<compile_context>
chip_gen: v5e
topology: v5e:2x2
jax: 0.10.0
libtpu: 0.0.40
codegen_flags: <defaults>
</compile_context>

<pallas_src>
import jax
import jax.numpy as jnp
from jax.experimental import pallas as pl
from jax.experimental.pallas import tpu as pltpu

_BN_EPS = 1e-5


def _round_up(x, m):
    return ((x + m - 1) // m) * m


def _pick_tile(size, candidates):
    for c in candidates:
        if size % c == 0:
            return c
    return candidates[-1]


# ----------------------------------------------------------------------------
# MXU matmul kernel: bf16 operands, f32 accumulation directly in the resident
# output block (its index_map ignores k, so it stays in VMEM across the K axis)
# ----------------------------------------------------------------------------

def _matmul_kernel(a_ref, b_ref, o_ref):
    @pl.when(pl.program_id(2) == 0)
    def _():
        o_ref[...] = jnp.zeros_like(o_ref)

    o_ref[...] += jnp.dot(a_ref[...], b_ref[...],
                          preferred_element_type=jnp.float32)


def pallas_matmul(a, b):
    """a: (M, Kp) bf16, Kp % 128 == 0; b: (Kp, Np) bf16, Np % 128 == 0.
    Returns (M, Np) float32."""
    M, Kp = a.shape
    Kp2, Np = b.shape
    assert Kp == Kp2 and Kp % 128 == 0 and Np % 128 == 0, (a.shape, b.shape)
    assert a.dtype == jnp.bfloat16 and b.dtype == jnp.bfloat16

    tn = 256 if Np % 256 == 0 else 128        # 256-wide MXU on v6e/v7x
    tk = _pick_tile(Kp, (512, 256, 128))
    tm = min(512, _round_up(M, 8))            # large tm cuts B re-fetch (v5e)
    Mp = _round_up(M, tm)
    # v7x has 2 TensorCores: prefer >=2 parallel output blocks (halve tm first,
    # then fall back to narrower tn).
    if (Mp // tm) * (Np // tn) < 2 and tm >= 16:
        tm = _round_up(tm // 2, 8)
        Mp = _round_up(M, tm)
    if (Mp // tm) * (Np // tn) < 2 and tn > 128:
        tn = 128
    if Mp != M:
        a = jnp.pad(a, ((0, Mp - M), (0, 0)))

    out = pl.pallas_call(
        _matmul_kernel,
        out_shape=jax.ShapeDtypeStruct((Mp, Np), jnp.float32),
        grid_spec=pltpu.PrefetchScalarGridSpec(
            num_scalar_prefetch=0,
            grid=(Mp // tm, Np // tn, Kp // tk),
            in_specs=[pl.BlockSpec((tm, tk), lambda i, j, k: (i, k)),
                      pl.BlockSpec((tk, tn), lambda i, j, k: (k, j))],
            out_specs=pl.BlockSpec((tm, tn), lambda i, j, k: (i, j))),
        compiler_params=pltpu.CompilerParams(
            dimension_semantics=("parallel", "parallel", "arbitrary")),
    )(a, b)
    return out[:M]


# ----------------------------------------------------------------------------
# Fused elementwise kernels (BN-fold + residual + ModReLU / ReLU)
# Per-channel parameter block layout (8, C):
#   complex: [a_rr, a_ii, a_ri, a_ir, c_r, c_i, modrelu_b, 0]
#   real:    [scale, shift, 0, 0, 0, 0, 0, 0]
# Math in f32; stores cast to the output ref dtype (bf16 for inter-stage).
# ----------------------------------------------------------------------------

def _cbn_modrelu_kernel(xr_ref, xi_ref, p_ref, yr_ref, yi_ref):
    xr = xr_ref[...].astype(jnp.float32)
    xi = xi_ref[...].astype(jnp.float32)
    p = p_ref[...]
    zr = xr * p[0:1] - xi * p[1:2] + p[4:5]
    zi = xr * p[2:3] + xi * p[3:4] + p[5:6]
    inv = jax.lax.rsqrt(zr * zr + zi * zi + 1e-12)
    scale = jnp.maximum(1.0 + p[6:7] * inv, 0.0)
    yr_ref[...] = (scale * zr).astype(yr_ref.dtype)
    yi_ref[...] = (scale * zi).astype(yi_ref.dtype)


def _cbn_res_modrelu_kernel(xr_ref, xi_ref, rr_ref, ri_ref, pm_ref, pr_ref,
                            yr_ref, yi_ref):
    xr = xr_ref[...].astype(jnp.float32)
    xi = xi_ref[...].astype(jnp.float32)
    rr = rr_ref[...].astype(jnp.float32)
    ri = ri_ref[...].astype(jnp.float32)
    pm = pm_ref[...]
    pr = pr_ref[...]
    zr = (xr * pm[0:1] - xi * pm[1:2] + pm[4:5]
          + rr * pr[0:1] - ri * pr[1:2] + pr[4:5])
    zi = (xr * pm[2:3] + xi * pm[3:4] + pm[5:6]
          + rr * pr[2:3] + ri * pr[3:4] + pr[5:6])
    inv = jax.lax.rsqrt(zr * zr + zi * zi + 1e-12)
    scale = jnp.maximum(1.0 + pm[6:7] * inv, 0.0)
    yr_ref[...] = (scale * zr).astype(yr_ref.dtype)
    yi_ref[...] = (scale * zi).astype(yi_ref.dtype)


def _cbn_res_modrelu_mag_kernel(xr_ref, xi_ref, rr_ref, ri_ref, pm_ref, pr_ref,
                                yr_ref, yi_ref, mag_ref):
    # Same as above but also emits |output| = scale * |z| (= scale*s*rsqrt(s)),
    # fusing the magnitude-stream input into this epilogue.
    xr = xr_ref[...].astype(jnp.float32)
    xi = xi_ref[...].astype(jnp.float32)
    rr = rr_ref[...].astype(jnp.float32)
    ri = ri_ref[...].astype(jnp.float32)
    pm = pm_ref[...]
    pr = pr_ref[...]
    zr = (xr * pm[0:1] - xi * pm[1:2] + pm[4:5]
          + rr * pr[0:1] - ri * pr[1:2] + pr[4:5])
    zi = (xr * pm[2:3] + xi * pm[3:4] + pm[5:6]
          + rr * pr[2:3] + ri * pr[3:4] + pr[5:6])
    s = zr * zr + zi * zi
    inv = jax.lax.rsqrt(s + 1e-12)
    scale = jnp.maximum(1.0 + pm[6:7] * inv, 0.0)
    yr_ref[...] = (scale * zr).astype(yr_ref.dtype)
    yi_ref[...] = (scale * zi).astype(yi_ref.dtype)
    mag_ref[...] = (scale * s * inv).astype(mag_ref.dtype)


def _bn_relu_kernel(x_ref, p_ref, y_ref):
    p = p_ref[...]
    x = x_ref[...].astype(jnp.float32)
    y_ref[...] = jnp.maximum(x * p[0:1] + p[1:2], 0.0).astype(y_ref.dtype)


def _bn_res_relu_kernel(x_ref, r_ref, pm_ref, pr_ref, y_ref):
    pm = pm_ref[...]
    pr = pr_ref[...]
    x = x_ref[...].astype(jnp.float32)
    r = r_ref[...].astype(jnp.float32)
    y = x * pm[0:1] + pm[1:2] + r * pr[0:1] + pr[1:2]
    y_ref[...] = jnp.maximum(y, 0.0).astype(y_ref.dtype)


def _eltwise_call(kernel, data, params, out_dtypes):
    """Blocked elementwise pallas_call.

    data:       list of (R, C) arrays (identical shapes, f32 or bf16).
    params:     list of (8, C) f32 per-channel parameter blocks.
    out_dtypes: list of output dtypes; outputs have shape (R, C).
    """
    R0, C0 = data[0].shape
    R, C = R0, C0
    # lane-densify narrow channel counts (e.g. C=64 -> 128 lanes) so stores
    # are full-width unmasked vst.
    f = 1
    if C < 128 and 128 % C == 0 and R % (128 // C) == 0:
        f = 128 // C
        data = [d.reshape(R // f, C * f) for d in data]
        params = [jnp.tile(p, (1, f)) for p in params]
        R, C = R // f, C * f

    # block rows: ~1 MiB of f32 per operand, capped so all live double-buffered
    # blocks stay well under the 16 MiB default scoped-VMEM limit on v5e.
    n_out = len(out_dtypes)
    nbuf = len(data) + n_out
    cap_rows = (12 << 20) // (nbuf * 2 * 4 * C)
    brows = min((1 << 20) // (4 * C), cap_rows)
    brows = max(8, (brows // 8) * 8)
    brows = min(brows, _round_up(R, 8))
    Rp = _round_up(R, brows)
    if Rp != R:
        data = [jnp.pad(d, ((0, Rp - R), (0, 0))) for d in data]

    data_spec = pl.BlockSpec((brows, C), lambda i: (i, 0))
    param_specs = [pl.BlockSpec(p.shape, lambda i: (0, 0)) for p in params]
    outs = pl.pallas_call(
        kernel,
        out_shape=tuple(jax.ShapeDtypeStruct((Rp, C), dt) for dt in out_dtypes),
        grid_spec=pltpu.PrefetchScalarGridSpec(
            num_scalar_prefetch=0,
            grid=(Rp // brows,),
            in_specs=[data_spec] * len(data) + param_specs,
            out_specs=tuple(data_spec for _ in range(n_out))),
        compiler_params=pltpu.CompilerParams(
            dimension_semantics=("parallel",)),
    )(*data, *params)
    if not isinstance(outs, (list, tuple)):
        outs = (outs,)
    outs = [o[:R] for o in outs]
    if f > 1:
        outs = [o.reshape(R0, C0) for o in outs]
    return outs


# ----------------------------------------------------------------------------
# BatchNorm folding (training-mode batch statistics -> per-channel affine)
# TODO(synk): PyTorch eval() mode would use running stats instead.
# ----------------------------------------------------------------------------

def _bn_fold_pack(x, gamma, beta):
    mean = jnp.mean(x, axis=0)
    var = jnp.var(x, axis=0)
    scale = jax.lax.rsqrt(var + _BN_EPS) * gamma
    shift = beta - mean * scale
    z = jnp.zeros_like(scale)
    return jnp.stack([scale, shift, z, z, z, z, z, z], axis=0)


def _identity_bn_pack(c):
    one = jnp.ones((c,), jnp.float32)
    zero = jnp.zeros((c,), jnp.float32)
    return jnp.stack([one, zero, zero, zero, zero, zero, zero, zero], axis=0)


def _cbn_fold_pack(xr, xi, bnp, relu_b=None):
    # naive complex BN: normalize re/im separately (batch stats), then the
    # complex affine (wr, wi, br, bi); all folded into 6 per-channel coeffs.
    mr = jnp.mean(xr, axis=0)
    vr = jnp.var(xr, axis=0)
    mi = jnp.mean(xi, axis=0)
    vi = jnp.var(xi, axis=0)
    ir = jax.lax.rsqrt(vr + _BN_EPS)
    ii = jax.lax.rsqrt(vi + _BN_EPS)
    a_rr = ir * bnp['wr']
    a_ii = ii * bnp['wi']
    a_ri = ir * bnp['wi']
    a_ir = ii * bnp['wr']
    c_r = bnp['br'] - mr * a_rr + mi * a_ii
    c_i = bnp['bi'] - mr * a_ri - mi * a_ir
    if relu_b is None:
        relu_b = jnp.zeros_like(c_r)
    return jnp.stack([a_rr, a_ii, a_ri, a_ir, c_r, c_i, relu_b,
                      jnp.zeros_like(c_r)], axis=0)


def _identity_cbn_pack(c):
    one = jnp.ones((c,), jnp.float32)
    zero = jnp.zeros((c,), jnp.float32)
    return jnp.stack([one, zero, zero, one, zero, zero, zero, zero], axis=0)


# ----------------------------------------------------------------------------
# Convolutions: bf16 im2col (built once, already K-aligned to the pre-padded
# weights) + one MXU matmul.  Complex conv = ONE packed matmul:
#   A = [cr | ci],  B = [[wr, wi], [-wi, wr]]  (B packed/padded/cast at init).
# ----------------------------------------------------------------------------

def _im2col_parts(x, kh, kw, stride, pad):
    x = x.astype(jnp.bfloat16)
    if pad:
        x = jnp.pad(x, ((0, 0), (pad, pad), (pad, pad), (0, 0)))
    n, h, w_, _ = x.shape
    ho = (h - kh) // stride + 1
    wo = (w_ - kw) // stride + 1
    parts = [x[:, i:i + stride * ho:stride, j:j + stride * wo:stride, :]
             for i in range(kh) for j in range(kw)]
    return parts, n, ho, wo


def _assemble_cols(parts, n, ho, wo, kp):
    k = sum(p.shape[-1] for p in parts)
    if kp > k:
        parts = parts + [jnp.zeros((n, ho, wo, kp - k), jnp.bfloat16)]
    return jnp.concatenate(parts, axis=-1).reshape(n * ho * wo, kp)


def conv2d(x, w, cout, kh, kw, stride=1, pad=0):
    """Real conv. x: (N,H,W,Cin); w: (Kp, Np) bf16 packed+padded at init."""
    parts, n, ho, wo = _im2col_parts(x, kh, kw, stride, pad)
    a = _assemble_cols(parts, n, ho, wo, w.shape[0])
    out = pallas_matmul(a, w)
    return out[:, :cout], ho, wo


def complex_conv2d(xr, xi, w, cout, kh, kw, stride=1, pad=0):
    """Complex conv as ONE matmul.  Returns (out_r, out_i) as (rows, cout)."""
    pr, n, ho, wo = _im2col_parts(xr, kh, kw, stride, pad)
    pi, _, _, _ = _im2col_parts(xi, kh, kw, stride, pad)
    a = _assemble_cols(pr + pi, n, ho, wo, w.shape[0])
    out = pallas_matmul(a, w)
    return out[:, :cout], out[:, cout:2 * cout], ho, wo


# ----------------------------------------------------------------------------
# Residual blocks
# ----------------------------------------------------------------------------

def complex_basic_block(xr, xi, p, stride, out_dtype=jnp.bfloat16,
                        emit_mag=False):
    n = xr.shape[0]
    cout = p['bn1']['wr'].shape[0]

    o_r, o_i, ho, wo = complex_conv2d(xr, xi, p['conv1_w'], cout, 3, 3,
                                      stride, 1)
    pm1 = _cbn_fold_pack(o_r, o_i, p['bn1'], p['relu1_b'])
    o_r, o_i = _eltwise_call(_cbn_modrelu_kernel, [o_r, o_i], [pm1],
                             [jnp.bfloat16, jnp.bfloat16])

    o_r4 = o_r.reshape(n, ho, wo, cout)
    o_i4 = o_i.reshape(n, ho, wo, cout)
    z_r, z_i, _, _ = complex_conv2d(o_r4, o_i4, p['conv2_w'], cout, 3, 3, 1, 1)
    pm2 = _cbn_fold_pack(z_r, z_i, p['bn2'], p['relu2_b'])

    if 'down_w' in p:
        r_r, r_i, _, _ = complex_conv2d(xr, xi, p['down_w'], cout, 1, 1,
                                        stride, 0)
        pr = _cbn_fold_pack(r_r, r_i, p['down_bn'])
    else:
        r_r = xr.reshape(-1, cout)
        r_i = xi.reshape(-1, cout)
        pr = _identity_cbn_pack(cout)

    if emit_mag:
        y_r, y_i, mag = _eltwise_call(
            _cbn_res_modrelu_mag_kernel, [z_r, z_i, r_r, r_i], [pm2, pr],
            [out_dtype, out_dtype, jnp.float32])
        return (y_r.reshape(n, ho, wo, cout), y_i.reshape(n, ho, wo, cout),
                mag.reshape(n, ho, wo, cout))

    y_r, y_i = _eltwise_call(_cbn_res_modrelu_kernel,
                             [z_r, z_i, r_r, r_i], [pm2, pr],
                             [out_dtype, out_dtype])
    return y_r.reshape(n, ho, wo, cout), y_i.reshape(n, ho, wo, cout)


def basic_block(x, p, stride, out_dtype=jnp.bfloat16):
    n = x.shape[0]
    cout = p['bn1_g'].shape[0]

    o, ho, wo = conv2d(x, p['conv1_w'], cout, 3, 3, stride, 1)
    pm1 = _bn_fold_pack(o, p['bn1_g'], p['bn1_b'])
    (o,) = _eltwise_call(_bn_relu_kernel, [o], [pm1], [jnp.bfloat16])

    o4 = o.reshape(n, ho, wo, cout)
    z, _, _ = conv2d(o4, p['conv2_w'], cout, 3, 3, 1, 1)
    pm2 = _bn_fold_pack(z, p['bn2_g'], p['bn2_b'])

    if 'down_w' in p:
        r, _, _ = conv2d(x, p['down_w'], cout, 1, 1, stride, 0)
        pr = _bn_fold_pack(r, p['down_g'], p['down_b'])
    else:
        r = x.reshape(-1, cout)
        pr = _identity_bn_pack(cout)

    (y,) = _eltwise_call(_bn_res_relu_kernel, [z, r], [pm2, pr], [out_dtype])
    return y.reshape(n, ho, wo, cout)


def _run_layer(x, blocks, stride, out_dtype=jnp.bfloat16):
    for i, blk in enumerate(blocks):
        x = basic_block(x, blk, stride if i == 0 else 1, out_dtype)
    return x


# ----------------------------------------------------------------------------
# Parameter init (deterministic, synthetic; conv weights pre-packed, pre-padded
# to (Kp, Np) with Kp,Np % 128 == 0, and pre-cast to bf16 at init time).
# ----------------------------------------------------------------------------

def _kaiming_conv(key, kh, kw, cin, cout):
    std = (2.0 / (cout * kh * kw)) ** 0.5     # kaiming_normal_, mode='fan_out'
    return std * jax.random.normal(key, (kh, kw, cin, cout), jnp.float32)


def _pack_real_weight(key, kh, kw, cin, cout):
    w = _kaiming_conv(key, kh, kw, cin, cout).reshape(-1, cout)
    kp = _round_up(w.shape[0], 128)
    np_ = _round_up(cout, 128)
    w = jnp.pad(w, ((0, kp - w.shape[0]), (0, np_ - cout)))
    return w.astype(jnp.bfloat16)


def _pack_complex_weight(key, kh, kw, cin, cout):
    k1, k2 = jax.random.split(key)
    wr = _kaiming_conv(k1, kh, kw, cin, cout).reshape(-1, cout)
    wi = _kaiming_conv(k2, kh, kw, cin, cout).reshape(-1, cout)
    top = jnp.concatenate([wr, wi], axis=1)
    bot = jnp.concatenate([-wi, wr], axis=1)
    w = jnp.concatenate([top, bot], axis=0)            # (2K, 2Cout)
    kp = _round_up(w.shape[0], 128)
    np_ = _round_up(w.shape[1], 128)
    w = jnp.pad(w, ((0, kp - w.shape[0]), (0, np_ - w.shape[1])))
    return w.astype(jnp.bfloat16)


def _dense_weight(key, cin, cout):
    std = (2.0 / cout) ** 0.5                  # kaiming fan_out for 1x1 / fc
    return std * jax.random.normal(key, (cin, cout), jnp.float32)


def _complex_bn_params(c):
    return {'wr': jnp.ones((c,), jnp.float32),
            'wi': jnp.zeros((c,), jnp.float32),
            'br': jnp.zeros((c,), jnp.float32),
            'bi': jnp.zeros((c,), jnp.float32)}


def _complex_block_params(keys, cin, cout, stride):
    p = {
        'conv1_w': _pack_complex_weight(next(keys), 3, 3, cin, cout),
        'bn1': _complex_bn_params(cout),
        'relu1_b': -0.1 * jnp.ones((cout,), jnp.float32),
        'conv2_w': _pack_complex_weight(next(keys), 3, 3, cout, cout),
        'bn2': _complex_bn_params(cout),
        'relu2_b': -0.1 * jnp.ones((cout,), jnp.float32),
    }
    if stride != 1 or cin != cout:
        p['down_w'] = _pack_complex_weight(next(keys), 1, 1, cin, cout)
        p['down_bn'] = _complex_bn_params(cout)
    return p


def _basic_block_params(keys, cin, cout, stride):
    p = {
        'conv1_w': _pack_real_weight(next(keys), 3, 3, cin, cout),
        'bn1_g': jnp.ones((cout,), jnp.float32),
        'bn1_b': jnp.zeros((cout,), jnp.float32),
        'conv2_w': _pack_real_weight(next(keys), 3, 3, cout, cout),
        'bn2_g': jnp.ones((cout,), jnp.float32),
        'bn2_b': jnp.zeros((cout,), jnp.float32),
    }
    if stride != 1 or cin != cout:
        p['down_w'] = _pack_real_weight(next(keys), 1, 1, cin, cout)
        p['down_g'] = jnp.ones((cout,), jnp.float32)
        p['down_b'] = jnp.zeros((cout,), jnp.float32)
    return p


def init_params(key, input_channels=4, num_classes=10):
    keys = iter(jax.random.split(key, 64))
    p = {}
    # initial_layer: ComplexConv2d(cin, 64, k7, s2, p3) + ComplexBN + ModReLU
    p['init'] = {
        'w': _pack_complex_weight(next(keys), 7, 7, input_channels, 64),
        'bn': _complex_bn_params(64),
        'relu_b': -0.1 * jnp.ones((64,), jnp.float32),
    }
    p['layer1'] = [_complex_block_params(keys, 64, 64, 1)]
    p['layer2'] = [_complex_block_params(keys, 64, 128, 2)]
    p['layer3_mag'] = [_basic_block_params(keys, 128, 256, 2)]
    p['layer3_phase'] = [_basic_block_params(keys, 128, 256, 2)]
    p['layer4_mag'] = [_basic_block_params(keys, 256, 512, 2)]
    p['layer4_phase'] = [_basic_block_params(keys, 256, 512, 2)]
    # attn_gate: Conv1x1(1024->512)+BN+ReLU+Conv1x1(512->2)+Softmax(channel)
    # TODO(synk): nn.Conv2d default (uniform) bias init replaced by zeros.
    p['attn'] = {
        'w1': _dense_weight(next(keys), 2 * 512, 512),
        'b1': jnp.zeros((512,), jnp.float32),
        'bn_g': jnp.ones((512,), jnp.float32),
        'bn_b': jnp.zeros((512,), jnp.float32),
        'w2': _dense_weight(next(keys), 512, 2),
        'b2': jnp.zeros((2,), jnp.float32),
    }
    p['fc'] = {
        'w': _dense_weight(next(keys), 512, num_classes),
        'b': jnp.zeros((num_classes,), jnp.float32),
    }
    return p


# ----------------------------------------------------------------------------
# Forward pass
# ----------------------------------------------------------------------------

def forward(params, x):
    """x: (N, C, H, W, 2) float32 — last dim is (real, imag), NCHW layout."""
    p = params
    n = x.shape[0]
    xr = jnp.transpose(x[..., 0], (0, 2, 3, 1))   # NCHW -> NHWC
    xi = jnp.transpose(x[..., 1], (0, 2, 3, 1))

    # initial_layer (ComplexConv + fused ComplexBN + ModReLU)
    o_r, o_i, ho, wo = complex_conv2d(xr, xi, p['init']['w'], 64, 7, 7, 2, 3)
    pm = _cbn_fold_pack(o_r, o_i, p['init']['bn'], p['init']['relu_b'])
    o_r, o_i = _eltwise_call(_cbn_modrelu_kernel, [o_r, o_i], [pm],
                             [jnp.bfloat16, jnp.bfloat16])
    xr = o_r.reshape(n, ho, wo, 64)
    xi = o_i.reshape(n, ho, wo, 64)

    # complex residual stages (layer2's last block also emits |z| fused)
    for blk in p['layer1']:
        xr, xi = complex_basic_block(xr, xi, blk, 1)
    blocks2 = p['layer2']
    for i, blk in enumerate(blocks2[:-1]):
        xr, xi = complex_basic_block(xr, xi, blk, 2 if i == 0 else 1)
    last_stride = 2 if len(blocks2) == 1 else 1
    xr, xi, mag = complex_basic_block(xr, xi, blocks2[-1], last_stride,
                                      out_dtype=jnp.float32, emit_mag=True)

    # TODO(synk): atan2 has no guaranteed Mosaic lowering; phase stays in XLA.
    phase = (jnp.arctan2(xi, xr) + jnp.pi) / (2.0 * jnp.pi)

    # real-valued dual streams
    out_mag = _run_layer(mag, p['layer3_mag'], 2)
    out_phase = _run_layer(phase, p['layer3_phase'], 2)
    out_mag = _run_layer(out_mag, p['layer4_mag'], 2)
    out_phase = _run_layer(out_phase, p['layer4_phase'], 2)

    # adaptive avg pool to 1x1 (f32 accumulation over bf16 activations)
    mag_pool = jnp.mean(out_mag, axis=(1, 2), dtype=jnp.float32)     # (N, 512)
    phase_pool = jnp.mean(out_phase, axis=(1, 2), dtype=jnp.float32)

    # attention gate (tiny matmuls: keep in XLA so they fuse)
    cat = jnp.concatenate([mag_pool, phase_pool], axis=-1)           # (N, 1024)
    a = cat @ p['attn']['w1'] + p['attn']['b1']
    mean = jnp.mean(a, axis=0)
    var = jnp.var(a, axis=0)
    a = ((a - mean) * jax.lax.rsqrt(var + _BN_EPS)
         * p['attn']['bn_g'] + p['attn']['bn_b'])
    a = jnp.maximum(a, 0.0)
    a = a @ p['attn']['w2'] + p['attn']['b2']                        # (N, 2)
    a = jax.nn.softmax(a, axis=-1)
    fused = a[:, 0:1] * mag_pool + a[:, 1:2] * phase_pool            # (N, 512)
    return fused @ p['fc']['w'] + p['fc']['b']                       # (N, cls)


# ----------------------------------------------------------------------------

if __name__ == "__main__":
    key = jax.random.PRNGKey(0)
    pkey, xkey = jax.random.split(key)
    params = init_params(pkey, input_channels=4, num_classes=10)
    # (N, C, H, W, 2): real/imag stacked on the last axis (the x.dim()==5 path)
    x = jax.random.normal(xkey, (2, 4, 16, 16, 2), dtype=jnp.float32)

    out = jax.jit(forward)(params, x)
    out = jax.block_until_ready(out)

    assert out.shape == (2, 10), out.shape
    assert bool(jnp.all(jnp.isfinite(out)))
    print("KERNEL_OK")
</pallas_src>

<mosaic_0001>
module attributes {stable_mosaic.version = 11 : i64} {
  func.func @_matmul_kernel(%arg0: i32, %arg1: i32, %arg2: i32, %arg3: memref<64x512xbf16, #tpu.memory_space<vmem>>, %arg4: memref<512x128xbf16, #tpu.memory_space<vmem>>, %arg5: memref<64x128xf32, #tpu.memory_space<vmem>>) attributes {dimension_semantics = [#tpu.dimension_semantics<parallel>, #tpu.dimension_semantics<parallel>, #tpu.dimension_semantics<arbitrary>], iteration_bounds = array<i64: 2, 1, 1>, scalar_prefetch = 0 : i64, scratch_operands = 0 : i64, tpu.core_type = #tpu.core_type<tc>, window_params = [{transform_indices = @transform_0, window_bounds = array<i64: 64, 512>}, {transform_indices = @transform_1, window_bounds = array<i64: 512, 128>}, {transform_indices = @transform_2, window_bounds = array<i64: 64, 128>}]} {
    %c0_i32 = arith.constant 0 : i32
    %0 = arith.cmpi eq, %arg2, %c0_i32 : i32
    %1 = arith.extui %0 : i1 to i32
    %c0_i32_0 = arith.constant 0 : i32
    %2 = arith.cmpi ne, %1, %c0_i32_0 : i32
    scf.if %2 {
      %cst_8 = arith.constant 0.000000e+00 : f32
      %9 = vector.broadcast %cst_8 : f32 to vector<64x128xf32>
      %c0_9 = arith.constant 0 : index
      %c0_10 = arith.constant 0 : index
      %10 = vector.load %arg5[%c0_9, %c0_10] : memref<64x128xf32, #tpu.memory_space<vmem>>, vector<64x128xf32>
      tpu.vector_store %arg5[%c0_9, %c0_10], %9 {strides = array<i32>} : memref<64x128xf32, #tpu.memory_space<vmem>>, vector<64x128xf32>,
    } else {
    }
    %c0 = arith.constant 0 : index
    %c0_1 = arith.constant 0 : index
    %3 = vector.load %arg5[%c0, %c0_1] : memref<64x128xf32, #tpu.memory_space<vmem>>, vector<64x128xf32>
    %c0_2 = arith.constant 0 : index
    %c0_3 = arith.constant 0 : index
    %4 = vector.load %arg3[%c0_2, %c0_3] : memref<64x512xbf16, #tpu.memory_space<vmem>>, vector<64x512xbf16>
    %c0_4 = arith.constant 0 : index
    %c0_5 = arith.constant 0 : index
    %5 = vector.load %arg4[%c0_4, %c0_5] : memref<512x128xbf16, #tpu.memory_space<vmem>>, vector<512x128xbf16>
    %cst = arith.constant dense<0.000000e+00> : vector<64x128xf32>
    %6 = tpu.matmul %4, %5, %cst {dimension_numbers = #tpu.dot_dimension_numbers<[1], [0], [0], [1], [0, 0, 1, 1], [], []>} : vector<64x512xbf16>, vector<512x128xbf16>, vector<64x128xf32> -> vector<64x128xf32>
    %7 = arith.addf %3, %6 : vector<64x128xf32>
    %c0_6 = arith.constant 0 : index
    %c0_7 = arith.constant 0 : index
    %8 = vector.load %arg5[%c0_6, %c0_7] : memref<64x128xf32, #tpu.memory_space<vmem>>, vector<64x128xf32>
    tpu.vector_store %arg5[%c0_6, %c0_7], %7 {strides = array<i32>} : memref<64x128xf32, #tpu.memory_space<vmem>>, vector<64x128xf32>,
    return
  }
  func.func @transform_0(%arg0: i32, %arg1: i32, %arg2: i32) -> (i32, i32) {
    %c0_i32 = arith.constant 0 : i32
    return %arg0, %arg2 : i32, i32
  }
  func.func @transform_1(%arg0: i32, %arg1: i32, %arg2: i32) -> (i32, i32) {
    %c0_i32 = arith.constant 0 : i32
    return %arg2, %arg1 : i32, i32
  }
  func.func @transform_2(%arg0: i32, %arg1: i32, %arg2: i32) -> (i32, i32) {
    %c0_i32 = arith.constant 0 : i32
    return %arg0, %arg1 : i32, i32
  }
}

module attributes {stable_mosaic.version = 11 : i64} {
  func.func @_cbn_modrelu_kernel(%arg0: i32, %arg1: memref<64x128xf32, #tpu.memory_space<vmem>>, %arg2: memref<64x128xf32, #tpu.memory_space<vmem>>, %arg3: memref<8x128xf32, #tpu.memory_space<vmem>>, %arg4: memref<64x128xbf16, #tpu.memory_space<vmem>>, %arg5: memref<64x128xbf16, #tpu.memory_space<vmem>>) attributes {dimension_semantics = [#tpu.dimension_semantics<parallel>], iteration_bounds = array<i64: 1>, scalar_prefetch = 0 : i64, scratch_operands = 0 : i64, tpu.core_type = #tpu.core_type<tc>, window_params = [{transform_indices = @transform_0, window_bounds = array<i64: 64, 128>}, {transform_indices = @transform_1, window_bounds = array<i64: 64, 128>}, {pipeline_mode = #tpu.pipeline_mode<synchronous>, transform_indices = @transform_2, window_bounds = array<i64: 8, 128>}, {transform_indices = @transform_3, window_bounds = array<i64: 64, 128>}, {transform_indices = @transform_4, window_bounds = array<i64: 64, 128>}]} {
    %c0 = arith.constant 0 : index
    %c0_0 = arith.constant 0 : index
    %0 = vector.load %arg1[%c0, %c0_0] : memref<64x128xf32, #tpu.memory_space<vmem>>, vector<64x128xf32>
    %c0_1 = arith.constant 0 : index
    %c0_2 = arith.constant 0 : index
    %1 = vector.load %arg2[%c0_1, %c0_2] : memref<64x128xf32, #tpu.memory_space<vmem>>, vector<64x128xf32>
    %c0_3 = arith.constant 0 : index
    %c0_4 = arith.constant 0 : index
    %2 = vector.load %arg3[%c0_3, %c0_4] : memref<8x128xf32, #tpu.memory_space<vmem>>, vector<8x128xf32>
    %3 = vector.extract_strided_slice %2 {offsets = [0, 0], sizes = [1, 128], strides = [1, 1]} : vector<8x128xf32> to vector<1x128xf32>
    %4 = vector.broadcast %3 : vector<1x128xf32> to vector<64x128xf32>
    %5 = arith.mulf %0, %4 : vector<64x128xf32>
    %6 = vector.extract_strided_slice %2 {offsets = [1, 0], sizes = [1, 128], strides = [1, 1]} : vector<8x128xf32> to vector<1x128xf32>
    %7 = vector.broadcast %6 : vector<1x128xf32> to vector<64x128xf32>
    %8 = arith.mulf %1, %7 : vector<64x128xf32>
    %9 = arith.subf %5, %8 : vector<64x128xf32>
    %10 = vector.extract_strided_slice %2 {offsets = [4, 0], sizes = [1, 128], strides = [1, 1]} : vector<8x128xf32> to vector<1x128xf32>
    %11 = vector.broadcast %10 : vector<1x128xf32> to vector<64x128xf32>
    %12 = arith.addf %9, %11 : vector<64x128xf32>
    %13 = vector.extract_strided_slice %2 {offsets = [2, 0], sizes = [1, 128], strides = [1, 1]} : vector<8x128xf32> to vector<1x128xf32>
    %14 = vector.broadcast %13 : vector<1x128xf32> to vector<64x128xf32>
    %15 = arith.mulf %0, %14 : vector<64x128xf32>
    %16 = vector.extract_strided_slice %2 {offsets = [3, 0], sizes = [1, 128], strides = [1, 1]} : vector<8x128xf32> to vector<1x128xf32>
    %17 = vector.broadcast %16 : vector<1x128xf32> to vector<64x128xf32>
    %18 = arith.mulf %1, %17 : vector<64x128xf32>
    %19 = arith.addf %15, %18 : vector<64x128xf32>
    %20 = vector.extract_strided_slice %2 {offsets = [5, 0], sizes = [1, 128], strides = [1, 1]} : vector<8x128xf32> to vector<1x128xf32>
    %21 = vector.broadcast %20 : vector<1x128xf32> to vector<64x128xf32>
    %22 = arith.addf %19, %21 : vector<64x128xf32>
    %23 = arith.mulf %12, %12 : vector<64x128xf32>
    %24 = arith.mulf %22, %22 : vector<64x128xf32>
    %25 = arith.addf %23, %24 : vector<64x128xf32>
    %cst = arith.constant 9.99999996E-13 : f32
    %26 = vector.broadcast %cst : f32 to vector<64x128xf32>
    %27 = arith.addf %25, %26 : vector<64x128xf32>
    %28 = math.rsqrt %27 : vector<64x128xf32>
    %29 = vector.extract_strided_slice %2 {offsets = [6, 0], sizes = [1, 128], strides = [1, 1]} : vector<8x128xf32> to vector<1x128xf32>
    %30 = vector.broadcast %29 : vector<1x128xf32> to vector<64x128xf32>
    %31 = arith.mulf %30, %28 : vector<64x128xf32>
    %cst_5 = arith.constant 1.000000e+00 : f32
    %32 = vector.broadcast %cst_5 : f32 to vector<64x128xf32>
    %33 = arith.addf %32, %31 : vector<64x128xf32>
    %cst_6 = arith.constant 0.000000e+00 : f32
    %34 = vector.broadcast %cst_6 : f32 to vector<64x128xf32>
    %35 = arith.maximumf %33, %34 : vector<64x128xf32>
    %36 = arith.mulf %35, %12 : vector<64x128xf32>
    %37 = arith.truncf %36 : vector<64x128xf32> to vector<64x128xbf16>
    %c0_7 = arith.constant 0 : index
    %c0_8 = arith.constant 0 : index
    %38 = vector.load %arg4[%c0_7, %c0_8] : memref<64x128xbf16, #tpu.memory_space<vmem>>, vector<64x128xbf16>
    tpu.vector_store %arg4[%c0_7, %c0_8], %37 {strides = array<i32>} : memref<64x128xbf16, #tpu.memory_space<vmem>>, vector<64x128xbf16>,
    %39 = arith.mulf %35, %22 : vector<64x128xf32>
    %40 = arith.truncf %39 : vector<64x128xf32> to vector<64x128xbf16>
    %c0_9 = arith.constant 0 : index
    %c0_10 = arith.constant 0 : index
    %41 = vector.load %arg5[%c0_9, %c0_10] : memref<64x128xbf16, #tpu.memory_space<vmem>>, vector<64x128xbf16>
    tpu.vector_store %arg5[%c0_9, %c0_10], %40 {strides = array<i32>} : memref<64x128xbf16, #tpu.memory_space<vmem>>, vector<64x128xbf16>,
    return
  }
  func.func @transform_0(%arg0: i32) -> (i32, i32) {
    %c0_i32 = arith.constant 0 : i32
    %c0_i32_0 = arith.constant 0 : i32
    return %arg0, %c0_i32 : i32, i32
  }
  func.func @transform_1(%arg0: i32) -> (i32, i32) {
    %c0_i32 = arith.constant 0 : i32
    %c0_i32_0 = arith.constant 0 : i32
    return %arg0, %c0_i32 : i32, i32
  }
  func.func @transform_2(%arg0: i32) -> (i32, i32) {
    %c0_i32 = arith.constant 0 : i32
    %c0_i32_0 = arith.constant 0 : i32
    %c0_i32_1 = arith.constant 0 : i32
    return %c0_i32, %c0_i32_0 : i32, i32
  }
  func.func @transform_3(%arg0: i32) -> (i32, i32) {
    %c0_i32 = arith.constant 0 : i32
    %c0_i32_0 = arith.constant 0 : i32
    return %arg0, %c0_i32 : i32, i32
  }
  func.func @transform_4(%arg0: i32) -> (i32, i32) {
    %c0_i32 = arith.constant 0 : i32
    %c0_i32_0 = arith.constant 0 : i32
    return %arg0, %c0_i32 : i32, i32
  }
}

module attributes {stable_mosaic.version = 11 : i64} {
  func.func @_matmul_kernel(%arg0: i32, %arg1: i32, %arg2: i32, %arg3: memref<64x128xbf16, #tpu.memory_space<vmem>>, %arg4: memref<128x128xbf16, #tpu.memory_space<vmem>>, %arg5: memref<64x128xf32, #tpu.memory_space<vmem>>) attributes {dimension_semantics = [#tpu.dimension_semantics<parallel>, #tpu.dimension_semantics<parallel>, #tpu.dimension_semantics<arbitrary>], iteration_bounds = array<i64: 2, 1, 9>, scalar_prefetch = 0 : i64, scratch_operands = 0 : i64, tpu.core_type = #tpu.core_type<tc>, window_params = [{transform_indices = @transform_0, window_bounds = array<i64: 64, 128>}, {transform_indices = @transform_1, window_bounds = array<i64: 128, 128>}, {transform_indices = @transform_2, window_bounds = array<i64: 64, 128>}]} {
    %c0_i32 = arith.constant 0 : i32
    %0 = arith.cmpi eq, %arg2, %c0_i32 : i32
    %1 = arith.extui %0 : i1 to i32
    %c0_i32_0 = arith.constant 0 : i32
    %2 = arith.cmpi ne, %1, %c0_i32_0 : i32
    scf.if %2 {
      %cst_8 = arith.constant 0.000000e+00 : f32
      %9 = vector.broadcast %cst_8 : f32 to vector<64x128xf32>
      %c0_9 = arith.constant 0 : index
      %c0_10 = arith.constant 0 : index
      %10 = vector.load %arg5[%c0_9, %c0_10] : memref<64x128xf32, #tpu.memory_space<vmem>>, vector<64x128xf32>
      tpu.vector_store %arg5[%c0_9, %c0_10], %9 {strides = array<i32>} : memref<64x128xf32, #tpu.memory_space<vmem>>, vector<64x128xf32>,
    } else {
    }
    %c0 = arith.constant 0 : index
    %c0_1 = arith.constant 0 : index
    %3 = vector.load %arg5[%c0, %c0_1] : memref<64x128xf32, #tpu.memory_space<vmem>>, vector<64x128xf32>
    %c0_2 = arith.constant 0 : index
    %c0_3 = arith.constant 0 : index
    %4 = vector.load %arg3[%c0_2, %c0_3] : memref<64x128xbf16, #tpu.memory_space<vmem>>, vector<64x128xbf16>
    %c0_4 = arith.constant 0 : index
    %c0_5 = arith.constant 0 : index
    %5 = vector.load %arg4[%c0_4, %c0_5] : memref<128x128xbf16, #tpu.memory_space<vmem>>, vector<128x128xbf16>
    %cst = arith.constant dense<0.000000e+00> : vector<64x128xf32>
    %6 = tpu.matmul %4, %5, %cst {dimension_numbers = #tpu.dot_dimension_numbers<[1], [0], [0], [1], [0, 0, 1, 1], [], []>} : vector<64x128xbf16>, vector<128x128xbf16>, vector<64x128xf32> -> vector<64x128xf32>
    %7 = arith.addf %3, %6 : vector<64x128xf32>
    %c0_6 = arith.constant 0 : index
    %c0_7 = arith.constant 0 : index
    %8 = vector.load %arg5[%c0_6, %c0_7] : memref<64x128xf32, #tpu.memory_space<vmem>>, vector<64x128xf32>
    tpu.vector_store %arg5[%c0_6, %c0_7], %7 {strides = array<i32>} : memref<64x128xf32, #tpu.memory_space<vmem>>, vector<64x128xf32>,
    return
  }
  func.func @transform_0(%arg0: i32, %arg1: i32, %arg2: i32) -> (i32, i32) {
    %c0_i32 = arith.constant 0 : i32
    return %arg0, %arg2 : i32, i32
  }
  func.func @transform_1(%arg0: i32, %arg1: i32, %arg2: i32) -> (i32, i32) {
    %c0_i32 = arith.constant 0 : i32
    return %arg2, %arg1 : i32, i32
  }
  func.func @transform_2(%arg0: i32, %arg1: i32, %arg2: i32) -> (i32, i32) {
    %c0_i32 = arith.constant 0 : i32
    return %arg0, %arg1 : i32, i32
  }
}

module attributes {stable_mosaic.version = 11 : i64} {
  func.func @_matmul_kernel(%arg0: i32, %arg1: i32, %arg2: i32, %arg3: memref<64x128xbf16, #tpu.memory_space<vmem>>, %arg4: memref<128x128xbf16, #tpu.memory_space<vmem>>, %arg5: memref<64x128xf32, #tpu.memory_space<vmem>>) attributes {dimension_semantics = [#tpu.dimension_semantics<parallel>, #tpu.dimension_semantics<parallel>, #tpu.dimension_semantics<arbitrary>], iteration_bounds = array<i64: 2, 1, 9>, scalar_prefetch = 0 : i64, scratch_operands = 0 : i64, tpu.core_type = #tpu.core_type<tc>, window_params = [{transform_indices = @transform_0, window_bounds = array<i64: 64, 128>}, {transform_indices = @transform_1, window_bounds = array<i64: 128, 128>}, {transform_indices = @transform_2, window_bounds = array<i64: 64, 128>}]} {
    %c0_i32 = arith.constant 0 : i32
    %0 = arith.cmpi eq, %arg2, %c0_i32 : i32
    %1 = arith.extui %0 : i1 to i32
    %c0_i32_0 = arith.constant 0 : i32
    %2 = arith.cmpi ne, %1, %c0_i32_0 : i32
    scf.if %2 {
      %cst_8 = arith.constant 0.000000e+00 : f32
      %9 = vector.broadcast %cst_8 : f32 to vector<64x128xf32>
      %c0_9 = arith.constant 0 : index
      %c0_10 = arith.constant 0 : index
      %10 = vector.load %arg5[%c0_9, %c0_10] : memref<64x128xf32, #tpu.memory_space<vmem>>, vector<64x128xf32>
      tpu.vector_store %arg5[%c0_9, %c0_10], %9 {strides = array<i32>} : memref<64x128xf32, #tpu.memory_space<vmem>>, vector<64x128xf32>,
    } else {
    }
    %c0 = arith.constant 0 : index
    %c0_1 = arith.constant 0 : index
    %3 = vector.load %arg5[%c0, %c0_1] : memref<64x128xf32, #tpu.memory_space<vmem>>, vector<64x128xf32>
    %c0_2 = arith.constant 0 : index
    %c0_3 = arith.constant 0 : index
    %4 = vector.load %arg3[%c0_2, %c0_3] : memref<64x128xbf16, #tpu.memory_space<vmem>>, vector<64x128xbf16>
    %c0_4 = arith.constant 0 : index
    %c0_5 = arith.constant 0 : index
    %5 = vector.load %arg4[%c0_4, %c0_5] : memref<128x128xbf16, #tpu.memory_space<vmem>>, vector<128x128xbf16>
    %cst = arith.constant dense<0.000000e+00> : vector<64x128xf32>
    %6 = tpu.matmul %4, %5, %cst {dimension_numbers = #tpu.dot_dimension_numbers<[1], [0], [0], [1], [0, 0, 1, 1], [], []>} : vector<64x128xbf16>, vector<128x128xbf16>, vector<64x128xf32> -> vector<64x128xf32>
    %7 = arith.addf %3, %6 : vector<64x128xf32>
    %c0_6 = arith.constant 0 : index
    %c0_7 = arith.constant 0 : index
    %8 = vector.load %arg5[%c0_6, %c0_7] : memref<64x128xf32, #tpu.memory_space<vmem>>, vector<64x128xf32>
    tpu.vector_store %arg5[%c0_6, %c0_7], %7 {strides = array<i32>} : memref<64x128xf32, #tpu.memory_space<vmem>>, vector<64x128xf32>,
    return
  }
  func.func @transform_0(%arg0: i32, %arg1: i32, %arg2: i32) -> (i32, i32) {
    %c0_i32 = arith.constant 0 : i32
    return %arg0, %arg2 : i32, i32
  }
  func.func @transform_1(%arg0: i32, %arg1: i32, %arg2: i32) -> (i32, i32) {
    %c0_i32 = arith.constant 0 : i32
    return %arg2, %arg1 : i32, i32
  }
  func.func @transform_2(%arg0: i32, %arg1: i32, %arg2: i32) -> (i32, i32) {
    %c0_i32 = arith.constant 0 : i32
    return %arg0, %arg1 : i32, i32
  }
}

module attributes {stable_mosaic.version = 11 : i64} {
  func.func @_cbn_res_modrelu_kernel(%arg0: i32, %arg1: memref<64x128xf32, #tpu.memory_space<vmem>>, %arg2: memref<64x128xf32, #tpu.memory_space<vmem>>, %arg3: memref<64x128xbf16, #tpu.memory_space<vmem>>, %arg4: memref<64x128xbf16, #tpu.memory_space<vmem>>, %arg5: memref<8x128xf32, #tpu.memory_space<vmem>>, %arg6: memref<8x128xf32, #tpu.memory_space<vmem>>, %arg7: memref<64x128xbf16, #tpu.memory_space<vmem>>, %arg8: memref<64x128xbf16, #tpu.memory_space<vmem>>) attributes {dimension_semantics = [#tpu.dimension_semantics<parallel>], iteration_bounds = array<i64: 1>, scalar_prefetch = 0 : i64, scratch_operands = 0 : i64, tpu.core_type = #tpu.core_type<tc>, window_params = [{transform_indices = @transform_0, window_bounds = array<i64: 64, 128>}, {transform_indices = @transform_1, window_bounds = array<i64: 64, 128>}, {transform_indices = @transform_2, window_bounds = array<i64: 64, 128>}, {transform_indices = @transform_3, window_bounds = array<i64: 64, 128>}, {pipeline_mode = #tpu.pipeline_mode<synchronous>, transform_indices = @transform_4, window_bounds = array<i64: 8, 128>}, {pipeline_mode = #tpu.pipeline_mode<synchronous>, transform_indices = @transform_5, window_bounds = array<i64: 8, 128>}, {transform_indices = @transform_6, window_bounds = array<i64: 64, 128>}, {transform_indices = @transform_7, window_bounds = array<i64: 64, 128>}]} {
    %c0 = arith.constant 0 : index
    %c0_0 = arith.constant 0 : index
    %0 = vector.load %arg1[%c0, %c0_0] : memref<64x128xf32, #tpu.memory_space<vmem>>, vector<64x128xf32>
    %c0_1 = arith.constant 0 : index
    %c0_2 = arith.constant 0 : index
    %1 = vector.load %arg2[%c0_1, %c0_2] : memref<64x128xf32, #tpu.memory_space<vmem>>, vector<64x128xf32>
    %c0_3 = arith.constant 0 : index
    %c0_4 = arith.constant 0 : index
    %2 = vector.load %arg3[%c0_3, %c0_4] : memref<64x128xbf16, #tpu.memory_space<vmem>>, vector<64x128xbf16>
    %3 = arith.extf %2 : vector<64x128xbf16> to vector<64x128xf32>
    %c0_5 = arith.constant 0 : index
    %c0_6 = arith.constant 0 : index
    %4 = vector.load %arg4[%c0_5, %c0_6] : memref<64x128xbf16, #tpu.memory_space<vmem>>, vector<64x128xbf16>
    %5 = arith.extf %4 : vector<64x128xbf16> to vector<64x128xf32>
    %c0_7 = arith.constant 0 : index
    %c0_8 = arith.constant 0 : index
    %6 = vector.load %arg5[%c0_7, %c0_8] : memref<8x128xf32, #tpu.memory_space<vmem>>, vector<8x128xf32>
    %c0_9 = arith.constant 0 : index
    %c0_10 = arith.constant 0 : index
    %7 = vector.load %arg6[%c0_9, %c0_10] : memref<8x128xf32, #tpu.memory_space<vmem>>, vector<8x128xf32>
    %8 = vector.extract_strided_slice %6 {offsets = [0, 0], sizes = [1, 128], strides = [1, 1]} : vector<8x128xf32> to vector<1x128xf32>
    %9 = vector.broadcast %8 : vector<1x128xf32> to vector<64x128xf32>
    %10 = arith.mulf %0, %9 : vector<64x128xf32>
    %11 = vector.extract_strided_slice %6 {offsets = [1, 0], sizes = [1, 128], strides = [1, 1]} : vector<8x128xf32> to vector<1x128xf32>
    %12 = vector.broadcast %11 : vector<1x128xf32> to vector<64x128xf32>
    %13 = arith.mulf %1, %12 : vector<64x128xf32>
    %14 = arith.subf %10, %13 : vector<64x128xf32>
    %15 = vector.extract_strided_slice %6 {offsets = [4, 0], sizes = [1, 128], strides = [1, 1]} : vector<8x128xf32> to vector<1x128xf32>
    %16 = vector.broadcast %15 : vector<1x128xf32> to vector<64x128xf32>
    %17 = arith.addf %14, %16 : vector<64x128xf32>
    %18 = vector.extract_strided_slice %7 {offsets = [0, 0], sizes = [1, 128], strides = [1, 1]} : vector<8x128xf32> to vector<1x128xf32>
    %19 = vector.broadcast %18 : vector<1x128xf32> to vector<64x128xf32>
    %20 = arith.mulf %3, %19 : vector<64x128xf32>
    %21 = arith.addf %17, %20 : vector<64x128xf32>
    %22 = vector.extract_strided_slice %7 {offsets = [1, 0], sizes = [1, 128], strides = [1, 1]} : vector<8x128xf32> to vector<1x128xf32>
    %23 = vector.broadcast %22 : vector<1x128xf32> to vector<64x128xf32>
    %24 = arith.mulf %5, %23 : vector<64x128xf32>
    %25 = arith.subf %21, %24 : vector<64x128xf32>
    %26 = vector.extract_strided_slice %7 {offsets = [4, 0], sizes = [1, 128], strides = [1, 1]} : vector<8x128xf32> to vector<1x128xf32>
    %27 = vector.broadcast %26 : vector<1x128xf32> to vector<64x128xf32>
    %28 = arith.addf %25, %27 : vector<64x128xf32>
    %29 = vector.extract_strided_slice %6 {offsets = [2, 0], sizes = [1, 128], strides = [1, 1]} : vector<8x128xf32> to vector<1x128xf32>
    %30 = vector.broadcast %29 : vector<1x128xf32> to vector<64x128xf32>
    %31 = arith.mulf %0, %30 : vector<64x128xf32>
    %32 = vector.extract_strided_slice %6 {offsets = [3, 0], sizes = [1, 128], strides = [1, 1]} : vector<8x128xf32> to vector<1x128xf32>
    %33 = vector.broadcast %32 : vector<1x128xf32> to vector<64x128xf32>
    %34 = arith.mulf %1, %33 : vector<64x128xf32>
    %35 = arith.addf %31, %34 : vector<64x128xf32>
    %36 = vector.extract_strided_slice %6 {offsets = [5, 0], sizes = [1, 128], strides = [1, 1]} : vector<8x128xf32> to vector<1x128xf32>
    %37 = vector.broadcast %36 : vector<1x128xf32> to vector<64x128xf32>
    %38 = arith.addf %35, %37 : vector<64x128xf32>
    %39 = vector.extract_strided_slice %7 {offsets = [2, 0], sizes = [1, 128], strides = [1, 1]} : vector<8x128xf32> to vector<1x128xf32>
    %40 = vector.broadcast %39 : vector<1x128xf32> to vector<64x128xf32>
    %41 = arith.mulf %3, %40 : vector<64x128xf32>
    %42 = arith.addf %38, %41 : vector<64x128xf32>
    %43 = vector.extract_strided_slice %7 {offsets = [3, 0], sizes = [1, 128], strides = [1, 1]} : vector<8x128xf32> to vector<1x128xf32>
    %44 = vector.broadcast %43 : vector<1x128xf32> to vector<64x128xf32>
    %45 = arith.mulf %5, %44 : vector<64x128xf32>
    %46 = arith.addf %42, %45 : vector<64x128xf32>
    %47 = vector.extract_strided_slice %7 {offsets = [5, 0], sizes = [1, 128], strides = [1, 1]} : vector<8x128xf32> to vector<1x128xf32>
    %48 = vector.broadcast %47 : vector<1x128xf32> to vector<64x128xf32>
    %49 = arith.addf %46, %48 : vector<64x128xf32>
    %50 = arith.mulf %28, %28 : vector<64x128xf32>
    %51 = arith.mulf %49, %49 : vector<64x128xf32>
    %52 = arith.addf %50, %51 : vector<64x128xf32>
    %cst = arith.constant 9.99999996E-13 : f32
    %53 = vector.broadcast %cst : f32 to vector<64x128xf32>
    %54 = arith.addf %52, %53 : vector<64x128xf32>
    %55 = math.rsqrt %54 : vector<64x128xf32>
    %56 = vector.extract_strided_slice %6 {offsets = [6, 0], sizes = [1, 128], strides = [1, 1]} : vector<8x128xf32> to vector<1x128xf32>
    %57 = vector.broadcast %56 : vector<1x128xf32> to vector<64x128xf32>
    %58 = arith.mulf %57, %55 : vector<64x128xf32>
    %cst_11 = arith.constant 1.000000e+00 : f32
    %59 = vector.broadcast %cst_11 : f32 to vector<64x128xf32>
    %60 = arith.addf %59, %58 : vector<64x128xf32>
    %cst_12 = arith.constant 0.000000e+00 : f32
    %61 = vector.broadcast %cst_12 : f32 to vector<64x128xf32>
    %62 = arith.maximumf %60, %61 : vector<64x128xf32>
    %63 = arith.mulf %62, %28 : vector<64x128xf32>
    %64 = arith.truncf %63 : vector<64x128xf32> to vector<64x128xbf16>
    %c0_13 = arith.constant 0 : index
    %c0_14 = arith.constant 0 : index
    %65 = vector.load %arg7[%c0_13, %c0_14] : memref<64x128xbf16, #tpu.memory_space<vmem>>, vector<64x128xbf16>
    tpu.vector_store %arg7[%c0_13, %c0_14], %64 {strides = array<i32>} : memref<64x128xbf16, #tpu.memory_space<vmem>>, vector<64x128xbf16>,
    %66 = arith.mulf %62, %49 : vector<64x128xf32>
    %67 = arith.truncf %66 : vector<64x128xf32> to vector<64x128xbf16>
    %c0_15 = arith.constant 0 : index
    %c0_16 = arith.constant 0 : index
    %68 = vector.load %arg8[%c0_15, %c0_16] : memref<64x128xbf16, #tpu.memory_space<vmem>>, vector<64x128xbf16>
    tpu.vector_store %arg8[%c0_15, %c0_16], %67 {strides = array<i32>} : memref<64x128xbf16, #tpu.memory_space<vmem>>, vector<64x128xbf16>,
    return
  }
  func.func @transform_0(%arg0: i32) -> (i32, i32) {
    %c0_i32 = arith.constant 0 : i32
    %c0_i32_0 = arith.constant 0 : i32
    return %arg0, %c0_i32 : i32, i32
  }
  func.func @transform_1(%arg0: i32) -> (i32, i32) {
    %c0_i32 = arith.constant 0 : i32
    %c0_i32_0 = arith.constant 0 : i32
    return %arg0, %c0_i32 : i32, i32
  }
  func.func @transform_2(%arg0: i32) -> (i32, i32) {
    %c0_i32 = arith.constant 0 : i32
    %c0_i32_0 = arith.constant 0 : i32
    return %arg0, %c0_i32 : i32, i32
  }
  func.func @transform_3(%arg0: i32) -> (i32, i32) {
    %c0_i32 = arith.constant 0 : i32
    %c0_i32_0 = arith.constant 0 : i32
    return %arg0, %c0_i32 : i32, i32
  }
  func.func @transform_4(%arg0: i32) -> (i32, i32) {
    %c0_i32 = arith.constant 0 : i32
    %c0_i32_0 = arith.constant 0 : i32
    %c0_i32_1 = arith.constant 0 : i32
    return %c0_i32, %c0_i32_0 : i32, i32
  }
  func.func @transform_5(%arg0: i32) -> (i32, i32) {
    %c0_i32 = arith.constant 0 : i32
    %c0_i32_0 = arith.constant 0 : i32
    %c0_i32_1 = arith.constant 0 : i32
    return %c0_i32, %c0_i32_0 : i32, i32
  }
  func.func @transform_6(%arg0: i32) -> (i32, i32) {
    %c0_i32 = arith.constant 0 : i32
    %c0_i32_0 = arith.constant 0 : i32
    return %arg0, %c0_i32 : i32, i32
  }
  func.func @transform_7(%arg0: i32) -> (i32, i32) {
    %c0_i32 = arith.constant 0 : i32
    %c0_i32_0 = arith.constant 0 : i32
    return %arg0, %c0_i32 : i32, i32
  }
}

module attributes {stable_mosaic.version = 11 : i64} {
  func.func @_matmul_kernel(%arg0: i32, %arg1: i32, %arg2: i32, %arg3: memref<16x128xbf16, #tpu.memory_space<vmem>>, %arg4: memref<128x256xbf16, #tpu.memory_space<vmem>>, %arg5: memref<16x256xf32, #tpu.memory_space<vmem>>) attributes {dimension_semantics = [#tpu.dimension_semantics<parallel>, #tpu.dimension_semantics<parallel>, #tpu.dimension_semantics<arbitrary>], iteration_bounds = array<i64: 2, 1, 1>, scalar_prefetch = 0 : i64, scratch_operands = 0 : i64, tpu.core_type = #tpu.core_type<tc>, window_params = [{transform_indices = @transform_0, window_bounds = array<i64: 16, 128>}, {transform_indices = @transform_1, window_bounds = array<i64: 128, 256>}, {transform_indices = @transform_2, window_bounds = array<i64: 16, 256>}]} {
    %c0_i32 = arith.constant 0 : i32
    %0 = arith.cmpi eq, %arg2, %c0_i32 : i32
    %1 = arith.extui %0 : i1 to i32
    %c0_i32_0 = arith.constant 0 : i32
    %2 = arith.cmpi ne, %1, %c0_i32_0 : i32
    scf.if %2 {
      %cst_8 = arith.constant 0.000000e+00 : f32
      %9 = vector.broadcast %cst_8 : f32 to vector<16x256xf32>
      %c0_9 = arith.constant 0 : index
      %c0_10 = arith.constant 0 : index
      %10 = vector.load %arg5[%c0_9, %c0_10] : memref<16x256xf32, #tpu.memory_space<vmem>>, vector<16x256xf32>
      tpu.vector_store %arg5[%c0_9, %c0_10], %9 {strides = array<i32>} : memref<16x256xf32, #tpu.memory_space<vmem>>, vector<16x256xf32>,
    } else {
    }
    %c0 = arith.constant 0 : index
    %c0_1 = arith.constant 0 : index
    %3 = vector.load %arg5[%c0, %c0_1] : memref<16x256xf32, #tpu.memory_space<vmem>>, vector<16x256xf32>
    %c0_2 = arith.constant 0 : index
    %c0_3 = arith.constant 0 : index
    %4 = vector.load %arg3[%c0_2, %c0_3] : memref<16x128xbf16, #tpu.memory_space<vmem>>, vector<16x128xbf16>
    %c0_4 = arith.constant 0 : index
    %c0_5 = arith.constant 0 : index
    %5 = vector.load %arg4[%c0_4, %c0_5] : memref<128x256xbf16, #tpu.memory_space<vmem>>, vector<128x256xbf16>
    %cst = arith.constant dense<0.000000e+00> : vector<16x256xf32>
    %6 = tpu.matmul %4, %5, %cst {dimension_numbers = #tpu.dot_dimension_numbers<[1], [0], [0], [1], [0, 0, 1, 1], [], []>} : vector<16x128xbf16>, vector<128x256xbf16>, vector<16x256xf32> -> vector<16x256xf32>
    %7 = arith.addf %3, %6 : vector<16x256xf32>
    %c0_6 = arith.constant 0 : index
    %c0_7 = arith.constant 0 : index
    %8 = vector.load %arg5[%c0_6, %c0_7] : memref<16x256xf32, #tpu.memory_space<vmem>>, vector<16x256xf32>
    tpu.vector_store %arg5[%c0_6, %c0_7], %7 {strides = array<i32>} : memref<16x256xf32, #tpu.memory_space<vmem>>, vector<16x256xf32>,
    return
  }
  func.func @transform_0(%arg0: i32, %arg1: i32, %arg2: i32) -> (i32, i32) {
    %c0_i32 = arith.constant 0 : i32
    return %arg0, %arg2 : i32, i32
  }
  func.func @transform_1(%arg0: i32, %arg1: i32, %arg2: i32) -> (i32, i32) {
    %c0_i32 = arith.constant 0 : i32
    return %arg2, %arg1 : i32, i32
  }
  func.func @transform_2(%arg0: i32, %arg1: i32, %arg2: i32) -> (i32, i32) {
    %c0_i32 = arith.constant 0 : i32
    return %arg0, %arg1 : i32, i32
  }
}

module attributes {stable_mosaic.version = 11 : i64} {
  func.func @_matmul_kernel(%arg0: i32, %arg1: i32, %arg2: i32, %arg3: memref<16x128xbf16, #tpu.memory_space<vmem>>, %arg4: memref<128x256xbf16, #tpu.memory_space<vmem>>, %arg5: memref<16x256xf32, #tpu.memory_space<vmem>>) attributes {dimension_semantics = [#tpu.dimension_semantics<parallel>, #tpu.dimension_semantics<parallel>, #tpu.dimension_semantics<arbitrary>], iteration_bounds = array<i64: 2, 1, 9>, scalar_prefetch = 0 : i64, scratch_operands = 0 : i64, tpu.core_type = #tpu.core_type<tc>, window_params = [{transform_indices = @transform_0, window_bounds = array<i64: 16, 128>}, {transform_indices = @transform_1, window_bounds = array<i64: 128, 256>}, {transform_indices = @transform_2, window_bounds = array<i64: 16, 256>}]} {
    %c0_i32 = arith.constant 0 : i32
    %0 = arith.cmpi eq, %arg2, %c0_i32 : i32
    %1 = arith.extui %0 : i1 to i32
    %c0_i32_0 = arith.constant 0 : i32
    %2 = arith.cmpi ne, %1, %c0_i32_0 : i32
    scf.if %2 {
      %cst_8 = arith.constant 0.000000e+00 : f32
      %9 = vector.broadcast %cst_8 : f32 to vector<16x256xf32>
      %c0_9 = arith.constant 0 : index
      %c0_10 = arith.constant 0 : index
      %10 = vector.load %arg5[%c0_9, %c0_10] : memref<16x256xf32, #tpu.memory_space<vmem>>, vector<16x256xf32>
      tpu.vector_store %arg5[%c0_9, %c0_10], %9 {strides = array<i32>} : memref<16x256xf32, #tpu.memory_space<vmem>>, vector<16x256xf32>,
    } else {
    }
    %c0 = arith.constant 0 : index
    %c0_1 = arith.constant 0 : index
    %3 = vector.load %arg5[%c0, %c0_1] : memref<16x256xf32, #tpu.memory_space<vmem>>, vector<16x256xf32>
    %c0_2 = arith.constant 0 : index
    %c0_3 = arith.constant 0 : index
    %4 = vector.load %arg3[%c0_2, %c0_3] : memref<16x128xbf16, #tpu.memory_space<vmem>>, vector<16x128xbf16>
    %c0_4 = arith.constant 0 : index
    %c0_5 = arith.constant 0 : index
    %5 = vector.load %arg4[%c0_4, %c0_5] : memref<128x256xbf16, #tpu.memory_space<vmem>>, vector<128x256xbf16>
    %cst = arith.constant dense<0.000000e+00> : vector<16x256xf32>
    %6 = tpu.matmul %4, %5, %cst {dimension_numbers = #tpu.dot_dimension_numbers<[1], [0], [0], [1], [0, 0, 1, 1], [], []>} : vector<16x128xbf16>, vector<128x256xbf16>, vector<16x256xf32> -> vector<16x256xf32>
    %7 = arith.addf %3, %6 : vector<16x256xf32>
    %c0_6 = arith.constant 0 : index
    %c0_7 = arith.constant 0 : index
    %8 = vector.load %arg5[%c0_6, %c0_7] : memref<16x256xf32, #tpu.memory_space<vmem>>, vector<16x256xf32>
    tpu.vector_store %arg5[%c0_6, %c0_7], %7 {strides = array<i32>} : memref<16x256xf32, #tpu.memory_space<vmem>>, vector<16x256xf32>,
    return
  }
  func.func @transform_0(%arg0: i32, %arg1: i32, %arg2: i32) -> (i32, i32) {
    %c0_i32 = arith.constant 0 : i32
    return %arg0, %arg2 : i32, i32
  }
  func.func @transform_1(%arg0: i32, %arg1: i32, %arg2: i32) -> (i32, i32) {
    %c0_i32 = arith.constant 0 : i32
    return %arg2, %arg1 : i32, i32
  }
  func.func @transform_2(%arg0: i32, %arg1: i32, %arg2: i32) -> (i32, i32) {
    %c0_i32 = arith.constant 0 : i32
    return %arg0, %arg1 : i32, i32
  }
}

module attributes {stable_mosaic.version = 11 : i64} {
  func.func @_cbn_modrelu_kernel(%arg0: i32, %arg1: memref<32x128xf32, #tpu.memory_space<vmem>>, %arg2: memref<32x128xf32, #tpu.memory_space<vmem>>, %arg3: memref<8x128xf32, #tpu.memory_space<vmem>>, %arg4: memref<32x128xbf16, #tpu.memory_space<vmem>>, %arg5: memref<32x128xbf16, #tpu.memory_space<vmem>>) attributes {dimension_semantics = [#tpu.dimension_semantics<parallel>], iteration_bounds = array<i64: 1>, scalar_prefetch = 0 : i64, scratch_operands = 0 : i64, tpu.core_type = #tpu.core_type<tc>, window_params = [{transform_indices = @transform_0, window_bounds = array<i64: 32, 128>}, {transform_indices = @transform_1, window_bounds = array<i64: 32, 128>}, {pipeline_mode = #tpu.pipeline_mode<synchronous>, transform_indices = @transform_2, window_bounds = array<i64: 8, 128>}, {transform_indices = @transform_3, window_bounds = array<i64: 32, 128>}, {transform_indices = @transform_4, window_bounds = array<i64: 32, 128>}]} {
    %c0 = arith.constant 0 : index
    %c0_0 = arith.constant 0 : index
    %0 = vector.load %arg1[%c0, %c0_0] : memref<32x128xf32, #tpu.memory_space<vmem>>, vector<32x128xf32>
    %c0_1 = arith.constant 0 : index
    %c0_2 = arith.constant 0 : index
    %1 = vector.load %arg2[%c0_1, %c0_2] : memref<32x128xf32, #tpu.memory_space<vmem>>, vector<32x128xf32>
    %c0_3 = arith.constant 0 : index
    %c0_4 = arith.constant 0 : index
    %2 = vector.load %arg3[%c0_3, %c0_4] : memref<8x128xf32, #tpu.memory_space<vmem>>, vector<8x128xf32>
    %3 = vector.extract_strided_slice %2 {offsets = [0, 0], sizes = [1, 128], strides = [1, 1]} : vector<8x128xf32> to vector<1x128xf32>
    %4 = vector.broadcast %3 : vector<1x128xf32> to vector<32x128xf32>
    %5 = arith.mulf %0, %4 : vector<32x128xf32>
    %6 = vector.extract_strided_slice %2 {offsets = [1, 0], sizes = [1, 128], strides = [1, 1]} : vector<8x128xf32> to vector<1x128xf32>
    %7 = vector.broadcast %6 : vector<1x128xf32> to vector<32x128xf32>
    %8 = arith.mulf %1, %7 : vector<32x128xf32>
    %9 = arith.subf %5, %8 : vector<32x128xf32>
    %10 = vector.extract_strided_slice %2 {offsets = [4, 0], sizes = [1, 128], strides = [1, 1]} : vector<8x128xf32> to vector<1x128xf32>
    %11 = vector.broadcast %10 : vector<1x128xf32> to vector<32x128xf32>
    %12 = arith.addf %9, %11 : vector<32x128xf32>
    %13 = vector.extract_strided_slice %2 {offsets = [2, 0], sizes = [1, 128], strides = [1, 1]} : vector<8x128xf32> to vector<1x128xf32>
    %14 = vector.broadcast %13 : vector<1x128xf32> to vector<32x128xf32>
    %15 = arith.mulf %0, %14 : vector<32x128xf32>
    %16 = vector.extract_strided_slice %2 {offsets = [3, 0], sizes = [1, 128], strides = [1, 1]} : vector<8x128xf32> to vector<1x128xf32>
    %17 = vector.broadcast %16 : vector<1x128xf32> to vector<32x128xf32>
    %18 = arith.mulf %1, %17 : vector<32x128xf32>
    %19 = arith.addf %15, %18 : vector<32x128xf32>
    %20 = vector.extract_strided_slice %2 {offsets = [5, 0], sizes = [1, 128], strides = [1, 1]} : vector<8x128xf32> to vector<1x128xf32>
    %21 = vector.broadcast %20 : vector<1x128xf32> to vector<32x128xf32>
    %22 = arith.addf %19, %21 : vector<32x128xf32>
    %23 = arith.mulf %12, %12 : vector<32x128xf32>
    %24 = arith.mulf %22, %22 : vector<32x128xf32>
    %25 = arith.addf %23, %24 : vector<32x128xf32>
    %cst = arith.constant 9.99999996E-13 : f32
    %26 = vector.broadcast %cst : f32 to vector<32x128xf32>
    %27 = arith.addf %25, %26 : vector<32x128xf32>
    %28 = math.rsqrt %27 : vector<32x128xf32>
    %29 = vector.extract_strided_slice %2 {offsets = [6, 0], sizes = [1, 128], strides = [1, 1]} : vector<8x128xf32> to vector<1x128xf32>
    %30 = vector.broadcast %29 : vector<1x128xf32> to vector<32x128xf32>
    %31 = arith.mulf %30, %28 : vector<32x128xf32>
    %cst_5 = arith.constant 1.000000e+00 : f32
    %32 = vector.broadcast %cst_5 : f32 to vector<32x128xf32>
    %33 = arith.addf %32, %31 : vector<32x128xf32>
    %cst_6 = arith.constant 0.000000e+00 : f32
    %34 = vector.broadcast %cst_6 : f32 to vector<32x128xf32>
    %35 = arith.maximumf %33, %34 : vector<32x128xf32>
    %36 = arith.mulf %35, %12 : vector<32x128xf32>
    %37 = arith.truncf %36 : vector<32x128xf32> to vector<32x128xbf16>
    %c0_7 = arith.constant 0 : index
    %c0_8 = arith.constant 0 : index
    %38 = vector.load %arg4[%c0_7, %c0_8] : memref<32x128xbf16, #tpu.memory_space<vmem>>, vector<32x128xbf16>
    tpu.vector_store %arg4[%c0_7, %c0_8], %37 {strides = array<i32>} : memref<32x128xbf16, #tpu.memory_space<vmem>>, vector<32x128xbf16>,
    %39 = arith.mulf %35, %22 : vector<32x128xf32>
    %40 = arith.truncf %39 : vector<32x128xf32> to vector<32x128xbf16>
    %c0_9 = arith.constant 0 : index
    %c0_10 = arith.constant 0 : index
    %41 = vector.load %arg5[%c0_9, %c0_10] : memref<32x128xbf16, #tpu.memory_space<vmem>>, vector<32x128xbf16>
    tpu.vector_store %arg5[%c0_9, %c0_10], %40 {strides = array<i32>} : memref<32x128xbf16, #tpu.memory_space<vmem>>, vector<32x128xbf16>,
    return
  }
  func.func @transform_0(%arg0: i32) -> (i32, i32) {
    %c0_i32 = arith.constant 0 : i32
    %c0_i32_0 = arith.constant 0 : i32
    return %arg0, %c0_i32 : i32, i32
  }
  func.func @transform_1(%arg0: i32) -> (i32, i32) {
    %c0_i32 = arith.constant 0 : i32
    %c0_i32_0 = arith.constant 0 : i32
    return %arg0, %c0_i32 : i32, i32
  }
  func.func @transform_2(%arg0: i32) -> (i32, i32) {
    %c0_i32 = arith.constant 0 : i32
    %c0_i32_0 = arith.constant 0 : i32
    %c0_i32_1 = arith.constant 0 : i32
    return %c0_i32, %c0_i32_0 : i32, i32
  }
  func.func @transform_3(%arg0: i32) -> (i32, i32) {
    %c0_i32 = arith.constant 0 : i32
    %c0_i32_0 = arith.constant 0 : i32
    return %arg0, %c0_i32 : i32, i32
  }
  func.func @transform_4(%arg0: i32) -> (i32, i32) {
    %c0_i32 = arith.constant 0 : i32
    %c0_i32_0 = arith.constant 0 : i32
    return %arg0, %c0_i32 : i32, i32
  }
}

module attributes {stable_mosaic.version = 11 : i64} {
  func.func @_matmul_kernel(%arg0: i32, %arg1: i32, %arg2: i32, %arg3: memref<16x256xbf16, #tpu.memory_space<vmem>>, %arg4: memref<256x256xbf16, #tpu.memory_space<vmem>>, %arg5: memref<16x256xf32, #tpu.memory_space<vmem>>) attributes {dimension_semantics = [#tpu.dimension_semantics<parallel>, #tpu.dimension_semantics<parallel>, #tpu.dimension_semantics<arbitrary>], iteration_bounds = array<i64: 2, 1, 9>, scalar_prefetch = 0 : i64, scratch_operands = 0 : i64, tpu.core_type = #tpu.core_type<tc>, window_params = [{transform_indices = @transform_0, window_bounds = array<i64: 16, 256>}, {transform_indices = @transform_1, window_bounds = array<i64: 256, 256>}, {transform_indices = @transform_2, window_bounds = array<i64: 16, 256>}]} {
    %c0_i32 = arith.constant 0 : i32
    %0 = arith.cmpi eq, %arg2, %c0_i32 : i32
    %1 = arith.extui %0 : i1 to i32
    %c0_i32_0 = arith.constant 0 : i32
    %2 = arith.cmpi ne, %1, %c0_i32_0 : i32
    scf.if %2 {
      %cst_8 = arith.constant 0.000000e+00 : f32
      %9 = vector.broadcast %cst_8 : f32 to vector<16x256xf32>
      %c0_9 = arith.constant 0 : index
      %c0_10 = arith.constant 0 : index
      %10 = vector.load %arg5[%c0_9, %c0_10] : memref<16x256xf32, #tpu.memory_space<vmem>>, vector<16x256xf32>
      tpu.vector_store %arg5[%c0_9, %c0_10], %9 {strides = array<i32>} : memref<16x256xf32, #tpu.memory_space<vmem>>, vector<16x256xf32>,
    } else {
    }
    %c0 = arith.constant 0 : index
    %c0_1 = arith.constant 0 : index
    %3 = vector.load %arg5[%c0, %c0_1] : memref<16x256xf32, #tpu.memory_space<vmem>>, vector<16x256xf32>
    %c0_2 = arith.constant 0 : index
    %c0_3 = arith.constant 0 : index
    %4 = vector.load %arg3[%c0_2, %c0_3] : memref<16x256xbf16, #tpu.memory_space<vmem>>, vector<16x256xbf16>
    %c0_4 = arith.constant 0 : index
    %c0_5 = arith.constant 0 : index
    %5 = vector.load %arg4[%c0_4, %c0_5] : memref<256x256xbf16, #tpu.memory_space<vmem>>, vector<256x256xbf16>
    %cst = arith.constant dense<0.000000e+00> : vector<16x256xf32>
    %6 = tpu.matmul %4, %5, %cst {dimension_numbers = #tpu.dot_dimension_numbers<[1], [0], [0], [1], [0, 0, 1, 1], [], []>} : vector<16x256xbf16>, vector<256x256xbf16>, vector<16x256xf32> -> vector<16x256xf32>
    %7 = arith.addf %3, %6 : vector<16x256xf32>
    %c0_6 = arith.constant 0 : index
    %c0_7 = arith.constant 0 : index
    %8 = vector.load %arg5[%c0_6, %c0_7] : memref<16x256xf32, #tpu.memory_space<vmem>>, vector<16x256xf32>
    tpu.vector_store %arg5[%c0_6, %c0_7], %7 {strides = array<i32>} : memref<16x256xf32, #tpu.memory_space<vmem>>, vector<16x256xf32>,
    return
  }
  func.func @transform_0(%arg0: i32, %arg1: i32, %arg2: i32) -> (i32, i32) {
    %c0_i32 = arith.constant 0 : i32
    return %arg0, %arg2 : i32, i32
  }
  func.func @transform_1(%arg0: i32, %arg1: i32, %arg2: i32) -> (i32, i32) {
    %c0_i32 = arith.constant 0 : i32
    return %arg2, %arg1 : i32, i32
  }
  func.func @transform_2(%arg0: i32, %arg1: i32, %arg2: i32) -> (i32, i32) {
    %c0_i32 = arith.constant 0 : i32
    return %arg0, %arg1 : i32, i32
  }
}

module attributes {stable_mosaic.version = 11 : i64} {
  func.func @_cbn_res_modrelu_mag_kernel(%arg0: i32, %arg1: memref<32x128xf32, #tpu.memory_space<vmem>>, %arg2: memref<32x128xf32, #tpu.memory_space<vmem>>, %arg3: memref<32x128xf32, #tpu.memory_space<vmem>>, %arg4: memref<32x128xf32, #tpu.memory_space<vmem>>, %arg5: memref<8x128xf32, #tpu.memory_space<vmem>>, %arg6: memref<8x128xf32, #tpu.memory_space<vmem>>, %arg7: memref<32x128xf32, #tpu.memory_space<vmem>>, %arg8: memref<32x128xf32, #tpu.memory_space<vmem>>, %arg9: memref<32x128xf32, #tpu.memory_space<vmem>>) attributes {dimension_semantics = [#tpu.dimension_semantics<parallel>], iteration_bounds = array<i64: 1>, scalar_prefetch = 0 : i64, scratch_operands = 0 : i64, tpu.core_type = #tpu.core_type<tc>, window_params = [{transform_indices = @transform_0, window_bounds = array<i64: 32, 128>}, {transform_indices = @transform_1, window_bounds = array<i64: 32, 128>}, {transform_indices = @transform_2, window_bounds = array<i64: 32, 128>}, {transform_indices = @transform_3, window_bounds = array<i64: 32, 128>}, {pipeline_mode = #tpu.pipeline_mode<synchronous>, transform_indices = @transform_4, window_bounds = array<i64: 8, 128>}, {pipeline_mode = #tpu.pipeline_mode<synchronous>, transform_indices = @transform_5, window_bounds = array<i64: 8, 128>}, {transform_indices = @transform_6, window_bounds = array<i64: 32, 128>}, {transform_indices = @transform_7, window_bounds = array<i64: 32, 128>}, {transform_indices = @transform_8, window_bounds = array<i64: 32, 128>}]} {
    %c0 = arith.constant 0 : index
    %c0_0 = arith.constant 0 : index
    %0 = vector.load %arg1[%c0, %c0_0] : memref<32x128xf32, #tpu.memory_space<vmem>>, vector<32x128xf32>
    %c0_1 = arith.constant 0 : index
    %c0_2 = arith.constant 0 : index
    %1 = vector.load %arg2[%c0_1, %c0_2] : memref<32x128xf32, #tpu.memory_space<vmem>>, vector<32x128xf32>
    %c0_3 = arith.constant 0 : index
    %c0_4 = arith.constant 0 : index
    %2 = vector.load %arg3[%c0_3, %c0_4] : memref<32x128xf32, #tpu.memory_space<vmem>>, vector<32x128xf32>
    %c0_5 = arith.constant 0 : index
    %c0_6 = arith.constant 0 : index
    %3 = vector.load %arg4[%c0_5, %c0_6] : memref<32x128xf32, #tpu.memory_space<vmem>>, vector<32x128xf32>
    %c0_7 = arith.constant 0 : index
    %c0_8 = arith.constant 0 : index
    %4 = vector.load %arg5[%c0_7, %c0_8] : memref<8x128xf32, #tpu.memory_space<vmem>>, vector<8x128xf32>
    %c0_9 = arith.constant 0 : index
    %c0_10 = arith.constant 0 : index
    %5 = vector.load %arg6[%c0_9, %c0_10] : memref<8x128xf32, #tpu.memory_space<vmem>>, vector<8x128xf32>
    %6 = vector.extract_strided_slice %4 {offsets = [0, 0], sizes = [1, 128], strides = [1, 1]} : vector<8x128xf32> to vector<1x128xf32>
    %7 = vector.broadcast %6 : vector<1x128xf32> to vector<32x128xf32>
    %8 = arith.mulf %0, %7 : vector<32x128xf32>
    %9 = vector.extract_strided_slice %4 {offsets = [1, 0], sizes = [1, 128], strides = [1, 1]} : vector<8x128xf32> to vector<1x128xf32>
    %10 = vector.broadcast %9 : vector<1x128xf32> to vector<32x128xf32>
    %11 = arith.mulf %1, %10 : vector<32x128xf32>
    %12 = arith.subf %8, %11 : vector<32x128xf32>
    %13 = vector.extract_strided_slice %4 {offsets = [4, 0], sizes = [1, 128], strides = [1, 1]} : vector<8x128xf32> to vector<1x128xf32>
    %14 = vector.broadcast %13 : vector<1x128xf32> to vector<32x128xf32>
    %15 = arith.addf %12, %14 : vector<32x128xf32>
    %16 = vector.extract_strided_slice %5 {offsets = [0, 0], sizes = [1, 128], strides = [1, 1]} : vector<8x128xf32> to vector<1x128xf32>
    %17 = vector.broadcast %16 : vector<1x128xf32> to vector<32x128xf32>
    %18 = arith.mulf %2, %17 : vector<32x128xf32>
    %19 = arith.addf %15, %18 : vector<32x128xf32>
    %20 = vector.extract_strided_slice %5 {offsets = [1, 0], sizes = [1, 128], strides = [1, 1]} : vector<8x128xf32> to vector<1x128xf32>
    %21 = vector.broadcast %20 : vector<1x128xf32> to vector<32x128xf32>
    %22 = arith.mulf %3, %21 : vector<32x128xf32>
    %23 = arith.subf %19, %22 : vector<32x128xf32>
    %24 = vector.extract_strided_slice %5 {offsets = [4, 0], sizes = [1, 128], strides = [1, 1]} : vector<8x128xf32> to vector<1x128xf32>
    %25 = vector.broadcast %24 : vector<1x128xf32> to vector<32x128xf32>
    %26 = arith.addf %23, %25 : vector<32x128xf32>
    %27 = vector.extract_strided_slice %4 {offsets = [2, 0], sizes = [1, 128], strides = [1, 1]} : vector<8x128xf32> to vector<1x128xf32>
    %28 = vector.broadcast %27 : vector<1x128xf32> to vector<32x128xf32>
    %29 = arith.mulf %0, %28 : vector<32x128xf32>
    %30 = vector.extract_strided_slice %4 {offsets = [3, 0], sizes = [1, 128], strides = [1, 1]} : vector<8x128xf32> to vector<1x128xf32>
    %31 = vector.broadcast %30 : vector<1x128xf32> to vector<32x128xf32>
    %32 = arith.mulf %1, %31 : vector<32x128xf32>
    %33 = arith.addf %29, %32 : vector<32x128xf32>
    %34 = vector.extract_strided_slice %4 {offsets = [5, 0], sizes = [1, 128], strides = [1, 1]} : vector<8x128xf32> to vector<1x128xf32>
    %35 = vector.broadcast %34 : vector<1x128xf32> to vector<32x128xf32>
    %36 = arith.addf %33, %35 : vector<32x128xf32>
    %37 = vector.extract_strided_slice %5 {offsets = [2, 0], sizes = [1, 128], strides = [1, 1]} : vector<8x128xf32> to vector<1x128xf32>
    %38 = vector.broadcast %37 : vector<1x128xf32> to vector<32x128xf32>
    %39 = arith.mulf %2, %38 : vector<32x128xf32>
    %40 = arith.addf %36, %39 : vector<32x128xf32>
    %41 = vector.extract_strided_slice %5 {offsets = [3, 0], sizes = [1, 128], strides = [1, 1]} : vector<8x128xf32> to vector<1x128xf32>
    %42 = vector.broadcast %41 : vector<1x128xf32> to vector<32x128xf32>
    %43 = arith.mulf %3, %42 : vector<32x128xf32>
    %44 = arith.addf %40, %43 : vector<32x128xf32>
    %45 = vector.extract_strided_slice %5 {offsets = [5, 0], sizes = [1, 128], strides = [1, 1]} : vector<8x128xf32> to vector<1x128xf32>
    %46 = vector.broadcast %45 : vector<1x128xf32> to vector<32x128xf32>
    %47 = arith.addf %44, %46 : vector<32x128xf32>
    %48 = arith.mulf %26, %26 : vector<32x128xf32>
    %49 = arith.mulf %47, %47 : vector<32x128xf32>
    %50 = arith.addf %48, %49 : vector<32x128xf32>
    %cst = arith.constant 9.99999996E-13 : f32
    %51 = vector.broadcast %cst : f32 to vector<32x128xf32>
    %52 = arith.addf %50, %51 : vector<32x128xf32>
    %53 = math.rsqrt %52 : vector<32x128xf32>
    %54 = vector.extract_strided_slice %4 {offsets = [6, 0], sizes = [1, 128], strides = [1, 1]} : vector<8x128xf32> to vector<1x128xf32>
    %55 = vector.broadcast %54 : vector<1x128xf32> to vector<32x128xf32>
    %56 = arith.mulf %55, %53 : vector<32x128xf32>
    %cst_11 = arith.constant 1.000000e+00 : f32
    %57 = vector.broadcast %cst_11 : f32 to vector<32x128xf32>
    %58 = arith.addf %57, %56 : vector<32x128xf32>
    %cst_12 = arith.constant 0.000000e+00 : f32
    %59 = vector.broadcast %cst_12 : f32 to vector<32x128xf32>
    %60 = arith.maximumf %58, %59 : vector<32x128xf32>
    %61 = arith.mulf %60, %26 : vector<32x128xf32>
    %c0_13 = arith.constant 0 : index
    %c0_14 = arith.constant 0 : index
    %62 = vector.load %arg7[%c0_13, %c0_14] : memref<32x128xf32, #tpu.memory_space<vmem>>, vector<32x128xf32>
    tpu.vector_store %arg7[%c0_13, %c0_14], %61 {strides = array<i32>} : memref<32x128xf32, #tpu.memory_space<vmem>>, vector<32x128xf32>,
    %63 = arith.mulf %60, %47 : vector<32x128xf32>
    %c0_15 = arith.constant 0 : index
    %c0_16 = arith.constant 0 : index
    %64 = vector.load %arg8[%c0_15, %c0_16] : memref<32x128xf32, #tpu.memory_space<vmem>>, vector<32x128xf32>
    tpu.vector_store %arg8[%c0_15, %c0_16], %63 {strides = array<i32>} : memref<32x128xf32, #tpu.memory_space<vmem>>, vector<32x128xf32>,
    %65 = arith.mulf %60, %50 : vector<32x128xf32>
    %66 = arith.mulf %65, %53 : vector<32x128xf32>
    %c0_17 = arith.constant 0 : index
    %c0_18 = arith.constant 0 : index
    %67 = vector.load %arg9[%c0_17, %c0_18] : memref<32x128xf32, #tpu.memory_space<vmem>>, vector<32x128xf32>
    tpu.vector_store %arg9[%c0_17, %c0_18], %66 {strides = array<i32>} : memref<32x128xf32, #tpu.memory_space<vmem>>, vector<32x128xf32>,
    return
  }
  func.func @transform_0(%arg0: i32) -> (i32, i32) {
    %c0_i32 = arith.constant 0 : i32
    %c0_i32_0 = arith.constant 0 : i32
    return %arg0, %c0_i32 : i32, i32
  }
  func.func @transform_1(%arg0: i32) -> (i32, i32) {
    %c0_i32 = arith.constant 0 : i32
    %c0_i32_0 = arith.constant 0 : i32
    return %arg0, %c0_i32 : i32, i32
  }
  func.func @transform_2(%arg0: i32) -> (i32, i32) {
    %c0_i32 = arith.constant 0 : i32
    %c0_i32_0 = arith.constant 0 : i32
    return %arg0, %c0_i32 : i32, i32
  }
  func.func @transform_3(%arg0: i32) -> (i32, i32) {
    %c0_i32 = arith.constant 0 : i32
    %c0_i32_0 = arith.constant 0 : i32
    return %arg0, %c0_i32 : i32, i32
  }
  func.func @transform_4(%arg0: i32) -> (i32, i32) {
    %c0_i32 = arith.constant 0 : i32
    %c0_i32_0 = arith.constant 0 : i32
    %c0_i32_1 = arith.constant 0 : i32
    return %c0_i32, %c0_i32_0 : i32, i32
  }
  func.func @transform_5(%arg0: i32) -> (i32, i32) {
    %c0_i32 = arith.constant 0 : i32
    %c0_i32_0 = arith.constant 0 : i32
    %c0_i32_1 = arith.constant 0 : i32
    return %c0_i32, %c0_i32_0 : i32, i32
  }
  func.func @transform_6(%arg0: i32) -> (i32, i32) {
    %c0_i32 = arith.constant 0 : i32
    %c0_i32_0 = arith.constant 0 : i32
    return %arg0, %c0_i32 : i32, i32
  }
  func.func @transform_7(%arg0: i32) -> (i32, i32) {
    %c0_i32 = arith.constant 0 : i32
    %c0_i32_0 = arith.constant 0 : i32
    return %arg0, %c0_i32 : i32, i32
  }
  func.func @transform_8(%arg0: i32) -> (i32, i32) {
    %c0_i32 = arith.constant 0 : i32
    %c0_i32_0 = arith.constant 0 : i32
    return %arg0, %c0_i32 : i32, i32
  }
}

module attributes {stable_mosaic.version = 11 : i64} {
  func.func @_matmul_kernel(%arg0: i32, %arg1: i32, %arg2: i32, %arg3: memref<8x128xbf16, #tpu.memory_space<vmem>>, %arg4: memref<128x128xbf16, #tpu.memory_space<vmem>>, %arg5: memref<8x128xf32, #tpu.memory_space<vmem>>) attributes {dimension_semantics = [#tpu.dimension_semantics<parallel>, #tpu.dimension_semantics<parallel>, #tpu.dimension_semantics<arbitrary>], iteration_bounds = array<i64: 1, 2, 1>, scalar_prefetch = 0 : i64, scratch_operands = 0 : i64, tpu.core_type = #tpu.core_type<tc>, window_params = [{transform_indices = @transform_0, window_bounds = array<i64: 8, 128>}, {transform_indices = @transform_1, window_bounds = array<i64: 128, 128>}, {transform_indices = @transform_2, window_bounds = array<i64: 8, 128>}]} {
    %c0_i32 = arith.constant 0 : i32
    %0 = arith.cmpi eq, %arg2, %c0_i32 : i32
    %1 = arith.extui %0 : i1 to i32
    %c0_i32_0 = arith.constant 0 : i32
    %2 = arith.cmpi ne, %1, %c0_i32_0 : i32
    scf.if %2 {
      %cst_8 = arith.constant 0.000000e+00 : f32
      %9 = vector.broadcast %cst_8 : f32 to vector<8x128xf32>
      %c0_9 = arith.constant 0 : index
      %c0_10 = arith.constant 0 : index
      %10 = vector.load %arg5[%c0_9, %c0_10] : memref<8x128xf32, #tpu.memory_space<vmem>>, vector<8x128xf32>
      tpu.vector_store %arg5[%c0_9, %c0_10], %9 {strides = array<i32>} : memref<8x128xf32, #tpu.memory_space<vmem>>, vector<8x128xf32>,
    } else {
    }
    %c0 = arith.constant 0 : index
    %c0_1 = arith.constant 0 : index
    %3 = vector.load %arg5[%c0, %c0_1] : memref<8x128xf32, #tpu.memory_space<vmem>>, vector<8x128xf32>
    %c0_2 = arith.constant 0 : index
    %c0_3 = arith.constant 0 : index
    %4 = vector.load %arg3[%c0_2, %c0_3] : memref<8x128xbf16, #tpu.memory_space<vmem>>, vector<8x128xbf16>
    %c0_4 = arith.constant 0 : index
    %c0_5 = arith.constant 0 : index
    %5 = vector.load %arg4[%c0_4, %c0_5] : memref<128x128xbf16, #tpu.memory_space<vmem>>, vector<128x128xbf16>
    %cst = arith.constant dense<0.000000e+00> : vector<8x128xf32>
    %6 = tpu.matmul %4, %5, %cst {dimension_numbers = #tpu.dot_dimension_numbers<[1], [0], [0], [1], [0, 0, 1, 1], [], []>} : vector<8x128xbf16>, vector<128x128xbf16>, vector<8x128xf32> -> vector<8x128xf32>
    %7 = arith.addf %3, %6 : vector<8x128xf32>
    %c0_6 = arith.constant 0 : index
    %c0_7 = arith.constant 0 : index
    %8 = vector.load %arg5[%c0_6, %c0_7] : memref<8x128xf32, #tpu.memory_space<vmem>>, vector<8x128xf32>
    tpu.vector_store %arg5[%c0_6, %c0_7], %7 {strides = array<i32>} : memref<8x128xf32, #tpu.memory_space<vmem>>, vector<8x128xf32>,
    return
  }
  func.func @transform_0(%arg0: i32, %arg1: i32, %arg2: i32) -> (i32, i32) {
    %c0_i32 = arith.constant 0 : i32
    return %arg0, %arg2 : i32, i32
  }
  func.func @transform_1(%arg0: i32, %arg1: i32, %arg2: i32) -> (i32, i32) {
    %c0_i32 = arith.constant 0 : i32
    return %arg2, %arg1 : i32, i32
  }
  func.func @transform_2(%arg0: i32, %arg1: i32, %arg2: i32) -> (i32, i32) {
    %c0_i32 = arith.constant 0 : i32
    return %arg0, %arg1 : i32, i32
  }
}

module attributes {stable_mosaic.version = 11 : i64} {
  func.func @_matmul_kernel(%arg0: i32, %arg1: i32, %arg2: i32, %arg3: memref<8x128xbf16, #tpu.memory_space<vmem>>, %arg4: memref<128x128xbf16, #tpu.memory_space<vmem>>, %arg5: memref<8x128xf32, #tpu.memory_space<vmem>>) attributes {dimension_semantics = [#tpu.dimension_semantics<parallel>, #tpu.dimension_semantics<parallel>, #tpu.dimension_semantics<arbitrary>], iteration_bounds = array<i64: 1, 2, 9>, scalar_prefetch = 0 : i64, scratch_operands = 0 : i64, tpu.core_type = #tpu.core_type<tc>, window_params = [{transform_indices = @transform_0, window_bounds = array<i64: 8, 128>}, {transform_indices = @transform_1, window_bounds = array<i64: 128, 128>}, {transform_indices = @transform_2, window_bounds = array<i64: 8, 128>}]} {
    %c0_i32 = arith.constant 0 : i32
    %0 = arith.cmpi eq, %arg2, %c0_i32 : i32
    %1 = arith.extui %0 : i1 to i32
    %c0_i32_0 = arith.constant 0 : i32
    %2 = arith.cmpi ne, %1, %c0_i32_0 : i32
    scf.if %2 {
      %cst_8 = arith.constant 0.000000e+00 : f32
      %9 = vector.broadcast %cst_8 : f32 to vector<8x128xf32>
      %c0_9 = arith.constant 0 : index
      %c0_10 = arith.constant 0 : index
      %10 = vector.load %arg5[%c0_9, %c0_10] : memref<8x128xf32, #tpu.memory_space<vmem>>, vector<8x128xf32>
      tpu.vector_store %arg5[%c0_9, %c0_10], %9 {strides = array<i32>} : memref<8x128xf32, #tpu.memory_space<vmem>>, vector<8x128xf32>,
    } else {
    }
    %c0 = arith.constant 0 : index
    %c0_1 = arith.constant 0 : index
    %3 = vector.load %arg5[%c0, %c0_1] : memref<8x128xf32, #tpu.memory_space<vmem>>, vector<8x128xf32>
    %c0_2 = arith.constant 0 : index
    %c0_3 = arith.constant 0 : index
    %4 = vector.load %arg3[%c0_2, %c0_3] : memref<8x128xbf16, #tpu.memory_space<vmem>>, vector<8x128xbf16>
    %c0_4 = arith.constant 0 : index
    %c0_5 = arith.constant 0 : index
    %5 = vector.load %arg4[%c0_4, %c0_5] : memref<128x128xbf16, #tpu.memory_space<vmem>>, vector<128x128xbf16>
    %cst = arith.constant dense<0.000000e+00> : vector<8x128xf32>
    %6 = tpu.matmul %4, %5, %cst {dimension_numbers = #tpu.dot_dimension_numbers<[1], [0], [0], [1], [0, 0, 1, 1], [], []>} : vector<8x128xbf16>, vector<128x128xbf16>, vector<8x128xf32> -> vector<8x128xf32>
    %7 = arith.addf %3, %6 : vector<8x128xf32>
    %c0_6 = arith.constant 0 : index
    %c0_7 = arith.constant 0 : index
    %8 = vector.load %arg5[%c0_6, %c0_7] : memref<8x128xf32, #tpu.memory_space<vmem>>, vector<8x128xf32>
    tpu.vector_store %arg5[%c0_6, %c0_7], %7 {strides = array<i32>} : memref<8x128xf32, #tpu.memory_space<vmem>>, vector<8x128xf32>,
    return
  }
  func.func @transform_0(%arg0: i32, %arg1: i32, %arg2: i32) -> (i32, i32) {
    %c0_i32 = arith.constant 0 : i32
    return %arg0, %arg2 : i32, i32
  }
  func.func @transform_1(%arg0: i32, %arg1: i32, %arg2: i32) -> (i32, i32) {
    %c0_i32 = arith.constant 0 : i32
    return %arg2, %arg1 : i32, i32
  }
  func.func @transform_2(%arg0: i32, %arg1: i32, %arg2: i32) -> (i32, i32) {
    %c0_i32 = arith.constant 0 : i32
    return %arg0, %arg1 : i32, i32
  }
}

module attributes {stable_mosaic.version = 11 : i64} {
  func.func @_bn_relu_kernel(%arg0: i32, %arg1: memref<8x256xf32, #tpu.memory_space<vmem>>, %arg2: memref<8x256xf32, #tpu.memory_space<vmem>>, %arg3: memref<8x256xbf16, #tpu.memory_space<vmem>>) attributes {dimension_semantics = [#tpu.dimension_semantics<parallel>], iteration_bounds = array<i64: 1>, scalar_prefetch = 0 : i64, scratch_operands = 0 : i64, tpu.core_type = #tpu.core_type<tc>, window_params = [{transform_indices = @transform_0, window_bounds = array<i64: 8, 256>}, {pipeline_mode = #tpu.pipeline_mode<synchronous>, transform_indices = @transform_1, window_bounds = array<i64: 8, 256>}, {transform_indices = @transform_2, window_bounds = array<i64: 8, 256>}]} {
    %c0 = arith.constant 0 : index
    %c0_0 = arith.constant 0 : index
    %0 = vector.load %arg2[%c0, %c0_0] : memref<8x256xf32, #tpu.memory_space<vmem>>, vector<8x256xf32>
    %c0_1 = arith.constant 0 : index
    %c0_2 = arith.constant 0 : index
    %1 = vector.load %arg1[%c0_1, %c0_2] : memref<8x256xf32, #tpu.memory_space<vmem>>, vector<8x256xf32>
    %2 = vector.extract_strided_slice %0 {offsets = [0, 0], sizes = [1, 256], strides = [1, 1]} : vector<8x256xf32> to vector<1x256xf32>
    %3 = vector.broadcast %2 : vector<1x256xf32> to vector<8x256xf32>
    %4 = arith.mulf %1, %3 : vector<8x256xf32>
    %5 = vector.extract_strided_slice %0 {offsets = [1, 0], sizes = [1, 256], strides = [1, 1]} : vector<8x256xf32> to vector<1x256xf32>
    %6 = vector.broadcast %5 : vector<1x256xf32> to vector<8x256xf32>
    %7 = arith.addf %4, %6 : vector<8x256xf32>
    %cst = arith.constant 0.000000e+00 : f32
    %8 = vector.broadcast %cst : f32 to vector<8x256xf32>
    %9 = arith.maximumf %7, %8 : vector<8x256xf32>
    %10 = arith.truncf %9 : vector<8x256xf32> to vector<8x256xbf16>
    %c0_3 = arith.constant 0 : index
    %c0_4 = arith.constant 0 : index
    %11 = vector.load %arg3[%c0_3, %c0_4] : memref<8x256xbf16, #tpu.memory_space<vmem>>, vector<8x256xbf16>
    tpu.vector_store %arg3[%c0_3, %c0_4], %10 {strides = array<i32>} : memref<8x256xbf16, #tpu.memory_space<vmem>>, vector<8x256xbf16>,
    return
  }
  func.func @transform_0(%arg0: i32) -> (i32, i32) {
    %c0_i32 = arith.constant 0 : i32
    %c0_i32_0 = arith.constant 0 : i32
    return %arg0, %c0_i32 : i32, i32
  }
  func.func @transform_1(%arg0: i32) -> (i32, i32) {
    %c0_i32 = arith.constant 0 : i32
    %c0_i32_0 = arith.constant 0 : i32
    %c0_i32_1 = arith.constant 0 : i32
    return %c0_i32, %c0_i32_0 : i32, i32
  }
  func.func @transform_2(%arg0: i32) -> (i32, i32) {
    %c0_i32 = arith.constant 0 : i32
    %c0_i32_0 = arith.constant 0 : i32
    return %arg0, %c0_i32 : i32, i32
  }
}

module attributes {stable_mosaic.version = 11 : i64} {
  func.func @_matmul_kernel(%arg0: i32, %arg1: i32, %arg2: i32, %arg3: memref<8x256xbf16, #tpu.memory_space<vmem>>, %arg4: memref<256x128xbf16, #tpu.memory_space<vmem>>, %arg5: memref<8x128xf32, #tpu.memory_space<vmem>>) attributes {dimension_semantics = [#tpu.dimension_semantics<parallel>, #tpu.dimension_semantics<parallel>, #tpu.dimension_semantics<arbitrary>], iteration_bounds = array<i64: 1, 2, 9>, scalar_prefetch = 0 : i64, scratch_operands = 0 : i64, tpu.core_type = #tpu.core_type<tc>, window_params = [{transform_indices = @transform_0, window_bounds = array<i64: 8, 256>}, {transform_indices = @transform_1, window_bounds = array<i64: 256, 128>}, {transform_indices = @transform_2, window_bounds = array<i64: 8, 128>}]} {
    %c0_i32 = arith.constant 0 : i32
    %0 = arith.cmpi eq, %arg2, %c0_i32 : i32
    %1 = arith.extui %0 : i1 to i32
    %c0_i32_0 = arith.constant 0 : i32
    %2 = arith.cmpi ne, %1, %c0_i32_0 : i32
    scf.if %2 {
      %cst_8 = arith.constant 0.000000e+00 : f32
      %9 = vector.broadcast %cst_8 : f32 to vector<8x128xf32>
      %c0_9 = arith.constant 0 : index
      %c0_10 = arith.constant 0 : index
      %10 = vector.load %arg5[%c0_9, %c0_10] : memref<8x128xf32, #tpu.memory_space<vmem>>, vector<8x128xf32>
      tpu.vector_store %arg5[%c0_9, %c0_10], %9 {strides = array<i32>} : memref<8x128xf32, #tpu.memory_space<vmem>>, vector<8x128xf32>,
    } else {
    }
    %c0 = arith.constant 0 : index
    %c0_1 = arith.constant 0 : index
    %3 = vector.load %arg5[%c0, %c0_1] : memref<8x128xf32, #tpu.memory_space<vmem>>, vector<8x128xf32>
    %c0_2 = arith.constant 0 : index
    %c0_3 = arith.constant 0 : index
    %4 = vector.load %arg3[%c0_2, %c0_3] : memref<8x256xbf16, #tpu.memory_space<vmem>>, vector<8x256xbf16>
    %c0_4 = arith.constant 0 : index
    %c0_5 = arith.constant 0 : index
    %5 = vector.load %arg4[%c0_4, %c0_5] : memref<256x128xbf16, #tpu.memory_space<vmem>>, vector<256x128xbf16>
    %cst = arith.constant dense<0.000000e+00> : vector<8x128xf32>
    %6 = tpu.matmul %4, %5, %cst {dimension_numbers = #tpu.dot_dimension_numbers<[1], [0], [0], [1], [0, 0, 1, 1], [], []>} : vector<8x256xbf16>, vector<256x128xbf16>, vector<8x128xf32> -> vector<8x128xf32>
    %7 = arith.addf %3, %6 : vector<8x128xf32>
    %c0_6 = arith.constant 0 : index
    %c0_7 = arith.constant 0 : index
    %8 = vector.load %arg5[%c0_6, %c0_7] : memref<8x128xf32, #tpu.memory_space<vmem>>, vector<8x128xf32>
    tpu.vector_store %arg5[%c0_6, %c0_7], %7 {strides = array<i32>} : memref<8x128xf32, #tpu.memory_space<vmem>>, vector<8x128xf32>,
    return
  }
  func.func @transform_0(%arg0: i32, %arg1: i32, %arg2: i32) -> (i32, i32) {
    %c0_i32 = arith.constant 0 : i32
    return %arg0, %arg2 : i32, i32
  }
  func.func @transform_1(%arg0: i32, %arg1: i32, %arg2: i32) -> (i32, i32) {
    %c0_i32 = arith.constant 0 : i32
    return %arg2, %arg1 : i32, i32
  }
  func.func @transform_2(%arg0: i32, %arg1: i32, %arg2: i32) -> (i32, i32) {
    %c0_i32 = arith.constant 0 : i32
    return %arg0, %arg1 : i32, i32
  }
}

module attributes {stable_mosaic.version = 11 : i64} {
  func.func @_bn_res_relu_kernel(%arg0: i32, %arg1: memref<8x256xf32, #tpu.memory_space<vmem>>, %arg2: memref<8x256xf32, #tpu.memory_space<vmem>>, %arg3: memref<8x256xf32, #tpu.memory_space<vmem>>, %arg4: memref<8x256xf32, #tpu.memory_space<vmem>>, %arg5: memref<8x256xbf16, #tpu.memory_space<vmem>>) attributes {dimension_semantics = [#tpu.dimension_semantics<parallel>], iteration_bounds = array<i64: 1>, scalar_prefetch = 0 : i64, scratch_operands = 0 : i64, tpu.core_type = #tpu.core_type<tc>, window_params = [{transform_indices = @transform_0, window_bounds = array<i64: 8, 256>}, {transform_indices = @transform_1, window_bounds = array<i64: 8, 256>}, {pipeline_mode = #tpu.pipeline_mode<synchronous>, transform_indices = @transform_2, window_bounds = array<i64: 8, 256>}, {pipeline_mode = #tpu.pipeline_mode<synchronous>, transform_indices = @transform_3, window_bounds = array<i64: 8, 256>}, {transform_indices = @transform_4, window_bounds = array<i64: 8, 256>}]} {
    %c0 = arith.constant 0 : index
    %c0_0 = arith.constant 0 : index
    %0 = vector.load %arg3[%c0, %c0_0] : memref<8x256xf32, #tpu.memory_space<vmem>>, vector<8x256xf32>
    %c0_1 = arith.constant 0 : index
    %c0_2 = arith.constant 0 : index
    %1 = vector.load %arg4[%c0_1, %c0_2] : memref<8x256xf32, #tpu.memory_space<vmem>>, vector<8x256xf32>
    %c0_3 = arith.constant 0 : index
    %c0_4 = arith.constant 0 : index
    %2 = vector.load %arg1[%c0_3, %c0_4] : memref<8x256xf32, #tpu.memory_space<vmem>>, vector<8x256xf32>
    %c0_5 = arith.constant 0 : index
    %c0_6 = arith.constant 0 : index
    %3 = vector.load %arg2[%c0_5, %c0_6] : memref<8x256xf32, #tpu.memory_space<vmem>>, vector<8x256xf32>
    %4 = vector.extract_strided_slice %0 {offsets = [0, 0], sizes = [1, 256], strides = [1, 1]} : vector<8x256xf32> to vector<1x256xf32>
    %5 = vector.broadcast %4 : vector<1x256xf32> to vector<8x256xf32>
    %6 = arith.mulf %2, %5 : vector<8x256xf32>
    %7 = vector.extract_strided_slice %0 {offsets = [1, 0], sizes = [1, 256], strides = [1, 1]} : vector<8x256xf32> to vector<1x256xf32>
    %8 = vector.broadcast %7 : vector<1x256xf32> to vector<8x256xf32>
    %9 = arith.addf %6, %8 : vector<8x256xf32>
    %10 = vector.extract_strided_slice %1 {offsets = [0, 0], sizes = [1, 256], strides = [1, 1]} : vector<8x256xf32> to vector<1x256xf32>
    %11 = vector.broadcast %10 : vector<1x256xf32> to vector<8x256xf32>
    %12 = arith.mulf %3, %11 : vector<8x256xf32>
    %13 = arith.addf %9, %12 : vector<8x256xf32>
    %14 = vector.extract_strided_slice %1 {offsets = [1, 0], sizes = [1, 256], strides = [1, 1]} : vector<8x256xf32> to vector<1x256xf32>
    %15 = vector.broadcast %14 : vector<1x256xf32> to vector<8x256xf32>
    %16 = arith.addf %13, %15 : vector<8x256xf32>
    %cst = arith.constant 0.000000e+00 : f32
    %17 = vector.broadcast %cst : f32 to vector<8x256xf32>
    %18 = arith.maximumf %16, %17 : vector<8x256xf32>
    %19 = arith.truncf %18 : vector<8x256xf32> to vector<8x256xbf16>
    %c0_7 = arith.constant 0 : index
    %c0_8 = arith.constant 0 : index
    %20 = vector.load %arg5[%c0_7, %c0_8] : memref<8x256xbf16, #tpu.memory_space<vmem>>, vector<8x256xbf16>
    tpu.vector_store %arg5[%c0_7, %c0_8], %19 {strides = array<i32>} : memref<8x256xbf16, #tpu.memory_space<vmem>>, vector<8x256xbf16>,
    return
  }
  func.func @transform_0(%arg0: i32) -> (i32, i32) {
    %c0_i32 = arith.constant 0 : i32
    %c0_i32_0 = arith.constant 0 : i32
    return %arg0, %c0_i32 : i32, i32
  }
  func.func @transform_1(%arg0: i32) -> (i32, i32) {
    %c0_i32 = arith.constant 0 : i32
    %c0_i32_0 = arith.constant 0 : i32
    return %arg0, %c0_i32 : i32, i32
  }
  func.func @transform_2(%arg0: i32) -> (i32, i32) {
    %c0_i32 = arith.constant 0 : i32
    %c0_i32_0 = arith.constant 0 : i32
    %c0_i32_1 = arith.constant 0 : i32
    return %c0_i32, %c0_i32_0 : i32, i32
  }
  func.func @transform_3(%arg0: i32) -> (i32, i32) {
    %c0_i32 = arith.constant 0 : i32
    %c0_i32_0 = arith.constant 0 : i32
    %c0_i32_1 = arith.constant 0 : i32
    return %c0_i32, %c0_i32_0 : i32, i32
  }
  func.func @transform_4(%arg0: i32) -> (i32, i32) {
    %c0_i32 = arith.constant 0 : i32
    %c0_i32_0 = arith.constant 0 : i32
    return %arg0, %c0_i32 : i32, i32
  }
}

module attributes {stable_mosaic.version = 11 : i64} {
  func.func @_matmul_kernel(%arg0: i32, %arg1: i32, %arg2: i32, %arg3: memref<8x256xbf16, #tpu.memory_space<vmem>>, %arg4: memref<256x256xbf16, #tpu.memory_space<vmem>>, %arg5: memref<8x256xf32, #tpu.memory_space<vmem>>) attributes {dimension_semantics = [#tpu.dimension_semantics<parallel>, #tpu.dimension_semantics<parallel>, #tpu.dimension_semantics<arbitrary>], iteration_bounds = array<i64: 1, 2, 9>, scalar_prefetch = 0 : i64, scratch_operands = 0 : i64, tpu.core_type = #tpu.core_type<tc>, window_params = [{transform_indices = @transform_0, window_bounds = array<i64: 8, 256>}, {transform_indices = @transform_1, window_bounds = array<i64: 256, 256>}, {transform_indices = @transform_2, window_bounds = array<i64: 8, 256>}]} {
    %c0_i32 = arith.constant 0 : i32
    %0 = arith.cmpi eq, %arg2, %c0_i32 : i32
    %1 = arith.extui %0 : i1 to i32
    %c0_i32_0 = arith.constant 0 : i32
    %2 = arith.cmpi ne, %1, %c0_i32_0 : i32
    scf.if %2 {
      %cst_8 = arith.constant 0.000000e+00 : f32
      %9 = vector.broadcast %cst_8 : f32 to vector<8x256xf32>
      %c0_9 = arith.constant 0 : index
      %c0_10 = arith.constant 0 : index
      %10 = vector.load %arg5[%c0_9, %c0_10] : memref<8x256xf32, #tpu.memory_space<vmem>>, vector<8x256xf32>
      tpu.vector_store %arg5[%c0_9, %c0_10], %9 {strides = array<i32>} : memref<8x256xf32, #tpu.memory_space<vmem>>, vector<8x256xf32>,
    } else {
    }
    %c0 = arith.constant 0 : index
    %c0_1 = arith.constant 0 : index
    %3 = vector.load %arg5[%c0, %c0_1] : memref<8x256xf32, #tpu.memory_space<vmem>>, vector<8x256xf32>
    %c0_2 = arith.constant 0 : index
    %c0_3 = arith.constant 0 : index
    %4 = vector.load %arg3[%c0_2, %c0_3] : memref<8x256xbf16, #tpu.memory_space<vmem>>, vector<8x256xbf16>
    %c0_4 = arith.constant 0 : index
    %c0_5 = arith.constant 0 : index
    %5 = vector.load %arg4[%c0_4, %c0_5] : memref<256x256xbf16, #tpu.memory_space<vmem>>, vector<256x256xbf16>
    %cst = arith.constant dense<0.000000e+00> : vector<8x256xf32>
    %6 = tpu.matmul %4, %5, %cst {dimension_numbers = #tpu.dot_dimension_numbers<[1], [0], [0], [1], [0, 0, 1, 1], [], []>} : vector<8x256xbf16>, vector<256x256xbf16>, vector<8x256xf32> -> vector<8x256xf32>
    %7 = arith.addf %3, %6 : vector<8x256xf32>
    %c0_6 = arith.constant 0 : index
    %c0_7 = arith.constant 0 : index
    %8 = vector.load %arg5[%c0_6, %c0_7] : memref<8x256xf32, #tpu.memory_space<vmem>>, vector<8x256xf32>
    tpu.vector_store %arg5[%c0_6, %c0_7], %7 {strides = array<i32>} : memref<8x256xf32, #tpu.memory_space<vmem>>, vector<8x256xf32>,
    return
  }
  func.func @transform_0(%arg0: i32, %arg1: i32, %arg2: i32) -> (i32, i32) {
    %c0_i32 = arith.constant 0 : i32
    return %arg0, %arg2 : i32, i32
  }
  func.func @transform_1(%arg0: i32, %arg1: i32, %arg2: i32) -> (i32, i32) {
    %c0_i32 = arith.constant 0 : i32
    return %arg2, %arg1 : i32, i32
  }
  func.func @transform_2(%arg0: i32, %arg1: i32, %arg2: i32) -> (i32, i32) {
    %c0_i32 = arith.constant 0 : i32
    return %arg0, %arg1 : i32, i32
  }
}

module attributes {stable_mosaic.version = 11 : i64} {
  func.func @_matmul_kernel(%arg0: i32, %arg1: i32, %arg2: i32, %arg3: memref<8x256xbf16, #tpu.memory_space<vmem>>, %arg4: memref<256x256xbf16, #tpu.memory_space<vmem>>, %arg5: memref<8x256xf32, #tpu.memory_space<vmem>>) attributes {dimension_semantics = [#tpu.dimension_semantics<parallel>, #tpu.dimension_semantics<parallel>, #tpu.dimension_semantics<arbitrary>], iteration_bounds = array<i64: 1, 2, 1>, scalar_prefetch = 0 : i64, scratch_operands = 0 : i64, tpu.core_type = #tpu.core_type<tc>, window_params = [{transform_indices = @transform_0, window_bounds = array<i64: 8, 256>}, {transform_indices = @transform_1, window_bounds = array<i64: 256, 256>}, {transform_indices = @transform_2, window_bounds = array<i64: 8, 256>}]} {
    %c0_i32 = arith.constant 0 : i32
    %0 = arith.cmpi eq, %arg2, %c0_i32 : i32
    %1 = arith.extui %0 : i1 to i32
    %c0_i32_0 = arith.constant 0 : i32
    %2 = arith.cmpi ne, %1, %c0_i32_0 : i32
    scf.if %2 {
      %cst_8 = arith.constant 0.000000e+00 : f32
      %9 = vector.broadcast %cst_8 : f32 to vector<8x256xf32>
      %c0_9 = arith.constant 0 : index
      %c0_10 = arith.constant 0 : index
      %10 = vector.load %arg5[%c0_9, %c0_10] : memref<8x256xf32, #tpu.memory_space<vmem>>, vector<8x256xf32>
      tpu.vector_store %arg5[%c0_9, %c0_10], %9 {strides = array<i32>} : memref<8x256xf32, #tpu.memory_space<vmem>>, vector<8x256xf32>,
    } else {
    }
    %c0 = arith.constant 0 : index
    %c0_1 = arith.constant 0 : index
    %3 = vector.load %arg5[%c0, %c0_1] : memref<8x256xf32, #tpu.memory_space<vmem>>, vector<8x256xf32>
    %c0_2 = arith.constant 0 : index
    %c0_3 = arith.constant 0 : index
    %4 = vector.load %arg3[%c0_2, %c0_3] : memref<8x256xbf16, #tpu.memory_space<vmem>>, vector<8x256xbf16>
    %c0_4 = arith.constant 0 : index
    %c0_5 = arith.constant 0 : index
    %5 = vector.load %arg4[%c0_4, %c0_5] : memref<256x256xbf16, #tpu.memory_space<vmem>>, vector<256x256xbf16>
    %cst = arith.constant dense<0.000000e+00> : vector<8x256xf32>
    %6 = tpu.matmul %4, %5, %cst {dimension_numbers = #tpu.dot_dimension_numbers<[1], [0], [0], [1], [0, 0, 1, 1], [], []>} : vector<8x256xbf16>, vector<256x256xbf16>, vector<8x256xf32> -> vector<8x256xf32>
    %7 = arith.addf %3, %6 : vector<8x256xf32>
    %c0_6 = arith.constant 0 : index
    %c0_7 = arith.constant 0 : index
    %8 = vector.load %arg5[%c0_6, %c0_7] : memref<8x256xf32, #tpu.memory_space<vmem>>, vector<8x256xf32>
    tpu.vector_store %arg5[%c0_6, %c0_7], %7 {strides = array<i32>} : memref<8x256xf32, #tpu.memory_space<vmem>>, vector<8x256xf32>,
    return
  }
  func.func @transform_0(%arg0: i32, %arg1: i32, %arg2: i32) -> (i32, i32) {
    %c0_i32 = arith.constant 0 : i32
    return %arg0, %arg2 : i32, i32
  }
  func.func @transform_1(%arg0: i32, %arg1: i32, %arg2: i32) -> (i32, i32) {
    %c0_i32 = arith.constant 0 : i32
    return %arg2, %arg1 : i32, i32
  }
  func.func @transform_2(%arg0: i32, %arg1: i32, %arg2: i32) -> (i32, i32) {
    %c0_i32 = arith.constant 0 : i32
    return %arg0, %arg1 : i32, i32
  }
}

module attributes {stable_mosaic.version = 11 : i64} {
  func.func @_matmul_kernel(%arg0: i32, %arg1: i32, %arg2: i32, %arg3: memref<8x256xbf16, #tpu.memory_space<vmem>>, %arg4: memref<256x256xbf16, #tpu.memory_space<vmem>>, %arg5: memref<8x256xf32, #tpu.memory_space<vmem>>) attributes {dimension_semantics = [#tpu.dimension_semantics<parallel>, #tpu.dimension_semantics<parallel>, #tpu.dimension_semantics<arbitrary>], iteration_bounds = array<i64: 1, 2, 1>, scalar_prefetch = 0 : i64, scratch_operands = 0 : i64, tpu.core_type = #tpu.core_type<tc>, window_params = [{transform_indices = @transform_0, window_bounds = array<i64: 8, 256>}, {transform_indices = @transform_1, window_bounds = array<i64: 256, 256>}, {transform_indices = @transform_2, window_bounds = array<i64: 8, 256>}]} {
    %c0_i32 = arith.constant 0 : i32
    %0 = arith.cmpi eq, %arg2, %c0_i32 : i32
    %1 = arith.extui %0 : i1 to i32
    %c0_i32_0 = arith.constant 0 : i32
    %2 = arith.cmpi ne, %1, %c0_i32_0 : i32
    scf.if %2 {
      %cst_8 = arith.constant 0.000000e+00 : f32
      %9 = vector.broadcast %cst_8 : f32 to vector<8x256xf32>
      %c0_9 = arith.constant 0 : index
      %c0_10 = arith.constant 0 : index
      %10 = vector.load %arg5[%c0_9, %c0_10] : memref<8x256xf32, #tpu.memory_space<vmem>>, vector<8x256xf32>
      tpu.vector_store %arg5[%c0_9, %c0_10], %9 {strides = array<i32>} : memref<8x256xf32, #tpu.memory_space<vmem>>, vector<8x256xf32>,
    } else {
    }
    %c0 = arith.constant 0 : index
    %c0_1 = arith.constant 0 : index
    %3 = vector.load %arg5[%c0, %c0_1] : memref<8x256xf32, #tpu.memory_space<vmem>>, vector<8x256xf32>
    %c0_2 = arith.constant 0 : index
    %c0_3 = arith.constant 0 : index
    %4 = vector.load %arg3[%c0_2, %c0_3] : memref<8x256xbf16, #tpu.memory_space<vmem>>, vector<8x256xbf16>
    %c0_4 = arith.constant 0 : index
    %c0_5 = arith.constant 0 : index
    %5 = vector.load %arg4[%c0_4, %c0_5] : memref<256x256xbf16, #tpu.memory_space<vmem>>, vector<256x256xbf16>
    %cst = arith.constant dense<0.000000e+00> : vector<8x256xf32>
    %6 = tpu.matmul %4, %5, %cst {dimension_numbers = #tpu.dot_dimension_numbers<[1], [0], [0], [1], [0, 0, 1, 1], [], []>} : vector<8x256xbf16>, vector<256x256xbf16>, vector<8x256xf32> -> vector<8x256xf32>
    %7 = arith.addf %3, %6 : vector<8x256xf32>
    %c0_6 = arith.constant 0 : index
    %c0_7 = arith.constant 0 : index
    %8 = vector.load %arg5[%c0_6, %c0_7] : memref<8x256xf32, #tpu.memory_space<vmem>>, vector<8x256xf32>
    tpu.vector_store %arg5[%c0_6, %c0_7], %7 {strides = array<i32>} : memref<8x256xf32, #tpu.memory_space<vmem>>, vector<8x256xf32>,
    return
  }
  func.func @transform_0(%arg0: i32, %arg1: i32, %arg2: i32) -> (i32, i32) {
    %c0_i32 = arith.constant 0 : i32
    return %arg0, %arg2 : i32, i32
  }
  func.func @transform_1(%arg0: i32, %arg1: i32, %arg2: i32) -> (i32, i32) {
    %c0_i32 = arith.constant 0 : i32
    return %arg2, %arg1 : i32, i32
  }
  func.func @transform_2(%arg0: i32, %arg1: i32, %arg2: i32) -> (i32, i32) {
    %c0_i32 = arith.constant 0 : i32
    return %arg0, %arg1 : i32, i32
  }
}

module attributes {stable_mosaic.version = 11 : i64} {
  func.func @_matmul_kernel(%arg0: i32, %arg1: i32, %arg2: i32, %arg3: memref<8x256xbf16, #tpu.memory_space<vmem>>, %arg4: memref<256x256xbf16, #tpu.memory_space<vmem>>, %arg5: memref<8x256xf32, #tpu.memory_space<vmem>>) attributes {dimension_semantics = [#tpu.dimension_semantics<parallel>, #tpu.dimension_semantics<parallel>, #tpu.dimension_semantics<arbitrary>], iteration_bounds = array<i64: 1, 2, 9>, scalar_prefetch = 0 : i64, scratch_operands = 0 : i64, tpu.core_type = #tpu.core_type<tc>, window_params = [{transform_indices = @transform_0, window_bounds = array<i64: 8, 256>}, {transform_indices = @transform_1, window_bounds = array<i64: 256, 256>}, {transform_indices = @transform_2, window_bounds = array<i64: 8, 256>}]} {
    %c0_i32 = arith.constant 0 : i32
    %0 = arith.cmpi eq, %arg2, %c0_i32 : i32
    %1 = arith.extui %0 : i1 to i32
    %c0_i32_0 = arith.constant 0 : i32
    %2 = arith.cmpi ne, %1, %c0_i32_0 : i32
    scf.if %2 {
      %cst_8 = arith.constant 0.000000e+00 : f32
      %9 = vector.broadcast %cst_8 : f32 to vector<8x256xf32>
      %c0_9 = arith.constant 0 : index
      %c0_10 = arith.constant 0 : index
      %10 = vector.load %arg5[%c0_9, %c0_10] : memref<8x256xf32, #tpu.memory_space<vmem>>, vector<8x256xf32>
      tpu.vector_store %arg5[%c0_9, %c0_10], %9 {strides = array<i32>} : memref<8x256xf32, #tpu.memory_space<vmem>>, vector<8x256xf32>,
    } else {
    }
    %c0 = arith.constant 0 : index
    %c0_1 = arith.constant 0 : index
    %3 = vector.load %arg5[%c0, %c0_1] : memref<8x256xf32, #tpu.memory_space<vmem>>, vector<8x256xf32>
    %c0_2 = arith.constant 0 : index
    %c0_3 = arith.constant 0 : index
    %4 = vector.load %arg3[%c0_2, %c0_3] : memref<8x256xbf16, #tpu.memory_space<vmem>>, vector<8x256xbf16>
    %c0_4 = arith.constant 0 : index
    %c0_5 = arith.constant 0 : index
    %5 = vector.load %arg4[%c0_4, %c0_5] : memref<256x256xbf16, #tpu.memory_space<vmem>>, vector<256x256xbf16>
    %cst = arith.constant dense<0.000000e+00> : vector<8x256xf32>
    %6 = tpu.matmul %4, %5, %cst {dimension_numbers = #tpu.dot_dimension_numbers<[1], [0], [0], [1], [0, 0, 1, 1], [], []>} : vector<8x256xbf16>, vector<256x256xbf16>, vector<8x256xf32> -> vector<8x256xf32>
    %7 = arith.addf %3, %6 : vector<8x256xf32>
    %c0_6 = arith.constant 0 : index
    %c0_7 = arith.constant 0 : index
    %8 = vector.load %arg5[%c0_6, %c0_7] : memref<8x256xf32, #tpu.memory_space<vmem>>, vector<8x256xf32>
    tpu.vector_store %arg5[%c0_6, %c0_7], %7 {strides = array<i32>} : memref<8x256xf32, #tpu.memory_space<vmem>>, vector<8x256xf32>,
    return
  }
  func.func @transform_0(%arg0: i32, %arg1: i32, %arg2: i32) -> (i32, i32) {
    %c0_i32 = arith.constant 0 : i32
    return %arg0, %arg2 : i32, i32
  }
  func.func @transform_1(%arg0: i32, %arg1: i32, %arg2: i32) -> (i32, i32) {
    %c0_i32 = arith.constant 0 : i32
    return %arg2, %arg1 : i32, i32
  }
  func.func @transform_2(%arg0: i32, %arg1: i32, %arg2: i32) -> (i32, i32) {
    %c0_i32 = arith.constant 0 : i32
    return %arg0, %arg1 : i32, i32
  }
}

module attributes {stable_mosaic.version = 11 : i64} {
  func.func @_bn_relu_kernel(%arg0: i32, %arg1: memref<8x512xf32, #tpu.memory_space<vmem>>, %arg2: memref<8x512xf32, #tpu.memory_space<vmem>>, %arg3: memref<8x512xbf16, #tpu.memory_space<vmem>>) attributes {dimension_semantics = [#tpu.dimension_semantics<parallel>], iteration_bounds = array<i64: 1>, scalar_prefetch = 0 : i64, scratch_operands = 0 : i64, tpu.core_type = #tpu.core_type<tc>, window_params = [{transform_indices = @transform_0, window_bounds = array<i64: 8, 512>}, {pipeline_mode = #tpu.pipeline_mode<synchronous>, transform_indices = @transform_1, window_bounds = array<i64: 8, 512>}, {transform_indices = @transform_2, window_bounds = array<i64: 8, 512>}]} {
    %c0 = arith.constant 0 : index
    %c0_0 = arith.constant 0 : index
    %0 = vector.load %arg2[%c0, %c0_0] : memref<8x512xf32, #tpu.memory_space<vmem>>, vector<8x512xf32>
    %c0_1 = arith.constant 0 : index
    %c0_2 = arith.constant 0 : index
    %1 = vector.load %arg1[%c0_1, %c0_2] : memref<8x512xf32, #tpu.memory_space<vmem>>, vector<8x512xf32>
    %2 = vector.extract_strided_slice %0 {offsets = [0, 0], sizes = [1, 512], strides = [1, 1]} : vector<8x512xf32> to vector<1x512xf32>
    %3 = vector.broadcast %2 : vector<1x512xf32> to vector<8x512xf32>
    %4 = arith.mulf %1, %3 : vector<8x512xf32>
    %5 = vector.extract_strided_slice %0 {offsets = [1, 0], sizes = [1, 512], strides = [1, 1]} : vector<8x512xf32> to vector<1x512xf32>
    %6 = vector.broadcast %5 : vector<1x512xf32> to vector<8x512xf32>
    %7 = arith.addf %4, %6 : vector<8x512xf32>
    %cst = arith.constant 0.000000e+00 : f32
    %8 = vector.broadcast %cst : f32 to vector<8x512xf32>
    %9 = arith.maximumf %7, %8 : vector<8x512xf32>
    %10 = arith.truncf %9 : vector<8x512xf32> to vector<8x512xbf16>
    %c0_3 = arith.constant 0 : index
    %c0_4 = arith.constant 0 : index
    %11 = vector.load %arg3[%c0_3, %c0_4] : memref<8x512xbf16, #tpu.memory_space<vmem>>, vector<8x512xbf16>
    tpu.vector_store %arg3[%c0_3, %c0_4], %10 {strides = array<i32>} : memref<8x512xbf16, #tpu.memory_space<vmem>>, vector<8x512xbf16>,
    return
  }
  func.func @transform_0(%arg0: i32) -> (i32, i32) {
    %c0_i32 = arith.constant 0 : i32
    %c0_i32_0 = arith.constant 0 : i32
    return %arg0, %c0_i32 : i32, i32
  }
  func.func @transform_1(%arg0: i32) -> (i32, i32) {
    %c0_i32 = arith.constant 0 : i32
    %c0_i32_0 = arith.constant 0 : i32
    %c0_i32_1 = arith.constant 0 : i32
    return %c0_i32, %c0_i32_0 : i32, i32
  }
  func.func @transform_2(%arg0: i32) -> (i32, i32) {
    %c0_i32 = arith.constant 0 : i32
    %c0_i32_0 = arith.constant 0 : i32
    return %arg0, %c0_i32 : i32, i32
  }
}

module attributes {stable_mosaic.version = 11 : i64} {
  func.func @_matmul_kernel(%arg0: i32, %arg1: i32, %arg2: i32, %arg3: memref<8x512xbf16, #tpu.memory_space<vmem>>, %arg4: memref<512x256xbf16, #tpu.memory_space<vmem>>, %arg5: memref<8x256xf32, #tpu.memory_space<vmem>>) attributes {dimension_semantics = [#tpu.dimension_semantics<parallel>, #tpu.dimension_semantics<parallel>, #tpu.dimension_semantics<arbitrary>], iteration_bounds = array<i64: 1, 2, 9>, scalar_prefetch = 0 : i64, scratch_operands = 0 : i64, tpu.core_type = #tpu.core_type<tc>, window_params = [{transform_indices = @transform_0, window_bounds = array<i64: 8, 512>}, {transform_indices = @transform_1, window_bounds = array<i64: 512, 256>}, {transform_indices = @transform_2, window_bounds = array<i64: 8, 256>}]} {
    %c0_i32 = arith.constant 0 : i32
    %0 = arith.cmpi eq, %arg2, %c0_i32 : i32
    %1 = arith.extui %0 : i1 to i32
    %c0_i32_0 = arith.constant 0 : i32
    %2 = arith.cmpi ne, %1, %c0_i32_0 : i32
    scf.if %2 {
      %cst_8 = arith.constant 0.000000e+00 : f32
      %9 = vector.broadcast %cst_8 : f32 to vector<8x256xf32>
      %c0_9 = arith.constant 0 : index
      %c0_10 = arith.constant 0 : index
      %10 = vector.load %arg5[%c0_9, %c0_10] : memref<8x256xf32, #tpu.memory_space<vmem>>, vector<8x256xf32>
      tpu.vector_store %arg5[%c0_9, %c0_10], %9 {strides = array<i32>} : memref<8x256xf32, #tpu.memory_space<vmem>>, vector<8x256xf32>,
    } else {
    }
    %c0 = arith.constant 0 : index
    %c0_1 = arith.constant 0 : index
    %3 = vector.load %arg5[%c0, %c0_1] : memref<8x256xf32, #tpu.memory_space<vmem>>, vector<8x256xf32>
    %c0_2 = arith.constant 0 : index
    %c0_3 = arith.constant 0 : index
    %4 = vector.load %arg3[%c0_2, %c0_3] : memref<8x512xbf16, #tpu.memory_space<vmem>>, vector<8x512xbf16>
    %c0_4 = arith.constant 0 : index
    %c0_5 = arith.constant 0 : index
    %5 = vector.load %arg4[%c0_4, %c0_5] : memref<512x256xbf16, #tpu.memory_space<vmem>>, vector<512x256xbf16>
    %cst = arith.constant dense<0.000000e+00> : vector<8x256xf32>
    %6 = tpu.matmul %4, %5, %cst {dimension_numbers = #tpu.dot_dimension_numbers<[1], [0], [0], [1], [0, 0, 1, 1], [], []>} : vector<8x512xbf16>, vector<512x256xbf16>, vector<8x256xf32> -> vector<8x256xf32>
    %7 = arith.addf %3, %6 : vector<8x256xf32>
    %c0_6 = arith.constant 0 : index
    %c0_7 = arith.constant 0 : index
    %8 = vector.load %arg5[%c0_6, %c0_7] : memref<8x256xf32, #tpu.memory_space<vmem>>, vector<8x256xf32>
    tpu.vector_store %arg5[%c0_6, %c0_7], %7 {strides = array<i32>} : memref<8x256xf32, #tpu.memory_space<vmem>>, vector<8x256xf32>,
    return
  }
  func.func @transform_0(%arg0: i32, %arg1: i32, %arg2: i32) -> (i32, i32) {
    %c0_i32 = arith.constant 0 : i32
    return %arg0, %arg2 : i32, i32
  }
  func.func @transform_1(%arg0: i32, %arg1: i32, %arg2: i32) -> (i32, i32) {
    %c0_i32 = arith.constant 0 : i32
    return %arg2, %arg1 : i32, i32
  }
  func.func @transform_2(%arg0: i32, %arg1: i32, %arg2: i32) -> (i32, i32) {
    %c0_i32 = arith.constant 0 : i32
    return %arg0, %arg1 : i32, i32
  }
}

module attributes {stable_mosaic.version = 11 : i64} {
  func.func @_bn_res_relu_kernel(%arg0: i32, %arg1: memref<8x512xf32, #tpu.memory_space<vmem>>, %arg2: memref<8x512xf32, #tpu.memory_space<vmem>>, %arg3: memref<8x512xf32, #tpu.memory_space<vmem>>, %arg4: memref<8x512xf32, #tpu.memory_space<vmem>>, %arg5: memref<8x512xbf16, #tpu.memory_space<vmem>>) attributes {dimension_semantics = [#tpu.dimension_semantics<parallel>], iteration_bounds = array<i64: 1>, scalar_prefetch = 0 : i64, scratch_operands = 0 : i64, tpu.core_type = #tpu.core_type<tc>, window_params = [{transform_indices = @transform_0, window_bounds = array<i64: 8, 512>}, {transform_indices = @transform_1, window_bounds = array<i64: 8, 512>}, {pipeline_mode = #tpu.pipeline_mode<synchronous>, transform_indices = @transform_2, window_bounds = array<i64: 8, 512>}, {pipeline_mode = #tpu.pipeline_mode<synchronous>, transform_indices = @transform_3, window_bounds = array<i64: 8, 512>}, {transform_indices = @transform_4, window_bounds = array<i64: 8, 512>}]} {
    %c0 = arith.constant 0 : index
    %c0_0 = arith.constant 0 : index
    %0 = vector.load %arg3[%c0, %c0_0] : memref<8x512xf32, #tpu.memory_space<vmem>>, vector<8x512xf32>
    %c0_1 = arith.constant 0 : index
    %c0_2 = arith.constant 0 : index
    %1 = vector.load %arg4[%c0_1, %c0_2] : memref<8x512xf32, #tpu.memory_space<vmem>>, vector<8x512xf32>
    %c0_3 = arith.constant 0 : index
    %c0_4 = arith.constant 0 : index
    %2 = vector.load %arg1[%c0_3, %c0_4] : memref<8x512xf32, #tpu.memory_space<vmem>>, vector<8x512xf32>
    %c0_5 = arith.constant 0 : index
    %c0_6 = arith.constant 0 : index
    %3 = vector.load %arg2[%c0_5, %c0_6] : memref<8x512xf32, #tpu.memory_space<vmem>>, vector<8x512xf32>
    %4 = vector.extract_strided_slice %0 {offsets = [0, 0], sizes = [1, 512], strides = [1, 1]} : vector<8x512xf32> to vector<1x512xf32>
    %5 = vector.broadcast %4 : vector<1x512xf32> to vector<8x512xf32>
    %6 = arith.mulf %2, %5 : vector<8x512xf32>
    %7 = vector.extract_strided_slice %0 {offsets = [1, 0], sizes = [1, 512], strides = [1, 1]} : vector<8x512xf32> to vector<1x512xf32>
    %8 = vector.broadcast %7 : vector<1x512xf32> to vector<8x512xf32>
    %9 = arith.addf %6, %8 : vector<8x512xf32>
    %10 = vector.extract_strided_slice %1 {offsets = [0, 0], sizes = [1, 512], strides = [1, 1]} : vector<8x512xf32> to vector<1x512xf32>
    %11 = vector.broadcast %10 : vector<1x512xf32> to vector<8x512xf32>
    %12 = arith.mulf %3, %11 : vector<8x512xf32>
    %13 = arith.addf %9, %12 : vector<8x512xf32>
    %14 = vector.extract_strided_slice %1 {offsets = [1, 0], sizes = [1, 512], strides = [1, 1]} : vector<8x512xf32> to vector<1x512xf32>
    %15 = vector.broadcast %14 : vector<1x512xf32> to vector<8x512xf32>
    %16 = arith.addf %13, %15 : vector<8x512xf32>
    %cst = arith.constant 0.000000e+00 : f32
    %17 = vector.broadcast %cst : f32 to vector<8x512xf32>
    %18 = arith.maximumf %16, %17 : vector<8x512xf32>
    %19 = arith.truncf %18 : vector<8x512xf32> to vector<8x512xbf16>
    %c0_7 = arith.constant 0 : index
    %c0_8 = arith.constant 0 : index
    %20 = vector.load %arg5[%c0_7, %c0_8] : memref<8x512xbf16, #tpu.memory_space<vmem>>, vector<8x512xbf16>
    tpu.vector_store %arg5[%c0_7, %c0_8], %19 {strides = array<i32>} : memref<8x512xbf16, #tpu.memory_space<vmem>>, vector<8x512xbf16>,
    return
  }
  func.func @transform_0(%arg0: i32) -> (i32, i32) {
    %c0_i32 = arith.constant 0 : i32
    %c0_i32_0 = arith.constant 0 : i32
    return %arg0, %c0_i32 : i32, i32
  }
  func.func @transform_1(%arg0: i32) -> (i32, i32) {
    %c0_i32 = arith.constant 0 : i32
    %c0_i32_0 = arith.constant 0 : i32
    return %arg0, %c0_i32 : i32, i32
  }
  func.func @transform_2(%arg0: i32) -> (i32, i32) {
    %c0_i32 = arith.constant 0 : i32
    %c0_i32_0 = arith.constant 0 : i32
    %c0_i32_1 = arith.constant 0 : i32
    return %c0_i32, %c0_i32_0 : i32, i32
  }
  func.func @transform_3(%arg0: i32) -> (i32, i32) {
    %c0_i32 = arith.constant 0 : i32
    %c0_i32_0 = arith.constant 0 : i32
    %c0_i32_1 = arith.constant 0 : i32
    return %c0_i32, %c0_i32_0 : i32, i32
  }
  func.func @transform_4(%arg0: i32) -> (i32, i32) {
    %c0_i32 = arith.constant 0 : i32
    %c0_i32_0 = arith.constant 0 : i32
    return %arg0, %c0_i32 : i32, i32
  }
}

</mosaic_0001>

<bundles_post_ra>
// kernel: tile.23
= control target key start
LH: loop header
LB: loop body
LE: loop exit
PB: predicated region body
PF: predicated region fallthrough
CT: control target
= control target key end

     0   :  { %vm36_vm0 = vcmask 1047556   ;;  %vm38_vm1 = vcmask 523264   ;;  %vm48_vm2 = vcmask 1048064   ;;  %s99_s0 = inlined_call_operand.vmem [shape: f32[8,2,64], index: 0, kind: input, shape index: {}]   ;;  %s100_s1 = inlined_call_operand.vmem [shape: f32[8,128], index: 1, kind: output, shape index: {}]  }
   0x1   :  { %v50_v0 = vld [vmem:[%s99_s0 + $0xe] sm:$0x3]  ;;  %v51_v1 = vld [vmem:[%s99_s0 + $0xc] sm:$0x3]  ;;  %v52_v2 = vld [vmem:[%s99_s0 + $0xa] sm:$0x3] }
   0x2   :  { %7 = vst [vmem:[#allocation0 + $0x38] sm:$0x3] %v50_v0  ;;  %v53_v3 = vld [vmem:[%s99_s0 + $0x8] sm:$0x3]  ;;  %v54_v4 = vld [vmem:[%s99_s0 + $0x6] sm:$0x3] }
   0x3   :  { %11 = vst [vmem:[#allocation0 + $0x30] sm:$0x3] %v51_v1  ;;  %v55_v5 = vld [vmem:[%s99_s0 + $0x4] sm:$0x3]  ;;  %v56_v6 = vld [vmem:[%s99_s0 + $0x2] sm:$0x3] }
   0x4   :  { %15 = vst [vmem:[#allocation0 + $0x28] sm:$0x3] %v52_v2  ;;  %v32_v7 = vld [vmem:[%s99_s0] sm:$0x3]  ;;  %s58_s0 = smov 64  }
   0x5   :  { %19 = vst [vmem:[#allocation0 + $0x20] sm:$0x3] %v53_v3 }
   0x6   :  { %23 = vst [vmem:[#allocation0 + $0x18] sm:$0x3] %v54_v4 }
   0x7   :  { %27 = vst [vmem:[#allocation0 + $0x10] sm:$0x3] %v55_v5 }
   0x8   :  { %31 = vst [vmem:[#allocation0 + $0x8] sm:$0x3] %v56_v6 }
   0x9   :  { %33 = vst [vmem:[#allocation0] sm:$0x3] %v32_v7 }
   0xc   :  { %v35_v8 = vld [vmem:[#allocation0] ss:$8 sm:$0xf0]   ;;  %v43_v9 = vld [vmem:[#allocation0 + $0x1] ss:$8 sm:$0xf0]  }
  0x10   :  { %v34_v10 = vld [vmem:[#allocation0] ss:$8 sm:$0xf]   ;;  %v41_v11 = vld [vmem:[#allocation0 + $0x1] ss:$8 sm:$0xf]  }
  0x11   :  { %v37_v12 = vsel %vm36_vm0, %v35_v8, %v34_v10  ;;  %v45_v13 = vsel %vm36_vm0, %v43_v9, %v41_v11 }
  0x12   :  { %46 = vrot.lane.b32.xlu0 %v45_v13, %s58_s0  ;;  %39 = vst.msk [vmem:[%s100_s1] sm:$0xff] %vm38_vm1, %v37_v12  }
  0x84   :  { %v47_v14 = vpop.permute.xlu0 %46  }
  0x85   :  { %49 = vst.msk [vmem:[%s100_s1] sm:$0xff] %vm48_vm2, %v47_v14  }

// kernel: forward.31
= control target key start
LH: loop header
LB: loop body
LE: loop exit
PB: predicated region body
PF: predicated region fallthrough
CT: control target
= control target key end

     0   :  { %s1150_s9 = smov 0   ;;  %s1152_s10 = smov 0   ;;  %s1330_s0 = inlined_call_operand.vmem [shape: bf16[128,512], index: 0, kind: input, shape index: {}]   ;;  %s1331_s1 = inlined_call_operand.vmem [shape: bf16[512,128], index: 1, kind: input, shape index: {}]   ;;  %s1332_s2 = inlined_call_operand.vmem [shape: f32[128,128], index: 2, kind: output, shape index: {}]  }
   0x1   :  { %s1154_s11 = smov 0  }
   0x2 LB: > { %s31_s12 = sadd.s32 1, %s1129_s10  ;;  %p837_p0 = scmp.ge.s32.totalorder %s1133_s11, 1  ;;  %s1133_s11 = sphi %s1154_s11, %s12_s11   ;;  %s1129_s10 = sphi %s1152_s10, %s1334_s10   ;;  %s1125_s9 = sphi %s1150_s9, %s1333_s9  }
   0x3   : > { %p33_p1 = scmp.ge.s32.totalorder %s31_s12, 2  ;;  %p158_p2 = scmp.lt.s32.totalorder %s1133_s11, 3 }
   0x5   : > { %s1336_s12 = smov (%p33_p1, %s31_s12), 0  ;;  %p159_p3 = pnand %p837_p0, %p158_p2 }
   0x6   : > { %s838_s13 = sshll.u32 (!%p159_p3), %s1125_s9, 3 }
   0x7   : > { %162 = sbr.rel (%p159_p3) target bundleno = 239 (0xef), region = 28  ;;  %p198_p4 = scmp.lt.s32.totalorder (!%p159_p3), %s838_s13, 15 }
   0xc   : > { %v1061_v0 = vld [vmem:[%s1331_s1 + $0x38] sm:$0xff]  ;;  %v1060_v4 = vld [vmem:[%s1331_s1 + $0x30] sm:$0xff]  ;;  %v1059_v8 = vld [vmem:[%s1331_s1 + $0x28] sm:$0xff]  ;;  %s1338_s13 = smov (!%p198_p4, %s838_s13), 15 }
   0xd   : > { %v1069_v1 = vld [vmem:[%s1331_s1 + $0x78] sm:$0xff]  ;;  %598 = vmatpush.bf16.msra.mxu0 %v1061_v0  ;;  %v1068_v5 = vld [vmem:[%s1331_s1 + $0x70] sm:$0xff]  ;;  %v1067_v9 = vld [vmem:[%s1331_s1 + $0x68] sm:$0xff]  ;;  %s1037_s14 = sshll.u32 %s1338_s13, 4  ;;  %s842_s5 = sshll.u32 %s1338_s13, 3 }
   0xe   : > { %v1077_v2 = vld [vmem:[%s1331_s1 + $0xb8] sm:$0xff]  ;;  %627 = vmatpush.bf16.msra.mxu1 %v1069_v1  ;;  %v1076_v6 = vld [vmem:[%s1331_s1 + $0xb0] sm:$0xff]  ;;  %v1075_v10 = vld [vmem:[%s1331_s1 + $0xa8] sm:$0xff]  ;;  %s1255_s21 = scalar_lea.vmem %s1330_s0, %s1037_s14  ;;  %s1311_s8 = scalar_lea.vmem %s1332_s2, %s842_s5 }
   0xf   : > { %v1085_v3 = vld [vmem:[%s1331_s1 + $0xf8] sm:$0xff]  ;;  %656 = vmatpush.bf16.msra.mxu2 %v1077_v2  ;;  %v1084_v7 = vld [vmem:[%s1331_s1 + $0xf0] sm:$0xff]  ;;  %v1083_v11 = vld [vmem:[%s1331_s1 + $0xe8] sm:$0xff] }
  0x10   : > { %685 = vmatpush.bf16.msra.mxu3 %v1085_v3  ;;  %v1058_v12 = vld [vmem:[%s1331_s1 + $0x20] sm:$0xff]  ;;  %v1057_v16 = vld [vmem:[%s1331_s1 + $0x18] sm:$0xff]  ;;  %v1056_v20 = vld [vmem:[%s1331_s1 + $0x10] sm:$0xff] }
  0x11   : > { %599 = vmatpush.bf16.msra.mxu0 %v1060_v4  ;;  %v1066_v13 = vld [vmem:[%s1331_s1 + $0x60] sm:$0xff]  ;;  %v1065_v17 = vld [vmem:[%s1331_s1 + $0x58] sm:$0xff]  ;;  %v1064_v21 = vld [vmem:[%s1331_s1 + $0x50] sm:$0xff] }
  0x12   : > { %628 = vmatpush.bf16.msra.mxu1 %v1068_v5  ;;  %v1074_v14 = vld [vmem:[%s1331_s1 + $0xa0] sm:$0xff]  ;;  %v1073_v18 = vld [vmem:[%s1331_s1 + $0x98] sm:$0xff]  ;;  %v1072_v22 = vld [vmem:[%s1331_s1 + $0x90] sm:$0xff] }
  0x13   : > { %657 = vmatpush.bf16.msra.mxu2 %v1076_v6  ;;  %v1082_v15 = vld [vmem:[%s1331_s1 + $0xe0] sm:$0xff]  ;;  %v1081_v19 = vld [vmem:[%s1331_s1 + $0xd8] sm:$0xff]  ;;  %v1080_v23 = vld [vmem:[%s1331_s1 + $0xd0] sm:$0xff] }
  0x14   : > { %686 = vmatpush.bf16.msra.mxu3 %v1084_v7  ;;  %v1055_v24 = vld [vmem:[%s1331_s1 + $0x8] sm:$0xff]  ;;  %v1054_v28 = vld [vmem:[%s1331_s1] sm:$0xff]  ;;  %v1040_v33 = vld [vmem:[%s1255_s21 + $0xc] sm:$0xf0] }
  0x15   : > { %600 = vmatpush.bf16.msra.mxu0 %v1059_v8  ;;  %v1063_v25 = vld [vmem:[%s1331_s1 + $0x48] sm:$0xff]  ;;  %v1062_v29 = vld [vmem:[%s1331_s1 + $0x40] sm:$0xff]  ;;  %v847_v35 = vld [vmem:[%s1255_s21 + $0x10] sm:$0xf0] }
  0x16   : > { %629 = vmatpush.bf16.msra.mxu1 %v1067_v9  ;;  %v1071_v26 = vld [vmem:[%s1331_s1 + $0x88] sm:$0xff]  ;;  %v1070_v30 = vld [vmem:[%s1331_s1 + $0x80] sm:$0xff]  ;;  %v1041_v37 = vld [vmem:[%s1255_s21 + $0x14] sm:$0xf0] }
  0x17   : > { %658 = vmatpush.bf16.msra.mxu2 %v1075_v10  ;;  %v1079_v27 = vld [vmem:[%s1331_s1 + $0xc8] sm:$0xff]  ;;  %v1078_v31 = vld [vmem:[%s1331_s1 + $0xc0] sm:$0xff]  ;;  %v855_v39 = vld [vmem:[%s1255_s21 + $0x18] sm:$0xf0] }
  0x18   : > { %687 = vmatpush.bf16.msra.mxu3 %v1083_v11  ;;  %v845_v32 = vld [vmem:[%s1255_s21] sm:$0xf]  ;;  %v1038_v34 = vld [vmem:[%s1255_s21 + $0x4] sm:$0xf]  ;;  %v853_v36 = vld [vmem:[%s1255_s21 + $0x8] sm:$0xf] }
  0x19   : > { %601 = vmatpush.bf16.msra.mxu0 %v1058_v12  ;;  %v1039_v38 = vld [vmem:[%s1255_s21 + $0xc] sm:$0xf]  ;;  %v846_v40 = vor.u32 %v1040_v33, %v845_v32  ;;  %v850_v41 = vor.u32 %v1038_v34, %v847_v35  ;;  %v854_v42 = vor.u32 %v1041_v37, %v853_v36  ;;  %v861_v44 = vld [vmem:[%s1255_s21 + $0x20] sm:$0xf]  ;;  %v1044_v45 = vld [vmem:[%s1255_s21 + $0x2c] sm:$0xf0] }
  0x1a   : > { %630 = vmatpush.bf16.msra.mxu1 %v1066_v13  ;;  %v858_v43 = vor.u32 %v1039_v38, %v855_v39  ;;  %v1042_v46 = vld [vmem:[%s1255_s21 + $0x24] sm:$0xf]  ;;  %v863_v47 = vld [vmem:[%s1255_s21 + $0x30] sm:$0xf0]  ;;  %v869_v48 = vld [vmem:[%s1255_s21 + $0x28] sm:$0xf]  ;;  %v862_v52 = vor.u32 %v1044_v45, %v861_v44 }
  0x1b   : > { %659 = vmatpush.bf16.msra.mxu2 %v1074_v14  ;;  %v1045_v49 = vld [vmem:[%s1255_s21 + $0x34] sm:$0xf0]  ;;  %v1043_v50 = vld [vmem:[%s1255_s21 + $0x2c] sm:$0xf]  ;;  %v871_v51 = vld [vmem:[%s1255_s21 + $0x38] sm:$0xf0]  ;;  %v866_v53 = vor.u32 %v1042_v46, %v863_v47 }
  0x1c   : > { %688 = vmatpush.bf16.msra.mxu3 %v1082_v15  ;;  %v870_v54 = vor.u32 %v1045_v49, %v869_v48  ;;  %v874_v55 = vor.u32 %v1043_v50, %v871_v51  ;;  %v877_v56 = vld [vmem:[%s1255_s21 + $0x40] sm:$0xf]  ;;  %v1048_v57 = vld [vmem:[%s1255_s21 + $0x4c] sm:$0xf0]  ;;  %v1046_v58 = vld [vmem:[%s1255_s21 + $0x44] sm:$0xf] }
  0x1d   : > { %602 = vmatpush.bf16.msra.mxu0 %v1057_v16  ;;  %v879_v59 = vld [vmem:[%s1255_s21 + $0x50] sm:$0xf0]  ;;  %v885_v60 = vld [vmem:[%s1255_s21 + $0x48] sm:$0xf]  ;;  %v1049_v61 = vld [vmem:[%s1255_s21 + $0x54] sm:$0xf0]  ;;  %v878_v0 = vor.u32 %v1048_v57, %v877_v56 }
  0x1e   : > { %631 = vmatpush.bf16.msra.mxu1 %v1065_v17  ;;  %v1047_v62 = vld [vmem:[%s1255_s21 + $0x4c] sm:$0xf]  ;;  %v887_v63 = vld [vmem:[%s1255_s21 + $0x58] sm:$0xf0]  ;;  %v882_v1 = vor.u32 %v1046_v58, %v879_v59  ;;  %v886_v2 = vor.u32 %v1049_v61, %v885_v60  ;;  %v893_v4 = vld [vmem:[%s1255_s21 + $0x60] sm:$0xf] }
  0x1f   : > { %660 = vmatpush.bf16.msra.mxu2 %v1073_v18  ;;  %v890_v3 = vor.u32 %v1047_v62, %v887_v63  ;;  %v1052_v5 = vld [vmem:[%s1255_s21 + $0x6c] sm:$0xf0]  ;;  %v1050_v6 = vld [vmem:[%s1255_s21 + $0x64] sm:$0xf]  ;;  %v895_v7 = vld [vmem:[%s1255_s21 + $0x70] sm:$0xf0] }
  0x20   : > { %689 = vmatpush.bf16.msra.mxu3 %v1081_v19  ;;  %v901_v8 = vld [vmem:[%s1255_s21 + $0x68] sm:$0xf]  ;;  %v1053_v9 = vld [vmem:[%s1255_s21 + $0x74] sm:$0xf0]  ;;  %v1051_v10 = vld [vmem:[%s1255_s21 + $0x6c] sm:$0xf]  ;;  %v894_v12 = vor.u32 %v1052_v5, %v893_v4  ;;  %v898_v13 = vor.u32 %v1050_v6, %v895_v7 }
  0x21   : > { %603 = vmatpush.bf16.msra.mxu0 %v1056_v20  ;;  %v903_v11 = vld [vmem:[%s1255_s21 + $0x78] sm:$0xf0]  ;;  %v902_v14 = vor.u32 %v1053_v9, %v901_v8 }
  0x22   : > { %632 = vmatpush.bf16.msra.mxu1 %v1064_v21  ;;  %v906_v15 = vor.u32 %v1051_v10, %v903_v11 }
  0x23   : > { %661 = vmatpush.bf16.msra.mxu2 %v1072_v22 }
  0x24   : > { %690 = vmatpush.bf16.msra.mxu3 %v1080_v23 }
  0x25   : > { %604 = vmatpush.bf16.msra.mxu0 %v1055_v24 }
  0x26   : > { %633 = vmatpush.bf16.msra.mxu1 %v1063_v25 }
  0x27   : > { %662 = vmatpush.bf16.msra.mxu2 %v1071_v26 }
  0x28   : > { %691 = vmatpush.bf16.msra.mxu3 %v1079_v27 }
  0x29   : > { %605 = vmatpush.bf16.msra.mxu0 %v1054_v28 }
  0x2a   : > { %634 = vmatpush.bf16.msra.mxu1 %v1062_v29 }
  0x2b   : > { %663 = vmatpush.bf16.msra.mxu2 %v1070_v30 }
  0x2c   : > { %692 = vmatpush.bf16.msra.mxu3 %v1078_v31  ;;  %606 = vmatmul.bf16.vlgmr.msra.gmra.mxu0 %v846_v40 }
  0x2d   : > { %635 = vmatmul.bf16.vlgmr.msra.gmra.mxu1 %v850_v41 }
  0x2e   : > { %664 = vmatmul.bf16.vlgmr.msra.gmra.mxu2 %v854_v42 }
  0x2f   : > { %693 = vmatmul.bf16.vlgmr.msra.gmra.mxu3 %v858_v43 }
  0x3c   : > { %611 = vmatmul.bf16.gmra.mxu0 %v862_v52 }
  0x3d   : > { %640 = vmatmul.bf16.gmra.mxu1 %v866_v53 }
  0x3e   : > { %669 = vmatmul.bf16.gmra.mxu2 %v870_v54 }
  0x3f   : > { %698 = vmatmul.bf16.gmra.mxu3 %v874_v55 }
  0x4c   : > { %616 = vmatmul.bf16.gmra.mxu0 %v878_v0 }
  0x4d   : > { %645 = vmatmul.bf16.gmra.mxu1 %v882_v1 }
  0x4e   : > { %674 = vmatmul.bf16.gmra.mxu2 %v886_v2 }
  0x4f   : > { %703 = vmatmul.bf16.gmra.mxu3 %v890_v3 }
  0x5c   : > { %621 = vmatmul.bf16.gmra.mxu0 %v894_v12 }
  0x5d   : > { %650 = vmatmul.bf16.gmra.mxu1 %v898_v13 }
  0x5e   : > { %679 = vmatmul.bf16.gmra.mxu2 %v902_v14 }
  0x5f   : > { %708 = vmatmul.bf16.gmra.mxu3 %v906_v15 }
  0xa9   : > { %v607_v16 = vpop.f32.mrf.mxu0 }
  0xaa   : > { %v636_v17 = vpop.f32.mrf.mxu1 }
  0xab   : > { %v637_v18 = vadd.f32 %v636_v17, %v607_v16 }
  0xb1   : > { %v665_v19 = vpop.f32.mrf.mxu2  ;;  %v609_v22 = vpop.f32.mrf.mxu0 }
  0xb2   : > { %v694_v20 = vpop.f32.mrf.mxu3  ;;  %v666_v21 = vadd.f32 %v665_v19, %v637_v18  ;;  %v638_v23 = vpop.f32.mrf.mxu1 }
  0xb3   : > { %v639_v25 = vadd.f32 %v638_v23, %v609_v22 }
  0xb4   : > { %v695_v24 = vadd.f32 %v694_v20, %v666_v21 }
  0xb6   : > { %722 = vst [vmem:[%s1311_s8] sm:$0xff] %v695_v24 }
  0xb9   : > { %v667_v26 = vpop.f32.mrf.mxu2  ;;  %v612_v29 = vpop.f32.mrf.mxu0 }
  0xba   : > { %v696_v27 = vpop.f32.mrf.mxu3  ;;  %v668_v28 = vadd.f32 %v667_v26, %v639_v25  ;;  %v641_v30 = vpop.f32.mrf.mxu1 }
  0xbb   : > { %v642_v32 = vadd.f32 %v641_v30, %v612_v29 }
  0xbc   : > { %v697_v31 = vadd.f32 %v696_v27, %v668_v28 }
  0xbe   : > { %723 = vst [vmem:[%s1311_s8 + $0x8] sm:$0xff] %v697_v31 }
  0xc1   : > { %v670_v33 = vpop.f32.mrf.mxu2  ;;  %v614_v36 = vpop.f32.mrf.mxu0 }
  0xc2   : > { %v699_v34 = vpop.f32.mrf.mxu3  ;;  %v671_v35 = vadd.f32 %v670_v33, %v642_v32  ;;  %v643_v37 = vpop.f32.mrf.mxu1 }
  0xc3   : > { %v644_v39 = vadd.f32 %v643_v37, %v614_v36 }
  0xc4   : > { %v700_v38 = vadd.f32 %v699_v34, %v671_v35 }
  0xc6   : > { %724 = vst [vmem:[%s1311_s8 + $0x10] sm:$0xff] %v700_v38 }
  0xc9   : > { %v672_v40 = vpop.f32.mrf.mxu2  ;;  %v617_v43 = vpop.f32.mrf.mxu0 }
  0xca   : > { %v701_v41 = vpop.f32.mrf.mxu3  ;;  %v673_v42 = vadd.f32 %v672_v40, %v644_v39  ;;  %v646_v44 = vpop.f32.mrf.mxu1 }
  0xcb   : > { %v647_v46 = vadd.f32 %v646_v44, %v617_v43 }
  0xcc   : > { %v702_v45 = vadd.f32 %v701_v41, %v673_v42 }
  0xce   : > { %725 = vst [vmem:[%s1311_s8 + $0x18] sm:$0xff] %v702_v45 }
  0xd1   : > { %v675_v47 = vpop.f32.mrf.mxu2  ;;  %v619_v50 = vpop.f32.mrf.mxu0 }
  0xd2   : > { %v704_v48 = vpop.f32.mrf.mxu3  ;;  %v676_v49 = vadd.f32 %v675_v47, %v647_v46  ;;  %v648_v51 = vpop.f32.mrf.mxu1 }
  0xd3   : > { %v649_v53 = vadd.f32 %v648_v51, %v619_v50 }
  0xd4   : > { %v705_v52 = vadd.f32 %v704_v48, %v676_v49 }
  0xd6   : > { %726 = vst [vmem:[%s1311_s8 + $0x20] sm:$0xff] %v705_v52 }
  0xd9   : > { %v677_v54 = vpop.f32.mrf.mxu2  ;;  %v622_v57 = vpop.f32.mrf.mxu0 }
  0xda   : > { %v706_v55 = vpop.f32.mrf.mxu3  ;;  %v678_v56 = vadd.f32 %v677_v54, %v649_v53  ;;  %v651_v58 = vpop.f32.mrf.mxu1 }
  0xdb   : > { %v652_v60 = vadd.f32 %v651_v58, %v622_v57 }
  0xdc   : > { %v707_v59 = vadd.f32 %v706_v55, %v678_v56 }
  0xde   : > { %727 = vst [vmem:[%s1311_s8 + $0x28] sm:$0xff] %v707_v59 }
  0xe1   : > { %v680_v61 = vpop.f32.mrf.mxu2  ;;  %v624_v1 = vpop.f32.mrf.mxu0 }
  0xe2   : > { %v709_v62 = vpop.f32.mrf.mxu3  ;;  %v681_v63 = vadd.f32 %v680_v61, %v652_v60  ;;  %v653_v2 = vpop.f32.mrf.mxu1 }
  0xe3   : > { %v654_v3 = vadd.f32 %v653_v2, %v624_v1 }
  0xe4   : > { %v710_v0 = vadd.f32 %v709_v62, %v681_v63 }
  0xe6   : > { %728 = vst [vmem:[%s1311_s8 + $0x30] sm:$0xff] %v710_v0 }
  0xe9   : > { %v682_v4 = vpop.f32.mrf.mxu2 }
  0xea   : > { %v683_v5 = vadd.f32 %v682_v4, %v654_v3  ;;  %v711_v6 = vpop.f32.mrf.mxu3 }
  0xec   : > { %v712_v7 = vadd.f32 %v711_v6, %v683_v5 }
  0xee   : > { %729 = vst [vmem:[%s1311_s8 + $0x38] sm:$0xff] %v712_v7 }
  0xef PF: > { %s12_s11 = sadd.s32 1, %s1133_s11   ;;  %s1333_s9 = smov %s1129_s10 }
  0xf0   : > { %p9_p5 = scmp.ge.s32.totalorder %s12_s11, 4   ;;  %s1334_s10 = smov %s1336_s12 }
  0xf2   :  { %11 = sbr.rel (!%p9_p5) target bundleno = 2 (0x2), region = 65 }

// kernel: forward.32
= control target key start
LH: loop header
LB: loop body
LE: loop exit
PB: predicated region body
PF: predicated region fallthrough
CT: control target
= control target key end

     0   :  { %s695_s0 = inlined_call_operand.vmem [shape: f32[64,128], index: 0, kind: input, shape index: {}]   ;;  %s696_s1 = inlined_call_operand.vmem [shape: f32[64,128], index: 1, kind: input, shape index: {}]   ;;  %s697_s2 = inlined_call_operand.vmem [shape: f32[8,128], index: 2, kind: input, shape index: {}]   ;;  %s698_s3 = inlined_call_operand.vmem [shape: bf16[64,128], index: 3, kind: output, shape index: {0}]   ;;  %s699_s4 = inlined_call_operand.vmem [shape: bf16[64,128], index: 4, kind: output, shape index: {1}]  }
   0x1   :  { %v16_v0 = vld [vmem:[%s695_s0] sm:$0xff]  ;;  %v17_v1 = vld [vmem:[%s695_s0 + $0x8] sm:$0xff]  ;;  %v18_v11 = vld [vmem:[%s695_s0 + $0x10] sm:$0xff] }
   0x2   :  { %v24_v2 = vld [vmem:[%s696_s1] sm:$0xff]  ;;  %v25_v3 = vld [vmem:[%s696_s1 + $0x8] sm:$0xff]  ;;  %v19_v12 = vld [vmem:[%s695_s0 + $0x18] sm:$0xff] }
   0x3   :  { %v398_v4 = vld [vmem:[%s697_s2] sm:$0xff]  ;;  %v26_v17 = vld [vmem:[%s696_s1 + $0x10] sm:$0xff]  ;;  %v27_v18 = vld [vmem:[%s696_s1 + $0x18] sm:$0xff] }
   0x4   :  { %v401_v5 = vperm.slane %v398_v4, 0  ;;  %v404_v6 = vperm.slane %v398_v4, 1  ;;  %v407_v7 = vperm.slane %v398_v4, 2  ;;  %v410_v8 = vperm.slane %v398_v4, 4  ;;  %v20_v39 = vld [vmem:[%s695_s0 + $0x20] sm:$0xff]  ;;  %v21_v40 = vld [vmem:[%s695_s0 + $0x28] sm:$0xff] }
   0x5   :  { %v413_v9 = vperm.slane %v398_v4, 3  ;;  %v416_v10 = vperm.slane %v398_v4, 5  ;;  %v28_v49 = vld [vmem:[%s696_s1 + $0x20] sm:$0xff]  ;;  %v29_v50 = vld [vmem:[%s696_s1 + $0x28] sm:$0xff] }
   0x6   :  { %v34_v13 = vmul.f32 %v401_v5, %v16_v0  ;;  %v35_v14 = vmul.f32 %v401_v5, %v17_v1  ;;  %v43_v15 = vmul.f32 %v404_v6, %v24_v2  ;;  %v44_v16 = vmul.f32 %v404_v6, %v25_v3 }
   0x7   :  { %v69_v19 = vmul.f32 %v407_v7, %v16_v0  ;;  %v70_v20 = vmul.f32 %v407_v7, %v17_v1  ;;  %v78_v21 = vmul.f32 %v413_v9, %v24_v2  ;;  %v79_v22 = vmul.f32 %v413_v9, %v25_v3 }
   0x8   :  { %v51_v23 = vsub.f32 %v34_v13, %v43_v15  ;;  %v52_v24 = vsub.f32 %v35_v14, %v44_v16  ;;  %v36_v25 = vmul.f32 %v401_v5, %v18_v11  ;;  %v37_v26 = vmul.f32 %v401_v5, %v19_v12  ;;  %v22_v13 = vld [vmem:[%s695_s0 + $0x30] sm:$0xff]  ;;  %v23_v16 = vld [vmem:[%s695_s0 + $0x38] sm:$0xff] }
   0x9   :  { %v86_v27 = vadd.f32 %v78_v21, %v69_v19  ;;  %v87_v28 = vadd.f32 %v79_v22, %v70_v20  ;;  %v45_v29 = vmul.f32 %v404_v6, %v26_v17  ;;  %v46_v30 = vmul.f32 %v404_v6, %v27_v18  ;;  %v30_v20 = vld [vmem:[%s696_s1 + $0x30] sm:$0xff] }
   0xa   :  { %v443_v31 = vadd.f32 %v410_v8, %v51_v23  ;;  %v446_v32 = vadd.f32 %v410_v8, %v52_v24  ;;  %v71_v33 = vmul.f32 %v407_v7, %v18_v11  ;;  %v72_v34 = vmul.f32 %v407_v7, %v19_v12  ;;  %v31_v24 = vld [vmem:[%s696_s1 + $0x38] sm:$0xff] }
   0xb   :  { %v451_v35 = vadd.f32 %v416_v10, %v86_v27  ;;  %v454_v36 = vadd.f32 %v416_v10, %v87_v28  ;;  %v53_v37 = vsub.f32 %v36_v25, %v45_v29  ;;  %v54_v38 = vsub.f32 %v37_v26, %v46_v30 }
   0xc   :  { %v103_v41 = vmul.f32 %v443_v31, %v443_v31  ;;  %v104_v42 = vmul.f32 %v446_v32, %v446_v32  ;;  %v80_v43 = vmul.f32 %v413_v9, %v26_v17  ;;  %v81_v44 = vmul.f32 %v413_v9, %v27_v18 }
   0xd   :  { %v111_v45 = vmul.f32 %v451_v35, %v451_v35  ;;  %v112_v46 = vmul.f32 %v454_v36, %v454_v36  ;;  %v473_v47 = vadd.f32 %v410_v8, %v53_v37  ;;  %v476_v48 = vadd.f32 %v410_v8, %v54_v38 }
   0xe   :  { %v88_v51 = vadd.f32 %v80_v43, %v71_v33  ;;  %v89_v52 = vadd.f32 %v81_v44, %v72_v34  ;;  %v38_v53 = vmul.f32 %v401_v5, %v20_v39  ;;  %v39_v54 = vmul.f32 %v401_v5, %v21_v40 }
   0xf   :  { %v119_v55 = vadd.f32 %v111_v45, %v103_v41  ;;  %v120_v56 = vadd.f32 %v112_v46, %v104_v42  ;;  %v105_v57 = vmul.f32 %v473_v47, %v473_v47  ;;  %v106_v58 = vmul.f32 %v476_v48, %v476_v48 }
  0x10   :  { %v491_v59 = vadd.f32 %v416_v10, %v88_v51  ;;  %v494_v60 = vadd.f32 %v416_v10, %v89_v52  ;;  %v47_v61 = vmul.f32 %v404_v6, %v28_v49  ;;  %v48_v62 = vmul.f32 %v404_v6, %v29_v50 }
  0x11   :  { %v498_v63 = vadd.f32 1e-12, %v119_v55  ;;  %v500_v0 = vadd.f32 1e-12, %v120_v56  ;;  %v73_v1 = vmul.f32 %v407_v7, %v20_v39  ;;  %v74_v14 = vmul.f32 %v407_v7, %v21_v40 }
  0x12   :  { %v113_v2 = vmul.f32 %v491_v59, %v491_v59  ;;  %v114_v3 = vmul.f32 %v494_v60, %v494_v60  ;;  %v55_v11 = vsub.f32 %v38_v53, %v47_v61  ;;  %v56_v12 = vsub.f32 %v39_v54, %v48_v62 }
  0x13   :  { %342 = vrsqrt.f32 %v498_v63  ;;  %v82_v15 = vmul.f32 %v413_v9, %v28_v49  ;;  %v83_v22 = vmul.f32 %v413_v9, %v29_v50  ;;  %v40_v25 = vmul.f32 %v401_v5, %v22_v13 }
  0x14   :  { %344 = vrsqrt.f32 %v500_v0  ;;  %v121_v17 = vadd.f32 %v113_v2, %v105_v57  ;;  %v122_v18 = vadd.f32 %v114_v3, %v106_v58  ;;  %v518_v19 = vadd.f32 %v410_v8, %v55_v11 }
  0x15   :  { %v524_v21 = vadd.f32 %v410_v8, %v56_v12  ;;  %v90_v23 = vadd.f32 %v82_v15, %v73_v1  ;;  %v41_v28 = vmul.f32 %v401_v5, %v23_v16  ;;  %v91_v29 = vadd.f32 %v83_v22, %v74_v14 }
  0x16   :  { %v531_v26 = vadd.f32 1e-12, %v121_v17  ;;  %v533_v27 = vadd.f32 1e-12, %v122_v18  ;;  %v107_v33 = vmul.f32 %v518_v19, %v518_v19  ;;  %v49_v34 = vmul.f32 %v404_v6, %v30_v20 }
  0x17   :  { %v537_v30 = vadd.f32 %v416_v10, %v90_v23  ;;  %v543_v37 = vperm.slane %v398_v4, 6  ;;  %v108_v38 = vmul.f32 %v524_v21, %v524_v21  ;;  %v50_v39 = vmul.f32 %v404_v6, %v31_v24 }
  0x18   :  { %346 = vrsqrt.f32 %v531_v26  ;;  %v551_v40 = vadd.f32 %v416_v10, %v91_v29  ;;  %v57_v42 = vsub.f32 %v40_v25, %v49_v34  ;;  %vm141_vm0 = vweird.f32 %v498_v63 }
  0x19   :  { %v343_v5 = vpop.eup %342  ;;  %348 = vrsqrt.f32 %v533_v27  ;;  %v115_v41 = vmul.f32 %v537_v30, %v537_v30  ;;  %vm151_vm1 = vweird.f32 %v500_v0  ;;  %v58_v44 = vsub.f32 %v41_v28, %v50_v39 }
  0x1a   :  { %v345_v43 = vpop.eup %344  ;;  %v136_v4 = vmul.f32 %v343_v5, %v498_v63  ;;  %vm161_vm2 = vweird.f32 %v531_v26  ;;  %v116_v45 = vmul.f32 %v551_v40, %v551_v40  ;;  %vm142_vm3 = vweird.f32 %v343_v5 }
  0x1b   :  { %v146_v6 = vmul.f32 %v345_v43, %v500_v0  ;;  %v123_v46 = vadd.f32 %v115_v41, %v107_v33  ;;  %vm171_vm4 = vweird.f32 %v533_v27  ;;  %v564_v50 = vadd.f32 %v410_v8, %v57_v42  ;;  %vm585_vm6 = vmor %vm141_vm0, %vm142_vm3 }
  0x1c   :  { %v137_v49 = vmul.f32 %v343_v5, %v136_v4  ;;  %v75_v51 = vmul.f32 %v407_v7, %v22_v13  ;;  %v124_v53 = vadd.f32 %v116_v45, %v108_v38  ;;  %v570_v55 = vadd.f32 %v410_v8, %v58_v44 }
  0x1d   :  { %v147_v52 = vmul.f32 %v345_v43, %v146_v6  ;;  %v567_v54 = vadd.f32 1e-12, %v123_v46  ;;  %vm152_vm5 = vweird.f32 %v345_v43  ;;  %v76_v58 = vmul.f32 %v407_v7, %v23_v16 }
  0x1e   :  { %v347_v56 = vpop.eup %346  ;;  %v138_v57 = vmul.f32 0.5, %v137_v49  ;;  %v84_v61 = vmul.f32 %v413_v9, %v30_v20  ;;  %v575_v3 = vadd.f32 1e-12, %v124_v53  ;;  %v85_v11 = vmul.f32 %v413_v9, %v31_v24  ;;  %vm595_vm7 = vmor %vm151_vm1, %vm152_vm5 }
  0x1f   :  { %v349_v62 = vpop.eup %348  ;;  %v148_v1 = vmul.f32 0.5, %v147_v52  ;;  %v156_v2 = vmul.f32 %v347_v56, %v531_v26  ;;  %350 = vrsqrt.f32 %v567_v54  ;;  %v109_v8 = vmul.f32 %v564_v50, %v564_v50 }
  0x20   :  { %v139_v12 = vsub.f32 1.5, %v138_v57  ;;  %v166_v13 = vmul.f32 %v349_v62, %v533_v27  ;;  %352 = vrsqrt.f32 %v575_v3  ;;  %v110_v9 = vmul.f32 %v570_v55, %v570_v55 }
  0x21   :  { %v149_v14 = vsub.f32 1.5, %v148_v1  ;;  %v157_v15 = vmul.f32 %v347_v56, %v156_v2  ;;  %vm162_vm8 = vweird.f32 %v347_v56  ;;  %v92_v18 = vadd.f32 %v84_v61, %v75_v51 }
  0x22   :  { %v140_v16 = vmul.f32 %v343_v5, %v139_v12  ;;  %v167_v63 = vmul.f32 %v349_v62, %v166_v13  ;;  %vm172_vm9 = vweird.f32 %v349_v62  ;;  %v93_v23 = vadd.f32 %v85_v11, %v76_v58  ;;  %vm615_vm11 = vmor %vm161_vm2, %vm162_vm8 }
  0x23   :  { %v150_v20 = vmul.f32 %v345_v43, %v149_v14  ;;  %v158_v22 = vmul.f32 0.5, %v157_v15  ;;  %vm181_vm10 = vweird.f32 %v567_v54  ;;  %v603_v28 = vadd.f32 %v416_v10, %v92_v18  ;;  %vm625_vm13 = vmor %vm171_vm4, %vm172_vm9 }
  0x24   :  { %v144_v24 = vsel %vm585_vm6, %v343_v5, %v140_v16  ;;  %v168_v25 = vmul.f32 0.5, %v167_v63  ;;  %v609_v34 = vadd.f32 %v416_v10, %v93_v23  ;;  %vm191_vm12 = vweird.f32 %v575_v3 }
  0x25   :  { %v154_v0 = vsel %vm595_vm7, %v345_v43, %v150_v20  ;;  %v216_v29 = vmul.f32 %v543_v37, %v144_v24  ;;  %v159_v33 = vsub.f32 1.5, %v158_v22  ;;  %v351_v38 = vpop.eup %350  ;;  %v117_v42 = vmul.f32 %v603_v28, %v603_v28 }
  0x26   :  { %v217_v39 = vmul.f32 %v543_v37, %v154_v0  ;;  %v169_v41 = vsub.f32 1.5, %v168_v25  ;;  %v353_v43 = vpop.eup %352  ;;  %v176_v26 = vmul.f32 %v351_v38, %v567_v54  ;;  %vm182_vm14 = vweird.f32 %v351_v38 }
  0x27   :  { %v224_v4 = vadd.f32 1.0, %v216_v29  ;;  %v160_v10 = vmul.f32 %v347_v56, %v159_v33  ;;  %v186_v46 = vmul.f32 %v353_v43, %v575_v3  ;;  %vm192_vm15 = vweird.f32 %v353_v43  ;;  %vm644_vm0 = vmor %vm181_vm10, %vm182_vm14 }
  0x28   :  { %v225_v6 = vadd.f32 1.0, %v217_v39  ;;  %v170_v45 = vmul.f32 %v349_v62, %v169_v41  ;;  %v177_v52 = vmul.f32 %v351_v38, %v176_v26  ;;  %v118_v27 = vmul.f32 %v609_v34, %v609_v34  ;;  %vm193_vm1 = vmor %vm191_vm12, %vm192_vm15 }
  0x29   :  { %v232_v49 = vmax.f32 %v224_v4, 0.0  ;;  %v164_v51 = vsel %vm615_vm11, %v347_v56, %v160_v10  ;;  %v187_v61 = vmul.f32 %v353_v43, %v186_v46  ;;  %v125_v12 = vadd.f32 %v117_v42, %v109_v8 }
  0x2a   :  { %v233_v53 = vmax.f32 %v225_v6, 0.0  ;;  %v174_v57 = vsel %vm625_vm13, %v349_v62, %v170_v45  ;;  %v218_v58 = vmul.f32 %v543_v37, %v164_v51  ;;  %v178_v11 = vmul.f32 0.5, %v177_v52 }
  0x2b   :  { %v240_v1 = vmul.f32 %v232_v49, %v443_v31  ;;  %v219_v2 = vmul.f32 %v543_v37, %v174_v57  ;;  %v188_v7 = vmul.f32 0.5, %v187_v61  ;;  %v126_v14 = vadd.f32 %v118_v27, %v110_v9 }
  0x2c   :  { %v241_v13 = vmul.f32 %v233_v53, %v446_v32  ;;  %v226_v56 = vadd.f32 1.0, %v218_v58  ;;  %v179_v16 = vsub.f32 1.5, %v178_v11  ;;  %v133_v17 = vadd.f32 1e-12, %v125_v12 }
  0x2d   :  { %v227_v15 = vadd.f32 1.0, %v219_v2  ;;  %v189_v31 = vsub.f32 1.5, %v188_v7  ;;  %v134_v20 = vadd.f32 1e-12, %v126_v14  ;;  %v264_v32 = vmul.f32 %v232_v49, %v451_v35 }
  0x2e   :  { %v299_v63 = vpack.c.bf16 %v241_v13, %v240_v1  ;;  %v234_v18 = vmax.f32 %v226_v56, 0.0  ;;  %v180_v22 = vmul.f32 %v351_v38, %v179_v16  ;;  %354 = vrsqrt.f32 %v133_v17 }
  0x2f   :  { %v235_v8 = vmax.f32 %v227_v15, 0.0  ;;  %v190_v9 = vmul.f32 %v353_v43, %v189_v31  ;;  %356 = vrsqrt.f32 %v134_v20  ;;  %v265_v25 = vmul.f32 %v233_v53, %v454_v36 }
  0x30   :  { %300 = vst [vmem:[%s698_s3] sm:$0xff] %v299_v63   ;;  %v242_v54 = vmul.f32 %v234_v18, %v473_v47  ;;  %v184_v24 = vsel %vm644_vm0, %v351_v38, %v180_v22  ;;  %v266_v3 = vmul.f32 %v234_v18, %v491_v59  ;;  %vm201_vm2 = vweird.f32 %v133_v17 }
  0x31   :  { %v243_v23 = vmul.f32 %v235_v8, %v476_v48  ;;  %v194_v0 = vsel %vm193_vm1, %v353_v43, %v190_v9  ;;  %v220_v35 = vmul.f32 %v543_v37, %v184_v24  ;;  %v267_v29 = vmul.f32 %v235_v8, %v494_v60 }
  0x32   :  { %v221_v39 = vmul.f32 %v543_v37, %v194_v0  ;;  %v319_v47 = vpack.c.bf16 %v265_v25, %v264_v32  ;;  %vm211_vm4 = vweird.f32 %v134_v20 }
  0x33   :  { %v304_v33 = vpack.c.bf16 %v243_v23, %v242_v54  ;;  %v228_v5 = vadd.f32 1.0, %v220_v35  ;;  %v324_v41 = vpack.c.bf16 %v267_v29, %v266_v3 }
  0x34   :  { %v355_v42 = vpop.eup %354  ;;  %v229_v48 = vadd.f32 1.0, %v221_v39  ;;  %320 = vst [vmem:[%s699_s4] sm:$0xff] %v319_v47  }
  0x35   :  { %336 = vst [vmem:[%s698_s3 + $0x8] sm:$0xff] %v304_v33   ;;  %v357_v36 = vpop.eup %356  ;;  %v236_v38 = vmax.f32 %v228_v5, 0.0  ;;  %v196_v59 = vmul.f32 %v355_v42, %v133_v17  ;;  %vm202_vm3 = vweird.f32 %v355_v42 }
  0x36   :  { %v237_v60 = vmax.f32 %v229_v48, 0.0  ;;  %v206_v43 = vmul.f32 %v357_v36, %v134_v20  ;;  %339 = vst [vmem:[%s699_s4 + $0x8] sm:$0xff] %v324_v41   ;;  %vm212_vm5 = vweird.f32 %v357_v36  ;;  %vm203_vm6 = vmor %vm201_vm2, %vm202_vm3 }
  0x37   :  { %v244_v4 = vmul.f32 %v236_v38, %v518_v19  ;;  %v197_v10 = vmul.f32 %v355_v42, %v196_v59  ;;  %v268_v44 = vmul.f32 %v236_v38, %v537_v30  ;;  %vm213_vm7 = vmor %vm211_vm4, %vm212_vm5 }
  0x38   :  { %v245_v26 = vmul.f32 %v237_v60, %v524_v21  ;;  %v207_v6 = vmul.f32 %v357_v36, %v206_v43  ;;  %v269_v45 = vmul.f32 %v237_v60, %v551_v40 }
  0x39   :  { %v198_v46 = vmul.f32 0.5, %v197_v10 }
  0x3a   :  { %v309_v49 = vpack.c.bf16 %v245_v26, %v244_v4  ;;  %v208_v51 = vmul.f32 0.5, %v207_v6  ;;  %v329_v52 = vpack.c.bf16 %v269_v45, %v268_v44 }
  0x3b   :  { %v199_v27 = vsub.f32 1.5, %v198_v46 }
  0x3c   :  { %337 = vst [vmem:[%s698_s3 + $0x10] sm:$0xff] %v309_v49   ;;  %v209_v19 = vsub.f32 1.5, %v208_v51 }
  0x3d   :  { %v200_v30 = vmul.f32 %v355_v42, %v199_v27  ;;  %340 = vst [vmem:[%s699_s4 + $0x10] sm:$0xff] %v329_v52  }
  0x3e   :  { %v210_v21 = vmul.f32 %v357_v36, %v209_v19 }
  0x3f   :  { %v204_v40 = vsel %vm203_vm6, %v355_v42, %v200_v30 }
  0x40   :  { %v214_v53 = vsel %vm213_vm7, %v357_v36, %v210_v21  ;;  %v222_v57 = vmul.f32 %v543_v37, %v204_v40 }
  0x41   :  { %v223_v58 = vmul.f32 %v543_v37, %v214_v53 }
  0x42   :  { %v230_v61 = vadd.f32 1.0, %v222_v57 }
  0x43   :  { %v231_v1 = vadd.f32 1.0, %v223_v58 }
  0x44   :  { %v238_v2 = vmax.f32 %v230_v61, 0.0 }
  0x45   :  { %v239_v11 = vmax.f32 %v231_v1, 0.0 }
  0x46   :  { %v246_v12 = vmul.f32 %v238_v2, %v564_v50  ;;  %v270_v13 = vmul.f32 %v238_v2, %v603_v28 }
  0x47   :  { %v247_v56 = vmul.f32 %v239_v11, %v570_v55  ;;  %v271_v7 = vmul.f32 %v239_v11, %v609_v34 }
  0x49   :  { %v314_v14 = vpack.c.bf16 %v247_v56, %v246_v12  ;;  %v334_v15 = vpack.c.bf16 %v271_v7, %v270_v13 }
  0x4b   :  { %338 = vst [vmem:[%s698_s3 + $0x18] sm:$0xff] %v314_v14  }
  0x4c   :  { %341 = vst [vmem:[%s699_s4 + $0x18] sm:$0xff] %v334_v15  }

// kernel: forward.33
= control target key start
LH: loop header
LB: loop body
LE: loop exit
PB: predicated region body
PF: predicated region fallthrough
CT: control target
= control target key end

     0   :  { %s778_s9 = smov 0   ;;  %s780_s10 = smov 0   ;;  %s913_s0 = inlined_call_operand.vmem [shape: bf16[128,1152], index: 0, kind: input, shape index: {}]   ;;  %s914_s1 = inlined_call_operand.vmem [shape: bf16[1152,128], index: 1, kind: input, shape index: {}]   ;;  %s915_s2 = inlined_call_operand.vmem [shape: f32[128,128], index: 2, kind: output, shape index: {}]  }
   0x1   :  { %s782_s11 = smov 0   ;;  %s784_s12 = smov 0  }
   0x2   :  { %s786_s13 = smov 0   ;;  %s788_s14 = smov 0  }
   0x3   :  { %s790_s15 = smov 0  }
   0x4 LB: > { %s24_s16 = sadd.s32 1, %s752_s13  ;;  %s31_s17 = sadd.s32 1, %s756_s14  ;;  %s760_s15 = sphi %s790_s15, %s12_s15   ;;  %s756_s14 = sphi %s788_s14, %s921_s14   ;;  %s752_s13 = sphi %s786_s13, %s920_s13   ;;  %s748_s12 = sphi %s784_s12, %s919_s12   ;;  %s744_s11 = sphi %s782_s11, %s918_s11   ;;  %s740_s10 = sphi %s780_s10, %s917_s10   ;;  %s736_s9 = sphi %s778_s9, %s916_s9  }
   0x5   : > { %p25_p0 = scmp.ge.s32.totalorder %s24_s16, 9  ;;  %p47_p1 = scmp.ne.s32.totalorder %s740_s10, %s736_s9 }
   0x6   : > { %p48_p2 = scmp.eq.s32.totalorder %s760_s15, 0  ;;  %s40_s21 = sadd.s32 1, %s740_s10 }
   0x7   : > { %s923_s16 = smov (%p25_p0, %s24_s16), 0  ;;  %s925_s17 = smov (!%p25_p0, %s31_s17), %s756_s14 }
   0x8   : > { %p49_p3 = por %p48_p2, %p47_p1  ;;  %p33_p4 = scmp.ge.s32.totalorder %s925_s17, 2 }
   0x9   : > { %s36_s18 = ssub.s32 %s752_s13, %s923_s16  ;;  %p550_p6 = scmp.ge.s32.totalorder %s760_s15, 18 }
   0xa   : > { %s927_s17 = smov (%p33_p4, %s925_s17), 0 }
   0xb   : > { %s35_s19 = ssub.s32 %s756_s14, %s927_s17  ;;  %129 = sbr.rel (%p550_p6) target bundleno = 31 (0x1f), region = 16 }
   0xc   : > { %s37_s20 = sor.u32 %s36_s18, %s35_s19 }
   0xd   : > { %p38_p5 = scmp.eq.s32.totalorder %s37_s20, 0 }
   0xf   : > { %s829_s22 = scalar_select %p38_p5, %s740_s10, %s40_s21  }
  0x10   : > { %132 = sbr.rel (!%p49_p3) target bundleno = 31 (0x1f), region = 20  ;;  %s134_s23 = sand.u32 (%p49_p3), 1, %s740_s10  }
  0x11   : > { %s648_s24 = smul.u32 (%p49_p3), 72, %s756_s14  ;;  %s551_s25 = sshll.u32 (%p49_p3), %s134_s23, 5 }
  0x12   : > { %s136_s3 = scalar_lea.vmem (%p49_p3), [#allocation2], %s551_s25 }
  0x13   : > { %s139_s26 = sadd.s32 (%p49_p3), %s752_s13, %s648_s24 }
  0x14   : > { %s554_s27 = sshll.u32 (%p49_p3), %s139_s26, 2 }
  0x15   : > { %s141_s30 = scalar_lea.vmem %s913_s0, %s554_s27 }
  0x16   : > { %v158_v0 = vld [vmem:[%s141_s30] sm:$0xf]  ;;  %v160_v1 = vld [vmem:[%s141_s30 + $0x24] sm:$0xf]  ;;  %v162_v2 = vld [vmem:[%s141_s30 + $0x48] sm:$0xf] }
  0x17   : > { %159 = vst [vmem:[%s136_s3] sm:$0xf] %v158_v0  ;;  %v164_v3 = vld [vmem:[%s141_s30 + $0x6c] sm:$0xf]  ;;  %v166_v4 = vld [vmem:[%s141_s30 + $0x90] sm:$0xf] }
  0x18   : > { %161 = vst [vmem:[%s136_s3 + $0x4] sm:$0xf] %v160_v1  ;;  %v168_v5 = vld [vmem:[%s141_s30 + $0xb4] sm:$0xf]  ;;  %v170_v6 = vld [vmem:[%s141_s30 + $0xd8] sm:$0xf] }
  0x19   : > { %163 = vst [vmem:[%s136_s3 + $0x8] sm:$0xf] %v162_v2  ;;  %v172_v7 = vld [vmem:[%s141_s30 + $0xfc] sm:$0xf] }
  0x1a   : > { %165 = vst [vmem:[%s136_s3 + $0xc] sm:$0xf] %v164_v3 }
  0x1b   : > { %167 = vst [vmem:[%s136_s3 + $0x10] sm:$0xf] %v166_v4 }
  0x1c   : > { %169 = vst [vmem:[%s136_s3 + $0x14] sm:$0xf] %v168_v5 }
  0x1d   : > { %171 = vst [vmem:[%s136_s3 + $0x18] sm:$0xf] %v170_v6 }
  0x1e   : > { %173 = vst [vmem:[%s136_s3 + $0x1c] sm:$0xf] %v172_v7 }
  0x1f PF: > { %p555_p7 = scmp.ge.s32.totalorder %s760_s15, 1  ;;  %p224_p8 = scmp.lt.s32.totalorder %s760_s15, 19 }
  0x21   : > { %p225_p9 = pnand %p555_p7, %p224_p8 }
  0x22   : > { %s231_s4 = sand.u32 (!%p225_p9), 1, %s736_s9   ;;  %s557_s5 = sshll.u32 (!%p225_p9), %s744_s11, 4 }
  0x23   : > { %228 = sbr.rel (%p225_p9) target bundleno = 234 (0xea), region = 65  ;;  %s556_s6 = sshll.u32 (!%p225_p9), %s231_s4, 5 }
  0x24   : > { %p265_p10 = scmp.lt.s32.totalorder (!%p225_p9), %s557_s5, 143  ;;  %s559_s7 = sshll.u32 (!%p225_p9), %s748_s12, 3 }
  0x25   : > { %p274_p11 = scmp.lt.s32.totalorder (!%p225_p9), %s559_s7, 15  ;;  %s853_s9 = scalar_lea.vmem (!%p225_p9), [#allocation2], %s556_s6 }
  0x26   : > { %p561_p12 = scmp.ne.s32.totalorder (!%p225_p9), %s744_s11, 0 }
  0x28   : > { %s929_s5 = smov (!%p265_p10, %s557_s5), 143  ;;  %s931_s7 = smov (!%p274_p11, %s559_s7), 15 }
  0x29   : > { %s558_s8 = sshll.u32 %s929_s5, 2  ;;  %s560_s21 = sshll.u32 %s931_s7, 3 }
  0x2a   : > { %s846_s20 = scalar_lea.vmem %s914_s1, %s558_s8  ;;  %s851_s25 = scalar_lea.vmem %s915_s2, %s560_s21 }
  0x2b   : > { %285 = sbr.rel (%p561_p12) target bundleno = 57 (0x39), region = 73 }
  0x30   : > { %v762_v8 = vmov 0.0  }
  0x31   : > { %286 = vst [vmem:[%s851_s25] sm:$0xff] %v762_v8 }
  0x32   : > { %287 = vst [vmem:[%s851_s25 + $0x8] sm:$0xff] %v762_v8 }
  0x33   : > { %288 = vst [vmem:[%s851_s25 + $0x10] sm:$0xff] %v762_v8 }
  0x34   : > { %289 = vst [vmem:[%s851_s25 + $0x18] sm:$0xff] %v762_v8 }
  0x35   : > { %290 = vst [vmem:[%s851_s25 + $0x20] sm:$0xff] %v762_v8 }
  0x36   : > { %291 = vst [vmem:[%s851_s25 + $0x28] sm:$0xff] %v762_v8 }
  0x37   : > { %292 = vst [vmem:[%s851_s25 + $0x30] sm:$0xff] %v762_v8 }
  0x38   : > { %293 = vst [vmem:[%s851_s25 + $0x38] sm:$0xff] %v762_v8 }
  0x39 PF: > { %v623_v9 = vld [vmem:[%s846_s20 + $0x38] sm:$0xff]  ;;  %v622_v10 = vld [vmem:[%s846_s20 + $0x30] sm:$0xff]  ;;  %v621_v11 = vld [vmem:[%s846_s20 + $0x28] sm:$0xff] }
  0x3a   : > { %398 = vmatpush.bf16.msra.mxu0 %v623_v9  ;;  %624 = vmatpush.bf16.msra.mxu1 %v623_v9  ;;  %v620_v12 = vld [vmem:[%s846_s20 + $0x20] sm:$0xff]  ;;  %v619_v13 = vld [vmem:[%s846_s20 + $0x18] sm:$0xff]  ;;  %v618_v14 = vld [vmem:[%s846_s20 + $0x10] sm:$0xff] }
  0x3b   : > { %625 = vmatpush.bf16.msra.mxu2 %v623_v9  ;;  %626 = vmatpush.bf16.msra.mxu3 %v623_v9  ;;  %v617_v15 = vld [vmem:[%s846_s20 + $0x8] sm:$0xff]  ;;  %v616_v16 = vld [vmem:[%s846_s20] sm:$0xff]  ;;  %v614_v19 = vld [vmem:[%s853_s9 + $0x10] sm:$0xff] }
  0x3c   : > { %v612_v17 = vld [vmem:[%s853_s9] sm:$0xff]  ;;  %v613_v18 = vld [vmem:[%s853_s9 + $0x8] sm:$0xff]  ;;  %v615_v20 = vld [vmem:[%s853_s9 + $0x18] sm:$0xff] }
  0x3d   : > { %v294_v21 = vld [vmem:[%s851_s25] sm:$0xff]  ;;  %v296_v22 = vld [vmem:[%s851_s25 + $0x10] sm:$0xff]  ;;  %v295_v29 = vld [vmem:[%s851_s25 + $0x8] sm:$0xff] }
  0x3e   : > { %399 = vmatpush.bf16.msra.mxu0 %v622_v10  ;;  %627 = vmatpush.bf16.msra.mxu1 %v622_v10  ;;  %v298_v27 = vld [vmem:[%s851_s25 + $0x20] sm:$0xff]  ;;  %v300_v28 = vld [vmem:[%s851_s25 + $0x30] sm:$0xff]  ;;  %v297_v30 = vld [vmem:[%s851_s25 + $0x18] sm:$0xff] }
  0x3f   : > { %628 = vmatpush.bf16.msra.mxu2 %v622_v10  ;;  %629 = vmatpush.bf16.msra.mxu3 %v622_v10  ;;  %v299_v39 = vld [vmem:[%s851_s25 + $0x28] sm:$0xff]  ;;  %v301_v40 = vld [vmem:[%s851_s25 + $0x38] sm:$0xff] }
  0x42   : > { %400 = vmatpush.bf16.msra.mxu0 %v621_v11  ;;  %630 = vmatpush.bf16.msra.mxu1 %v621_v11 }
  0x43   : > { %631 = vmatpush.bf16.msra.mxu2 %v621_v11  ;;  %632 = vmatpush.bf16.msra.mxu3 %v621_v11 }
  0x46   : > { %401 = vmatpush.bf16.msra.mxu0 %v620_v12  ;;  %633 = vmatpush.bf16.msra.mxu1 %v620_v12 }
  0x47   : > { %634 = vmatpush.bf16.msra.mxu2 %v620_v12  ;;  %635 = vmatpush.bf16.msra.mxu3 %v620_v12 }
  0x4a   : > { %402 = vmatpush.bf16.msra.mxu0 %v619_v13  ;;  %636 = vmatpush.bf16.msra.mxu1 %v619_v13 }
  0x4b   : > { %637 = vmatpush.bf16.msra.mxu2 %v619_v13  ;;  %638 = vmatpush.bf16.msra.mxu3 %v619_v13 }
  0x4e   : > { %403 = vmatpush.bf16.msra.mxu0 %v618_v14  ;;  %639 = vmatpush.bf16.msra.mxu1 %v618_v14 }
  0x4f   : > { %640 = vmatpush.bf16.msra.mxu2 %v618_v14  ;;  %641 = vmatpush.bf16.msra.mxu3 %v618_v14 }
  0x52   : > { %404 = vmatpush.bf16.msra.mxu0 %v617_v15  ;;  %642 = vmatpush.bf16.msra.mxu1 %v617_v15 }
  0x53   : > { %643 = vmatpush.bf16.msra.mxu2 %v617_v15  ;;  %644 = vmatpush.bf16.msra.mxu3 %v617_v15 }
  0x56   : > { %405 = vmatpush.bf16.msra.mxu0 %v616_v16  ;;  %645 = vmatpush.bf16.msra.mxu1 %v616_v16 }
  0x57   : > { %646 = vmatpush.bf16.msra.mxu2 %v616_v16  ;;  %647 = vmatpush.bf16.msra.mxu3 %v616_v16 }
  0x59   : > { %406 = vmatmul.bf16.vlgmr.msra.gmra.mxu0 %v612_v17  ;;  %411 = vmatmul.bf16.vlgmr.msra.gmra.mxu1 %v613_v18 }
  0x5a   : > { %416 = vmatmul.bf16.vlgmr.msra.gmra.mxu2 %v614_v19  ;;  %421 = vmatmul.bf16.vlgmr.msra.gmra.mxu3 %v615_v20 }
  0xd6   : > { %v407_v23 = vpop.f32.mrf.mxu0  ;;  %v412_v24 = vpop.f32.mrf.mxu1 }
  0xd7   : > { %v427_v25 = vadd.f32 %v407_v23, %v294_v21  ;;  %v429_v26 = vadd.f32 %v412_v24, %v296_v22 }
  0xd9   : > { %435 = vst [vmem:[%s851_s25] sm:$0xff] %v427_v25 }
  0xda   : > { %437 = vst [vmem:[%s851_s25 + $0x10] sm:$0xff] %v429_v26 }
  0xdd   : > { %v417_v31 = vpop.f32.mrf.mxu2  ;;  %v422_v32 = vpop.f32.mrf.mxu3 }
  0xde   : > { %v431_v33 = vadd.f32 %v417_v31, %v298_v27  ;;  %v433_v34 = vadd.f32 %v422_v32, %v300_v28  ;;  %v409_v35 = vpop.f32.mrf.mxu0  ;;  %v414_v36 = vpop.f32.mrf.mxu1 }
  0xdf   : > { %v428_v37 = vadd.f32 %v409_v35, %v295_v29  ;;  %v430_v38 = vadd.f32 %v414_v36, %v297_v30 }
  0xe0   : > { %439 = vst [vmem:[%s851_s25 + $0x20] sm:$0xff] %v431_v33 }
  0xe1   : > { %441 = vst [vmem:[%s851_s25 + $0x30] sm:$0xff] %v433_v34 }
  0xe2   : > { %436 = vst [vmem:[%s851_s25 + $0x8] sm:$0xff] %v428_v37 }
  0xe3   : > { %438 = vst [vmem:[%s851_s25 + $0x18] sm:$0xff] %v430_v38 }
  0xe5   : > { %v419_v41 = vpop.f32.mrf.mxu2  ;;  %v424_v42 = vpop.f32.mrf.mxu3 }
  0xe6   : > { %v432_v43 = vadd.f32 %v419_v41, %v299_v39  ;;  %v434_v44 = vadd.f32 %v424_v42, %v301_v40 }
  0xe8   : > { %440 = vst [vmem:[%s851_s25 + $0x28] sm:$0xff] %v432_v43 }
  0xe9   : > { %442 = vst [vmem:[%s851_s25 + $0x38] sm:$0xff] %v434_v44 }
  0xea PF: > { %s12_s15 = sadd.s32 1, %s760_s15   ;;  %s916_s9 = smov %s740_s10 }
  0xeb   : > { %p9_p13 = scmp.ge.s32.totalorder %s12_s15, 20   ;;  %s917_s10 = smov %s829_s22 }
  0xec   : > { %s918_s11 = smov %s752_s13  ;;  %s919_s12 = smov %s756_s14 }
  0xed   : > { %s920_s13 = smov %s923_s16  ;;  %s921_s14 = smov %s927_s17 }
  0xee   :  { %11 = sbr.rel (!%p9_p13) target bundleno = 4 (0x4), region = 111 }

// kernel: forward.35
= control target key start
LH: loop header
LB: loop body
LE: loop exit
PB: predicated region body
PF: predicated region fallthrough
CT: control target
= control target key end

     0   :  { %7 = vsyncpa [#allocation4], 0  ;;  %s1080_s0 = inlined_call_operand.vmem [shape: bf16[128,1152], index: 0, kind: input, shape index: {}]   ;;  %s1081_s1 = inlined_call_operand.hbm [shape: bf16[1152,128], index: 1, kind: input, shape index: {}]   ;;  %s1082_s2 = inlined_call_operand.vmem [shape: f32[128,128], index: 2, kind: output, shape index: {}]  }
   0x1   :  { %9 = vsyncpa [#allocation4 + $0x1], 0  ;;  %s890_s9 = smov 0   ;;  %s892_s10 = smov 0  }
   0x2   :  { %s894_s11 = smov 0   ;;  %s896_s12 = smov 0  }
   0x3   :  { %s898_s13 = smov 0   ;;  %s900_s14 = smov 0  }
   0x4   :  { %s902_s15 = smov 0   ;;  %s904_s16 = smov 0  }
   0x5   :  { %s906_s17 = smov 0   ;;  %s908_s18 = smov 0  }
   0x6 LB: > { %s570_s19 = sadd.s32 4294967295, %s870_s18   ;;  %s27_s20 = sadd.s32 1, %s862_s16  ;;  %s870_s18 = sphi %s908_s18, %s15_s18   ;;  %s866_s17 = sphi %s906_s17, %s1094_s17   ;;  %s862_s16 = sphi %s904_s16, %s1093_s16   ;;  %s858_s15 = sphi %s902_s15, %s1092_s15   ;;  %s854_s14 = sphi %s900_s14, %s1091_s14   ;;  %s850_s13 = sphi %s898_s13, %s1090_s13   ;;  %s846_s12 = sphi %s896_s12, %s1089_s12   ;;  %s842_s11 = sphi %s894_s11, %s1088_s11   ;;  %s838_s10 = sphi %s892_s10, %s1087_s10   ;;  %s834_s9 = sphi %s890_s9, %s1086_s9  }
   0x7   : > { %p28_p0 = scmp.ge.s32.totalorder %s27_s20, 9  ;;  %s34_s21 = sadd.s32 1, %s866_s17 }
   0x8   : > { %s43_s22 = sadd.s32 1, %s850_s13  ;;  %p50_p1 = scmp.ne.s32.totalorder %s850_s13, %s846_s12 }
   0x9   : > { %s1096_s20 = smov (%p28_p0, %s27_s20), 0  ;;  %s1098_s21 = smov (!%p28_p0, %s34_s21), %s866_s17 }
   0xa   : > { %s39_s23 = ssub.s32 %s862_s16, %s1096_s20  ;;  %p51_p2 = scmp.eq.s32.totalorder %s870_s18, 0 }
   0xb   : > { %p36_p3 = scmp.ge.s32.totalorder %s1098_s21, 2  ;;  %p69_p4 = scmp.eq.s32.totalorder %s39_s23, 0 }
   0xc   : > { %p952_p5 = por %p51_p2, %p50_p1  ;;  %s71_s25 = sadd.s32 1, %s842_s11 }
   0xd   : > { %s1100_s21 = smov (%p36_p3, %s1098_s21), 0  ;;  %p78_p6 = scmp.ne.s32.totalorder %s842_s11, %s838_s10 }
   0xe   : > { %s960_s26 = scalar_select %p69_p4, %s842_s11, %s71_s25  }
   0xf   : > { %s38_s27 = ssub.s32 %s866_s17, %s1100_s21  ;;  %p84_p7 = scmp.ne.s32.totalorder %s838_s10, %s834_s9 }
  0x10   : > { %s40_s28 = sor.u32 %s39_s23, %s38_s27  ;;  %p968_p9 = por %p78_p6, %p51_p2 }
  0x11   : > { %p41_p8 = scmp.eq.s32.totalorder %s40_s28, 0  ;;  %p85_p10 = scmp.eq.s32.totalorder %s570_s19, 0 }
  0x12   : > { %p573_p12 = scmp.ge.s32.totalorder %s870_s18, 18 }
  0x13   : > { %s973_s30 = scalar_select %p41_p8, %s850_s13, %s43_s22  }
  0x14   : > { %p975_p11 = por %p85_p10, %p84_p7  ;;  %132 = sbr.rel (%p573_p12) target bundleno = 46 (0x2e), region = 16 }
  0x19   : > { %135 = sbr.rel (!%p952_p5) target bundleno = 40 (0x28), region = 20  ;;  %s137_s4 = sand.u32 (%p952_p5), 1, %s850_s13  }
  0x1a   : > { %s674_s5 = smul.u32 (%p952_p5), 72, %s866_s17  ;;  %s574_s6 = sshll.u32 (%p952_p5), %s137_s4, 5 }
  0x1b   : > { %s139_s23 = scalar_lea.vmem (%p952_p5), [#allocation2], %s574_s6 }
  0x1c   : > { %s142_s7 = sadd.s32 (%p952_p5), %s862_s16, %s674_s5 }
  0x1d   : > { %s577_s8 = sshll.u32 (%p952_p5), %s142_s7, 2 }
  0x1e   : > { %s144_s22 = scalar_lea.vmem %s1080_s0, %s577_s8 }
  0x1f   : > { %v161_v0 = vld [vmem:[%s144_s22] sm:$0xf]  ;;  %v163_v1 = vld [vmem:[%s144_s22 + $0x24] sm:$0xf]  ;;  %v165_v2 = vld [vmem:[%s144_s22 + $0x48] sm:$0xf] }
  0x20   : > { %162 = vst [vmem:[%s139_s23] sm:$0xf] %v161_v0  ;;  %v167_v3 = vld [vmem:[%s144_s22 + $0x6c] sm:$0xf]  ;;  %v169_v4 = vld [vmem:[%s144_s22 + $0x90] sm:$0xf] }
  0x21   : > { %164 = vst [vmem:[%s139_s23 + $0x4] sm:$0xf] %v163_v1  ;;  %v171_v5 = vld [vmem:[%s144_s22 + $0xb4] sm:$0xf]  ;;  %v173_v6 = vld [vmem:[%s144_s22 + $0xd8] sm:$0xf] }
  0x22   : > { %166 = vst [vmem:[%s139_s23 + $0x8] sm:$0xf] %v165_v2  ;;  %v175_v7 = vld [vmem:[%s144_s22 + $0xfc] sm:$0xf] }
  0x23   : > { %168 = vst [vmem:[%s139_s23 + $0xc] sm:$0xf] %v167_v3 }
  0x24   : > { %170 = vst [vmem:[%s139_s23 + $0x10] sm:$0xf] %v169_v4 }
  0x25   : > { %172 = vst [vmem:[%s139_s23 + $0x14] sm:$0xf] %v171_v5 }
  0x26   : > { %174 = vst [vmem:[%s139_s23 + $0x18] sm:$0xf] %v173_v6 }
  0x27   : > { %176 = vst [vmem:[%s139_s23 + $0x1c] sm:$0xf] %v175_v7 }
  0x28 PF: > { %s217_s24 = sand.u32 1, %s842_s11   ;;  %s637_s25 = sshll.u32 %s862_s16, 6 }
  0x29   : > { %s578_s27 = sshll.u32 %s217_s24, 6  ;;  %s227_s5 = scalar_lea.hbm %s1081_s1, %s637_s25 }
  0x2a   : > { %s228_s6 = sshll.u32 %s227_s5, 4  ;;  %s221_s7 = scalar_lea.vmem [#allocation3], %s578_s27  ;;  %s229_s6 = int_to_ptr.hbm [resolvable:$true] %s228_s6 }
  0x2b   : > { %s230_s8 = sshll.u32 %s221_s7, 4  ;;  %s218_s9 = scalar_lea.sflag [#allocation4], %s217_s24  ;;  %s231_s8 = int_to_ptr.vmem [resolvable:$true] %s230_s8 }
  0x2c   : > { %s872_s19 = smov 64   ;;  %s873_s22 = smov 4  }
  0x2d   : > { %675 = dma.hbm_to_vmem [thread:$0]  (%p968_p9), %s229_s6, 1024, %s231_s8, %s218_s9, %s872_s19, %s872_s19, %s873_s22  }
  0x2e PF: > { %p581_p13 = scmp.ge.s32.totalorder %s870_s18, 1  ;;  %p238_p0 = scmp.lt.s32.totalorder %s870_s18, 19 }
  0x30   : > { %p239_p1 = pnand %p581_p13, %p238_p0 }
  0x31   : > { %s245_s23 = sand.u32 (!%p239_p1), 1, %s846_s12   ;;  %s251_s25 = sand.u32 (!%p239_p1), 1, %s838_s10  }
  0x32   : > { %242 = sbr.rel (%p239_p1) target bundleno = 249 (0xf9), region = 65  ;;  %s582_s27 = sshll.u32 (!%p239_p1), %s245_s23, 5 }
  0x33   : > { %s583_s28 = sshll.u32 (!%p239_p1), %s251_s25, 6  ;;  %s999_s4 = scalar_lea.vmem (!%p239_p1), [#allocation2], %s582_s27 }
  0x34   : > { %s252_s24 = scalar_lea.sflag (!%p239_p1), [#allocation4], %s251_s25  ;;  %s1001_s5 = scalar_lea.vmem (!%p239_p1), [#allocation3], %s583_s28 }
  0x37   : > { %829 = dma.done.wait (%p975_p11), %s252_s24, 1024  }
  0x38   : > { %831 = vsyncadd (%p975_p11), %s252_s24, 4294966272  ;;  %s584_s29 = sshll.u32 %s858_s15, 3  ;;  %p586_p3 = scmp.ne.s32.totalorder %s854_s14, 0 }
  0x39   : > { %p287_p2 = scmp.lt.s32.totalorder %s584_s29, 15 }
  0x3a   : > { %298 = sbr.rel (%p586_p3) target bundleno = 72 (0x48), region = 77 }
  0x3b   : > { %s1102_s29 = smov (!%p287_p2, %s584_s29), 15 }
  0x3c   : > { %s585_s6 = sshll.u32 %s1102_s29, 3 }
  0x3d   : > { %s1011_s8 = scalar_lea.vmem %s1082_s2, %s585_s6 }
  0x3f   : > { %v874_v8 = vmov 0.0  }
  0x40   : > { %299 = vst [vmem:[%s1011_s8] sm:$0xff] %v874_v8 }
  0x41   : > { %300 = vst [vmem:[%s1011_s8 + $0x8] sm:$0xff] %v874_v8 }
  0x42   : > { %301 = vst [vmem:[%s1011_s8 + $0x10] sm:$0xff] %v874_v8 }
  0x43   : > { %302 = vst [vmem:[%s1011_s8 + $0x18] sm:$0xff] %v874_v8 }
  0x44   : > { %303 = vst [vmem:[%s1011_s8 + $0x20] sm:$0xff] %v874_v8 }
  0x45   : > { %304 = vst [vmem:[%s1011_s8 + $0x28] sm:$0xff] %v874_v8 }
  0x46   : > { %305 = vst [vmem:[%s1011_s8 + $0x30] sm:$0xff] %v874_v8 }
  0x47   : > { %306 = vst [vmem:[%s1011_s8 + $0x38] sm:$0xff] %v874_v8 }
  0x48 PF: > { %v649_v9 = vld [vmem:[%s1001_s5 + $0x38] sm:$0xff]  ;;  %v648_v10 = vld [vmem:[%s1001_s5 + $0x30] sm:$0xff]  ;;  %v647_v11 = vld [vmem:[%s1001_s5 + $0x28] sm:$0xff] }
  0x49   : > { %411 = vmatpush.bf16.msra.mxu0 %v649_v9  ;;  %650 = vmatpush.bf16.msra.mxu1 %v649_v9  ;;  %v646_v12 = vld [vmem:[%s1001_s5 + $0x20] sm:$0xff]  ;;  %v645_v13 = vld [vmem:[%s1001_s5 + $0x18] sm:$0xff]  ;;  %v644_v14 = vld [vmem:[%s1001_s5 + $0x10] sm:$0xff] }
  0x4a   : > { %651 = vmatpush.bf16.msra.mxu2 %v649_v9  ;;  %652 = vmatpush.bf16.msra.mxu3 %v649_v9  ;;  %v643_v15 = vld [vmem:[%s1001_s5 + $0x8] sm:$0xff]  ;;  %v642_v16 = vld [vmem:[%s1001_s5] sm:$0xff]  ;;  %v640_v19 = vld [vmem:[%s999_s4 + $0x10] sm:$0xff] }
  0x4b   : > { %v638_v17 = vld [vmem:[%s999_s4] sm:$0xff]  ;;  %v639_v18 = vld [vmem:[%s999_s4 + $0x8] sm:$0xff]  ;;  %v641_v20 = vld [vmem:[%s999_s4 + $0x18] sm:$0xff] }
  0x4c   : > { %v307_v21 = vld [vmem:[%s1011_s8] sm:$0xff]  ;;  %v309_v22 = vld [vmem:[%s1011_s8 + $0x10] sm:$0xff]  ;;  %v308_v29 = vld [vmem:[%s1011_s8 + $0x8] sm:$0xff] }
  0x4d   : > { %412 = vmatpush.bf16.msra.mxu0 %v648_v10  ;;  %653 = vmatpush.bf16.msra.mxu1 %v648_v10  ;;  %v311_v27 = vld [vmem:[%s1011_s8 + $0x20] sm:$0xff]  ;;  %v313_v28 = vld [vmem:[%s1011_s8 + $0x30] sm:$0xff]  ;;  %v310_v30 = vld [vmem:[%s1011_s8 + $0x18] sm:$0xff] }
  0x4e   : > { %654 = vmatpush.bf16.msra.mxu2 %v648_v10  ;;  %655 = vmatpush.bf16.msra.mxu3 %v648_v10  ;;  %v312_v39 = vld [vmem:[%s1011_s8 + $0x28] sm:$0xff]  ;;  %v314_v40 = vld [vmem:[%s1011_s8 + $0x38] sm:$0xff] }
  0x51   : > { %413 = vmatpush.bf16.msra.mxu0 %v647_v11  ;;  %656 = vmatpush.bf16.msra.mxu1 %v647_v11 }
  0x52   : > { %657 = vmatpush.bf16.msra.mxu2 %v647_v11  ;;  %658 = vmatpush.bf16.msra.mxu3 %v647_v11 }
  0x55   : > { %414 = vmatpush.bf16.msra.mxu0 %v646_v12  ;;  %659 = vmatpush.bf16.msra.mxu1 %v646_v12 }
  0x56   : > { %660 = vmatpush.bf16.msra.mxu2 %v646_v12  ;;  %661 = vmatpush.bf16.msra.mxu3 %v646_v12 }
  0x59   : > { %415 = vmatpush.bf16.msra.mxu0 %v645_v13  ;;  %662 = vmatpush.bf16.msra.mxu1 %v645_v13 }
  0x5a   : > { %663 = vmatpush.bf16.msra.mxu2 %v645_v13  ;;  %664 = vmatpush.bf16.msra.mxu3 %v645_v13 }
  0x5d   : > { %416 = vmatpush.bf16.msra.mxu0 %v644_v14  ;;  %665 = vmatpush.bf16.msra.mxu1 %v644_v14 }
  0x5e   : > { %666 = vmatpush.bf16.msra.mxu2 %v644_v14  ;;  %667 = vmatpush.bf16.msra.mxu3 %v644_v14 }
  0x61   : > { %417 = vmatpush.bf16.msra.mxu0 %v643_v15  ;;  %668 = vmatpush.bf16.msra.mxu1 %v643_v15 }
  0x62   : > { %669 = vmatpush.bf16.msra.mxu2 %v643_v15  ;;  %670 = vmatpush.bf16.msra.mxu3 %v643_v15 }
  0x65   : > { %418 = vmatpush.bf16.msra.mxu0 %v642_v16  ;;  %671 = vmatpush.bf16.msra.mxu1 %v642_v16 }
  0x66   : > { %672 = vmatpush.bf16.msra.mxu2 %v642_v16  ;;  %673 = vmatpush.bf16.msra.mxu3 %v642_v16 }
  0x68   : > { %419 = vmatmul.bf16.vlgmr.msra.gmra.mxu0 %v638_v17  ;;  %424 = vmatmul.bf16.vlgmr.msra.gmra.mxu1 %v639_v18 }
  0x69   : > { %429 = vmatmul.bf16.vlgmr.msra.gmra.mxu2 %v640_v19  ;;  %434 = vmatmul.bf16.vlgmr.msra.gmra.mxu3 %v641_v20 }
  0xe5   : > { %v420_v23 = vpop.f32.mrf.mxu0  ;;  %v425_v24 = vpop.f32.mrf.mxu1 }
  0xe6   : > { %v440_v25 = vadd.f32 %v420_v23, %v307_v21  ;;  %v442_v26 = vadd.f32 %v425_v24, %v309_v22 }
  0xe8   : > { %448 = vst [vmem:[%s1011_s8] sm:$0xff] %v440_v25 }
  0xe9   : > { %450 = vst [vmem:[%s1011_s8 + $0x10] sm:$0xff] %v442_v26 }
  0xec   : > { %v430_v31 = vpop.f32.mrf.mxu2  ;;  %v435_v32 = vpop.f32.mrf.mxu3 }
  0xed   : > { %v444_v33 = vadd.f32 %v430_v31, %v311_v27  ;;  %v446_v34 = vadd.f32 %v435_v32, %v313_v28  ;;  %v422_v35 = vpop.f32.mrf.mxu0  ;;  %v427_v36 = vpop.f32.mrf.mxu1 }
  0xee   : > { %v441_v37 = vadd.f32 %v422_v35, %v308_v29  ;;  %v443_v38 = vadd.f32 %v427_v36, %v310_v30 }
  0xef   : > { %452 = vst [vmem:[%s1011_s8 + $0x20] sm:$0xff] %v444_v33 }
  0xf0   : > { %454 = vst [vmem:[%s1011_s8 + $0x30] sm:$0xff] %v446_v34 }
  0xf1   : > { %449 = vst [vmem:[%s1011_s8 + $0x8] sm:$0xff] %v441_v37 }
  0xf2   : > { %451 = vst [vmem:[%s1011_s8 + $0x18] sm:$0xff] %v443_v38 }
  0xf4   : > { %v432_v41 = vpop.f32.mrf.mxu2  ;;  %v437_v42 = vpop.f32.mrf.mxu3 }
  0xf5   : > { %v445_v43 = vadd.f32 %v432_v41, %v312_v39  ;;  %v447_v44 = vadd.f32 %v437_v42, %v314_v40 }
  0xf7   : > { %453 = vst [vmem:[%s1011_s8 + $0x28] sm:$0xff] %v445_v43 }
  0xf8   : > { %455 = vst [vmem:[%s1011_s8 + $0x38] sm:$0xff] %v447_v44 }
  0xf9 PF: > { %s15_s18 = sadd.s32 1, %s870_s18   ;;  %s1086_s9 = smov %s838_s10 }
  0xfa   : > { %p12_p4 = scmp.ge.s32.totalorder %s15_s18, 20   ;;  %s1087_s10 = smov %s842_s11 }
  0xfb   : > { %s1088_s11 = smov %s960_s26  ;;  %s1089_s12 = smov %s850_s13 }
  0xfc   : > { %s1090_s13 = smov %s973_s30  ;;  %s1091_s14 = smov %s862_s16 }
  0xfd   : > { %s1092_s15 = smov %s866_s17  ;;  %s1093_s16 = smov %s1096_s20 }
  0xfe   : > { %s1094_s17 = smov %s1100_s21  ;;  %14 = sbr.rel (!%p12_p4) target bundleno = 6 (0x6), region = 121 }
 0x103   :  { %484 = vsyncpa [#allocation4], 1 }
 0x104   :  { %486 = vsyncpa [#allocation4 + $0x1], 1 }

// kernel: forward.40
= control target key start
LH: loop header
LB: loop body
LE: loop exit
PB: predicated region body
PF: predicated region fallthrough
CT: control target
= control target key end

     0   :  { %7 = vsyncpa [#allocation3], 0  ;;  %s696_s9 = smov 0   ;;  %s698_s10 = smov 0   ;;  %s752_s0 = inlined_call_operand.vmem [shape: bf16[32,128], index: 0, kind: input, shape index: {}]   ;;  %s753_s1 = inlined_call_operand.hbm [shape: bf16[128,256], index: 1, kind: input, shape index: {}]   ;;  %s754_s2 = inlined_call_operand.vmem [shape: f32[32,256], index: 2, kind: output, shape index: {}]  }
   0x1   :  { %s700_s11 = smov 0  }
   0x2 LB: > { %s481_s12 = sadd.s32 4294967295, %s675_s11   ;;  %s32_s13 = sadd.s32 1, %s671_s10  ;;  %s675_s11 = sphi %s700_s11, %s13_s11   ;;  %s671_s10 = sphi %s698_s10, %s756_s10   ;;  %s667_s9 = sphi %s696_s9, %s755_s9  }
   0x3   : > { %p34_p0 = scmp.ge.s32.totalorder %s32_s13, 2  ;;  %p483_p1 = scmp.ge.s32.totalorder %s675_s11, 1 }
   0x4   : > { %p121_p2 = scmp.lt.s32.totalorder %s675_s11, 3  ;;  %p589_p4 = scmp.eq.s32.totalorder %s481_s12, 0 }
   0x5   : > { %s758_s13 = smov (%p34_p0, %s32_s13), 0  ;;  %s138_s16 = sshll.u32 %s753_s1, 4  ;;  %s139_s16 = int_to_ptr.hbm [resolvable:$true] %s138_s16 }
   0x6   : > { %p122_p3 = pnand %p483_p1, %p121_p2  ;;  %s677_s17 = smov [#allocation2]  }
   0x7   : > { %s140_s18 = sshll.u32 %s677_s17, 4  ;;  %s678_s19 = smov 128   ;;  %s141_s18 = int_to_ptr.vmem [resolvable:$true] %s140_s18 }
   0x8   : > { %p585_p5 = pneg %p122_p3  ;;  %s679_s20 = smov 8  }
   0x9   : > { %168 = sbr.rel (%p122_p3) target bundleno = 186 (0xba), region = 28 }
   0xa   : > { %p586_p6 = pnand %p589_p4, %p585_p5 }
   0xc   : > { %588 = dma.hbm_to_vmem [thread:$0]  (!%p586_p6), %s139_s16, 2048, %s141_s18, [#allocation3], %s678_s19, %s678_s19, %s679_s20  }
   0xe   : > { %662 = dma.done.wait (%p589_p4), [#allocation3], 2048  }
   0xf   : > { %664 = vsyncadd (%p589_p4), [#allocation3], 4294965248  ;;  %s488_s21 = sshll.u32 %s667_s9, 1  ;;  %v555_v0 = vld [vmem:[#allocation2 + $0x70] sm:$0xf]  ;;  %v680_v23 = vmov 0.0  }
  0x10   : > { %p200_p7 = scmp.lt.s32.totalorder %s488_s21, 3  ;;  %v580_v1 = vld [vmem:[#allocation2 + $0x74] sm:$0xf0]  ;;  %v579_v2 = vld [vmem:[#allocation2 + $0x74] sm:$0xf] }
  0x11   : > { %v556_v3 = vor.u32 %v580_v1, %v555_v0  ;;  %v557_v4 = vld [vmem:[#allocation2 + $0x78] sm:$0xf0]  ;;  %v547_v5 = vld [vmem:[#allocation2 + $0x60] sm:$0xf]  ;;  %v578_v6 = vld [vmem:[#allocation2 + $0x64] sm:$0xf0] }
  0x12   : > { %v560_v7 = vor.u32 %v579_v2, %v557_v4  ;;  %v577_v8 = vld [vmem:[#allocation2 + $0x64] sm:$0xf]  ;;  %v549_v9 = vld [vmem:[#allocation2 + $0x68] sm:$0xf0]  ;;  %v548_v10 = vor.u32 %v578_v6, %v547_v5  ;;  %s760_s21 = smov (!%p200_p7, %s488_s21), 3 }
  0x13   : > { %338 = vmatpush.bf16.msra.mxu0 %v556_v3  ;;  %v552_v11 = vor.u32 %v577_v8, %v549_v9  ;;  %v539_v12 = vld [vmem:[#allocation2 + $0x50] sm:$0xf]  ;;  %v576_v13 = vld [vmem:[#allocation2 + $0x54] sm:$0xf0]  ;;  %v575_v14 = vld [vmem:[#allocation2 + $0x54] sm:$0xf] }
  0x14   : > { %352 = vmatpush.bf16.msra.mxu1 %v560_v7  ;;  %v541_v15 = vld [vmem:[#allocation2 + $0x58] sm:$0xf0]  ;;  %s563_s22 = sshll.u32 %s760_s21, 4  ;;  %v540_v16 = vor.u32 %v576_v13, %v539_v12  ;;  %v531_v18 = vld [vmem:[#allocation2 + $0x40] sm:$0xf]  ;;  %s489_s26 = sshll.u32 %s760_s21, 2 }
  0x15   : > { %v544_v17 = vor.u32 %v575_v14, %v541_v15  ;;  %v574_v19 = vld [vmem:[#allocation2 + $0x44] sm:$0xf0]  ;;  %s727_s25 = scalar_lea.vmem %s754_s2, %s563_s22  ;;  %v573_v20 = vld [vmem:[#allocation2 + $0x44] sm:$0xf]  ;;  %v533_v21 = vld [vmem:[#allocation2 + $0x48] sm:$0xf0]  ;;  %s206_s29 = scalar_lea.vmem %s752_s0, %s489_s26 }
  0x16   : > { %v532_v22 = vor.u32 %v574_v19, %v531_v18  ;;  %226 = vst [vmem:[%s727_s25] sm:$0xff] %v680_v23  ;;  %v536_v24 = vor.u32 %v573_v20, %v533_v21  ;;  %v523_v25 = vld [vmem:[#allocation2 + $0x30] sm:$0xf]  ;;  %v572_v26 = vld [vmem:[#allocation2 + $0x34] sm:$0xf0]  ;;  %v571_v27 = vld [vmem:[#allocation2 + $0x34] sm:$0xf] }
  0x17   : > { %339 = vmatpush.bf16.msra.mxu0 %v548_v10  ;;  %228 = vst [vmem:[%s727_s25 + $0x10] sm:$0xff] %v680_v23  ;;  %v525_v28 = vld [vmem:[#allocation2 + $0x38] sm:$0xf0]  ;;  %v524_v29 = vor.u32 %v572_v26, %v523_v25  ;;  %v515_v31 = vld [vmem:[#allocation2 + $0x20] sm:$0xf] }
  0x18   : > { %353 = vmatpush.bf16.msra.mxu1 %v552_v11  ;;  %227 = vst [vmem:[%s727_s25 + $0x8] sm:$0xff] %v680_v23  ;;  %v528_v30 = vor.u32 %v571_v27, %v525_v28  ;;  %v570_v32 = vld [vmem:[#allocation2 + $0x24] sm:$0xf0]  ;;  %v569_v33 = vld [vmem:[#allocation2 + $0x24] sm:$0xf] }
  0x19   : > { %229 = vst [vmem:[%s727_s25 + $0x18] sm:$0xff] %v680_v23  ;;  %v517_v34 = vld [vmem:[#allocation2 + $0x28] sm:$0xf0]  ;;  %v516_v35 = vor.u32 %v570_v32, %v515_v31  ;;  %v507_v37 = vld [vmem:[#allocation2 + $0x10] sm:$0xf]  ;;  %v564_v49 = vld [vmem:[%s206_s29] sm:$0xff] }
  0x1a   : > { %v520_v36 = vor.u32 %v569_v33, %v517_v34  ;;  %v568_v38 = vld [vmem:[#allocation2 + $0x14] sm:$0xf0]  ;;  %v567_v39 = vld [vmem:[#allocation2 + $0x14] sm:$0xf]  ;;  %v509_v40 = vld [vmem:[#allocation2 + $0x18] sm:$0xf0] }
  0x1b   : > { %340 = vmatpush.bf16.msra.mxu0 %v540_v16  ;;  %v508_v41 = vor.u32 %v568_v38, %v507_v37  ;;  %v512_v42 = vor.u32 %v567_v39, %v509_v40  ;;  %v499_v43 = vld [vmem:[#allocation2] sm:$0xf]  ;;  %v566_v44 = vld [vmem:[#allocation2 + $0x4] sm:$0xf0]  ;;  %v565_v45 = vld [vmem:[#allocation2 + $0x4] sm:$0xf] }
  0x1c   : > { %354 = vmatpush.bf16.msra.mxu1 %v544_v17  ;;  %v501_v46 = vld [vmem:[#allocation2 + $0x8] sm:$0xf0]  ;;  %v500_v47 = vor.u32 %v566_v44, %v499_v43 }
  0x1d   : > { %v504_v48 = vor.u32 %v565_v45, %v501_v46  ;;  %v230_v50 = vld [vmem:[%s727_s25] sm:$0xff] }
  0x1f   : > { %341 = vmatpush.bf16.msra.mxu0 %v532_v22  ;;  %v231_v51 = vld [vmem:[%s727_s25 + $0x8] sm:$0xff] }
  0x20   : > { %355 = vmatpush.bf16.msra.mxu1 %v536_v24 }
  0x23   : > { %342 = vmatpush.bf16.msra.mxu0 %v524_v29 }
  0x24   : > { %356 = vmatpush.bf16.msra.mxu1 %v528_v30 }
  0x27   : > { %343 = vmatpush.bf16.msra.mxu0 %v516_v35 }
  0x28   : > { %357 = vmatpush.bf16.msra.mxu1 %v520_v36 }
  0x2b   : > { %344 = vmatpush.bf16.msra.mxu0 %v508_v41 }
  0x2c   : > { %358 = vmatpush.bf16.msra.mxu1 %v512_v42 }
  0x2f   : > { %345 = vmatpush.bf16.msra.mxu0 %v500_v47 }
  0x30   : > { %359 = vmatpush.bf16.msra.mxu1 %v504_v48 }
  0x32   : > { %346 = vmatmul.bf16.vlgmr.msra.gmra.mxu0 %v564_v49 }
  0x33   : > { %360 = vmatmul.bf16.vlgmr.msra.gmra.mxu1 %v564_v49 }
  0xaf   : > { %v347_v52 = vpop.f32.mrf.mxu0 }
  0xb0   : > { %v366_v53 = vadd.f32 %v347_v52, %v230_v50  ;;  %v361_v54 = vpop.f32.mrf.mxu1 }
  0xb1   : > { %v367_v55 = vadd.f32 %v361_v54, %v231_v51 }
  0xb2   : > { %370 = vst [vmem:[%s727_s25] sm:$0xff] %v366_v53 }
  0xb3   : > { %371 = vst [vmem:[%s727_s25 + $0x8] sm:$0xff] %v367_v55 }
  0xb7   : > { %v349_v56 = vpop.f32.mrf.mxu0 }
  0xb8   : > { %v363_v57 = vpop.f32.mrf.mxu1  ;;  %372 = vst [vmem:[%s727_s25 + $0x10] sm:$0xff] %v349_v56 }
  0xb9   : > { %373 = vst [vmem:[%s727_s25 + $0x18] sm:$0xff] %v363_v57 }
  0xba PF: > { %s13_s11 = sadd.s32 1, %s675_s11   ;;  %s755_s9 = smov %s671_s10 }
  0xbb   : > { %p10_p8 = scmp.ge.s32.totalorder %s13_s11, 4   ;;  %s756_s10 = smov %s758_s13 }
  0xbd   :  { %12 = sbr.rel (!%p10_p8) target bundleno = 2 (0x2), region = 68 }
  0xc2   :  { %407 = vsyncpa [#allocation3], 1 }
  0xc3   :  { %409 = vsyncpa [#allocation3 + $0x1], 1 }

// kernel: forward.36
= control target key start
LH: loop header
LB: loop body
LE: loop exit
PB: predicated region body
PF: predicated region fallthrough
CT: control target
= control target key end

     0   :  { %s1018_s0 = inlined_call_operand.vmem [shape: f32[64,128], index: 0, kind: input, shape index: {}]   ;;  %s1019_s1 = inlined_call_operand.vmem [shape: f32[64,128], index: 1, kind: input, shape index: {}]   ;;  %s1020_s2 = inlined_call_operand.vmem [shape: bf16[64,128], index: 2, kind: input, shape index: {}]   ;;  %s1021_s3 = inlined_call_operand.vmem [shape: bf16[64,128], index: 3, kind: input, shape index: {}]   ;;  %s1022_s4 = inlined_call_operand.vmem [shape: f32[8,128], index: 4, kind: input, shape index: {}]   ;;  %s1023_s5 = inlined_call_operand.vmem [shape: f32[8,128], index: 5, kind: input, shape index: {}]   ;;  %s1024_s6 = inlined_call_operand.vmem [shape: bf16[64,128], index: 6, kind: output, shape index: {0}]   ;;  %s1025_s7 = inlined_call_operand.vmem [shape: bf16[64,128], index: 7, kind: output, shape index: {1}]  }
   0x1   :  { %v25_v0 = vld [vmem:[%s1018_s0] sm:$0xff]  ;;  %v26_v1 = vld [vmem:[%s1018_s0 + $0x8] sm:$0xff]  ;;  %v27_v49 = vld [vmem:[%s1018_s0 + $0x10] sm:$0xff] }
   0x2   :  { %v33_v2 = vld [vmem:[%s1019_s1] sm:$0xff]  ;;  %v34_v5 = vld [vmem:[%s1019_s1 + $0x8] sm:$0xff]  ;;  %v28_v53 = vld [vmem:[%s1018_s0 + $0x18] sm:$0xff] }
   0x3   :  { %v425_v3 = vld [vmem:[%s1020_s2] sm:$0xff]   ;;  %v496_v39 = vld [vmem:[%s1020_s2 + $0x8] sm:$0xff]   ;;  %v35_v54 = vld [vmem:[%s1019_s1 + $0x10] sm:$0xff] }
   0x4   :  { %v441_v4 = vld [vmem:[%s1021_s3] sm:$0xff]   ;;  %v426_v6 = vunpack.c.l.bf16 %v425_v3  ;;  %v427_v7 = vunpack.c.h.bf16 %v425_v3  ;;  %v640_v44 = vld [vmem:[%s1021_s3 + $0x8] sm:$0xff]   ;;  %v430_v55 = vunpack.c.l.bf16 %v496_v39  ;;  %v36_v58 = vld [vmem:[%s1019_s1 + $0x18] sm:$0xff]  ;;  %v431_v59 = vunpack.c.h.bf16 %v496_v39 }
   0x5   :  { %v442_v8 = vunpack.c.l.bf16 %v441_v4  ;;  %v585_v9 = vld [vmem:[%s1022_s4] sm:$0xff]  ;;  %v443_v11 = vunpack.c.h.bf16 %v441_v4  ;;  %v446_v60 = vunpack.c.l.bf16 %v640_v44  ;;  %v447_v63 = vunpack.c.h.bf16 %v640_v44 }
   0x6   :  { %v74_v10 = vld [vmem:[%s1023_s5] sm:$0xff]  ;;  %v591_v12 = vperm.slane %v585_v9, 0  ;;  %v594_v13 = vperm.slane %v585_v9, 1  ;;  %v599_v15 = vperm.slane %v585_v9, 4  ;;  %v604_v17 = vperm.slane %v585_v9, 2 }
   0x7   :  { %v596_v14 = vperm.slane %v74_v10, 0  ;;  %v601_v16 = vperm.slane %v74_v10, 1  ;;  %v607_v18 = vperm.slane %v585_v9, 3  ;;  %v616_v26 = vperm.slane %v74_v10, 4 }
   0x8   :  { %v76_v19 = vmul.f32 %v591_v12, %v25_v0  ;;  %v77_v20 = vmul.f32 %v591_v12, %v26_v1  ;;  %v85_v21 = vmul.f32 %v594_v13, %v33_v2  ;;  %v86_v22 = vmul.f32 %v594_v13, %v34_v5 }
   0x9   :  { %v111_v23 = vmul.f32 %v426_v6, %v596_v14  ;;  %v112_v24 = vmul.f32 %v427_v7, %v596_v14  ;;  %v128_v25 = vmul.f32 %v442_v8, %v601_v16  ;;  %v154_v29 = vmul.f32 %v604_v17, %v25_v0 }
   0xa   :  { %v93_v27 = vsub.f32 %v76_v19, %v85_v21  ;;  %v94_v28 = vsub.f32 %v77_v20, %v86_v22  ;;  %v155_v30 = vmul.f32 %v604_v17, %v26_v1  ;;  %v163_v31 = vmul.f32 %v607_v18, %v33_v2 }
   0xb   :  { %v164_v32 = vmul.f32 %v607_v18, %v34_v5  ;;  %v623_v33 = vperm.slane %v585_v9, 5  ;;  %v625_v34 = vperm.slane %v74_v10, 2  ;;  %v129_v37 = vmul.f32 %v443_v11, %v601_v16 }
   0xc   :  { %v102_v35 = vadd.f32 %v599_v15, %v93_v27  ;;  %v103_v36 = vadd.f32 %v599_v15, %v94_v28  ;;  %v630_v38 = vperm.slane %v74_v10, 3  ;;  %v171_v40 = vadd.f32 %v163_v31, %v154_v29 }
   0xd   :  { %v172_v41 = vadd.f32 %v164_v32, %v155_v30  ;;  %v189_v42 = vmul.f32 %v426_v6, %v625_v34  ;;  %v190_v43 = vmul.f32 %v427_v7, %v625_v34  ;;  %v643_v48 = vperm.slane %v74_v10, 5 }
   0xe   :  { %v119_v45 = vadd.f32 %v111_v23, %v102_v35  ;;  %v120_v46 = vadd.f32 %v112_v24, %v103_v36  ;;  %v206_v47 = vmul.f32 %v442_v8, %v630_v38  ;;  %v180_v50 = vadd.f32 %v623_v33, %v171_v40 }
   0xf   :  { %v181_v51 = vadd.f32 %v623_v33, %v172_v41  ;;  %v207_v52 = vmul.f32 %v443_v11, %v630_v38  ;;  %v78_v0 = vmul.f32 %v591_v12, %v27_v49  ;;  %v79_v3 = vmul.f32 %v591_v12, %v28_v53 }
  0x10   :  { %v136_v56 = vsub.f32 %v119_v45, %v128_v25  ;;  %v137_v57 = vsub.f32 %v120_v46, %v129_v37  ;;  %v197_v61 = vadd.f32 %v189_v42, %v180_v50  ;;  %v87_v4 = vmul.f32 %v594_v13, %v35_v54 }
  0x11   :  { %v198_v62 = vadd.f32 %v190_v43, %v181_v51  ;;  %v88_v7 = vmul.f32 %v594_v13, %v36_v58  ;;  %v113_v8 = vmul.f32 %v430_v55, %v596_v14  ;;  %v114_v20 = vmul.f32 %v431_v59, %v596_v14 }
  0x12   :  { %v664_v1 = vadd.f32 %v616_v26, %v136_v56  ;;  %v667_v2 = vadd.f32 %v616_v26, %v137_v57  ;;  %v214_v5 = vadd.f32 %v206_v47, %v197_v61  ;;  %v95_v19 = vsub.f32 %v78_v0, %v87_v4  ;;  %v701_v47 = vld [vmem:[%s1020_s2 + $0x10] sm:$0xff]   ;;  %v29_v57 = vld [vmem:[%s1018_s0 + $0x20] sm:$0xff]  ;;  %v38_v4 = vld [vmem:[%s1019_s1 + $0x28] sm:$0xff] }
  0x13   :  { %v215_v6 = vadd.f32 %v207_v52, %v198_v62  ;;  %v96_v23 = vsub.f32 %v79_v3, %v88_v7  ;;  %v130_v24 = vmul.f32 %v446_v60, %v601_v16  ;;  %v131_v27 = vmul.f32 %v447_v63, %v601_v16  ;;  %v37_v61 = vld [vmem:[%s1019_s1 + $0x20] sm:$0xff] }
  0x14   :  { %v231_v10 = vmul.f32 %v664_v1, %v664_v1  ;;  %v232_v11 = vmul.f32 %v667_v2, %v667_v2  ;;  %v679_v21 = vadd.f32 %v643_v48, %v214_v5  ;;  %v104_v25 = vadd.f32 %v599_v15, %v95_v19 }
  0x15   :  { %v682_v22 = vadd.f32 %v643_v48, %v215_v6  ;;  %v156_v28 = vmul.f32 %v604_v17, %v27_v49  ;;  %v157_v29 = vmul.f32 %v604_v17, %v28_v53  ;;  %v105_v32 = vadd.f32 %v599_v15, %v96_v23 }
  0x16   :  { %v239_v30 = vmul.f32 %v679_v21, %v679_v21  ;;  %v165_v35 = vmul.f32 %v607_v18, %v35_v54  ;;  %v121_v36 = vadd.f32 %v113_v8, %v104_v25  ;;  %v166_v37 = vmul.f32 %v607_v18, %v36_v58  ;;  %v720_v58 = vld [vmem:[%s1021_s3 + $0x10] sm:$0xff]  }
  0x17   :  { %v240_v31 = vmul.f32 %v682_v22, %v682_v22  ;;  %v122_v41 = vadd.f32 %v114_v20, %v105_v32  ;;  %v191_v45 = vmul.f32 %v430_v55, %v625_v34  ;;  %v192_v46 = vmul.f32 %v431_v59, %v625_v34 }
  0x18   :  { %v247_v39 = vadd.f32 %v239_v30, %v231_v10  ;;  %v173_v42 = vadd.f32 %v165_v35, %v156_v28  ;;  %v138_v43 = vsub.f32 %v121_v36, %v130_v24  ;;  %v174_v44 = vadd.f32 %v166_v37, %v157_v29 }
  0x19   :  { %v248_v40 = vadd.f32 %v240_v31, %v232_v11  ;;  %v139_v51 = vsub.f32 %v122_v41, %v131_v27  ;;  %v208_v55 = vmul.f32 %v446_v60, %v630_v38  ;;  %v209_v56 = vmul.f32 %v447_v63, %v630_v38  ;;  %v30_v60 = vld [vmem:[%s1018_s0 + $0x28] sm:$0xff] }
  0x1a   :  { %v703_v49 = vadd.f32 1e-12, %v247_v39  ;;  %v182_v52 = vadd.f32 %v623_v33, %v173_v42  ;;  %v709_v53 = vadd.f32 %v616_v26, %v138_v43  ;;  %v183_v54 = vadd.f32 %v623_v33, %v174_v44 }
  0x1b   :  { %v705_v50 = vadd.f32 1e-12, %v248_v40  ;;  %v724_v59 = vadd.f32 %v616_v26, %v139_v51  ;;  %v434_v62 = vunpack.c.l.bf16 %v701_v47  ;;  %v435_v63 = vunpack.c.h.bf16 %v701_v47 }
  0x1c   :  { %508 = vrsqrt.f32 %v703_v49  ;;  %v199_v0 = vadd.f32 %v191_v45, %v182_v52  ;;  %v200_v3 = vadd.f32 %v192_v46, %v183_v54  ;;  %v233_v5 = vmul.f32 %v709_v53, %v709_v53 }
  0x1d   :  { %510 = vrsqrt.f32 %v705_v50  ;;  %v450_v6 = vunpack.c.l.bf16 %v720_v58  ;;  %v451_v7 = vunpack.c.h.bf16 %v720_v58  ;;  %v80_v8 = vmul.f32 %v591_v12, %v29_v57 }
  0x1e   :  { %vm269_vm0 = vweird.f32 %v703_v49  ;;  %v216_v10 = vadd.f32 %v208_v55, %v199_v0  ;;  %v217_v11 = vadd.f32 %v209_v56, %v200_v3  ;;  %v81_v19 = vmul.f32 %v591_v12, %v30_v60 }
  0x1f   :  { %v89_v20 = vmul.f32 %v594_v13, %v37_v61  ;;  %vm279_vm1 = vweird.f32 %v705_v50  ;;  %v234_v23 = vmul.f32 %v724_v59, %v724_v59  ;;  %v90_v24 = vmul.f32 %v594_v13, %v38_v4 }
  0x20   :  { %v115_v25 = vmul.f32 %v434_v62, %v596_v14  ;;  %v116_v27 = vmul.f32 %v435_v63, %v596_v14  ;;  %v757_v28 = vadd.f32 %v643_v48, %v216_v10  ;;  %v760_v29 = vadd.f32 %v643_v48, %v217_v11 }
  0x21   :  { %v97_v30 = vsub.f32 %v80_v8, %v89_v20  ;;  %v132_v31 = vmul.f32 %v450_v6, %v601_v16  ;;  %v98_v35 = vsub.f32 %v81_v19, %v90_v24  ;;  %v133_v36 = vmul.f32 %v451_v7, %v601_v16 }
  0x22   :  { %v509_v32 = vpop.eup %508  ;;  %v158_v37 = vmul.f32 %v604_v17, %v29_v57  ;;  %v167_v39 = vmul.f32 %v607_v18, %v37_v61  ;;  %v241_v42 = vmul.f32 %v757_v28, %v757_v28  ;;  %v242_v43 = vmul.f32 %v760_v29, %v760_v29 }
  0x23   :  { %v511_v40 = vpop.eup %510  ;;  %v264_v41 = vmul.f32 %v509_v32, %v703_v49  ;;  %v159_v44 = vmul.f32 %v604_v17, %v30_v60  ;;  %vm270_vm2 = vweird.f32 %v509_v32  ;;  %v106_v46 = vadd.f32 %v599_v15, %v97_v30 }
  0x24   :  { %v274_v45 = vmul.f32 %v511_v40, %v705_v50  ;;  %v107_v51 = vadd.f32 %v599_v15, %v98_v35  ;;  %v249_v54 = vadd.f32 %v241_v42, %v233_v5  ;;  %v250_v55 = vadd.f32 %v242_v43, %v234_v23  ;;  %vm792_vm4 = vmor %vm269_vm0, %vm270_vm2  ;;  %v40_v23 = vld [vmem:[%s1019_s1 + $0x38] sm:$0xff] }
  0x25   :  { %v265_v52 = vmul.f32 %v509_v32, %v264_v41  ;;  %v168_v56 = vmul.f32 %v607_v18, %v38_v4  ;;  %v123_v61 = vadd.f32 %v115_v25, %v106_v46  ;;  %v175_v3 = vadd.f32 %v167_v39, %v158_v37  ;;  %v819_v39 = vld [vmem:[%s1020_s2 + $0x18] sm:$0xff]  }
  0x26   :  { %v275_v57 = vmul.f32 %v511_v40, %v274_v45  ;;  %v124_v0 = vadd.f32 %v116_v27, %v107_v51  ;;  %v780_v10 = vadd.f32 1e-12, %v249_v54  ;;  %v782_v60 = vadd.f32 1e-12, %v250_v55  ;;  %v31_v55 = vld [vmem:[%s1018_s0 + $0x30] sm:$0xff] }
  0x27   :  { %v266_v8 = vmul.f32 0.5, %v265_v52  ;;  %v176_v11 = vadd.f32 %v168_v56, %v159_v44  ;;  %vm280_vm3 = vweird.f32 %v511_v40  ;;  %v140_v20 = vsub.f32 %v123_v61, %v132_v31 }
  0x28   :  { %v276_v19 = vmul.f32 0.5, %v275_v57  ;;  %v141_v24 = vsub.f32 %v124_v0, %v133_v36  ;;  %v785_v5 = vperm.slane %v585_v9, 6  ;;  %512 = vrsqrt.f32 %v780_v10  ;;  %vm805_vm5 = vmor %vm279_vm1, %vm280_vm3  ;;  %v32_v0 = vld [vmem:[%s1018_s0 + $0x38] sm:$0xff] }
  0x29   :  { %v267_v30 = vsub.f32 1.5, %v266_v8  ;;  %v184_v4 = vadd.f32 %v623_v33, %v175_v3  ;;  %514 = vrsqrt.f32 %v782_v60  ;;  %v798_v27 = vadd.f32 %v616_v26, %v140_v20  ;;  %v39_v20 = vld [vmem:[%s1019_s1 + $0x30] sm:$0xff] }
  0x2a   :  { %v277_v25 = vsub.f32 1.5, %v276_v19  ;;  %v801_v9 = vadd.f32 %v616_v26, %v141_v24  ;;  %v185_v49 = vadd.f32 %v623_v33, %v176_v11  ;;  %v193_v36 = vmul.f32 %v434_v62, %v625_v34 }
  0x2b   :  { %v268_v31 = vmul.f32 %v509_v32, %v267_v30  ;;  %v194_v37 = vmul.f32 %v435_v63, %v625_v34  ;;  %vm289_vm6 = vweird.f32 %v780_v10  ;;  %v210_v41 = vmul.f32 %v450_v6, %v630_v38  ;;  %v833_v63 = vld [vmem:[%s1021_s3 + $0x18] sm:$0xff]  }
  0x2c   :  { %v278_v50 = vmul.f32 %v511_v40, %v277_v25  ;;  %v211_v62 = vmul.f32 %v451_v7, %v630_v38  ;;  %v235_v47 = vmul.f32 %v798_v27, %v798_v27  ;;  %vm299_vm7 = vweird.f32 %v782_v60 }
  0x2d   :  { %v272_v42 = vsel %vm792_vm4, %v509_v32, %v268_v31  ;;  %v201_v43 = vadd.f32 %v193_v36, %v184_v4  ;;  %v202_v44 = vadd.f32 %v194_v37, %v185_v49  ;;  %v236_v6 = vmul.f32 %v801_v9, %v801_v9 }
  0x2e   :  { %v282_v58 = vsel %vm805_vm5, %v511_v40, %v278_v50  ;;  %v344_v7 = vmul.f32 %v785_v5, %v272_v42  ;;  %v438_v45 = vunpack.c.l.bf16 %v819_v39  ;;  %v439_v46 = vunpack.c.h.bf16 %v819_v39  ;;  %v513_v51 = vpop.eup %512 }
  0x2f   :  { %v345_v52 = vmul.f32 %v785_v5, %v282_v58  ;;  %v218_v32 = vadd.f32 %v210_v41, %v201_v43  ;;  %v219_v54 = vadd.f32 %v211_v62, %v202_v44  ;;  %v454_v56 = vunpack.c.l.bf16 %v833_v63  ;;  %v515_v57 = vpop.eup %514 }
  0x30   :  { %v850_v61 = vadd.f32 1.0, %v344_v7  ;;  %v284_v40 = vmul.f32 %v513_v51, %v780_v10  ;;  %vm290_vm8 = vweird.f32 %v513_v51  ;;  %v455_v3 = vunpack.c.h.bf16 %v833_v63 }
  0x31   :  { %v857_v8 = vadd.f32 1.0, %v345_v52  ;;  %v294_v11 = vmul.f32 %v515_v57, %v782_v60  ;;  %vm300_vm9 = vweird.f32 %v515_v57  ;;  %v861_v19 = vadd.f32 %v643_v48, %v218_v32  ;;  %vm894_vm10 = vmor %vm289_vm6, %vm290_vm8 }
  0x32   :  { %v360_v24 = vmax.f32 %v850_v61, 0.0  ;;  %v285_v30 = vmul.f32 %v513_v51, %v284_v40  ;;  %v868_v4 = vadd.f32 %v643_v48, %v219_v54  ;;  %v82_v25 = vmul.f32 %v591_v12, %v31_v55  ;;  %vm301_vm11 = vmor %vm299_vm7, %vm300_vm9 }
  0x33   :  { %v361_v31 = vmax.f32 %v857_v8, 0.0  ;;  %v295_v35 = vmul.f32 %v515_v57, %v294_v11  ;;  %v243_v49 = vmul.f32 %v861_v19, %v861_v19  ;;  %v83_v36 = vmul.f32 %v591_v12, %v32_v0 }
  0x34   :  { %v368_v37 = vmul.f32 %v360_v24, %v664_v1  ;;  %v286_v50 = vmul.f32 0.5, %v285_v30  ;;  %v244_v41 = vmul.f32 %v868_v4, %v868_v4  ;;  %v91_v62 = vmul.f32 %v594_v13, %v39_v20 }
  0x35   :  { %v369_v42 = vmul.f32 %v361_v31, %v667_v2  ;;  %v296_v43 = vmul.f32 0.5, %v295_v35  ;;  %v251_v44 = vadd.f32 %v243_v49, %v235_v47  ;;  %v92_v58 = vmul.f32 %v594_v13, %v40_v23 }
  0x36   :  { %v287_v7 = vsub.f32 1.5, %v286_v50  ;;  %v252_v12 = vadd.f32 %v244_v41, %v236_v6  ;;  %v99_v52 = vsub.f32 %v82_v25, %v91_v62  ;;  %v117_v1 = vmul.f32 %v438_v45, %v596_v14 }
  0x37   :  { %v459_v32 = vpack.c.bf16 %v369_v42, %v368_v37  ;;  %v297_v2 = vsub.f32 1.5, %v296_v43  ;;  %v259_v40 = vadd.f32 1e-12, %v251_v44  ;;  %v100_v47 = vsub.f32 %v83_v36, %v92_v58 }
  0x38   :  { %v288_v11 = vmul.f32 %v513_v51, %v287_v7  ;;  %v901_v13 = vadd.f32 1e-12, %v252_v12  ;;  %v108_v6 = vadd.f32 %v599_v15, %v99_v52  ;;  %v118_v10 = vmul.f32 %v439_v46, %v596_v14 }
  0x39   :  { %460 = vst [vmem:[%s1024_s6] sm:$0xff] %v459_v32   ;;  %v298_v30 = vmul.f32 %v515_v57, %v297_v2  ;;  %516 = vrsqrt.f32 %v259_v40  ;;  %v109_v25 = vadd.f32 %v599_v15, %v100_v47  ;;  %v134_v14 = vmul.f32 %v454_v56, %v601_v16 }
  0x3a   :  { %v292_v60 = vsel %vm894_vm10, %v513_v51, %v288_v11  ;;  %518 = vrsqrt.f32 %v901_v13  ;;  %v125_v35 = vadd.f32 %v117_v1, %v108_v6  ;;  %v135_v15 = vmul.f32 %v455_v3, %v601_v16 }
  0x3b   :  { %v302_v49 = vsel %vm301_vm11, %v515_v57, %v298_v30  ;;  %v346_v36 = vmul.f32 %v785_v5, %v292_v60  ;;  %v126_v37 = vadd.f32 %v118_v10, %v109_v25  ;;  %v160_v41 = vmul.f32 %v604_v17, %v31_v55 }
  0x3c   :  { %v347_v50 = vmul.f32 %v785_v5, %v302_v49  ;;  %v161_v51 = vmul.f32 %v604_v17, %v32_v0  ;;  %v142_v42 = vsub.f32 %v125_v35, %v134_v14  ;;  %v169_v57 = vmul.f32 %v607_v18, %v39_v20 }
  0x3d   :  { %v354_v62 = vadd.f32 1.0, %v346_v36  ;;  %v170_v43 = vmul.f32 %v607_v18, %v40_v23  ;;  %v143_v58 = vsub.f32 %v126_v37, %v135_v15  ;;  %v195_v16 = vmul.f32 %v438_v45, %v625_v34 }
  0x3e   :  { %v355_v44 = vadd.f32 1.0, %v347_v50  ;;  %v177_v52 = vadd.f32 %v169_v57, %v160_v41  ;;  %vm309_vm12 = vweird.f32 %v259_v40  ;;  %v196_v17 = vmul.f32 %v439_v46, %v625_v34 }
  0x3f   :  { %v517_v7 = vpop.eup %516  ;;  %v362_v12 = vmax.f32 %v354_v62, 0.0  ;;  %v178_v1 = vadd.f32 %v170_v43, %v161_v51  ;;  %v935_v20 = vadd.f32 %v616_v26, %v142_v42  ;;  %v212_v11 = vmul.f32 %v454_v56, %v630_v38 }
  0x40   :  { %v519_v32 = vpop.eup %518  ;;  %v363_v55 = vmax.f32 %v355_v44, 0.0  ;;  %v304_v54 = vmul.f32 %v517_v7, %v259_v40  ;;  %v186_v23 = vadd.f32 %v623_v33, %v177_v52  ;;  %v944_v34 = vadd.f32 %v616_v26, %v143_v58 }
  0x41   :  { %v370_v18 = vmul.f32 %v362_v12, %v709_v53  ;;  %v314_v0 = vmul.f32 %v519_v32, %v901_v13  ;;  %v187_v47 = vadd.f32 %v623_v33, %v178_v1  ;;  %v213_v46 = vmul.f32 %v455_v3, %v630_v38 }
  0x42   :  { %v371_v2 = vmul.f32 %v363_v55, %v724_v59  ;;  %v305_v45 = vmul.f32 %v517_v7, %v304_v54  ;;  %v203_v53 = vadd.f32 %v195_v16, %v186_v23  ;;  %vm310_vm13 = vweird.f32 %v517_v7 }
  0x43   :  { %v315_v39 = vmul.f32 %v519_v32, %v314_v0  ;;  %v204_v59 = vadd.f32 %v196_v17, %v187_v47  ;;  %vm319_vm14 = vweird.f32 %v901_v13  ;;  %vm320_vm15 = vweird.f32 %v519_v32  ;;  %vm954_vm0 = vmor %vm309_vm12, %vm310_vm13 }
  0x44   :  { %v464_v6 = vpack.c.bf16 %v371_v2, %v370_v18  ;;  %v306_v10 = vmul.f32 0.5, %v305_v45  ;;  %v220_v33 = vadd.f32 %v212_v11, %v203_v53  ;;  %v237_v3 = vmul.f32 %v935_v20, %v935_v20  ;;  %vm965_vm1 = vmor %vm319_vm14, %vm320_vm15 }
  0x45   :  { %v316_v30 = vmul.f32 0.5, %v315_v39  ;;  %v221_v56 = vadd.f32 %v213_v46, %v204_v59  ;;  %v238_v13 = vmul.f32 %v944_v34, %v944_v34  ;;  %v392_v49 = vmul.f32 %v360_v24, %v679_v21 }
  0x46   :  { %502 = vst [vmem:[%s1024_s6 + $0x8] sm:$0xff] %v464_v6   ;;  %v307_v26 = vsub.f32 1.5, %v306_v10  ;;  %v959_v63 = vadd.f32 %v643_v48, %v220_v33  ;;  %v393_v36 = vmul.f32 %v361_v31, %v682_v22  ;;  %v394_v50 = vmul.f32 %v362_v12, %v757_v28 }
  0x47   :  { %v317_v38 = vsub.f32 1.5, %v316_v30  ;;  %v970_v40 = vadd.f32 %v643_v48, %v221_v56  ;;  %v395_v15 = vmul.f32 %v363_v55, %v760_v29 }
  0x48   :  { %v308_v60 = vmul.f32 %v517_v7, %v307_v26  ;;  %v245_v14 = vmul.f32 %v959_v63, %v959_v63  ;;  %v479_v61 = vpack.c.bf16 %v393_v36, %v392_v49 }
  0x49   :  { %v318_v37 = vmul.f32 %v519_v32, %v317_v38  ;;  %v246_v41 = vmul.f32 %v970_v40, %v970_v40  ;;  %v484_v24 = vpack.c.bf16 %v395_v15, %v394_v50 }
  0x4a   :  { %v312_v48 = vsel %vm954_vm0, %v517_v7, %v308_v60  ;;  %v253_v8 = vadd.f32 %v245_v14, %v237_v3  ;;  %480 = vst [vmem:[%s1025_s7] sm:$0xff] %v479_v61  }
  0x4b   :  { %v322_v21 = vsel %vm965_vm1, %v519_v32, %v318_v37  ;;  %v348_v22 = vmul.f32 %v785_v5, %v312_v48  ;;  %v254_v51 = vadd.f32 %v246_v41, %v238_v13  ;;  %505 = vst [vmem:[%s1025_s7 + $0x8] sm:$0xff] %v484_v24  }
  0x4c   :  { %v349_v31 = vmul.f32 %v785_v5, %v322_v21  ;;  %v261_v29 = vadd.f32 1e-12, %v253_v8 }
  0x4d   :  { %v356_v28 = vadd.f32 1.0, %v348_v22  ;;  %v262_v42 = vadd.f32 1e-12, %v254_v51 }
  0x4e   :  { %v357_v62 = vadd.f32 1.0, %v349_v31  ;;  %520 = vrsqrt.f32 %v261_v29  ;;  %vm329_vm2 = vweird.f32 %v261_v29 }
  0x4f   :  { %v364_v57 = vmax.f32 %v356_v28, 0.0  ;;  %522 = vrsqrt.f32 %v262_v42  ;;  %vm339_vm4 = vweird.f32 %v262_v42 }
  0x50   :  { %v365_v43 = vmax.f32 %v357_v62, 0.0 }
  0x51   :  { %v372_v44 = vmul.f32 %v364_v57, %v798_v27  ;;  %v396_v58 = vmul.f32 %v364_v57, %v861_v19 }
  0x52   :  { %v373_v7 = vmul.f32 %v365_v43, %v801_v9  ;;  %v397_v12 = vmul.f32 %v365_v43, %v868_v4 }
  0x54   :  { %v469_v52 = vpack.c.bf16 %v373_v7, %v372_v44  ;;  %v489_v1 = vpack.c.bf16 %v397_v12, %v396_v58  ;;  %v521_v16 = vpop.eup %520 }
  0x55   :  { %v523_v32 = vpop.eup %522  ;;  %v324_v55 = vmul.f32 %v521_v16, %v261_v29  ;;  %vm330_vm3 = vweird.f32 %v521_v16 }
  0x56   :  { %503 = vst [vmem:[%s1024_s6 + $0x10] sm:$0xff] %v469_v52   ;;  %v334_v54 = vmul.f32 %v523_v32, %v262_v42  ;;  %vm340_vm5 = vweird.f32 %v523_v32  ;;  %vm331_vm6 = vmor %vm329_vm2, %vm330_vm3 }
  0x57   :  { %506 = vst [vmem:[%s1025_s7 + $0x10] sm:$0xff] %v489_v1   ;;  %v325_v27 = vmul.f32 %v521_v16, %v324_v55  ;;  %vm341_vm7 = vmor %vm339_vm4, %vm340_vm5 }
  0x58   :  { %v335_v19 = vmul.f32 %v523_v32, %v334_v54 }
  0x59   :  { %v326_v17 = vmul.f32 0.5, %v325_v27 }
  0x5a   :  { %v336_v9 = vmul.f32 0.5, %v335_v19 }
  0x5b   :  { %v327_v4 = vsub.f32 1.5, %v326_v17 }
  0x5c   :  { %v337_v18 = vsub.f32 1.5, %v336_v9 }
  0x5d   :  { %v328_v0 = vmul.f32 %v521_v16, %v327_v4 }
  0x5e   :  { %v338_v23 = vmul.f32 %v523_v32, %v337_v18 }
  0x5f   :  { %v332_v2 = vsel %vm331_vm6, %v521_v16, %v328_v0 }
  0x60   :  { %v342_v45 = vsel %vm341_vm7, %v523_v32, %v338_v23  ;;  %v350_v47 = vmul.f32 %v785_v5, %v332_v2 }
  0x61   :  { %v351_v11 = vmul.f32 %v785_v5, %v342_v45 }
  0x62   :  { %v358_v39 = vadd.f32 1.0, %v350_v47 }
  0x63   :  { %v359_v53 = vadd.f32 1.0, %v351_v11 }
  0x64   :  { %v366_v46 = vmax.f32 %v358_v39, 0.0 }
  0x65   :  { %v367_v6 = vmax.f32 %v359_v53, 0.0 }
  0x66   :  { %v374_v10 = vmul.f32 %v366_v46, %v935_v20  ;;  %v398_v59 = vmul.f32 %v366_v46, %v959_v63 }
  0x67   :  { %v375_v30 = vmul.f32 %v367_v6, %v944_v34  ;;  %v399_v33 = vmul.f32 %v367_v6, %v970_v40 }
  0x69   :  { %v474_v26 = vpack.c.bf16 %v375_v30, %v374_v10  ;;  %v494_v56 = vpack.c.bf16 %v399_v33, %v398_v59 }
  0x6b   :  { %504 = vst [vmem:[%s1024_s6 + $0x18] sm:$0xff] %v474_v26  }
  0x6c   :  { %507 = vst [vmem:[%s1025_s7 + $0x18] sm:$0xff] %v494_v56  }

// kernel: forward.37
= control target key start
LH: loop header
LB: loop body
LE: loop exit
PB: predicated region body
PF: predicated region fallthrough
CT: control target
= control target key end

     0   :  { %7 = vsyncpa [#allocation4], 0  ;;  %s1081_s0 = inlined_call_operand.vmem [shape: bf16[32,1152], index: 0, kind: input, shape index: {}]   ;;  %s1082_s1 = inlined_call_operand.hbm [shape: bf16[1152,256], index: 1, kind: input, shape index: {}]   ;;  %s1083_s2 = inlined_call_operand.vmem [shape: f32[32,256], index: 2, kind: output, shape index: {}]  }
   0x1   :  { %9 = vsyncpa [#allocation4 + $0x1], 0  ;;  %s880_s9 = smov 0   ;;  %s882_s10 = smov 0  }
   0x2   :  { %s884_s11 = smov 0   ;;  %s886_s12 = smov 0  }
   0x3   :  { %s888_s13 = smov 0   ;;  %s890_s14 = smov 0  }
   0x4   :  { %s892_s15 = smov 0   ;;  %s894_s16 = smov 0  }
   0x5   :  { %s896_s17 = smov 0   ;;  %s898_s18 = smov 0  }
   0x6 LB: > { %s555_s19 = sadd.s32 4294967295, %s860_s18   ;;  %s27_s20 = sadd.s32 1, %s852_s16  ;;  %s860_s18 = sphi %s898_s18, %s15_s18   ;;  %s856_s17 = sphi %s896_s17, %s1098_s17   ;;  %s852_s16 = sphi %s894_s16, %s1097_s16   ;;  %s848_s15 = sphi %s892_s15, %s1096_s15   ;;  %s844_s14 = sphi %s890_s14, %s1095_s14   ;;  %s840_s13 = sphi %s888_s13, %s1094_s13   ;;  %s836_s12 = sphi %s886_s12, %s1093_s12   ;;  %s832_s11 = sphi %s884_s11, %s1092_s11   ;;  %s828_s10 = sphi %s882_s10, %s1091_s10   ;;  %s824_s9 = sphi %s880_s9, %s1090_s9  }
   0x7   : > { %p28_p0 = scmp.ge.s32.totalorder %s27_s20, 9  ;;  %s34_s21 = sadd.s32 1, %s856_s17 }
   0x8   : > { %s43_s22 = sadd.s32 1, %s840_s13  ;;  %p50_p1 = scmp.ne.s32.totalorder %s840_s13, %s836_s12 }
   0x9   : > { %s1100_s20 = smov (%p28_p0, %s27_s20), 0  ;;  %s1102_s21 = smov (!%p28_p0, %s34_s21), %s856_s17 }
   0xa   : > { %s39_s23 = ssub.s32 %s852_s16, %s1100_s20  ;;  %p51_p2 = scmp.eq.s32.totalorder %s860_s18, 0 }
   0xb   : > { %p36_p3 = scmp.ge.s32.totalorder %s1102_s21, 2  ;;  %p69_p4 = scmp.eq.s32.totalorder %s39_s23, 0 }
   0xc   : > { %p942_p5 = por %p51_p2, %p50_p1  ;;  %s71_s25 = sadd.s32 1, %s832_s11 }
   0xd   : > { %s1104_s21 = smov (%p36_p3, %s1102_s21), 0  ;;  %p78_p6 = scmp.ne.s32.totalorder %s832_s11, %s828_s10 }
   0xe   : > { %1086 = sst [smem:[#allocation6_spill]] %s1104_s21  ;;  %s38_s27 = ssub.s32 %s856_s17, %s1104_s21 }
   0xf   : > { %s950_s26 = scalar_select %p69_p4, %s832_s11, %s71_s25  }
  0x10   : > { %s40_s28 = sor.u32 %s39_s23, %s38_s27  ;;  %p84_p7 = scmp.ne.s32.totalorder %s828_s10, %s824_s9 }
  0x11   : > { %p41_p8 = scmp.eq.s32.totalorder %s40_s28, 0  ;;  %p958_p9 = por %p78_p6, %p51_p2 }
  0x12   : > { %p85_p10 = scmp.eq.s32.totalorder %s555_s19, 0  ;;  %p558_p12 = scmp.ge.s32.totalorder %s860_s18, 18 }
  0x13   : > { %s963_s30 = scalar_select %p41_p8, %s840_s13, %s43_s22  }
  0x14   : > { %p965_p11 = por %p85_p10, %p84_p7  ;;  %132 = sbr.rel (%p558_p12) target bundleno = 40 (0x28), region = 16 }
  0x19   : > { %135 = sbr.rel (!%p942_p5) target bundleno = 34 (0x22), region = 20  ;;  %s137_s4 = sand.u32 (%p942_p5), 1, %s840_s13  }
  0x1a   : > { %s664_s5 = smul.u32 (%p942_p5), 18, %s856_s17  ;;  %s559_s6 = sshll.u32 (%p942_p5), %s137_s4, 3 }
  0x1b   : > { %s139_s23 = scalar_lea.vmem (%p942_p5), [#allocation2], %s559_s6 }
  0x1c   : > { %s142_s7 = sadd.s32 (%p942_p5), %s852_s16, %s664_s5 }
  0x1d   : > { %s562_s8 = sshll.u32 (%p942_p5), %s142_s7, 2 }
  0x1e   : > { %s144_s22 = scalar_lea.vmem %s1081_s0, %s562_s8 }
  0x1f   : > { %v161_v0 = vld [vmem:[%s144_s22] sm:$0xf]  ;;  %v163_v1 = vld [vmem:[%s144_s22 + $0x24] sm:$0xf] }
  0x20   : > { %162 = vst [vmem:[%s139_s23] sm:$0xf] %v161_v0 }
  0x21   : > { %164 = vst [vmem:[%s139_s23 + $0x4] sm:$0xf] %v163_v1 }
  0x22 PF: > { %s193_s24 = sand.u32 1, %s832_s11   ;;  %s645_s25 = sshll.u32 %s852_s16, 7 }
  0x23   : > { %s563_s27 = sshll.u32 %s193_s24, 7  ;;  %s205_s5 = scalar_lea.hbm %s1082_s1, %s645_s25 }
  0x24   : > { %s206_s7 = sshll.u32 %s205_s5, 4  ;;  %s197_s21 = scalar_lea.vmem [#allocation3], %s563_s27  ;;  %s207_s7 = int_to_ptr.hbm [resolvable:$true] %s206_s7 }
  0x25   : > { %s208_s9 = sshll.u32 %s197_s21, 4  ;;  %s194_s8 = scalar_lea.sflag [#allocation4], %s193_s24  ;;  %s209_s9 = int_to_ptr.vmem [resolvable:$true] %s208_s9 }
  0x26   : > { %s862_s6 = smov 128   ;;  %s863_s19 = smov 8  }
  0x27   : > { %665 = dma.hbm_to_vmem [thread:$0]  (%p958_p9), %s207_s7, 2048, %s209_s9, %s194_s8, %s862_s6, %s862_s6, %s863_s19  }
  0x28 PF: > { %p567_p13 = scmp.ge.s32.totalorder %s860_s18, 1  ;;  %p216_p0 = scmp.lt.s32.totalorder %s860_s18, 19 }
  0x2a   : > { %p217_p1 = pnand %p567_p13, %p216_p0 }
  0x2b   : > { %s223_s22 = sand.u32 (!%p217_p1), 1, %s836_s12   ;;  %s229_s23 = sand.u32 (!%p217_p1), 1, %s828_s10  }
  0x2c   : > { %220 = sbr.rel (%p217_p1) target bundleno = 234 (0xea), region = 65  ;;  %s989_s21 = sshll.u32 (!%p217_p1), %s223_s22, 3 }
  0x2d   : > { %s569_s24 = sshll.u32 (!%p217_p1), %s229_s23, 7  ;;  %s225_s25 = scalar_lea.vmem (!%p217_p1), [#allocation2], %s989_s21 }
  0x2e   : > { %s230_s27 = scalar_lea.sflag (!%p217_p1), [#allocation4], %s229_s23  ;;  %s992_s29 = scalar_lea.vmem (!%p217_p1), [#allocation3], %s569_s24 }
  0x31   : > { %819 = dma.done.wait (%p965_p11), %s230_s27, 2048  }
  0x32   : > { %821 = vsyncadd (%p965_p11), %s230_s27, 4294965248  ;;  %s570_s28 = sshll.u32 %s848_s15, 1  ;;  %p573_p3 = scmp.ne.s32.totalorder %s844_s14, 0 }
  0x33   : > { %p269_p2 = scmp.lt.s32.totalorder %s570_s28, 3 }
  0x34   : > { %282 = sbr.rel (%p573_p3) target bundleno = 62 (0x3e), region = 77 }
  0x35   : > { %s1106_s28 = smov (!%p269_p2, %s570_s28), 3 }
  0x36   : > { %s646_s4 = sshll.u32 %s1106_s28, 4 }
  0x37   : > { %s1002_s7 = scalar_lea.vmem %s1083_s2, %s646_s4 }
  0x39   : > { %v864_v2 = vmov 0.0  }
  0x3a   : > { %283 = vst [vmem:[%s1002_s7] sm:$0xff] %v864_v2 }
  0x3b   : > { %284 = vst [vmem:[%s1002_s7 + $0x8] sm:$0xff] %v864_v2 }
  0x3c   : > { %285 = vst [vmem:[%s1002_s7 + $0x10] sm:$0xff] %v864_v2 }
  0x3d   : > { %286 = vst [vmem:[%s1002_s7 + $0x18] sm:$0xff] %v864_v2 }
  0x3e PF: > { %v636_v3 = vld [vmem:[%s992_s29 + $0x70] sm:$0xf]  ;;  %v663_v4 = vld [vmem:[%s992_s29 + $0x74] sm:$0xf0]  ;;  %v662_v5 = vld [vmem:[%s992_s29 + $0x74] sm:$0xf] }
  0x3f   : > { %v637_v6 = vor.u32 %v663_v4, %v636_v3  ;;  %v638_v7 = vld [vmem:[%s992_s29 + $0x78] sm:$0xf0]  ;;  %v628_v8 = vld [vmem:[%s992_s29 + $0x60] sm:$0xf]  ;;  %v661_v9 = vld [vmem:[%s992_s29 + $0x64] sm:$0xf0] }
  0x40   : > { %v641_v10 = vor.u32 %v662_v5, %v638_v7  ;;  %v660_v11 = vld [vmem:[%s992_s29 + $0x64] sm:$0xf]  ;;  %v630_v12 = vld [vmem:[%s992_s29 + $0x68] sm:$0xf0]  ;;  %v629_v13 = vor.u32 %v661_v9, %v628_v8  ;;  %v620_v15 = vld [vmem:[%s992_s29 + $0x50] sm:$0xf] }
  0x41   : > { %395 = vmatpush.bf16.msra.mxu0 %v637_v6  ;;  %v633_v14 = vor.u32 %v660_v11, %v630_v12  ;;  %v659_v16 = vld [vmem:[%s992_s29 + $0x54] sm:$0xf0]  ;;  %v658_v17 = vld [vmem:[%s992_s29 + $0x54] sm:$0xf]  ;;  %v622_v18 = vld [vmem:[%s992_s29 + $0x58] sm:$0xf0] }
  0x42   : > { %409 = vmatpush.bf16.msra.mxu1 %v641_v10  ;;  %v621_v19 = vor.u32 %v659_v16, %v620_v15  ;;  %v625_v20 = vor.u32 %v658_v17, %v622_v18  ;;  %v612_v21 = vld [vmem:[%s992_s29 + $0x40] sm:$0xf]  ;;  %v657_v22 = vld [vmem:[%s992_s29 + $0x44] sm:$0xf0]  ;;  %v656_v23 = vld [vmem:[%s992_s29 + $0x44] sm:$0xf] }
  0x43   : > { %v614_v24 = vld [vmem:[%s992_s29 + $0x48] sm:$0xf0]  ;;  %v613_v25 = vor.u32 %v657_v22, %v612_v21  ;;  %v604_v27 = vld [vmem:[%s992_s29 + $0x30] sm:$0xf]  ;;  %v655_v28 = vld [vmem:[%s992_s29 + $0x34] sm:$0xf0] }
  0x44   : > { %v617_v26 = vor.u32 %v656_v23, %v614_v24  ;;  %v654_v29 = vld [vmem:[%s992_s29 + $0x34] sm:$0xf]  ;;  %v606_v30 = vld [vmem:[%s992_s29 + $0x38] sm:$0xf0]  ;;  %v605_v31 = vor.u32 %v655_v28, %v604_v27  ;;  %v596_v33 = vld [vmem:[%s992_s29 + $0x20] sm:$0xf] }
  0x45   : > { %396 = vmatpush.bf16.msra.mxu0 %v629_v13  ;;  %v609_v32 = vor.u32 %v654_v29, %v606_v30  ;;  %v653_v34 = vld [vmem:[%s992_s29 + $0x24] sm:$0xf0]  ;;  %v652_v35 = vld [vmem:[%s992_s29 + $0x24] sm:$0xf]  ;;  %v598_v36 = vld [vmem:[%s992_s29 + $0x28] sm:$0xf0] }
  0x46   : > { %410 = vmatpush.bf16.msra.mxu1 %v633_v14  ;;  %v597_v37 = vor.u32 %v653_v34, %v596_v33  ;;  %v601_v38 = vor.u32 %v652_v35, %v598_v36  ;;  %v588_v39 = vld [vmem:[%s992_s29 + $0x10] sm:$0xf]  ;;  %v651_v40 = vld [vmem:[%s992_s29 + $0x14] sm:$0xf0]  ;;  %v650_v41 = vld [vmem:[%s992_s29 + $0x14] sm:$0xf] }
  0x47   : > { %v590_v42 = vld [vmem:[%s992_s29 + $0x18] sm:$0xf0]  ;;  %v589_v43 = vor.u32 %v651_v40, %v588_v39  ;;  %v580_v45 = vld [vmem:[%s992_s29] sm:$0xf]  ;;  %v649_v46 = vld [vmem:[%s992_s29 + $0x4] sm:$0xf0] }
  0x48   : > { %v593_v44 = vor.u32 %v650_v41, %v590_v42  ;;  %v648_v47 = vld [vmem:[%s992_s29 + $0x4] sm:$0xf]  ;;  %v582_v48 = vld [vmem:[%s992_s29 + $0x8] sm:$0xf0]  ;;  %v581_v49 = vor.u32 %v649_v46, %v580_v45  ;;  %v647_v51 = vld [vmem:[%s225_s25] sm:$0xff] }
  0x49   : > { %397 = vmatpush.bf16.msra.mxu0 %v621_v19  ;;  %v585_v50 = vor.u32 %v648_v47, %v582_v48  ;;  %v287_v52 = vld [vmem:[%s1002_s7] sm:$0xff]  ;;  %v288_v53 = vld [vmem:[%s1002_s7 + $0x8] sm:$0xff]  ;;  %v289_v55 = vld [vmem:[%s1002_s7 + $0x10] sm:$0xff] }
  0x4a   : > { %411 = vmatpush.bf16.msra.mxu1 %v625_v20  ;;  %v290_v58 = vld [vmem:[%s1002_s7 + $0x18] sm:$0xff] }
  0x4d   : > { %398 = vmatpush.bf16.msra.mxu0 %v613_v25 }
  0x4e   : > { %412 = vmatpush.bf16.msra.mxu1 %v617_v26 }
  0x51   : > { %399 = vmatpush.bf16.msra.mxu0 %v605_v31 }
  0x52   : > { %413 = vmatpush.bf16.msra.mxu1 %v609_v32 }
  0x55   : > { %400 = vmatpush.bf16.msra.mxu0 %v597_v37 }
  0x56   : > { %414 = vmatpush.bf16.msra.mxu1 %v601_v38 }
  0x59   : > { %401 = vmatpush.bf16.msra.mxu0 %v589_v43 }
  0x5a   : > { %415 = vmatpush.bf16.msra.mxu1 %v593_v44 }
  0x5d   : > { %402 = vmatpush.bf16.msra.mxu0 %v581_v49 }
  0x5e   : > { %416 = vmatpush.bf16.msra.mxu1 %v585_v50 }
  0x60   : > { %403 = vmatmul.bf16.vlgmr.msra.gmra.mxu0 %v647_v51 }
  0x61   : > { %417 = vmatmul.bf16.vlgmr.msra.gmra.mxu1 %v647_v51 }
  0xdd   : > { %v404_v54 = vpop.f32.mrf.mxu0 }
  0xde   : > { %v423_v56 = vadd.f32 %v404_v54, %v287_v52  ;;  %v418_v57 = vpop.f32.mrf.mxu1 }
  0xdf   : > { %v424_v59 = vadd.f32 %v418_v57, %v288_v53 }
  0xe0   : > { %427 = vst [vmem:[%s1002_s7] sm:$0xff] %v423_v56 }
  0xe1   : > { %428 = vst [vmem:[%s1002_s7 + $0x8] sm:$0xff] %v424_v59 }
  0xe5   : > { %v406_v60 = vpop.f32.mrf.mxu0 }
  0xe6   : > { %v425_v61 = vadd.f32 %v406_v60, %v289_v55  ;;  %v420_v62 = vpop.f32.mrf.mxu1 }
  0xe7   : > { %v426_v63 = vadd.f32 %v420_v62, %v290_v58 }
  0xe8   : > { %429 = vst [vmem:[%s1002_s7 + $0x10] sm:$0xff] %v425_v61 }
  0xe9   : > { %430 = vst [vmem:[%s1002_s7 + $0x18] sm:$0xff] %v426_v63 }
  0xea PF: > { %s15_s18 = sadd.s32 1, %s860_s18   ;;  %s1089_s3 = sld [smem:[#allocation6_spill]] }
  0xeb   : > { %p12_p4 = scmp.ge.s32.totalorder %s15_s18, 20   ;;  %s1090_s9 = smov %s828_s10 }
  0xec   : > { %s1091_s10 = smov %s832_s11  ;;  %s1092_s11 = smov %s950_s26 }
  0xed   : > { %s1093_s12 = smov %s840_s13  ;;  %s1094_s13 = smov %s963_s30 }
  0xee   : > { %s1095_s14 = smov %s852_s16  ;;  %s1096_s15 = smov %s856_s17 }
  0xef   : > { %s1097_s16 = smov %s1100_s20  ;;  %14 = sbr.rel (!%p12_p4) target bundleno = 6 (0x6), region = 121 }
  0xf0   : > { %s1098_s17 = smov %s1089_s3 }
  0xf4   :  { %464 = vsyncpa [#allocation4], 1 }
  0xf5   :  { %466 = vsyncpa [#allocation4 + $0x1], 1 }

// kernel: forward.38
= control target key start
LH: loop header
LB: loop body
LE: loop exit
PB: predicated region body
PF: predicated region fallthrough
CT: control target
= control target key end

     0   :  { %s313_s0 = inlined_call_operand.vmem [shape: f32[32,128], index: 0, kind: input, shape index: {}]   ;;  %s314_s1 = inlined_call_operand.vmem [shape: f32[32,128], index: 1, kind: input, shape index: {}]   ;;  %s315_s2 = inlined_call_operand.vmem [shape: f32[8,128], index: 2, kind: input, shape index: {}]   ;;  %s316_s3 = inlined_call_operand.vmem [shape: bf16[32,128], index: 3, kind: output, shape index: {0}]   ;;  %s317_s4 = inlined_call_operand.vmem [shape: bf16[32,128], index: 4, kind: output, shape index: {1}]  }
   0x1   :  { %v16_v0 = vld [vmem:[%s313_s0] sm:$0xff]  ;;  %v17_v1 = vld [vmem:[%s313_s0 + $0x8] sm:$0xff]  ;;  %v18_v11 = vld [vmem:[%s313_s0 + $0x10] sm:$0xff] }
   0x2   :  { %v20_v2 = vld [vmem:[%s314_s1] sm:$0xff]  ;;  %v21_v3 = vld [vmem:[%s314_s1 + $0x8] sm:$0xff]  ;;  %v19_v12 = vld [vmem:[%s313_s0 + $0x18] sm:$0xff] }
   0x3   :  { %v234_v4 = vld [vmem:[%s315_s2] sm:$0xff]  ;;  %v22_v17 = vld [vmem:[%s314_s1 + $0x10] sm:$0xff]  ;;  %v23_v18 = vld [vmem:[%s314_s1 + $0x18] sm:$0xff] }
   0x4   :  { %v25_v5 = vperm.slane %v234_v4, 0  ;;  %v30_v6 = vperm.slane %v234_v4, 1  ;;  %v44_v7 = vperm.slane %v234_v4, 2  ;;  %v39_v8 = vperm.slane %v234_v4, 4 }
   0x5   :  { %v49_v9 = vperm.slane %v234_v4, 3  ;;  %v58_v10 = vperm.slane %v234_v4, 5 }
   0x6   :  { %v26_v13 = vmul.f32 %v25_v5, %v16_v0  ;;  %v27_v14 = vmul.f32 %v25_v5, %v17_v1  ;;  %v31_v15 = vmul.f32 %v30_v6, %v20_v2  ;;  %v32_v16 = vmul.f32 %v30_v6, %v21_v3 }
   0x7   :  { %v45_v19 = vmul.f32 %v44_v7, %v16_v0  ;;  %v46_v20 = vmul.f32 %v44_v7, %v17_v1  ;;  %v50_v21 = vmul.f32 %v49_v9, %v20_v2  ;;  %v51_v22 = vmul.f32 %v49_v9, %v21_v3 }
   0x8   :  { %v35_v23 = vsub.f32 %v26_v13, %v31_v15  ;;  %v36_v24 = vsub.f32 %v27_v14, %v32_v16  ;;  %v28_v25 = vmul.f32 %v25_v5, %v18_v11  ;;  %v29_v26 = vmul.f32 %v25_v5, %v19_v12 }
   0x9   :  { %v54_v27 = vadd.f32 %v50_v21, %v45_v19  ;;  %v55_v28 = vadd.f32 %v51_v22, %v46_v20  ;;  %v33_v29 = vmul.f32 %v30_v6, %v22_v17  ;;  %v34_v30 = vmul.f32 %v30_v6, %v23_v18 }
   0xa   :  { %v254_v31 = vadd.f32 %v39_v8, %v35_v23  ;;  %v256_v32 = vadd.f32 %v39_v8, %v36_v24  ;;  %v47_v33 = vmul.f32 %v44_v7, %v18_v11  ;;  %v48_v34 = vmul.f32 %v44_v7, %v19_v12 }
   0xb   :  { %v258_v35 = vadd.f32 %v58_v10, %v54_v27  ;;  %v260_v36 = vadd.f32 %v58_v10, %v55_v28  ;;  %v37_v37 = vsub.f32 %v28_v25, %v33_v29  ;;  %v38_v38 = vsub.f32 %v29_v26, %v34_v30 }
   0xc   :  { %v63_v39 = vmul.f32 %v254_v31, %v254_v31  ;;  %v64_v40 = vmul.f32 %v256_v32, %v256_v32  ;;  %v52_v41 = vmul.f32 %v49_v9, %v22_v17  ;;  %v53_v42 = vmul.f32 %v49_v9, %v23_v18 }
   0xd   :  { %v67_v43 = vmul.f32 %v258_v35, %v258_v35  ;;  %v68_v44 = vmul.f32 %v260_v36, %v260_v36  ;;  %v270_v45 = vadd.f32 %v39_v8, %v37_v37  ;;  %v272_v46 = vadd.f32 %v39_v8, %v38_v38 }
   0xe   :  { %v56_v47 = vadd.f32 %v52_v41, %v47_v33  ;;  %v57_v48 = vadd.f32 %v53_v42, %v48_v34  ;;  %v119_v15 = vperm.slane %v234_v4, 6 }
   0xf   :  { %v71_v49 = vadd.f32 %v67_v43, %v63_v39  ;;  %v72_v50 = vadd.f32 %v68_v44, %v64_v40  ;;  %v65_v53 = vmul.f32 %v270_v45, %v270_v45  ;;  %v66_v54 = vmul.f32 %v272_v46, %v272_v46 }
  0x10   :  { %v274_v51 = vadd.f32 %v58_v10, %v56_v47  ;;  %v276_v52 = vadd.f32 %v58_v10, %v57_v48 }
  0x11   :  { %v75_v55 = vadd.f32 1e-12, %v71_v49  ;;  %v76_v56 = vadd.f32 1e-12, %v72_v50 }
  0x12   :  { %v69_v57 = vmul.f32 %v274_v51, %v274_v51  ;;  %v70_v58 = vmul.f32 %v276_v52, %v276_v52 }
  0x13   :  { %186 = vrsqrt.f32 %v75_v55  ;;  %vm85_vm0 = vweird.f32 %v75_v55  ;;  %vm95_vm2 = vweird.f32 %v76_v56 }
  0x14   :  { %188 = vrsqrt.f32 %v76_v56  ;;  %v73_v59 = vadd.f32 %v69_v57, %v65_v53  ;;  %v74_v60 = vadd.f32 %v70_v58, %v66_v54 }
  0x16   :  { %v77_v61 = vadd.f32 1e-12, %v73_v59  ;;  %v78_v62 = vadd.f32 1e-12, %v74_v60 }
  0x18   :  { %190 = vrsqrt.f32 %v77_v61  ;;  %vm105_vm6 = vweird.f32 %v77_v61  ;;  %vm115_vm8 = vweird.f32 %v78_v62 }
  0x19   :  { %v187_v63 = vpop.eup %186  ;;  %192 = vrsqrt.f32 %v78_v62 }
  0x1a   :  { %v189_v0 = vpop.eup %188  ;;  %v80_v1 = vmul.f32 %v187_v63, %v75_v55  ;;  %vm86_vm1 = vweird.f32 %v187_v63 }
  0x1b   :  { %v90_v2 = vmul.f32 %v189_v0, %v76_v56  ;;  %vm96_vm3 = vweird.f32 %v189_v0  ;;  %vm286_vm4 = vmor %vm85_vm0, %vm86_vm1 }
  0x1c   :  { %v81_v3 = vmul.f32 %v187_v63, %v80_v1  ;;  %vm97_vm5 = vmor %vm95_vm2, %vm96_vm3 }
  0x1d   :  { %v91_v5 = vmul.f32 %v189_v0, %v90_v2 }
  0x1e   :  { %v191_v6 = vpop.eup %190  ;;  %v82_v7 = vmul.f32 0.5, %v81_v3 }
  0x1f   :  { %v193_v8 = vpop.eup %192  ;;  %v92_v9 = vmul.f32 0.5, %v91_v5  ;;  %v100_v10 = vmul.f32 %v191_v6, %v77_v61  ;;  %vm106_vm7 = vweird.f32 %v191_v6 }
  0x20   :  { %v83_v11 = vsub.f32 1.5, %v82_v7  ;;  %v110_v12 = vmul.f32 %v193_v8, %v78_v62  ;;  %vm116_vm9 = vweird.f32 %v193_v8  ;;  %vm107_vm10 = vmor %vm105_vm6, %vm106_vm7 }
  0x21   :  { %v93_v14 = vsub.f32 1.5, %v92_v9  ;;  %v101_v16 = vmul.f32 %v191_v6, %v100_v10  ;;  %vm117_vm11 = vmor %vm115_vm8, %vm116_vm9 }
  0x22   :  { %v84_v17 = vmul.f32 %v187_v63, %v83_v11  ;;  %v111_v18 = vmul.f32 %v193_v8, %v110_v12 }
  0x23   :  { %v94_v19 = vmul.f32 %v189_v0, %v93_v14  ;;  %v102_v20 = vmul.f32 0.5, %v101_v16 }
  0x24   :  { %v88_v21 = vsel %vm286_vm4, %v187_v63, %v84_v17  ;;  %v112_v22 = vmul.f32 0.5, %v111_v18 }
  0x25   :  { %v98_v23 = vsel %vm97_vm5, %v189_v0, %v94_v19  ;;  %v120_v24 = vmul.f32 %v119_v15, %v88_v21  ;;  %v103_v25 = vsub.f32 1.5, %v102_v20 }
  0x26   :  { %v121_v26 = vmul.f32 %v119_v15, %v98_v23  ;;  %v113_v4 = vsub.f32 1.5, %v112_v22 }
  0x27   :  { %v124_v27 = vadd.f32 1.0, %v120_v24  ;;  %v104_v28 = vmul.f32 %v191_v6, %v103_v25 }
  0x28   :  { %v125_v29 = vadd.f32 1.0, %v121_v26  ;;  %v114_v30 = vmul.f32 %v193_v8, %v113_v4 }
  0x29   :  { %v128_v33 = vmax.f32 %v124_v27, 0.0  ;;  %v108_v34 = vsel %vm107_vm10, %v191_v6, %v104_v28 }
  0x2a   :  { %v129_v37 = vmax.f32 %v125_v29, 0.0  ;;  %v118_v38 = vsel %vm117_vm11, %v193_v8, %v114_v30  ;;  %v122_v39 = vmul.f32 %v119_v15, %v108_v34 }
  0x2b   :  { %v132_v40 = vmul.f32 %v128_v33, %v254_v31  ;;  %v123_v41 = vmul.f32 %v119_v15, %v118_v38  ;;  %v144_v42 = vmul.f32 %v128_v33, %v258_v35 }
  0x2c   :  { %v133_v43 = vmul.f32 %v129_v37, %v256_v32  ;;  %v126_v44 = vadd.f32 1.0, %v122_v39  ;;  %v145_v47 = vmul.f32 %v129_v37, %v260_v36 }
  0x2d   :  { %v127_v48 = vadd.f32 1.0, %v123_v41 }
  0x2e   :  { %v167_v49 = vpack.c.bf16 %v133_v43, %v132_v40  ;;  %v130_v50 = vmax.f32 %v126_v44, 0.0  ;;  %v177_v53 = vpack.c.bf16 %v145_v47, %v144_v42 }
  0x2f   :  { %v131_v54 = vmax.f32 %v127_v48, 0.0 }
  0x30   :  { %168 = vst [vmem:[%s316_s3] sm:$0xff] %v167_v49   ;;  %v134_v55 = vmul.f32 %v130_v50, %v270_v45  ;;  %v146_v31 = vmul.f32 %v130_v50, %v274_v51 }
  0x31   :  { %v135_v35 = vmul.f32 %v131_v54, %v272_v46  ;;  %178 = vst [vmem:[%s317_s4] sm:$0xff] %v177_v53   ;;  %v147_v32 = vmul.f32 %v131_v54, %v276_v52 }
  0x33   :  { %v172_v36 = vpack.c.bf16 %v135_v35, %v134_v55  ;;  %v182_v56 = vpack.c.bf16 %v147_v32, %v146_v31 }
  0x35   :  { %184 = vst [vmem:[%s316_s3 + $0x8] sm:$0xff] %v172_v36  }
  0x36   :  { %185 = vst [vmem:[%s317_s4 + $0x8] sm:$0xff] %v182_v56  }

// kernel: forward.39
= control target key start
LH: loop header
LB: loop body
LE: loop exit
PB: predicated region body
PF: predicated region fallthrough
CT: control target
= control target key end

     0   :  { %7 = vsyncpa [#allocation4], 0  ;;  %s1323_s0 = inlined_call_operand.vmem [shape: bf16[32,2304], index: 0, kind: input, shape index: {}]   ;;  %s1324_s1 = inlined_call_operand.hbm [shape: bf16[2304,256], index: 1, kind: input, shape index: {}]   ;;  %s1325_s2 = inlined_call_operand.vmem [shape: f32[32,256], index: 2, kind: output, shape index: {}]  }
   0x1   :  { %9 = vsyncpa [#allocation4 + $0x1], 0  ;;  %s1089_s9 = smov 0   ;;  %s1091_s10 = smov 0  }
   0x2   :  { %s1093_s11 = smov 0   ;;  %s1095_s12 = smov 0  }
   0x3   :  { %s1097_s13 = smov 0   ;;  %s1099_s14 = smov 0  }
   0x4   :  { %s1101_s15 = smov 0   ;;  %s1103_s16 = smov 0  }
   0x5   :  { %s1105_s17 = smov 0   ;;  %s1107_s18 = smov 0  }
   0x6 LB: > { %s678_s19 = sadd.s32 4294967295, %s1069_s18   ;;  %s27_s20 = sadd.s32 1, %s1061_s16  ;;  %s1069_s18 = sphi %s1107_s18, %s15_s18   ;;  %s1065_s17 = sphi %s1105_s17, %s1340_s17   ;;  %s1061_s16 = sphi %s1103_s16, %s1339_s16   ;;  %s1057_s15 = sphi %s1101_s15, %s1338_s15   ;;  %s1053_s14 = sphi %s1099_s14, %s1337_s14   ;;  %s1049_s13 = sphi %s1097_s13, %s1336_s13   ;;  %s1045_s12 = sphi %s1095_s12, %s1335_s12   ;;  %s1041_s11 = sphi %s1093_s11, %s1334_s11   ;;  %s1037_s10 = sphi %s1091_s10, %s1333_s10   ;;  %s1033_s9 = sphi %s1089_s9, %s1332_s9  }
   0x7   : > { %p28_p0 = scmp.ge.s32.totalorder %s27_s20, 9  ;;  %s34_s21 = sadd.s32 1, %s1065_s17 }
   0x8   : > { %s43_s22 = sadd.s32 1, %s1049_s13  ;;  %p50_p1 = scmp.ne.s32.totalorder %s1049_s13, %s1045_s12 }
   0x9   : > { %s1342_s20 = smov (%p28_p0, %s27_s20), 0  ;;  %s1344_s21 = smov (!%p28_p0, %s34_s21), %s1065_s17 }
   0xa   : > { %s39_s23 = ssub.s32 %s1061_s16, %s1342_s20  ;;  %p51_p2 = scmp.eq.s32.totalorder %s1069_s18, 0 }
   0xb   : > { %p36_p3 = scmp.ge.s32.totalorder %s1344_s21, 2  ;;  %p69_p4 = scmp.eq.s32.totalorder %s39_s23, 0 }
   0xc   : > { %p1151_p5 = por %p51_p2, %p50_p1  ;;  %s71_s25 = sadd.s32 1, %s1041_s11 }
   0xd   : > { %s1346_s21 = smov (%p36_p3, %s1344_s21), 0  ;;  %p78_p6 = scmp.ne.s32.totalorder %s1041_s11, %s1037_s10 }
   0xe   : > { %1328 = sst [smem:[#allocation6_spill]] %s1346_s21  ;;  %s38_s27 = ssub.s32 %s1065_s17, %s1346_s21 }
   0xf   : > { %s1159_s26 = scalar_select %p69_p4, %s1041_s11, %s71_s25  }
  0x10   : > { %s40_s28 = sor.u32 %s39_s23, %s38_s27  ;;  %p84_p7 = scmp.ne.s32.totalorder %s1037_s10, %s1033_s9 }
  0x11   : > { %p41_p8 = scmp.eq.s32.totalorder %s40_s28, 0  ;;  %p1167_p9 = por %p78_p6, %p51_p2 }
  0x12   : > { %p85_p10 = scmp.eq.s32.totalorder %s678_s19, 0  ;;  %p681_p12 = scmp.ge.s32.totalorder %s1069_s18, 18 }
  0x13   : > { %s1172_s30 = scalar_select %p41_p8, %s1049_s13, %s43_s22  }
  0x14   : > { %p1174_p11 = por %p85_p10, %p84_p7  ;;  %132 = sbr.rel (%p681_p12) target bundleno = 41 (0x29), region = 16 }
  0x19   : > { %135 = sbr.rel (!%p1151_p5) target bundleno = 35 (0x23), region = 20  ;;  %s137_s4 = sand.u32 (%p1151_p5), 1, %s1049_s13  }
  0x1a   : > { %s684_s5 = sshll.u32 (%p1151_p5), %s1061_s16, 1  ;;  %s682_s6 = sshll.u32 (%p1151_p5), %s137_s4, 4 }
  0x1b   : > { %s873_s7 = smul.u32 (%p1151_p5), 36, %s1065_s17  ;;  %s139_s25 = scalar_lea.vmem (%p1151_p5), [#allocation2], %s682_s6 }
  0x1d   : > { %s143_s8 = sadd.s32 (%p1151_p5), %s873_s7, %s684_s5 }
  0x1e   : > { %s686_s9 = sshll.u32 %s143_s8, 2 }
  0x1f   : > { %s145_s23 = scalar_lea.vmem %s1323_s0, %s686_s9 }
  0x20   : > { %v176_v0 = vld [vmem:[%s145_s23] sm:$0xff]  ;;  %v178_v1 = vld [vmem:[%s145_s23 + $0x48] sm:$0xff] }
  0x21   : > { %177 = vst [vmem:[%s139_s25] sm:$0xff] %v176_v0 }
  0x22   : > { %179 = vst [vmem:[%s139_s25 + $0x8] sm:$0xff] %v178_v1 }
  0x23 PF: > { %s186_s24 = sand.u32 1, %s1041_s11   ;;  %s837_s27 = sshll.u32 %s1061_s16, 8 }
  0x24   : > { %s687_s28 = sshll.u32 %s186_s24, 8  ;;  %s198_s5 = scalar_lea.hbm %s1324_s1, %s837_s27 }
  0x25   : > { %s199_s7 = sshll.u32 %s198_s5, 4  ;;  %s190_s8 = scalar_lea.vmem [#allocation3], %s687_s28  ;;  %s200_s7 = int_to_ptr.hbm [resolvable:$true] %s199_s7 }
  0x26   : > { %s201_s19 = sshll.u32 %s190_s8, 4  ;;  %s187_s9 = scalar_lea.sflag [#allocation4], %s186_s24  ;;  %s202_s19 = int_to_ptr.vmem [resolvable:$true] %s201_s19 }
  0x27   : > { %s1071_s6 = smov 128   ;;  %s1072_s22 = smov 8  }
  0x28   : > { %874 = dma.hbm_to_vmem [thread:$0]  (%p1167_p9), %s200_s7, 4096, %s202_s19, %s187_s9, %s1071_s6, %s1071_s6, %s1072_s22  }
  0x29 PF: > { %p691_p13 = scmp.ge.s32.totalorder %s1069_s18, 1  ;;  %p209_p0 = scmp.lt.s32.totalorder %s1069_s18, 19 }
  0x2b   : > { %p210_p1 = pnand %p691_p13, %p209_p0 }
  0x2c   : > { %s216_s21 = sand.u32 (!%p210_p1), 1, %s1045_s12   ;;  %s222_s23 = sand.u32 (!%p210_p1), 1, %s1037_s10  }
  0x2d   : > { %213 = sbr.rel (%p210_p1) target bundleno = 244 (0xf4), region = 62  ;;  %s692_s25 = sshll.u32 (!%p210_p1), %s216_s21, 4 }
  0x2e   : > { %s693_s27 = sshll.u32 (!%p210_p1), %s222_s23, 8  ;;  %s1198_s28 = scalar_lea.vmem (!%p210_p1), [#allocation2], %s692_s25 }
  0x2f   : > { %s223_s24 = scalar_lea.sflag (!%p210_p1), [#allocation4], %s222_s23  ;;  %s1200_s4 = scalar_lea.vmem (!%p210_p1), [#allocation3], %s693_s27 }
  0x32   : > { %1028 = dma.done.wait (%p1174_p11), %s223_s24, 4096  }
  0x33   : > { %1030 = vsyncadd (%p1174_p11), %s223_s24, 4294963200  ;;  %s694_s29 = sshll.u32 %s1057_s15, 1  ;;  %p697_p3 = scmp.ne.s32.totalorder %s1053_s14, 0 }
  0x34   : > { %p263_p2 = scmp.lt.s32.totalorder %s694_s29, 3 }
  0x35   : > { %276 = sbr.rel (%p697_p3) target bundleno = 63 (0x3f), region = 74 }
  0x36   : > { %s1348_s29 = smov (!%p263_p2, %s694_s29), 3 }
  0x37   : > { %s838_s5 = sshll.u32 %s1348_s29, 4 }
  0x38   : > { %s1210_s8 = scalar_lea.vmem %s1325_s2, %s838_s5 }
  0x3a   : > { %v1073_v2 = vmov 0.0  }
  0x3b   : > { %277 = vst [vmem:[%s1210_s8] sm:$0xff] %v1073_v2 }
  0x3c   : > { %278 = vst [vmem:[%s1210_s8 + $0x8] sm:$0xff] %v1073_v2 }
  0x3d   : > { %279 = vst [vmem:[%s1210_s8 + $0x10] sm:$0xff] %v1073_v2 }
  0x3e   : > { %280 = vst [vmem:[%s1210_s8 + $0x18] sm:$0xff] %v1073_v2 }
  0x3f PF: > { %v764_v3 = vld [vmem:[%s1200_s4 + $0x70] sm:$0xf]  ;;  %v856_v4 = vld [vmem:[%s1200_s4 + $0x74] sm:$0xf0]  ;;  %v855_v8 = vld [vmem:[%s1200_s4 + $0x74] sm:$0xf] }
  0x40   : > { %v828_v5 = vld [vmem:[%s1200_s4 + $0xf0] sm:$0xf]  ;;  %v765_v6 = vor.u32 %v856_v4, %v764_v3  ;;  %v872_v7 = vld [vmem:[%s1200_s4 + $0xf4] sm:$0xf0]  ;;  %v766_v9 = vld [vmem:[%s1200_s4 + $0x78] sm:$0xf0] }
  0x41   : > { %v829_v10 = vor.u32 %v872_v7, %v828_v5  ;;  %v769_v11 = vor.u32 %v855_v8, %v766_v9  ;;  %v871_v12 = vld [vmem:[%s1200_s4 + $0xf4] sm:$0xf]  ;;  %v830_v13 = vld [vmem:[%s1200_s4 + $0xf8] sm:$0xf0]  ;;  %v756_v14 = vld [vmem:[%s1200_s4 + $0x60] sm:$0xf] }
  0x42   : > { %489 = vmatpush.bf16.msra.mxu0 %v765_v6  ;;  %v833_v15 = vor.u32 %v871_v12, %v830_v13  ;;  %v854_v16 = vld [vmem:[%s1200_s4 + $0x64] sm:$0xf0]  ;;  %v820_v17 = vld [vmem:[%s1200_s4 + $0xe0] sm:$0xf]  ;;  %v853_v21 = vld [vmem:[%s1200_s4 + $0x64] sm:$0xf] }
  0x43   : > { %v870_v18 = vld [vmem:[%s1200_s4 + $0xe4] sm:$0xf0]  ;;  %503 = vmatpush.bf16.msra.mxu1 %v829_v10  ;;  %517 = vmatpush.bf16.msra.mxu2 %v769_v11  ;;  %v757_v19 = vor.u32 %v854_v16, %v756_v14  ;;  %v758_v22 = vld [vmem:[%s1200_s4 + $0x68] sm:$0xf0]  ;;  %v869_v23 = vld [vmem:[%s1200_s4 + $0xe4] sm:$0xf] }
  0x44   : > { %v821_v20 = vor.u32 %v870_v18, %v820_v17  ;;  %531 = vmatpush.bf16.msra.mxu3 %v833_v15  ;;  %v761_v24 = vor.u32 %v853_v21, %v758_v22  ;;  %v822_v25 = vld [vmem:[%s1200_s4 + $0xe8] sm:$0xf0]  ;;  %v748_v26 = vld [vmem:[%s1200_s4 + $0x50] sm:$0xf]  ;;  %v852_v27 = vld [vmem:[%s1200_s4 + $0x54] sm:$0xf0] }
  0x45   : > { %v825_v28 = vor.u32 %v869_v23, %v822_v25  ;;  %v812_v29 = vld [vmem:[%s1200_s4 + $0xd0] sm:$0xf]  ;;  %v868_v30 = vld [vmem:[%s1200_s4 + $0xd4] sm:$0xf0]  ;;  %v851_v31 = vld [vmem:[%s1200_s4 + $0x54] sm:$0xf]  ;;  %v749_v32 = vor.u32 %v852_v27, %v748_v26 }
  0x46   : > { %490 = vmatpush.bf16.msra.mxu0 %v757_v19  ;;  %v750_v33 = vld [vmem:[%s1200_s4 + $0x58] sm:$0xf0]  ;;  %v867_v34 = vld [vmem:[%s1200_s4 + $0xd4] sm:$0xf]  ;;  %v813_v36 = vor.u32 %v868_v30, %v812_v29  ;;  %v740_v38 = vld [vmem:[%s1200_s4 + $0x40] sm:$0xf] }
  0x47   : > { %v814_v35 = vld [vmem:[%s1200_s4 + $0xd8] sm:$0xf0]  ;;  %504 = vmatpush.bf16.msra.mxu1 %v821_v20  ;;  %518 = vmatpush.bf16.msra.mxu2 %v761_v24  ;;  %v753_v37 = vor.u32 %v851_v31, %v750_v33  ;;  %v850_v39 = vld [vmem:[%s1200_s4 + $0x44] sm:$0xf0]  ;;  %v804_v40 = vld [vmem:[%s1200_s4 + $0xc0] sm:$0xf] }
  0x48   : > { %532 = vmatpush.bf16.msra.mxu3 %v825_v28  ;;  %v817_v41 = vor.u32 %v867_v34, %v814_v35  ;;  %v866_v42 = vld [vmem:[%s1200_s4 + $0xc4] sm:$0xf0]  ;;  %v849_v43 = vld [vmem:[%s1200_s4 + $0x44] sm:$0xf]  ;;  %v742_v44 = vld [vmem:[%s1200_s4 + $0x48] sm:$0xf0]  ;;  %v741_v47 = vor.u32 %v850_v39, %v740_v38 }
  0x49   : > { %v865_v45 = vld [vmem:[%s1200_s4 + $0xc4] sm:$0xf]  ;;  %v806_v46 = vld [vmem:[%s1200_s4 + $0xc8] sm:$0xf0]  ;;  %v805_v48 = vor.u32 %v866_v42, %v804_v40  ;;  %v745_v49 = vor.u32 %v849_v43, %v742_v44  ;;  %v732_v50 = vld [vmem:[%s1200_s4 + $0x30] sm:$0xf] }
  0x4a   : > { %491 = vmatpush.bf16.msra.mxu0 %v749_v32  ;;  %v848_v51 = vld [vmem:[%s1200_s4 + $0x34] sm:$0xf0]  ;;  %v796_v52 = vld [vmem:[%s1200_s4 + $0xb0] sm:$0xf]  ;;  %v809_v53 = vor.u32 %v865_v45, %v806_v46  ;;  %v847_v55 = vld [vmem:[%s1200_s4 + $0x34] sm:$0xf] }
  0x4b   : > { %505 = vmatpush.bf16.msra.mxu1 %v813_v36  ;;  %519 = vmatpush.bf16.msra.mxu2 %v753_v37  ;;  %v864_v54 = vld [vmem:[%s1200_s4 + $0xb4] sm:$0xf0]  ;;  %v734_v56 = vld [vmem:[%s1200_s4 + $0x38] sm:$0xf0]  ;;  %v863_v57 = vld [vmem:[%s1200_s4 + $0xb4] sm:$0xf]  ;;  %v733_v59 = vor.u32 %v848_v51, %v732_v50 }
  0x4c   : > { %533 = vmatpush.bf16.msra.mxu3 %v817_v41  ;;  %v798_v58 = vld [vmem:[%s1200_s4 + $0xb8] sm:$0xf0]  ;;  %v797_v60 = vor.u32 %v864_v54, %v796_v52  ;;  %v737_v61 = vor.u32 %v847_v55, %v734_v56  ;;  %v724_v62 = vld [vmem:[%s1200_s4 + $0x20] sm:$0xf]  ;;  %v846_v63 = vld [vmem:[%s1200_s4 + $0x24] sm:$0xf0] }
  0x4d   : > { %v788_v0 = vld [vmem:[%s1200_s4 + $0xa0] sm:$0xf]  ;;  %v801_v1 = vor.u32 %v863_v57, %v798_v58  ;;  %v862_v2 = vld [vmem:[%s1200_s4 + $0xa4] sm:$0xf0]  ;;  %v845_v3 = vld [vmem:[%s1200_s4 + $0x24] sm:$0xf]  ;;  %v725_v7 = vor.u32 %v846_v63, %v724_v62 }
  0x4e   : > { %492 = vmatpush.bf16.msra.mxu0 %v741_v47  ;;  %v726_v4 = vld [vmem:[%s1200_s4 + $0x28] sm:$0xf0]  ;;  %v861_v5 = vld [vmem:[%s1200_s4 + $0xa4] sm:$0xf]  ;;  %v789_v8 = vor.u32 %v862_v2, %v788_v0  ;;  %v716_v10 = vld [vmem:[%s1200_s4 + $0x10] sm:$0xf] }
  0x4f   : > { %506 = vmatpush.bf16.msra.mxu1 %v805_v48  ;;  %520 = vmatpush.bf16.msra.mxu2 %v745_v49  ;;  %v790_v6 = vld [vmem:[%s1200_s4 + $0xa8] sm:$0xf0]  ;;  %v729_v9 = vor.u32 %v845_v3, %v726_v4  ;;  %v844_v11 = vld [vmem:[%s1200_s4 + $0x14] sm:$0xf0]  ;;  %v780_v12 = vld [vmem:[%s1200_s4 + $0x90] sm:$0xf] }
  0x50   : > { %534 = vmatpush.bf16.msra.mxu3 %v809_v53  ;;  %v793_v13 = vor.u32 %v861_v5, %v790_v6  ;;  %v860_v14 = vld [vmem:[%s1200_s4 + $0x94] sm:$0xf0]  ;;  %v843_v15 = vld [vmem:[%s1200_s4 + $0x14] sm:$0xf]  ;;  %v718_v16 = vld [vmem:[%s1200_s4 + $0x18] sm:$0xf0]  ;;  %v717_v19 = vor.u32 %v844_v11, %v716_v10 }
  0x51   : > { %v859_v17 = vld [vmem:[%s1200_s4 + $0x94] sm:$0xf]  ;;  %v782_v18 = vld [vmem:[%s1200_s4 + $0x98] sm:$0xf0]  ;;  %v781_v20 = vor.u32 %v860_v14, %v780_v12  ;;  %v721_v21 = vor.u32 %v843_v15, %v718_v16  ;;  %v708_v22 = vld [vmem:[%s1200_s4] sm:$0xf] }
  0x52   : > { %493 = vmatpush.bf16.msra.mxu0 %v733_v59  ;;  %v842_v23 = vld [vmem:[%s1200_s4 + $0x4] sm:$0xf0]  ;;  %v772_v24 = vld [vmem:[%s1200_s4 + $0x80] sm:$0xf]  ;;  %v785_v25 = vor.u32 %v859_v17, %v782_v18  ;;  %v841_v27 = vld [vmem:[%s1200_s4 + $0x4] sm:$0xf] }
  0x53   : > { %507 = vmatpush.bf16.msra.mxu1 %v797_v60  ;;  %521 = vmatpush.bf16.msra.mxu2 %v737_v61  ;;  %v858_v26 = vld [vmem:[%s1200_s4 + $0x84] sm:$0xf0]  ;;  %v710_v28 = vld [vmem:[%s1200_s4 + $0x8] sm:$0xf0]  ;;  %v857_v29 = vld [vmem:[%s1200_s4 + $0x84] sm:$0xf]  ;;  %v709_v31 = vor.u32 %v842_v23, %v708_v22 }
  0x54   : > { %535 = vmatpush.bf16.msra.mxu3 %v801_v1  ;;  %v774_v30 = vld [vmem:[%s1200_s4 + $0x88] sm:$0xf0]  ;;  %v700_v32 = vld [vmem:[%s1198_s28] sm:$0xf]  ;;  %v840_v33 = vld [vmem:[%s1198_s28 + $0x4] sm:$0xf0]  ;;  %v773_v34 = vor.u32 %v858_v26, %v772_v24  ;;  %v713_v35 = vor.u32 %v841_v27, %v710_v28 }
  0x55   : > { %v839_v36 = vld [vmem:[%s1198_s28 + $0x4] sm:$0xf]  ;;  %v702_v37 = vld [vmem:[%s1198_s28 + $0x8] sm:$0xf0]  ;;  %v777_v38 = vor.u32 %v857_v29, %v774_v30  ;;  %v701_v39 = vor.u32 %v840_v33, %v700_v32 }
  0x56   : > { %494 = vmatpush.bf16.msra.mxu0 %v725_v7  ;;  %v705_v40 = vor.u32 %v839_v36, %v702_v37  ;;  %v281_v42 = vld [vmem:[%s1210_s8] sm:$0xff]  ;;  %v283_v45 = vld [vmem:[%s1210_s8 + $0x10] sm:$0xff]  ;;  %v282_v48 = vld [vmem:[%s1210_s8 + $0x8] sm:$0xff] }
  0x57   : > { %508 = vmatpush.bf16.msra.mxu1 %v789_v8  ;;  %522 = vmatpush.bf16.msra.mxu2 %v729_v9  ;;  %v284_v54 = vld [vmem:[%s1210_s8 + $0x18] sm:$0xff] }
  0x58   : > { %536 = vmatpush.bf16.msra.mxu3 %v793_v13 }
  0x5a   : > { %495 = vmatpush.bf16.msra.mxu0 %v717_v19 }
  0x5b   : > { %509 = vmatpush.bf16.msra.mxu1 %v781_v20  ;;  %523 = vmatpush.bf16.msra.mxu2 %v721_v21 }
  0x5c   : > { %537 = vmatpush.bf16.msra.mxu3 %v785_v25 }
  0x5e   : > { %496 = vmatpush.bf16.msra.mxu0 %v709_v31 }
  0x5f   : > { %510 = vmatpush.bf16.msra.mxu1 %v773_v34  ;;  %524 = vmatpush.bf16.msra.mxu2 %v713_v35 }
  0x60   : > { %538 = vmatpush.bf16.msra.mxu3 %v777_v38 }
  0x61   : > { %497 = vmatmul.bf16.vlgmr.msra.gmra.mxu0 %v701_v39 }
  0x62   : > { %511 = vmatmul.bf16.vlgmr.msra.gmra.mxu1 %v705_v40  ;;  %525 = vmatmul.bf16.vlgmr.msra.gmra.mxu2 %v701_v39 }
  0x63   : > { %539 = vmatmul.bf16.vlgmr.msra.gmra.mxu3 %v705_v40 }
  0xde   : > { %v498_v41 = vpop.f32.mrf.mxu0 }
  0xdf   : > { %v512_v43 = vpop.f32.mrf.mxu1 }
  0xe0   : > { %v513_v44 = vadd.f32 %v512_v43, %v498_v41 }
  0xe2   : > { %v545_v46 = vadd.f32 %v513_v44, %v281_v42 }
  0xe4   : > { %549 = vst [vmem:[%s1210_s8] sm:$0xff] %v545_v46 }
  0xe5   : > { %v526_v47 = vpop.f32.mrf.mxu2 }
  0xe6   : > { %v540_v49 = vpop.f32.mrf.mxu3  ;;  %v500_v50 = vpop.f32.mrf.mxu0 }
  0xe7   : > { %v541_v51 = vadd.f32 %v540_v49, %v526_v47  ;;  %v514_v52 = vpop.f32.mrf.mxu1 }
  0xe8   : > { %v515_v53 = vadd.f32 %v514_v52, %v500_v50 }
  0xe9   : > { %v546_v55 = vadd.f32 %v541_v51, %v282_v48 }
  0xea   : > { %v547_v56 = vadd.f32 %v515_v53, %v283_v45 }
  0xeb   : > { %550 = vst [vmem:[%s1210_s8 + $0x8] sm:$0xff] %v546_v55 }
  0xec   : > { %551 = vst [vmem:[%s1210_s8 + $0x10] sm:$0xff] %v547_v56 }
  0xed   : > { %v528_v57 = vpop.f32.mrf.mxu2 }
  0xee   : > { %v542_v58 = vpop.f32.mrf.mxu3 }
  0xef   : > { %v543_v59 = vadd.f32 %v542_v58, %v528_v57 }
  0xf1   : > { %v548_v60 = vadd.f32 %v543_v59, %v284_v54 }
  0xf3   : > { %552 = vst [vmem:[%s1210_s8 + $0x18] sm:$0xff] %v548_v60 }
  0xf4 PF: > { %s15_s18 = sadd.s32 1, %s1069_s18   ;;  %s1331_s3 = sld [smem:[#allocation6_spill]] }
  0xf5   : > { %p12_p4 = scmp.ge.s32.totalorder %s15_s18, 20   ;;  %s1332_s9 = smov %s1037_s10 }
  0xf6   : > { %s1333_s10 = smov %s1041_s11  ;;  %s1334_s11 = smov %s1159_s26 }
  0xf7   : > { %s1335_s12 = smov %s1049_s13  ;;  %s1336_s13 = smov %s1172_s30 }
  0xf8   : > { %s1337_s14 = smov %s1061_s16  ;;  %s1338_s15 = smov %s1065_s17 }
  0xf9   : > { %s1339_s16 = smov %s1342_s20  ;;  %14 = sbr.rel (!%p12_p4) target bundleno = 6 (0x6), region = 118 }
  0xfa   : > { %s1340_s17 = smov %s1331_s3 }
  0xfe   :  { %586 = vsyncpa [#allocation4], 1 }
  0xff   :  { %588 = vsyncpa [#allocation4 + $0x1], 1 }

// kernel: forward.41
= control target key start
LH: loop header
LB: loop body
LE: loop exit
PB: predicated region body
PF: predicated region fallthrough
CT: control target
= control target key end

     0   :  { %s518_s0 = inlined_call_operand.vmem [shape: f32[32,128], index: 0, kind: input, shape index: {}]   ;;  %s519_s1 = inlined_call_operand.vmem [shape: f32[32,128], index: 1, kind: input, shape index: {}]   ;;  %s520_s2 = inlined_call_operand.vmem [shape: f32[32,128], index: 2, kind: input, shape index: {}]   ;;  %s521_s4 = inlined_call_operand.vmem [shape: f32[8,128], index: 4, kind: input, shape index: {}]   ;;  %s522_s5 = inlined_call_operand.vmem [shape: f32[8,128], index: 5, kind: input, shape index: {}]   ;;  %s523_s3 = inlined_call_operand.vmem [shape: f32[32,128], index: 3, kind: input, shape index: {}]   ;;  %s524_s6 = inlined_call_operand.vmem [shape: f32[32,128], index: 6, kind: output, shape index: {0}]   ;;  %s525_s7 = inlined_call_operand.vmem [shape: f32[32,128], index: 7, kind: output, shape index: {1}]   ;;  %s526_s8 = inlined_call_operand.vmem [shape: f32[32,128], index: 8, kind: output, shape index: {2}]  }
   0x1   :  { %v26_v0 = vld [vmem:[%s518_s0] sm:$0xff]  ;;  %v27_v13 = vld [vmem:[%s518_s0 + $0x8] sm:$0xff]  ;;  %v28_v33 = vld [vmem:[%s518_s0 + $0x10] sm:$0xff] }
   0x2   :  { %v30_v1 = vld [vmem:[%s519_s1] sm:$0xff]  ;;  %v31_v18 = vld [vmem:[%s519_s1 + $0x8] sm:$0xff]  ;;  %v32_v38 = vld [vmem:[%s519_s1 + $0x10] sm:$0xff] }
   0x3   :  { %v34_v2 = vld [vmem:[%s520_s2] sm:$0xff]  ;;  %v35_v23 = vld [vmem:[%s520_s2 + $0x8] sm:$0xff]  ;;  %v36_v43 = vld [vmem:[%s520_s2 + $0x10] sm:$0xff] }
   0x4   :  { %v302_v3 = vld [vmem:[%s521_s4] sm:$0xff]  ;;  %v39_v24 = vld [vmem:[%s523_s3 + $0x8] sm:$0xff]  ;;  %v40_v44 = vld [vmem:[%s523_s3 + $0x10] sm:$0xff] }
   0x5   :  { %v43_v4 = vld [vmem:[%s522_s5] sm:$0xff]  ;;  %v308_v5 = vperm.slane %v302_v3, 0  ;;  %v311_v6 = vperm.slane %v302_v3, 1  ;;  %v319_v9 = vperm.slane %v302_v3, 4  ;;  %v324_v11 = vperm.slane %v302_v3, 2  ;;  %v29_v61 = vld [vmem:[%s518_s0 + $0x18] sm:$0xff] }
   0x6   :  { %v313_v7 = vperm.slane %v43_v4, 0  ;;  %v38_v8 = vld [vmem:[%s523_s3] sm:$0xff]  ;;  %v321_v10 = vperm.slane %v43_v4, 1  ;;  %v327_v12 = vperm.slane %v302_v3, 3  ;;  %v335_v17 = vperm.slane %v43_v4, 4  ;;  %v33_v62 = vld [vmem:[%s519_s1 + $0x18] sm:$0xff] }
   0x7   :  { %v45_v14 = vmul.f32 %v308_v5, %v26_v0  ;;  %v50_v15 = vmul.f32 %v311_v6, %v30_v1  ;;  %v87_v19 = vmul.f32 %v324_v11, %v26_v0  ;;  %v343_v21 = vperm.slane %v302_v3, 5 }
   0x8   :  { %v64_v16 = vmul.f32 %v313_v7, %v34_v2  ;;  %v92_v20 = vmul.f32 %v327_v12, %v30_v1  ;;  %v345_v22 = vperm.slane %v43_v4, 2  ;;  %v73_v26 = vmul.f32 %v321_v10, %v38_v8 }
   0x9   :  { %v54_v25 = vsub.f32 %v45_v14, %v50_v15  ;;  %v354_v27 = vperm.slane %v43_v4, 3  ;;  %v46_v28 = vmul.f32 %v308_v5, %v27_v13  ;;  %v358_v31 = vperm.slane %v43_v4, 5  ;;  %v37_v15 = vld [vmem:[%s520_s2 + $0x18] sm:$0xff] }
   0xa   :  { %v96_v29 = vadd.f32 %v92_v20, %v87_v19  ;;  %v106_v30 = vmul.f32 %v345_v22, %v34_v2  ;;  %v51_v32 = vmul.f32 %v311_v6, %v31_v18  ;;  %v65_v36 = vmul.f32 %v313_v7, %v35_v23 }
   0xb   :  { %v59_v34 = vadd.f32 %v319_v9, %v54_v25  ;;  %v115_v35 = vmul.f32 %v354_v27, %v38_v8  ;;  %v74_v37 = vmul.f32 %v321_v10, %v39_v24  ;;  %v88_v41 = vmul.f32 %v324_v11, %v27_v13 }
   0xc   :  { %v101_v39 = vadd.f32 %v343_v21, %v96_v29  ;;  %v55_v40 = vsub.f32 %v46_v28, %v51_v32  ;;  %v93_v42 = vmul.f32 %v327_v12, %v31_v18  ;;  %v107_v46 = vmul.f32 %v345_v22, %v35_v23 }
   0xd   :  { %v68_v45 = vadd.f32 %v64_v16, %v59_v34  ;;  %v116_v47 = vmul.f32 %v354_v27, %v39_v24  ;;  %v47_v48 = vmul.f32 %v308_v5, %v28_v33  ;;  %v52_v52 = vmul.f32 %v311_v6, %v32_v38  ;;  %v41_v16 = vld [vmem:[%s523_s3 + $0x18] sm:$0xff] }
   0xe   :  { %v110_v49 = vadd.f32 %v106_v30, %v101_v39  ;;  %v60_v50 = vadd.f32 %v319_v9, %v55_v40  ;;  %v97_v51 = vadd.f32 %v93_v42, %v88_v41  ;;  %v66_v54 = vmul.f32 %v313_v7, %v36_v43 }
   0xf   :  { %v77_v53 = vsub.f32 %v68_v45, %v73_v26  ;;  %v75_v55 = vmul.f32 %v321_v10, %v40_v44  ;;  %v89_v56 = vmul.f32 %v324_v11, %v28_v33  ;;  %v56_v60 = vsub.f32 %v47_v48, %v52_v52 }
  0x10   :  { %v119_v57 = vadd.f32 %v115_v35, %v110_v49  ;;  %v69_v58 = vadd.f32 %v65_v36, %v60_v50  ;;  %v102_v59 = vadd.f32 %v343_v21, %v97_v51  ;;  %v94_v0 = vmul.f32 %v327_v12, %v32_v38 }
  0x11   :  { %v396_v63 = vadd.f32 %v335_v17, %v77_v53  ;;  %v108_v1 = vmul.f32 %v345_v22, %v36_v43  ;;  %v117_v2 = vmul.f32 %v354_v27, %v40_v44  ;;  %v61_v14 = vadd.f32 %v319_v9, %v56_v60 }
  0x12   :  { %v402_v4 = vadd.f32 %v358_v31, %v119_v57  ;;  %v78_v8 = vsub.f32 %v69_v58, %v74_v37  ;;  %v111_v13 = vadd.f32 %v107_v46, %v102_v59  ;;  %v98_v19 = vadd.f32 %v94_v0, %v89_v56 }
  0x13   :  { %v128_v18 = vmul.f32 %v396_v63, %v396_v63  ;;  %v48_v20 = vmul.f32 %v308_v5, %v29_v61  ;;  %v53_v23 = vmul.f32 %v311_v6, %v33_v62  ;;  %v70_v28 = vadd.f32 %v66_v54, %v61_v14 }
  0x14   :  { %v132_v24 = vmul.f32 %v402_v4, %v402_v4  ;;  %v418_v25 = vadd.f32 %v335_v17, %v78_v8  ;;  %v120_v26 = vadd.f32 %v116_v47, %v111_v13  ;;  %v103_v29 = vadd.f32 %v343_v21, %v98_v19 }
  0x15   :  { %v57_v30 = vsub.f32 %v48_v20, %v53_v23  ;;  %v67_v32 = vmul.f32 %v313_v7, %v37_v15  ;;  %v76_v33 = vmul.f32 %v321_v10, %v41_v16  ;;  %v79_v35 = vsub.f32 %v70_v28, %v75_v55 }
  0x16   :  { %v423_v34 = vadd.f32 %v132_v24, %v128_v18  ;;  %v426_v5 = vadd.f32 %v358_v31, %v120_v26  ;;  %v129_v6 = vmul.f32 %v418_v25, %v418_v25  ;;  %v112_v36 = vadd.f32 %v108_v1, %v103_v29 }
  0x17   :  { %v62_v37 = vadd.f32 %v319_v9, %v57_v30  ;;  %v90_v38 = vmul.f32 %v324_v11, %v29_v61  ;;  %v95_v39 = vmul.f32 %v327_v12, %v33_v62  ;;  %v437_v40 = vadd.f32 %v335_v17, %v79_v35 }
  0x18   :  { %v140_v7 = vadd.f32 1e-12, %v423_v34  ;;  %v133_v10 = vmul.f32 %v426_v5, %v426_v5  ;;  %v121_v41 = vadd.f32 %v117_v2, %v112_v36  ;;  %v109_v44 = vmul.f32 %v345_v22, %v37_v15 }
  0x19   :  { %v71_v42 = vadd.f32 %v67_v32, %v62_v37  ;;  %v99_v43 = vadd.f32 %v95_v39, %v90_v38  ;;  %v118_v9 = vmul.f32 %v354_v27, %v41_v16  ;;  %v130_v12 = vmul.f32 %v437_v40, %v437_v40 }
  0x1a   :  { %237 = vrsqrt.f32 %v140_v7  ;;  %v440_v45 = vadd.f32 %v133_v10, %v129_v6  ;;  %v444_v11 = vadd.f32 %v358_v31, %v121_v41  ;;  %vm150_vm0 = vweird.f32 %v140_v7 }
  0x1b   :  { %v80_v46 = vsub.f32 %v71_v42, %v76_v33  ;;  %v104_v47 = vadd.f32 %v343_v21, %v99_v43  ;;  %v184_v0 = vperm.slane %v302_v3, 6 }
  0x1c   :  { %v141_v48 = vadd.f32 1e-12, %v440_v45  ;;  %v134_v49 = vmul.f32 %v444_v11, %v444_v11 }
  0x1d   :  { %v453_v22 = vadd.f32 %v335_v17, %v80_v46  ;;  %v113_v50 = vadd.f32 %v109_v44, %v104_v47 }
  0x1e   :  { %239 = vrsqrt.f32 %v141_v48  ;;  %v455_v27 = vadd.f32 %v134_v49, %v130_v12  ;;  %vm160_vm3 = vweird.f32 %v141_v48 }
  0x1f   :  { %v122_v51 = vadd.f32 %v118_v9, %v113_v50  ;;  %v131_v21 = vmul.f32 %v453_v22, %v453_v22 }
  0x20   :  { %v238_v52 = vpop.eup %237  ;;  %v142_v54 = vadd.f32 1e-12, %v455_v27 }
  0x21   :  { %v145_v53 = vmul.f32 %v238_v52, %v140_v7  ;;  %v459_v55 = vadd.f32 %v358_v31, %v122_v51  ;;  %vm151_vm1 = vweird.f32 %v238_v52 }
  0x22   :  { %241 = vrsqrt.f32 %v142_v54  ;;  %vm152_vm2 = vmor %vm150_vm0, %vm151_vm1  ;;  %vm170_vm6 = vweird.f32 %v142_v54 }
  0x23   :  { %v146_v56 = vmul.f32 %v238_v52, %v145_v53  ;;  %v135_v17 = vmul.f32 %v459_v55, %v459_v55 }
  0x24   :  { %v240_v57 = vpop.eup %239 }
  0x25   :  { %v147_v58 = vmul.f32 0.5, %v146_v56  ;;  %v155_v59 = vmul.f32 %v240_v57, %v141_v48  ;;  %v465_v60 = vadd.f32 %v135_v17, %v131_v21  ;;  %vm161_vm4 = vweird.f32 %v240_v57 }
  0x26   :  { %vm162_vm5 = vmor %vm160_vm3, %vm161_vm4 }
  0x27   :  { %v148_v61 = vsub.f32 1.5, %v147_v58  ;;  %v156_v62 = vmul.f32 %v240_v57, %v155_v59  ;;  %v143_v31 = vadd.f32 1e-12, %v465_v60 }
  0x28   :  { %v242_v1 = vpop.eup %241 }
  0x29   :  { %v149_v2 = vmul.f32 %v238_v52, %v148_v61  ;;  %v157_v8 = vmul.f32 0.5, %v156_v62  ;;  %243 = vrsqrt.f32 %v143_v31  ;;  %v165_v13 = vmul.f32 %v242_v1, %v142_v54 }
  0x2a   :  { %vm171_vm7 = vweird.f32 %v242_v1  ;;  %vm180_vm9 = vweird.f32 %v143_v31 }
  0x2b   :  { %v153_v14 = vsel %vm152_vm2, %v238_v52, %v149_v2  ;;  %v158_v15 = vsub.f32 1.5, %v157_v8  ;;  %v166_v18 = vmul.f32 %v242_v1, %v165_v13  ;;  %vm172_vm8 = vmor %vm170_vm6, %vm171_vm7 }
  0x2c   :  { %v185_v16 = vmul.f32 %v184_v0, %v153_v14 }
  0x2d   :  { %v159_v19 = vmul.f32 %v240_v57, %v158_v15  ;;  %v167_v23 = vmul.f32 0.5, %v166_v18 }
  0x2e   :  { %v189_v20 = vadd.f32 1.0, %v185_v16 }
  0x2f   :  { %v244_v24 = vpop.eup %243  ;;  %v163_v26 = vsel %vm162_vm5, %v240_v57, %v159_v19  ;;  %v168_v29 = vsub.f32 1.5, %v167_v23 }
  0x30   :  { %v193_v3 = vmax.f32 %v189_v20, 0.0  ;;  %v186_v28 = vmul.f32 %v184_v0, %v163_v26  ;;  %v175_v30 = vmul.f32 %v244_v24, %v143_v31  ;;  %vm181_vm10 = vweird.f32 %v244_v24 }
  0x31   :  { %v169_v6 = vmul.f32 %v242_v1, %v168_v29  ;;  %vm182_vm11 = vmor %vm180_vm9, %vm181_vm10 }
  0x32   :  { %v197_v32 = vmul.f32 %v193_v3, %v396_v63  ;;  %v190_v33 = vadd.f32 1.0, %v186_v28  ;;  %v176_v35 = vmul.f32 %v244_v24, %v175_v30  ;;  %v205_v36 = vmul.f32 %v193_v3, %v402_v4 }
  0x33   :  { %v213_v37 = vmul.f32 %v193_v3, %v423_v34  ;;  %v173_v39 = vsel %vm172_vm8, %v242_v1, %v169_v6 }
  0x34   :  { %201 = vst [vmem:[%s524_s6] sm:$0xff] %v197_v32  ;;  %v194_v38 = vmax.f32 %v190_v33, 0.0  ;;  %v177_v7 = vmul.f32 0.5, %v176_v35  ;;  %v187_v10 = vmul.f32 %v184_v0, %v173_v39 }
  0x35   :  { %209 = vst [vmem:[%s525_s7] sm:$0xff] %v205_v36  ;;  %v217_v63 = vmul.f32 %v213_v37, %v153_v14 }
  0x36   :  { %v198_v41 = vmul.f32 %v194_v38, %v418_v25  ;;  %v178_v42 = vsub.f32 1.5, %v177_v7  ;;  %v206_v4 = vmul.f32 %v194_v38, %v426_v5  ;;  %v214_v34 = vmul.f32 %v194_v38, %v440_v45 }
  0x37   :  { %v191_v43 = vadd.f32 1.0, %v187_v10  ;;  %221 = vst [vmem:[%s526_s8] sm:$0xff] %v217_v63 }
  0x38   :  { %202 = vst [vmem:[%s524_s6 + $0x8] sm:$0xff] %v198_v41  ;;  %v179_v44 = vmul.f32 %v244_v24, %v178_v42  ;;  %v218_v9 = vmul.f32 %v214_v34, %v163_v26 }
  0x39   :  { %v195_v12 = vmax.f32 %v191_v43, 0.0  ;;  %210 = vst [vmem:[%s525_s7 + $0x8] sm:$0xff] %v206_v4 }
  0x3a   :  { %v183_v25 = vsel %vm182_vm11, %v244_v24, %v179_v44  ;;  %222 = vst [vmem:[%s526_s8 + $0x8] sm:$0xff] %v218_v9 }
  0x3b   :  { %v199_v5 = vmul.f32 %v195_v12, %v437_v40  ;;  %v188_v45 = vmul.f32 %v184_v0, %v183_v25  ;;  %v207_v46 = vmul.f32 %v195_v12, %v444_v11  ;;  %v215_v47 = vmul.f32 %v195_v12, %v455_v27 }
  0x3d   :  { %203 = vst [vmem:[%s524_s6 + $0x10] sm:$0xff] %v199_v5  ;;  %v192_v48 = vadd.f32 1.0, %v188_v45  ;;  %v219_v49 = vmul.f32 %v215_v47, %v173_v39 }
  0x3e   :  { %211 = vst [vmem:[%s525_s7 + $0x10] sm:$0xff] %v207_v46 }
  0x3f   :  { %v196_v50 = vmax.f32 %v192_v48, 0.0  ;;  %223 = vst [vmem:[%s526_s8 + $0x10] sm:$0xff] %v219_v49 }
  0x41   :  { %v200_v40 = vmul.f32 %v196_v50, %v453_v22  ;;  %v208_v11 = vmul.f32 %v196_v50, %v459_v55  ;;  %v216_v27 = vmul.f32 %v196_v50, %v465_v60 }
  0x43   :  { %204 = vst [vmem:[%s524_s6 + $0x18] sm:$0xff] %v200_v40  ;;  %v220_v51 = vmul.f32 %v216_v27, %v183_v25 }
  0x44   :  { %212 = vst [vmem:[%s525_s7 + $0x18] sm:$0xff] %v208_v11 }
  0x45   :  { %224 = vst [vmem:[%s526_s8 + $0x18] sm:$0xff] %v220_v51 }

// kernel: forward.50
= control target key start
LH: loop header
LB: loop body
LE: loop exit
PB: predicated region body
PF: predicated region fallthrough
CT: control target
= control target key end

     0   :  { %7 = vsyncpa [#allocation3], 0  ;;  %s726_s0 = inlined_call_operand.vmem [shape: bf16[8,128], index: 0, kind: input, shape index: {}]   ;;  %s727_s1 = inlined_call_operand.hbm [shape: bf16[128,256], index: 1, kind: input, shape index: {}]   ;;  %s728_s2 = inlined_call_operand.vmem [shape: f32[8,256], index: 2, kind: output, shape index: {}]  }
   0x1   :  { %9 = vsyncpa [#allocation3 + $0x1], 0  ;;  %s635_s9 = smov 0   ;;  %s637_s10 = smov 0  }
   0x2   :  { %s639_s11 = smov 0   ;;  %s641_s12 = smov 0  }
   0x3   :  { %s643_s13 = smov 0   ;;  %s645_s14 = smov 0  }
   0x4 LB: > { %s424_s15 = sadd.s32 4294967295, %s615_s14   ;;  %s30_s16 = sadd.s32 1, %s611_s13  ;;  %s615_s14 = sphi %s645_s14, %s15_s14   ;;  %s611_s13 = sphi %s643_s13, %s735_s13   ;;  %s607_s12 = sphi %s641_s12, %s734_s12   ;;  %s603_s11 = sphi %s639_s11, %s733_s11   ;;  %s599_s10 = sphi %s637_s10, %s732_s10   ;;  %s595_s9 = sphi %s635_s9, %s731_s9  }
   0x5   : > { %p32_p0 = scmp.ge.s32.totalorder %s30_s16, 2  ;;  %s71_s17 = sadd.s32 1, %s603_s11 }
   0x6   : > { %p78_p1 = scmp.ne.s32.totalorder %s603_s11, %s599_s10  ;;  %p79_p2 = scmp.eq.s32.totalorder %s615_s14, 0 }
   0x7   : > { %s737_s16 = smov (%p32_p0, %s30_s16), 0  ;;  %p84_p4 = scmp.ne.s32.totalorder %s599_s10, %s595_s9 }
   0x8   : > { %p671_p3 = por %p79_p2, %p78_p1  ;;  %s67_s19 = ssub.s32 %s611_s13, %s737_s16 }
   0x9   : > { %p85_p5 = scmp.eq.s32.totalorder %s424_s15, 0  ;;  %p69_p6 = scmp.eq.s32.totalorder %s67_s19, 0 }
   0xa   : > { %p482_p8 = scmp.lt.s32.totalorder %s615_s14, 2  ;;  %s146_s22 = sand.u32 1, %s603_s11  }
   0xb   : > { %p678_p7 = por %p85_p5, %p84_p4  ;;  %s430_s23 = sshll.u32 %s611_s13, 2 }
   0xc   : > { %s684_s21 = scalar_select %p69_p6, %s603_s11, %s71_s17  }
   0xd   : > { %s429_s24 = sshll.u32 %s146_s22, 6  ;;  %s157_s27 = scalar_lea.hbm %s727_s1, %s430_s23 }
   0xe   : > { %s158_s28 = sshll.u32 %s157_s27, 4  ;;  %s150_s29 = scalar_lea.vmem [#allocation2], %s429_s24  ;;  %s159_s28 = int_to_ptr.hbm [resolvable:$true] %s158_s28 }
   0xf   : > { %s160_s30 = sshll.u32 %s150_s29, 4  ;;  %p479_p9 = pnand %p482_p8, %p671_p3  ;;  %s161_s30 = int_to_ptr.vmem [resolvable:$true] %s160_s30 }
  0x10   : > { %p431_p10 = scmp.ge.s32.totalorder %s615_s14, 1  ;;  %s147_s3 = scalar_lea.sflag [#allocation3], %s146_s22 }
  0x11   : > { %s617_s4 = smov 128   ;;  %s618_s5 = smov 64  }
  0x12   : > { %s619_s6 = smov 4   ;;  %p168_p11 = scmp.lt.s32.totalorder %s615_s14, 3 }
  0x13   : > { %481 = dma.hbm_to_vmem [thread:$0]  (!%p479_p9), %s159_s28, 1024, %s161_s30, %s147_s3, %s617_s4, %s618_s5, %s619_s6  }
  0x14   : > { %p169_p12 = pnand %p431_p10, %p168_p11 }
  0x15   : > { %s174_s7 = sand.u32 (!%p169_p12), 1, %s599_s10  }
  0x16   : > { %172 = sbr.rel (%p169_p12) target bundleno = 194 (0xc2), region = 28  ;;  %s432_s8 = sshll.u32 (!%p169_p12), %s174_s7, 6 }
  0x17   : > { %s175_s9 = scalar_lea.sflag (!%p169_p12), [#allocation3], %s174_s7  ;;  %s178_s15 = scalar_lea.vmem (!%p169_p12), [#allocation2], %s432_s8 }
  0x1b   : > { %590 = dma.done.wait (%p678_p7), %s175_s9, 1024  }
  0x1c   : > { %592 = vsyncadd (%p678_p7), %s175_s9, 4294966272  ;;  %v475_v0 = vld [vmem:[%s178_s15 + $0x38] sm:$0xff]  ;;  %v474_v1 = vld [vmem:[%s178_s15 + $0x30] sm:$0xff]  ;;  %p220_p13 = scmp.lt.s32.totalorder %s607_s12, 1 }
  0x1d   : > { %297 = vmatpush.bf16.msra.mxu0 %v475_v0  ;;  %v473_v2 = vld [vmem:[%s178_s15 + $0x28] sm:$0xff]  ;;  %v472_v3 = vld [vmem:[%s178_s15 + $0x20] sm:$0xff]  ;;  %v471_v4 = vld [vmem:[%s178_s15 + $0x18] sm:$0xff] }
  0x1e   : > { %v470_v5 = vld [vmem:[%s178_s15 + $0x10] sm:$0xff]  ;;  %v469_v6 = vld [vmem:[%s178_s15 + $0x8] sm:$0xff]  ;;  %v468_v7 = vld [vmem:[%s178_s15] sm:$0xff]  ;;  %s739_s12 = smov (!%p220_p13, %s607_s12), 1 }
  0x1f   : > { %v232_v8 = vld [vmem:[%s726_s0] sm:$0xf]  ;;  %s433_s19 = sshll.u32 %s739_s12, 3 }
  0x20   : > { %s225_s23 = scalar_lea.vmem %s728_s2, %s433_s19 }
  0x21   : > { %298 = vmatpush.bf16.msra.mxu0 %v474_v1 }
  0x25   : > { %299 = vmatpush.bf16.msra.mxu0 %v473_v2 }
  0x29   : > { %300 = vmatpush.bf16.msra.mxu0 %v472_v3 }
  0x2d   : > { %301 = vmatpush.bf16.msra.mxu0 %v471_v4 }
  0x31   : > { %302 = vmatpush.bf16.msra.mxu0 %v470_v5 }
  0x35   : > { %303 = vmatpush.bf16.msra.mxu0 %v469_v6 }
  0x39   : > { %304 = vmatpush.bf16.msra.mxu0 %v468_v7 }
  0x3c   : > { %305 = vmatmul.bf16.vlgmr.msra.gmra.mxu0 %v232_v8 }
  0xb9   : > { %v306_v9 = vpop.f32.mrf.mxu0 }
  0xba   : > { %311 = vst [vmem:[%s225_s23] sm:$0xff] %v306_v9 }
  0xc1   : > { %v308_v10 = vpop.f32.mrf.mxu0 }
  0xc2 PF: > { %s15_s14 = sadd.s32 1, %s615_s14   ;;  %s731_s9 = smov %s599_s10 }
  0xc3   : > { %p12_p0 = scmp.ge.s32.totalorder %s15_s14, 4   ;;  %s732_s10 = smov %s603_s11 }
  0xc4   : > { %s733_s11 = smov %s684_s21  ;;  %s734_s12 = smov %s611_s13 }
  0xc5   : > { %s735_s13 = smov %s737_s16  ;;  %14 = sbr.rel (!%p12_p0) target bundleno = 4 (0x4), region = 75 }
  0xca   :  { %339 = vsyncpa [#allocation3], 1 }
  0xcb   :  { %341 = vsyncpa [#allocation3 + $0x1], 1 }

// kernel: forward.47
= control target key start
LH: loop header
LB: loop body
LE: loop exit
PB: predicated region body
PF: predicated region fallthrough
CT: control target
= control target key end

     0   :  { %7 = vsyncpa [#allocation3], 0  ;;  %s797_s0 = inlined_call_operand.vmem [shape: bf16[8,1152], index: 0, kind: input, shape index: {}]   ;;  %s798_s1 = inlined_call_operand.hbm [shape: bf16[1152,256], index: 1, kind: input, shape index: {}]   ;;  %s799_s2 = inlined_call_operand.vmem [shape: f32[8,256], index: 2, kind: output, shape index: {}]  }
   0x1   :  { %9 = vsyncpa [#allocation3 + $0x1], 0  ;;  %s678_s9 = smov 0   ;;  %s680_s10 = smov 0  }
   0x2   :  { %s682_s11 = smov 0   ;;  %s684_s12 = smov 0  }
   0x3   :  { %s686_s13 = smov 0   ;;  %s688_s14 = smov 0  }
   0x4   :  { %s690_s15 = smov 0   ;;  %s692_s16 = smov 0  }
   0x5 LB: > { %s430_s17 = sadd.s32 4294967295, %s657_s16   ;;  %s27_s18 = sadd.s32 1, %s649_s14  ;;  %s657_s16 = sphi %s692_s16, %s15_s16   ;;  %s653_s15 = sphi %s690_s15, %s808_s15   ;;  %s649_s14 = sphi %s688_s14, %s807_s14   ;;  %s645_s13 = sphi %s686_s13, %s806_s13   ;;  %s641_s12 = sphi %s684_s12, %s805_s12   ;;  %s637_s11 = sphi %s682_s11, %s804_s11   ;;  %s633_s10 = sphi %s680_s10, %s803_s10   ;;  %s629_s9 = sphi %s678_s9, %s802_s9  }
   0x6   : > { %p28_p0 = scmp.ge.s32.totalorder %s27_s18, 9  ;;  %s30_s19 = sadd.s32 1, %s653_s15 }
   0x7   : > { %s71_s20 = sadd.s32 1, %s637_s11  ;;  %p78_p1 = scmp.ne.s32.totalorder %s637_s11, %s633_s10 }
   0x8   : > { %s810_s18 = smov (%p28_p0, %s27_s18), 0  ;;  %s812_s19 = smov (!%p28_p0, %s30_s19), %s653_s15 }
   0x9   : > { %s66_s21 = ssub.s32 %s649_s14, %s810_s18  ;;  %p79_p2 = scmp.eq.s32.totalorder %s657_s16, 0 }
   0xa   : > { %p32_p3 = scmp.ge.s32.totalorder %s812_s19, 2  ;;  %p84_p4 = scmp.ne.s32.totalorder %s633_s10, %s629_s9 }
   0xb   : > { %p729_p5 = por %p79_p2, %p78_p1  ;;  %p85_p6 = scmp.eq.s32.totalorder %s430_s17, 0 }
   0xc   : > { %s814_s19 = smov (%p32_p3, %s812_s19), 0  ;;  %p492_p8 = scmp.lt.s32.totalorder %s657_s16, 18 }
   0xd   : > { %p735_p7 = por %p85_p6, %p84_p4  ;;  %s67_s24 = ssub.s32 %s653_s15, %s814_s19 }
   0xe   : > { %s68_s25 = sor.u32 %s67_s24, %s66_s21  ;;  %s147_s26 = sand.u32 1, %s637_s11  }
   0xf   : > { %p69_p9 = scmp.eq.s32.totalorder %s68_s25, 0  ;;  %s434_s27 = sshll.u32 %s147_s26, 6 }
  0x10   : > { %s477_s28 = sshll.u32 %s649_s14, 5  ;;  %s151_s4 = scalar_lea.vmem [#allocation2], %s434_s27 }
  0x11   : > { %s745_s29 = scalar_select %p69_p9, %s637_s11, %s71_s20  }
  0x12   : > { %s156_s30 = sadd.s32 %s653_s15, %s477_s28  ;;  %s161_s5 = sshll.u32 %s151_s4, 4  ;;  %s162_s5 = int_to_ptr.vmem [resolvable:$true] %s161_s5 }
  0x13   : > { %s437_s3 = sshll.u32 %s156_s30, 2  ;;  %p489_p10 = pnand %p492_p8, %p729_p5 }
  0x14   : > { %s158_s8 = scalar_lea.hbm %s798_s1, %s437_s3  ;;  %p438_p11 = scmp.ge.s32.totalorder %s657_s16, 1 }
  0x15   : > { %s159_s9 = sshll.u32 %s158_s8, 4  ;;  %s148_s17 = scalar_lea.sflag [#allocation3], %s147_s26  ;;  %s160_s9 = int_to_ptr.hbm [resolvable:$true] %s159_s9 }
  0x16   : > { %s659_s21 = smov 128   ;;  %s660_s20 = smov 64  }
  0x17   : > { %s661_s24 = smov 4   ;;  %p169_p12 = scmp.lt.s32.totalorder %s657_s16, 19 }
  0x18   : > { %491 = dma.hbm_to_vmem [thread:$0]  (!%p489_p10), %s160_s9, 1024, %s162_s5, %s148_s17, %s659_s21, %s660_s20, %s661_s24  }
  0x19   : > { %p170_p13 = pnand %p438_p11, %p169_p12 }
  0x1a   : > { %s175_s25 = sand.u32 (!%p170_p13), 1, %s633_s10  }
  0x1b   : > { %173 = sbr.rel (%p170_p13) target bundleno = 209 (0xd1), region = 28  ;;  %s439_s27 = sshll.u32 (!%p170_p13), %s175_s25, 6 }
  0x1c   : > { %s176_s28 = scalar_lea.sflag (!%p170_p13), [#allocation3], %s175_s25  ;;  %s179_s30 = scalar_lea.vmem (!%p170_p13), [#allocation2], %s439_s27 }
  0x20   : > { %624 = dma.done.wait (%p735_p7), %s176_s28, 1024  }
  0x21   : > { %626 = vsyncadd (%p735_p7), %s176_s28, 4294966272  ;;  %p214_p0 = scmp.lt.s32.totalorder %s641_s12, 8  ;;  %p223_p1 = scmp.lt.s32.totalorder %s645_s13, 1 }
  0x22   : > { %p442_p2 = scmp.ne.s32.totalorder %s641_s12, 0 }
  0x23   : > { %s215_s22 = scalar_select %p214_p0, %s641_s12, 8 }
  0x24   : > { %s816_s13 = smov (!%p223_p1, %s645_s13), 1  ;;  %232 = sbr.rel (%p442_p2) target bundleno = 43 (0x2b), region = 36 }
  0x25   : > { %s440_s26 = sshll.u32 %s215_s22, 2  ;;  %s441_s6 = sshll.u32 %s816_s13, 3 }
  0x26   : > { %s219_s5 = scalar_lea.vmem %s797_s0, %s440_s26  ;;  %s228_s9 = scalar_lea.vmem %s799_s2, %s441_s6 }
  0x29   : > { %v662_v0 = vmov 0.0  }
  0x2a   : > { %233 = vst [vmem:[%s228_s9] sm:$0xff] %v662_v0 }
  0x2b PF: > { %v485_v1 = vld [vmem:[%s179_s30 + $0x38] sm:$0xff]  ;;  %v484_v2 = vld [vmem:[%s179_s30 + $0x30] sm:$0xff]  ;;  %v483_v3 = vld [vmem:[%s179_s30 + $0x28] sm:$0xff] }
  0x2c   : > { %300 = vmatpush.bf16.msra.mxu0 %v485_v1  ;;  %v482_v4 = vld [vmem:[%s179_s30 + $0x20] sm:$0xff]  ;;  %v481_v5 = vld [vmem:[%s179_s30 + $0x18] sm:$0xff]  ;;  %v480_v6 = vld [vmem:[%s179_s30 + $0x10] sm:$0xff] }
  0x2d   : > { %v479_v7 = vld [vmem:[%s179_s30 + $0x8] sm:$0xff]  ;;  %v478_v8 = vld [vmem:[%s179_s30] sm:$0xff] }
  0x2e   : > { %v235_v9 = vld [vmem:[%s219_s5] sm:$0xf] }
  0x30   : > { %301 = vmatpush.bf16.msra.mxu0 %v484_v2 }
  0x31   : > { %v234_v10 = vld [vmem:[%s228_s9] sm:$0xff] }
  0x34   : > { %302 = vmatpush.bf16.msra.mxu0 %v483_v3 }
  0x38   : > { %303 = vmatpush.bf16.msra.mxu0 %v482_v4 }
  0x3c   : > { %304 = vmatpush.bf16.msra.mxu0 %v481_v5 }
  0x40   : > { %305 = vmatpush.bf16.msra.mxu0 %v480_v6 }
  0x44   : > { %306 = vmatpush.bf16.msra.mxu0 %v479_v7 }
  0x48   : > { %307 = vmatpush.bf16.msra.mxu0 %v478_v8 }
  0x4b   : > { %308 = vmatmul.bf16.vlgmr.msra.gmra.mxu0 %v235_v9 }
  0xc8   : > { %v309_v11 = vpop.f32.mrf.mxu0 }
  0xc9   : > { %v313_v12 = vadd.f32 %v309_v11, %v234_v10 }
  0xcb   : > { %314 = vst [vmem:[%s228_s9] sm:$0xff] %v313_v12 }
  0xd0   : > { %v311_v13 = vpop.f32.mrf.mxu0 }
  0xd1 PF: > { %s15_s16 = sadd.s32 1, %s657_s16   ;;  %s802_s9 = smov %s633_s10 }
  0xd2   : > { %p12_p3 = scmp.ge.s32.totalorder %s15_s16, 20   ;;  %s803_s10 = smov %s637_s11 }
  0xd3   : > { %s804_s11 = smov %s745_s29  ;;  %s805_s12 = smov %s649_s14 }
  0xd4   : > { %s806_s13 = smov %s653_s15  ;;  %s807_s14 = smov %s810_s18 }
  0xd5   : > { %s808_s15 = smov %s814_s19  ;;  %14 = sbr.rel (!%p12_p3) target bundleno = 5 (0x5), region = 75 }
  0xda   :  { %342 = vsyncpa [#allocation3], 1 }
  0xdb   :  { %344 = vsyncpa [#allocation3 + $0x1], 1 }

// kernel: forward.43
= control target key start
LH: loop header
LB: loop body
LE: loop exit
PB: predicated region body
PF: predicated region fallthrough
CT: control target
= control target key end

     0   :  { %s61_s0 = inlined_call_operand.vmem [shape: f32[8,256], index: 0, kind: input, shape index: {}]   ;;  %s62_s1 = inlined_call_operand.vmem [shape: f32[8,256], index: 1, kind: input, shape index: {}]   ;;  %s63_s2 = inlined_call_operand.vmem [shape: bf16[8,256], index: 2, kind: output, shape index: {}]  }
   0x1   :  { %v11_v0 = vld [vmem:[%s62_s1] sm:$0xff]  ;;  %v12_v1 = vld [vmem:[%s62_s1 + $0x8] sm:$0xff] }
   0x2   :  { %v13_v2 = vld [vmem:[%s61_s0] sm:$0xff]  ;;  %v14_v3 = vld [vmem:[%s61_s0 + $0x8] sm:$0xff]  ;;  %v15_v4 = vperm.slane %v11_v0, 0  ;;  %v16_v5 = vperm.slane %v12_v1, 0  ;;  %v19_v6 = vperm.slane %v11_v0, 1  ;;  %v20_v7 = vperm.slane %v12_v1, 1 }
   0x4   :  { %v17_v8 = vmul.f32 %v15_v4, %v13_v2  ;;  %v18_v9 = vmul.f32 %v16_v5, %v14_v3 }
   0x6   :  { %v21_v10 = vadd.f32 %v19_v6, %v17_v8  ;;  %v22_v11 = vadd.f32 %v20_v7, %v18_v9 }
   0x8   :  { %v23_v12 = vmax.f32 %v21_v10, 0.0  ;;  %v24_v13 = vmax.f32 %v22_v11, 0.0 }
   0xa   :  { %v25_v14 = vpack.c.bf16 %v24_v13, %v23_v12 }
   0xc   :  { %26 = vst [vmem:[%s63_s2] sm:$0xff] %v25_v14 }

// kernel: forward.44
= control target key start
LH: loop header
LB: loop body
LE: loop exit
PB: predicated region body
PF: predicated region fallthrough
CT: control target
= control target key end

     0   :  { %7 = vsyncpa [#allocation3], 0  ;;  %s952_s0 = inlined_call_operand.vmem [shape: bf16[8,2304], index: 0, kind: input, shape index: {}]   ;;  %s953_s1 = inlined_call_operand.hbm [shape: bf16[2304,256], index: 1, kind: input, shape index: {}]   ;;  %s954_s2 = inlined_call_operand.vmem [shape: f32[8,256], index: 2, kind: output, shape index: {}]  }
   0x1   :  { %9 = vsyncpa [#allocation3 + $0x1], 0  ;;  %s808_s9 = smov 0   ;;  %s810_s10 = smov 0  }
   0x2   :  { %s812_s11 = smov 0   ;;  %s814_s12 = smov 0  }
   0x3   :  { %s816_s13 = smov 0   ;;  %s818_s14 = smov 0  }
   0x4   :  { %s820_s15 = smov 0   ;;  %s822_s16 = smov 0  }
   0x5 LB: > { %s519_s17 = sadd.s32 4294967295, %s787_s16   ;;  %s27_s18 = sadd.s32 1, %s779_s14  ;;  %s787_s16 = sphi %s822_s16, %s15_s16   ;;  %s783_s15 = sphi %s820_s15, %s963_s15   ;;  %s779_s14 = sphi %s818_s14, %s962_s14   ;;  %s775_s13 = sphi %s816_s13, %s961_s13   ;;  %s771_s12 = sphi %s814_s12, %s960_s12   ;;  %s767_s11 = sphi %s812_s11, %s959_s11   ;;  %s763_s10 = sphi %s810_s10, %s958_s10   ;;  %s759_s9 = sphi %s808_s9, %s957_s9  }
   0x6   : > { %p28_p0 = scmp.ge.s32.totalorder %s27_s18, 9  ;;  %s30_s19 = sadd.s32 1, %s783_s15 }
   0x7   : > { %s71_s20 = sadd.s32 1, %s767_s11  ;;  %p78_p1 = scmp.ne.s32.totalorder %s767_s11, %s763_s10 }
   0x8   : > { %s965_s18 = smov (%p28_p0, %s27_s18), 0  ;;  %s967_s19 = smov (!%p28_p0, %s30_s19), %s783_s15 }
   0x9   : > { %s66_s21 = ssub.s32 %s779_s14, %s965_s18  ;;  %p79_p2 = scmp.eq.s32.totalorder %s787_s16, 0 }
   0xa   : > { %p32_p3 = scmp.ge.s32.totalorder %s967_s19, 2  ;;  %p84_p4 = scmp.ne.s32.totalorder %s763_s10, %s759_s9 }
   0xb   : > { %p859_p5 = por %p79_p2, %p78_p1  ;;  %p85_p6 = scmp.eq.s32.totalorder %s519_s17, 0 }
   0xc   : > { %s969_s19 = smov (%p32_p3, %s967_s19), 0  ;;  %p622_p8 = scmp.lt.s32.totalorder %s787_s16, 18 }
   0xd   : > { %p865_p7 = por %p85_p6, %p84_p4  ;;  %s67_s24 = ssub.s32 %s783_s15, %s969_s19 }
   0xe   : > { %s68_s25 = sor.u32 %s67_s24, %s66_s21  ;;  %s149_s26 = sand.u32 1, %s767_s11  }
   0xf   : > { %p69_p9 = scmp.eq.s32.totalorder %s68_s25, 0  ;;  %s523_s27 = sshll.u32 %s149_s26, 7 }
  0x10   : > { %s599_s28 = sshll.u32 %s779_s14, 6  ;;  %s153_s4 = scalar_lea.vmem [#allocation2], %s523_s27 }
  0x11   : > { %s875_s29 = scalar_select %p69_p9, %s767_s11, %s71_s20  }
  0x12   : > { %s158_s30 = sadd.s32 %s783_s15, %s599_s28  ;;  %s163_s5 = sshll.u32 %s153_s4, 4  ;;  %s164_s5 = int_to_ptr.vmem [resolvable:$true] %s163_s5 }
  0x13   : > { %s526_s3 = sshll.u32 %s158_s30, 2  ;;  %p619_p10 = pnand %p622_p8, %p859_p5 }
  0x14   : > { %s160_s8 = scalar_lea.hbm %s953_s1, %s526_s3  ;;  %p527_p11 = scmp.ge.s32.totalorder %s787_s16, 1 }
  0x15   : > { %s161_s9 = sshll.u32 %s160_s8, 4  ;;  %s150_s17 = scalar_lea.sflag [#allocation3], %s149_s26  ;;  %s162_s9 = int_to_ptr.hbm [resolvable:$true] %s161_s9 }
  0x16   : > { %s789_s21 = smov 128   ;;  %s790_s20 = smov 64  }
  0x17   : > { %s791_s24 = smov 4   ;;  %p171_p12 = scmp.lt.s32.totalorder %s787_s16, 19 }
  0x18   : > { %621 = dma.hbm_to_vmem [thread:$0]  (!%p619_p10), %s162_s9, 2048, %s164_s5, %s150_s17, %s789_s21, %s790_s20, %s791_s24  }
  0x19   : > { %p172_p13 = pnand %p527_p11, %p171_p12 }
  0x1a   : > { %s177_s25 = sand.u32 (!%p172_p13), 1, %s763_s10  }
  0x1b   : > { %175 = sbr.rel (%p172_p13) target bundleno = 212 (0xd4), region = 28  ;;  %s528_s27 = sshll.u32 (!%p172_p13), %s177_s25, 7 }
  0x1c   : > { %s178_s28 = scalar_lea.sflag (!%p172_p13), [#allocation3], %s177_s25  ;;  %s888_s30 = scalar_lea.vmem (!%p172_p13), [#allocation2], %s528_s27 }
  0x20   : > { %754 = dma.done.wait (%p865_p7), %s178_s28, 2048  }
  0x21   : > { %756 = vsyncadd (%p865_p7), %s178_s28, 4294965248  ;;  %s529_s22 = sshll.u32 %s771_s12, 1  ;;  %p228_p0 = scmp.lt.s32.totalorder %s775_s13, 1 }
  0x22   : > { %p218_p1 = scmp.lt.s32.totalorder %s529_s22, 17  ;;  %p532_p2 = scmp.ne.s32.totalorder %s771_s12, 0 }
  0x23   : > { %s971_s13 = smov (!%p228_p0, %s775_s13), 1 }
  0x24   : > { %s973_s22 = smov (!%p218_p1, %s529_s22), 17  ;;  %s531_s26 = sshll.u32 %s971_s13, 3 }
  0x25   : > { %s530_s3 = sshll.u32 %s973_s22, 2  ;;  %s900_s6 = scalar_lea.vmem %s954_s2, %s531_s26 }
  0x26   : > { %s905_s23 = scalar_lea.vmem %s952_s0, %s530_s3  ;;  %237 = sbr.rel (%p532_p2) target bundleno = 45 (0x2d), region = 36 }
  0x2b   : > { %v792_v0 = vmov 0.0  }
  0x2c   : > { %238 = vst [vmem:[%s900_s6] sm:$0xff] %v792_v0 }
  0x2d PF: > { %v607_v1 = vld [vmem:[%s888_s30 + $0x38] sm:$0xff]  ;;  %v606_v3 = vld [vmem:[%s888_s30 + $0x30] sm:$0xff]  ;;  %v605_v5 = vld [vmem:[%s888_s30 + $0x28] sm:$0xff] }
  0x2e   : > { %v615_v2 = vld [vmem:[%s888_s30 + $0x78] sm:$0xff]  ;;  %376 = vmatpush.bf16.msra.mxu0 %v607_v1  ;;  %v614_v4 = vld [vmem:[%s888_s30 + $0x70] sm:$0xff]  ;;  %v613_v6 = vld [vmem:[%s888_s30 + $0x68] sm:$0xff] }
  0x2f   : > { %389 = vmatpush.bf16.msra.mxu1 %v615_v2  ;;  %v604_v7 = vld [vmem:[%s888_s30 + $0x20] sm:$0xff]  ;;  %v603_v9 = vld [vmem:[%s888_s30 + $0x18] sm:$0xff]  ;;  %v602_v11 = vld [vmem:[%s888_s30 + $0x10] sm:$0xff] }
  0x30   : > { %v612_v8 = vld [vmem:[%s888_s30 + $0x60] sm:$0xff]  ;;  %v611_v10 = vld [vmem:[%s888_s30 + $0x58] sm:$0xff]  ;;  %v610_v12 = vld [vmem:[%s888_s30 + $0x50] sm:$0xff] }
  0x31   : > { %v601_v13 = vld [vmem:[%s888_s30 + $0x8] sm:$0xff]  ;;  %v240_v15 = vld [vmem:[%s905_s23] sm:$0xff] }
  0x32   : > { %377 = vmatpush.bf16.msra.mxu0 %v606_v3  ;;  %v609_v14 = vld [vmem:[%s888_s30 + $0x48] sm:$0xff]  ;;  %v274_v16 = vunpack.c.l.b16 %v240_v15  ;;  %v275_v17 = vunpack.c.h.b16 %v240_v15  ;;  %v600_v18 = vld [vmem:[%s888_s30] sm:$0xff] }
  0x33   : > { %390 = vmatpush.bf16.msra.mxu1 %v614_v4  ;;  %v608_v19 = vld [vmem:[%s888_s30 + $0x40] sm:$0xff] }
  0x34   : > { %v276_v20 = vpack.c.b16 %v274_v16, %v274_v16  ;;  %v277_v21 = vpack.c.b16 %v275_v17, %v275_v17  ;;  %v239_v23 = vld [vmem:[%s900_s6] sm:$0xff] }
  0x36   : > { %378 = vmatpush.bf16.msra.mxu0 %v605_v5 }
  0x37   : > { %391 = vmatpush.bf16.msra.mxu1 %v613_v6 }
  0x3a   : > { %379 = vmatpush.bf16.msra.mxu0 %v604_v7 }
  0x3b   : > { %392 = vmatpush.bf16.msra.mxu1 %v612_v8 }
  0x3e   : > { %380 = vmatpush.bf16.msra.mxu0 %v603_v9 }
  0x3f   : > { %393 = vmatpush.bf16.msra.mxu1 %v611_v10 }
  0x42   : > { %381 = vmatpush.bf16.msra.mxu0 %v602_v11 }
  0x43   : > { %394 = vmatpush.bf16.msra.mxu1 %v610_v12 }
  0x46   : > { %382 = vmatpush.bf16.msra.mxu0 %v601_v13 }
  0x47   : > { %395 = vmatpush.bf16.msra.mxu1 %v609_v14 }
  0x4a   : > { %383 = vmatpush.bf16.msra.mxu0 %v600_v18 }
  0x4b   : > { %396 = vmatpush.bf16.msra.mxu1 %v608_v19 }
  0x4d   : > { %384 = vmatmul.bf16.vlgmr.msra.gmra.mxu0 %v276_v20 }
  0x4e   : > { %397 = vmatmul.bf16.vlgmr.msra.gmra.mxu1 %v277_v21 }
  0xca   : > { %v385_v22 = vpop.f32.mrf.mxu0 }
  0xcb   : > { %v398_v24 = vpop.f32.mrf.mxu1 }
  0xcc   : > { %v399_v25 = vadd.f32 %v398_v24, %v385_v22 }
  0xce   : > { %v402_v26 = vadd.f32 %v399_v25, %v239_v23 }
  0xd0   : > { %403 = vst [vmem:[%s900_s6] sm:$0xff] %v402_v26 }
  0xd2   : > { %v387_v27 = vpop.f32.mrf.mxu0 }
  0xd3   : > { %v400_v28 = vpop.f32.mrf.mxu1 }
  0xd4 PF: > { %s15_s16 = sadd.s32 1, %s787_s16   ;;  %s957_s9 = smov %s763_s10 }
  0xd5   : > { %p12_p3 = scmp.ge.s32.totalorder %s15_s16, 20   ;;  %s958_s10 = smov %s767_s11 }
  0xd6   : > { %s959_s11 = smov %s875_s29  ;;  %s960_s12 = smov %s779_s14 }
  0xd7   : > { %s961_s13 = smov %s783_s15  ;;  %s962_s14 = smov %s965_s18 }
  0xd8   : > { %s963_s15 = smov %s969_s19  ;;  %14 = sbr.rel (!%p12_p3) target bundleno = 5 (0x5), region = 75 }
  0xdd   :  { %431 = vsyncpa [#allocation3], 1 }
  0xde   :  { %433 = vsyncpa [#allocation3 + $0x1], 1 }

// kernel: forward.46
= control target key start
LH: loop header
LB: loop body
LE: loop exit
PB: predicated region body
PF: predicated region fallthrough
CT: control target
= control target key end

     0   :  { %s103_s0 = inlined_call_operand.vmem [shape: f32[8,256], index: 0, kind: input, shape index: {}]   ;;  %s104_s1 = inlined_call_operand.vmem [shape: f32[8,256], index: 1, kind: input, shape index: {}]   ;;  %s105_s2 = inlined_call_operand.vmem [shape: f32[8,256], index: 2, kind: input, shape index: {}]   ;;  %s106_s3 = inlined_call_operand.vmem [shape: f32[8,256], index: 3, kind: input, shape index: {}]   ;;  %s107_s4 = inlined_call_operand.vmem [shape: bf16[8,256], index: 4, kind: output, shape index: {}]  }
   0x1   :  { %v17_v0 = vld [vmem:[%s105_s2] sm:$0xff]  ;;  %v18_v1 = vld [vmem:[%s105_s2 + $0x8] sm:$0xff] }
   0x2   :  { %v19_v2 = vld [vmem:[%s106_s3] sm:$0xff]  ;;  %v20_v3 = vld [vmem:[%s106_s3 + $0x8] sm:$0xff]  ;;  %v25_v6 = vperm.slane %v17_v0, 0  ;;  %v26_v7 = vperm.slane %v18_v1, 0  ;;  %v29_v8 = vperm.slane %v17_v0, 1  ;;  %v30_v11 = vperm.slane %v18_v1, 1 }
   0x3   :  { %v21_v4 = vld [vmem:[%s103_s0] sm:$0xff]  ;;  %v22_v5 = vld [vmem:[%s103_s0 + $0x8] sm:$0xff]  ;;  %v33_v12 = vperm.slane %v19_v2, 0  ;;  %v34_v13 = vperm.slane %v20_v3, 0  ;;  %v39_v20 = vperm.slane %v19_v2, 1  ;;  %v40_v21 = vperm.slane %v20_v3, 1 }
   0x4   :  { %v23_v9 = vld [vmem:[%s104_s1] sm:$0xff]  ;;  %v24_v10 = vld [vmem:[%s104_s1 + $0x8] sm:$0xff]  ;;  %v27_v14 = vmul.f32 %v25_v6, %v21_v4  ;;  %v28_v15 = vmul.f32 %v26_v7, %v22_v5 }
   0x5   :  { %v35_v16 = vmul.f32 %v33_v12, %v23_v9  ;;  %v36_v17 = vmul.f32 %v34_v13, %v24_v10 }
   0x6   :  { %v31_v18 = vadd.f32 %v29_v8, %v27_v14  ;;  %v32_v19 = vadd.f32 %v30_v11, %v28_v15 }
   0x8   :  { %v37_v22 = vadd.f32 %v35_v16, %v31_v18  ;;  %v38_v23 = vadd.f32 %v36_v17, %v32_v19 }
   0xa   :  { %v41_v24 = vadd.f32 %v39_v20, %v37_v22  ;;  %v42_v25 = vadd.f32 %v40_v21, %v38_v23 }
   0xc   :  { %v43_v26 = vmax.f32 %v41_v24, 0.0  ;;  %v44_v27 = vmax.f32 %v42_v25, 0.0 }
   0xe   :  { %v45_v28 = vpack.c.bf16 %v44_v27, %v43_v26 }
  0x10   :  { %46 = vst [vmem:[%s107_s4] sm:$0xff] %v45_v28 }

// kernel: forward.52
= control target key start
LH: loop header
LB: loop body
LE: loop exit
PB: predicated region body
PF: predicated region fallthrough
CT: control target
= control target key end

     0   :  { %s1063_s9 = smov 0   ;;  %s1065_s10 = smov 0   ;;  %s1301_s0 = inlined_call_operand.vmem [shape: bf16[8,2304], index: 0, kind: input, shape index: {}]   ;;  %s1302_s1 = inlined_call_operand.vmem [shape: bf16[2304,512], index: 1, kind: input, shape index: {}]   ;;  %s1303_s2 = inlined_call_operand.vmem [shape: f32[8,512], index: 2, kind: output, shape index: {}]  }
   0x1   :  { %s1067_s11 = smov 0   ;;  %s1069_s12 = smov 0  }
   0x2   :  { %s1071_s13 = smov 0   ;;  %s1073_s14 = smov 0  }
   0x3   :  { %s1075_s15 = smov 0  }
   0x4 LB: > { %s24_s16 = sadd.s32 1, %s1037_s13  ;;  %s27_s17 = sadd.s32 1, %s1041_s14  ;;  %s1045_s15 = sphi %s1075_s15, %s12_s15   ;;  %s1041_s14 = sphi %s1073_s14, %s1309_s14   ;;  %s1037_s13 = sphi %s1071_s13, %s1308_s13   ;;  %s1033_s12 = sphi %s1069_s12, %s1307_s12   ;;  %s1029_s11 = sphi %s1067_s11, %s1306_s11   ;;  %s1025_s10 = sphi %s1065_s10, %s1305_s10   ;;  %s1021_s9 = sphi %s1063_s9, %s1304_s9  }
   0x5   : > { %p25_p0 = scmp.ge.s32.totalorder %s24_s16, 9  ;;  %p75_p1 = scmp.ne.s32.totalorder %s1025_s10, %s1021_s9 }
   0x6   : > { %p76_p2 = scmp.eq.s32.totalorder %s1045_s15, 0  ;;  %s68_s21 = sadd.s32 1, %s1025_s10 }
   0x7   : > { %s1311_s16 = smov (%p25_p0, %s24_s16), 0  ;;  %s1313_s17 = smov (!%p25_p0, %s27_s17), %s1041_s14 }
   0x8   : > { %p77_p3 = por %p76_p2, %p75_p1  ;;  %p29_p4 = scmp.ge.s32.totalorder %s1313_s17, 2 }
   0x9   : > { %s63_s18 = ssub.s32 %s1037_s13, %s1311_s16  ;;  %p758_p6 = scmp.ge.s32.totalorder %s1045_s15, 18 }
   0xa   : > { %s1315_s17 = smov (%p29_p4, %s1313_s17), 0 }
   0xb   : > { %s64_s19 = ssub.s32 %s1041_s14, %s1315_s17  ;;  %129 = sbr.rel (%p758_p6) target bundleno = 55 (0x37), region = 16 }
   0xc   : > { %s65_s20 = sor.u32 %s64_s19, %s63_s18 }
   0xd   : > { %p66_p5 = scmp.eq.s32.totalorder %s65_s20, 0 }
   0xf   : > { %s1114_s22 = scalar_select %p66_p5, %s1025_s10, %s68_s21  }
  0x10   : > { %145 = sbr.rel (!%p77_p3) target bundleno = 55 (0x37), region = 24  ;;  %s147_s23 = sand.u32 (%p77_p3), 1, %s1025_s10  }
  0x11   : > { %s761_s24 = sshll.u32 (%p77_p3), %s1041_s14, 1  ;;  %s759_s25 = sshll.u32 (%p77_p3), %s147_s23, 8 }
  0x12   : > { %s901_s26 = sshll.u32 (%p77_p3), %s1037_s13, 7  ;;  %s1128_s4 = scalar_lea.vmem (%p77_p3), [#allocation2], %s759_s25 }
  0x13   : > { %s153_s27 = sadd.s32 (%p77_p3), %s901_s26, %s761_s24 }
  0x14   : > { %s763_s28 = sshll.u32 (%p77_p3), %s153_s27, 2 }
  0x15   : > { %s1123_s3 = scalar_lea.vmem %s1302_s1, %s763_s28 }
  0x16   : > { %v246_v0 = vld [vmem:[%s1123_s3] sm:$0xff]  ;;  %v248_v1 = vld [vmem:[%s1123_s3 + $0x10] sm:$0xff] }
  0x17   : > { %v250_v2 = vld [vmem:[%s1123_s3 + $0x20] sm:$0xff]  ;;  %247 = vst [vmem:[%s1128_s4] sm:$0xff] %v246_v0  ;;  %v252_v3 = vld [vmem:[%s1123_s3 + $0x30] sm:$0xff] }
  0x18   : > { %249 = vst [vmem:[%s1128_s4 + $0x8] sm:$0xff] %v248_v1  ;;  %v254_v4 = vld [vmem:[%s1123_s3 + $0x40] sm:$0xff]  ;;  %v256_v5 = vld [vmem:[%s1123_s3 + $0x50] sm:$0xff] }
  0x19   : > { %251 = vst [vmem:[%s1128_s4 + $0x10] sm:$0xff] %v250_v2  ;;  %v258_v6 = vld [vmem:[%s1123_s3 + $0x60] sm:$0xff]  ;;  %v260_v7 = vld [vmem:[%s1123_s3 + $0x70] sm:$0xff] }
  0x1a   : > { %253 = vst [vmem:[%s1128_s4 + $0x18] sm:$0xff] %v252_v3  ;;  %v262_v8 = vld [vmem:[%s1123_s3 + $0x80] sm:$0xff]  ;;  %v264_v9 = vld [vmem:[%s1123_s3 + $0x90] sm:$0xff] }
  0x1b   : > { %255 = vst [vmem:[%s1128_s4 + $0x20] sm:$0xff] %v254_v4  ;;  %v266_v10 = vld [vmem:[%s1123_s3 + $0xa0] sm:$0xff]  ;;  %v268_v11 = vld [vmem:[%s1123_s3 + $0xb0] sm:$0xff] }
  0x1c   : > { %257 = vst [vmem:[%s1128_s4 + $0x28] sm:$0xff] %v256_v5  ;;  %v270_v12 = vld [vmem:[%s1123_s3 + $0xc0] sm:$0xff]  ;;  %v272_v13 = vld [vmem:[%s1123_s3 + $0xd0] sm:$0xff] }
  0x1d   : > { %259 = vst [vmem:[%s1128_s4 + $0x30] sm:$0xff] %v258_v6  ;;  %v274_v14 = vld [vmem:[%s1123_s3 + $0xe0] sm:$0xff]  ;;  %v276_v15 = vld [vmem:[%s1123_s3 + $0xf0] sm:$0xff] }
  0x1e   : > { %261 = vst [vmem:[%s1128_s4 + $0x38] sm:$0xff] %v260_v7  ;;  %v278_v16 = vld [vmem:[%s1123_s3 + $0x100] sm:$0xff]  ;;  %v280_v17 = vld [vmem:[%s1123_s3 + $0x110] sm:$0xff] }
  0x1f   : > { %263 = vst [vmem:[%s1128_s4 + $0x40] sm:$0xff] %v262_v8  ;;  %v282_v18 = vld [vmem:[%s1123_s3 + $0x120] sm:$0xff]  ;;  %v284_v19 = vld [vmem:[%s1123_s3 + $0x130] sm:$0xff] }
  0x20   : > { %265 = vst [vmem:[%s1128_s4 + $0x48] sm:$0xff] %v264_v9  ;;  %v286_v20 = vld [vmem:[%s1123_s3 + $0x140] sm:$0xff]  ;;  %v288_v21 = vld [vmem:[%s1123_s3 + $0x150] sm:$0xff] }
  0x21   : > { %267 = vst [vmem:[%s1128_s4 + $0x50] sm:$0xff] %v266_v10  ;;  %v290_v22 = vld [vmem:[%s1123_s3 + $0x160] sm:$0xff]  ;;  %v292_v23 = vld [vmem:[%s1123_s3 + $0x170] sm:$0xff] }
  0x22   : > { %269 = vst [vmem:[%s1128_s4 + $0x58] sm:$0xff] %v268_v11  ;;  %v294_v24 = vld [vmem:[%s1123_s3 + $0x180] sm:$0xff]  ;;  %v296_v25 = vld [vmem:[%s1123_s3 + $0x190] sm:$0xff] }
  0x23   : > { %271 = vst [vmem:[%s1128_s4 + $0x60] sm:$0xff] %v270_v12  ;;  %v298_v26 = vld [vmem:[%s1123_s3 + $0x1a0] sm:$0xff]  ;;  %v300_v27 = vld [vmem:[%s1123_s3 + $0x1b0] sm:$0xff] }
  0x24   : > { %273 = vst [vmem:[%s1128_s4 + $0x68] sm:$0xff] %v272_v13  ;;  %v302_v28 = vld [vmem:[%s1123_s3 + $0x1c0] sm:$0xff]  ;;  %v304_v29 = vld [vmem:[%s1123_s3 + $0x1d0] sm:$0xff] }
  0x25   : > { %275 = vst [vmem:[%s1128_s4 + $0x70] sm:$0xff] %v274_v14  ;;  %v306_v30 = vld [vmem:[%s1123_s3 + $0x1e0] sm:$0xff]  ;;  %v308_v31 = vld [vmem:[%s1123_s3 + $0x1f0] sm:$0xff] }
  0x26   : > { %277 = vst [vmem:[%s1128_s4 + $0x78] sm:$0xff] %v276_v15 }
  0x27   : > { %279 = vst [vmem:[%s1128_s4 + $0x80] sm:$0xff] %v278_v16 }
  0x28   : > { %281 = vst [vmem:[%s1128_s4 + $0x88] sm:$0xff] %v280_v17 }
  0x29   : > { %283 = vst [vmem:[%s1128_s4 + $0x90] sm:$0xff] %v282_v18 }
  0x2a   : > { %285 = vst [vmem:[%s1128_s4 + $0x98] sm:$0xff] %v284_v19 }
  0x2b   : > { %287 = vst [vmem:[%s1128_s4 + $0xa0] sm:$0xff] %v286_v20 }
  0x2c   : > { %289 = vst [vmem:[%s1128_s4 + $0xa8] sm:$0xff] %v288_v21 }
  0x2d   : > { %291 = vst [vmem:[%s1128_s4 + $0xb0] sm:$0xff] %v290_v22 }
  0x2e   : > { %293 = vst [vmem:[%s1128_s4 + $0xb8] sm:$0xff] %v292_v23 }
  0x2f   : > { %295 = vst [vmem:[%s1128_s4 + $0xc0] sm:$0xff] %v294_v24 }
  0x30   : > { %297 = vst [vmem:[%s1128_s4 + $0xc8] sm:$0xff] %v296_v25 }
  0x31   : > { %299 = vst [vmem:[%s1128_s4 + $0xd0] sm:$0xff] %v298_v26 }
  0x32   : > { %301 = vst [vmem:[%s1128_s4 + $0xd8] sm:$0xff] %v300_v27 }
  0x33   : > { %303 = vst [vmem:[%s1128_s4 + $0xe0] sm:$0xff] %v302_v28 }
  0x34   : > { %305 = vst [vmem:[%s1128_s4 + $0xe8] sm:$0xff] %v304_v29 }
  0x35   : > { %307 = vst [vmem:[%s1128_s4 + $0xf0] sm:$0xff] %v306_v30 }
  0x36   : > { %309 = vst [vmem:[%s1128_s4 + $0xf8] sm:$0xff] %v308_v31 }
  0x37 PF: > { %p764_p7 = scmp.ge.s32.totalorder %s1045_s15, 1  ;;  %p314_p8 = scmp.lt.s32.totalorder %s1045_s15, 19 }
  0x39   : > { %p315_p9 = pnand %p764_p7, %p314_p8 }
  0x3a   : > { %s321_s5 = sand.u32 (!%p315_p9), 1, %s1021_s9   ;;  %s766_s6 = sshll.u32 (!%p315_p9), %s1029_s11, 1 }
  0x3b   : > { %318 = sbr.rel (%p315_p9) target bundleno = 251 (0xfb), region = 62  ;;  %s765_s7 = sshll.u32 (!%p315_p9), %s321_s5, 8 }
  0x3c   : > { %p358_p10 = scmp.lt.s32.totalorder (!%p315_p9), %s766_s6, 17  ;;  %s768_s8 = sshll.u32 (!%p315_p9), %s1033_s12, 1 }
  0x3d   : > { %p370_p11 = scmp.lt.s32.totalorder (!%p315_p9), %s768_s8, 3  ;;  %s1206_s9 = scalar_lea.vmem (!%p315_p9), [#allocation2], %s765_s7 }
  0x3e   : > { %p770_p12 = scmp.ne.s32.totalorder (!%p315_p9), %s1029_s11, 0 }
  0x40   : > { %s1317_s6 = smov (!%p358_p10, %s766_s6), 17  ;;  %s1319_s8 = smov (!%p370_p11, %s768_s8), 3 }
  0x41   : > { %s767_s18 = sshll.u32 %s1317_s6, 2  ;;  %s769_s23 = sshll.u32 %s1319_s8, 3 }
  0x42   : > { %s1199_s21 = scalar_lea.vmem %s1301_s0, %s767_s18  ;;  %s1204_s26 = scalar_lea.vmem %s1303_s2, %s769_s23 }
  0x43   : > { %380 = sbr.rel (%p770_p12) target bundleno = 75 (0x4b), region = 70 }
  0x48   : > { %v1047_v32 = vmov 0.0  }
  0x49   : > { %381 = vst [vmem:[%s1204_s26] sm:$0xff] %v1047_v32 }
  0x4a   : > { %382 = vst [vmem:[%s1204_s26 + $0x8] sm:$0xff] %v1047_v32 }
  0x4b PF: > { %v829_v33 = vld [vmem:[%s1206_s9 + $0x70] sm:$0xf]  ;;  %v917_v34 = vld [vmem:[%s1206_s9 + $0x74] sm:$0xf0]  ;;  %v916_v38 = vld [vmem:[%s1206_s9 + $0x74] sm:$0xf] }
  0x4c   : > { %v893_v35 = vld [vmem:[%s1206_s9 + $0xf0] sm:$0xf]  ;;  %v830_v36 = vor.u32 %v917_v34, %v829_v33  ;;  %v933_v37 = vld [vmem:[%s1206_s9 + $0xf4] sm:$0xf0]  ;;  %v831_v39 = vld [vmem:[%s1206_s9 + $0x78] sm:$0xf0] }
  0x4d   : > { %v894_v40 = vor.u32 %v933_v37, %v893_v35  ;;  %v834_v41 = vor.u32 %v916_v38, %v831_v39  ;;  %v932_v42 = vld [vmem:[%s1206_s9 + $0xf4] sm:$0xf]  ;;  %v895_v43 = vld [vmem:[%s1206_s9 + $0xf8] sm:$0xf0]  ;;  %v821_v44 = vld [vmem:[%s1206_s9 + $0x60] sm:$0xf] }
  0x4e   : > { %585 = vmatpush.bf16.msra.mxu0 %v830_v36  ;;  %v898_v45 = vor.u32 %v932_v42, %v895_v43  ;;  %v915_v46 = vld [vmem:[%s1206_s9 + $0x64] sm:$0xf0]  ;;  %v885_v47 = vld [vmem:[%s1206_s9 + $0xe0] sm:$0xf]  ;;  %v914_v51 = vld [vmem:[%s1206_s9 + $0x64] sm:$0xf] }
  0x4f   : > { %v931_v48 = vld [vmem:[%s1206_s9 + $0xe4] sm:$0xf0]  ;;  %598 = vmatpush.bf16.msra.mxu1 %v894_v40  ;;  %611 = vmatpush.bf16.msra.mxu2 %v834_v41  ;;  %v822_v49 = vor.u32 %v915_v46, %v821_v44  ;;  %v823_v52 = vld [vmem:[%s1206_s9 + $0x68] sm:$0xf0]  ;;  %v930_v53 = vld [vmem:[%s1206_s9 + $0xe4] sm:$0xf] }
  0x50   : > { %v886_v50 = vor.u32 %v931_v48, %v885_v47  ;;  %624 = vmatpush.bf16.msra.mxu3 %v898_v45  ;;  %v826_v54 = vor.u32 %v914_v51, %v823_v52  ;;  %v887_v55 = vld [vmem:[%s1206_s9 + $0xe8] sm:$0xf0]  ;;  %v813_v56 = vld [vmem:[%s1206_s9 + $0x50] sm:$0xf]  ;;  %v913_v57 = vld [vmem:[%s1206_s9 + $0x54] sm:$0xf0] }
  0x51   : > { %v890_v58 = vor.u32 %v930_v53, %v887_v55  ;;  %v877_v59 = vld [vmem:[%s1206_s9 + $0xd0] sm:$0xf]  ;;  %v929_v60 = vld [vmem:[%s1206_s9 + $0xd4] sm:$0xf0]  ;;  %v912_v61 = vld [vmem:[%s1206_s9 + $0x54] sm:$0xf]  ;;  %v814_v62 = vor.u32 %v913_v57, %v813_v56 }
  0x52   : > { %586 = vmatpush.bf16.msra.mxu0 %v822_v49  ;;  %v815_v63 = vld [vmem:[%s1206_s9 + $0x58] sm:$0xf0]  ;;  %v928_v0 = vld [vmem:[%s1206_s9 + $0xd4] sm:$0xf]  ;;  %v878_v2 = vor.u32 %v929_v60, %v877_v59  ;;  %v805_v4 = vld [vmem:[%s1206_s9 + $0x40] sm:$0xf] }
  0x53   : > { %v879_v1 = vld [vmem:[%s1206_s9 + $0xd8] sm:$0xf0]  ;;  %599 = vmatpush.bf16.msra.mxu1 %v886_v50  ;;  %612 = vmatpush.bf16.msra.mxu2 %v826_v54  ;;  %v818_v3 = vor.u32 %v912_v61, %v815_v63  ;;  %v911_v5 = vld [vmem:[%s1206_s9 + $0x44] sm:$0xf0]  ;;  %v869_v6 = vld [vmem:[%s1206_s9 + $0xc0] sm:$0xf] }
  0x54   : > { %625 = vmatpush.bf16.msra.mxu3 %v890_v58  ;;  %v882_v7 = vor.u32 %v928_v0, %v879_v1  ;;  %v927_v8 = vld [vmem:[%s1206_s9 + $0xc4] sm:$0xf0]  ;;  %v910_v9 = vld [vmem:[%s1206_s9 + $0x44] sm:$0xf]  ;;  %v807_v10 = vld [vmem:[%s1206_s9 + $0x48] sm:$0xf0]  ;;  %v806_v13 = vor.u32 %v911_v5, %v805_v4 }
  0x55   : > { %v926_v11 = vld [vmem:[%s1206_s9 + $0xc4] sm:$0xf]  ;;  %v871_v12 = vld [vmem:[%s1206_s9 + $0xc8] sm:$0xf0]  ;;  %v870_v14 = vor.u32 %v927_v8, %v869_v6  ;;  %v810_v15 = vor.u32 %v910_v9, %v807_v10  ;;  %v797_v16 = vld [vmem:[%s1206_s9 + $0x30] sm:$0xf] }
  0x56   : > { %587 = vmatpush.bf16.msra.mxu0 %v814_v62  ;;  %v909_v17 = vld [vmem:[%s1206_s9 + $0x34] sm:$0xf0]  ;;  %v861_v18 = vld [vmem:[%s1206_s9 + $0xb0] sm:$0xf]  ;;  %v874_v19 = vor.u32 %v926_v11, %v871_v12  ;;  %v908_v21 = vld [vmem:[%s1206_s9 + $0x34] sm:$0xf] }
  0x57   : > { %600 = vmatpush.bf16.msra.mxu1 %v878_v2  ;;  %613 = vmatpush.bf16.msra.mxu2 %v818_v3  ;;  %v925_v20 = vld [vmem:[%s1206_s9 + $0xb4] sm:$0xf0]  ;;  %v799_v22 = vld [vmem:[%s1206_s9 + $0x38] sm:$0xf0]  ;;  %v924_v23 = vld [vmem:[%s1206_s9 + $0xb4] sm:$0xf]  ;;  %v798_v25 = vor.u32 %v909_v17, %v797_v16 }
  0x58   : > { %626 = vmatpush.bf16.msra.mxu3 %v882_v7  ;;  %v863_v24 = vld [vmem:[%s1206_s9 + $0xb8] sm:$0xf0]  ;;  %v862_v26 = vor.u32 %v925_v20, %v861_v18  ;;  %v802_v27 = vor.u32 %v908_v21, %v799_v22  ;;  %v789_v28 = vld [vmem:[%s1206_s9 + $0x20] sm:$0xf]  ;;  %v907_v29 = vld [vmem:[%s1206_s9 + $0x24] sm:$0xf0] }
  0x59   : > { %v853_v30 = vld [vmem:[%s1206_s9 + $0xa0] sm:$0xf]  ;;  %v866_v31 = vor.u32 %v924_v23, %v863_v24  ;;  %v923_v32 = vld [vmem:[%s1206_s9 + $0xa4] sm:$0xf0]  ;;  %v906_v33 = vld [vmem:[%s1206_s9 + $0x24] sm:$0xf]  ;;  %v790_v37 = vor.u32 %v907_v29, %v789_v28 }
  0x5a   : > { %588 = vmatpush.bf16.msra.mxu0 %v806_v13  ;;  %v791_v34 = vld [vmem:[%s1206_s9 + $0x28] sm:$0xf0]  ;;  %v922_v35 = vld [vmem:[%s1206_s9 + $0xa4] sm:$0xf]  ;;  %v854_v38 = vor.u32 %v923_v32, %v853_v30  ;;  %v781_v40 = vld [vmem:[%s1206_s9 + $0x10] sm:$0xf] }
  0x5b   : > { %601 = vmatpush.bf16.msra.mxu1 %v870_v14  ;;  %614 = vmatpush.bf16.msra.mxu2 %v810_v15  ;;  %v855_v36 = vld [vmem:[%s1206_s9 + $0xa8] sm:$0xf0]  ;;  %v794_v39 = vor.u32 %v906_v33, %v791_v34  ;;  %v905_v41 = vld [vmem:[%s1206_s9 + $0x14] sm:$0xf0]  ;;  %v845_v42 = vld [vmem:[%s1206_s9 + $0x90] sm:$0xf] }
  0x5c   : > { %627 = vmatpush.bf16.msra.mxu3 %v874_v19  ;;  %v858_v43 = vor.u32 %v922_v35, %v855_v36  ;;  %v921_v44 = vld [vmem:[%s1206_s9 + $0x94] sm:$0xf0]  ;;  %v904_v45 = vld [vmem:[%s1206_s9 + $0x14] sm:$0xf]  ;;  %v783_v46 = vld [vmem:[%s1206_s9 + $0x18] sm:$0xf0]  ;;  %v782_v49 = vor.u32 %v905_v41, %v781_v40 }
  0x5d   : > { %v920_v47 = vld [vmem:[%s1206_s9 + $0x94] sm:$0xf]  ;;  %v847_v48 = vld [vmem:[%s1206_s9 + $0x98] sm:$0xf0]  ;;  %v385_v50 = vld [vmem:[%s1199_s21] sm:$0xff]  ;;  %v846_v51 = vor.u32 %v921_v44, %v845_v42  ;;  %v786_v52 = vor.u32 %v904_v45, %v783_v46 }
  0x5e   : > { %589 = vmatpush.bf16.msra.mxu0 %v798_v25  ;;  %v773_v53 = vld [vmem:[%s1206_s9] sm:$0xf]  ;;  %v903_v54 = vld [vmem:[%s1206_s9 + $0x4] sm:$0xf0]  ;;  %v850_v56 = vor.u32 %v920_v47, %v847_v48  ;;  %v902_v58 = vld [vmem:[%s1206_s9 + $0x4] sm:$0xf]  ;;  %v419_v62 = vunpack.c.l.b16 %v385_v50  ;;  %v420_v0 = vunpack.c.h.b16 %v385_v50 }
  0x5f   : > { %602 = vmatpush.bf16.msra.mxu1 %v862_v26  ;;  %615 = vmatpush.bf16.msra.mxu2 %v802_v27  ;;  %v837_v55 = vld [vmem:[%s1206_s9 + $0x80] sm:$0xf]  ;;  %v919_v57 = vld [vmem:[%s1206_s9 + $0x84] sm:$0xf0]  ;;  %v775_v59 = vld [vmem:[%s1206_s9 + $0x8] sm:$0xf0]  ;;  %v774_v63 = vor.u32 %v903_v54, %v773_v53 }
  0x60   : > { %628 = vmatpush.bf16.msra.mxu3 %v866_v31  ;;  %v918_v60 = vld [vmem:[%s1206_s9 + $0x84] sm:$0xf]  ;;  %v839_v61 = vld [vmem:[%s1206_s9 + $0x88] sm:$0xf0]  ;;  %v838_v1 = vor.u32 %v919_v57, %v837_v55  ;;  %v778_v2 = vor.u32 %v902_v58, %v775_v59  ;;  %v421_v4 = vpack.c.b16 %v419_v62, %v419_v62  ;;  %v422_v5 = vpack.c.b16 %v420_v0, %v420_v0 }
  0x61   : > { %v842_v3 = vor.u32 %v918_v60, %v839_v61  ;;  %v383_v7 = vld [vmem:[%s1204_s26] sm:$0xff]  ;;  %v384_v10 = vld [vmem:[%s1204_s26 + $0x8] sm:$0xff] }
  0x62   : > { %590 = vmatpush.bf16.msra.mxu0 %v790_v37 }
  0x63   : > { %603 = vmatpush.bf16.msra.mxu1 %v854_v38  ;;  %616 = vmatpush.bf16.msra.mxu2 %v794_v39 }
  0x64   : > { %629 = vmatpush.bf16.msra.mxu3 %v858_v43 }
  0x66   : > { %591 = vmatpush.bf16.msra.mxu0 %v782_v49 }
  0x67   : > { %604 = vmatpush.bf16.msra.mxu1 %v846_v51  ;;  %617 = vmatpush.bf16.msra.mxu2 %v786_v52 }
  0x68   : > { %630 = vmatpush.bf16.msra.mxu3 %v850_v56 }
  0x6a   : > { %592 = vmatpush.bf16.msra.mxu0 %v774_v63 }
  0x6b   : > { %605 = vmatpush.bf16.msra.mxu1 %v838_v1  ;;  %618 = vmatpush.bf16.msra.mxu2 %v778_v2 }
  0x6c   : > { %631 = vmatpush.bf16.msra.mxu3 %v842_v3 }
  0x6d   : > { %593 = vmatmul.bf16.vlgmr.msra.gmra.mxu0 %v421_v4 }
  0x6e   : > { %606 = vmatmul.bf16.vlgmr.msra.gmra.mxu1 %v422_v5  ;;  %619 = vmatmul.bf16.vlgmr.msra.gmra.mxu2 %v421_v4 }
  0x6f   : > { %632 = vmatmul.bf16.vlgmr.msra.gmra.mxu3 %v422_v5 }
  0xea   : > { %v594_v6 = vpop.f32.mrf.mxu0 }
  0xeb   : > { %v607_v8 = vpop.f32.mrf.mxu1 }
  0xec   : > { %v608_v9 = vadd.f32 %v607_v8, %v594_v6 }
  0xee   : > { %v637_v11 = vadd.f32 %v608_v9, %v383_v7 }
  0xf0   : > { %639 = vst [vmem:[%s1204_s26] sm:$0xff] %v637_v11 }
  0xf1   : > { %v620_v12 = vpop.f32.mrf.mxu2 }
  0xf2   : > { %v633_v13 = vpop.f32.mrf.mxu3  ;;  %v596_v14 = vpop.f32.mrf.mxu0 }
  0xf3   : > { %v634_v15 = vadd.f32 %v633_v13, %v620_v12  ;;  %v609_v16 = vpop.f32.mrf.mxu1 }
  0xf5   : > { %v638_v17 = vadd.f32 %v634_v15, %v384_v10 }
  0xf7   : > { %640 = vst [vmem:[%s1204_s26 + $0x8] sm:$0xff] %v638_v17 }
  0xf9   : > { %v622_v18 = vpop.f32.mrf.mxu2 }
  0xfa   : > { %v635_v19 = vpop.f32.mrf.mxu3 }
  0xfb PF: > { %s12_s15 = sadd.s32 1, %s1045_s15   ;;  %s1304_s9 = smov %s1025_s10 }
  0xfc   : > { %p9_p13 = scmp.ge.s32.totalorder %s12_s15, 20   ;;  %s1305_s10 = smov %s1114_s22 }
  0xfd   : > { %s1306_s11 = smov %s1037_s13  ;;  %s1307_s12 = smov %s1041_s14 }
  0xfe   : > { %s1308_s13 = smov %s1311_s16  ;;  %s1309_s14 = smov %s1315_s17 }
  0xff   :  { %11 = sbr.rel (!%p9_p13) target bundleno = 4 (0x4), region = 108 }

// kernel: forward.60
= control target key start
LH: loop header
LB: loop body
LE: loop exit
PB: predicated region body
PF: predicated region fallthrough
CT: control target
= control target key end

     0   :  { %s1027_s9 = smov 0   ;;  %s1029_s10 = smov 0   ;;  %s1229_s0 = inlined_call_operand.vmem [shape: bf16[8,256], index: 0, kind: input, shape index: {}]   ;;  %s1230_s1 = inlined_call_operand.vmem [shape: bf16[256,512], index: 1, kind: input, shape index: {}]   ;;  %s1231_s2 = inlined_call_operand.vmem [shape: f32[8,512], index: 2, kind: output, shape index: {}]  }
   0x1   :  { %s1031_s11 = smov 0   ;;  %s1033_s12 = smov 0  }
   0x2   :  { %s1035_s13 = smov 0  }
   0x3 LB: > { %s27_s14 = sadd.s32 1, %s1005_s12  ;;  %p75_p1 = scmp.ne.s32.totalorder %s997_s10, %s993_s9  ;;  %s1009_s13 = sphi %s1035_s13, %s12_s13   ;;  %s1005_s12 = sphi %s1033_s12, %s1235_s12   ;;  %s1001_s11 = sphi %s1031_s11, %s1234_s11   ;;  %s997_s10 = sphi %s1029_s10, %s1233_s10   ;;  %s993_s9 = sphi %s1027_s9, %s1232_s9  }
   0x4   : > { %p29_p0 = scmp.ge.s32.totalorder %s27_s14, 2  ;;  %p76_p2 = scmp.eq.s32.totalorder %s1009_s13, 0 }
   0x5   : > { %s68_s16 = sadd.s32 1, %s997_s10  ;;  %p759_p5 = scmp.ge.s32.totalorder %s1009_s13, 2 }
   0x6   : > { %s1237_s14 = smov (%p29_p0, %s27_s14), 0  ;;  %p77_p3 = por %p76_p2, %p75_p1 }
   0x7   : > { %s64_s15 = ssub.s32 %s1005_s12, %s1237_s14  ;;  %142 = sbr.rel (%p759_p5) target bundleno = 48 (0x30), region = 20 }
   0x8   : > { %p66_p4 = scmp.eq.s32.totalorder %s64_s15, 0 }
   0xa   : > { %s1062_s17 = scalar_select %p66_p4, %s997_s10, %s68_s16  }
   0xc   : > { %145 = sbr.rel (!%p77_p3) target bundleno = 48 (0x30), region = 24  ;;  %s147_s18 = sand.u32 (%p77_p3), 1, %s997_s10  }
   0xd   : > { %s897_s19 = sshll.u32 (%p77_p3), %s1005_s12, 3  ;;  %s760_s20 = sshll.u32 (%p77_p3), %s147_s18, 8 }
   0xe   : > { %s1070_s23 = scalar_lea.vmem (%p77_p3), %s1230_s1, %s897_s19  ;;  %s1075_s24 = scalar_lea.vmem (%p77_p3), [#allocation2], %s760_s20 }
   0xf   : > { %v246_v0 = vld [vmem:[%s1070_s23] sm:$0xff] (%p77_p3)  ;;  %v248_v1 = vld [vmem:[%s1070_s23 + $0x10] sm:$0xff] (%p77_p3) }
  0x10   : > { %v250_v2 = vld [vmem:[%s1070_s23 + $0x20] sm:$0xff] (%p77_p3)  ;;  %247 = vst [vmem:[%s1075_s24] sm:$0xff] (%p77_p3), %v246_v0  ;;  %v252_v3 = vld [vmem:[%s1070_s23 + $0x30] sm:$0xff] (%p77_p3) }
  0x11   : > { %249 = vst [vmem:[%s1075_s24 + $0x8] sm:$0xff] %v248_v1  ;;  %v254_v4 = vld [vmem:[%s1070_s23 + $0x40] sm:$0xff]  ;;  %v256_v5 = vld [vmem:[%s1070_s23 + $0x50] sm:$0xff] }
  0x12   : > { %251 = vst [vmem:[%s1075_s24 + $0x10] sm:$0xff] %v250_v2  ;;  %v258_v6 = vld [vmem:[%s1070_s23 + $0x60] sm:$0xff]  ;;  %v260_v7 = vld [vmem:[%s1070_s23 + $0x70] sm:$0xff] }
  0x13   : > { %253 = vst [vmem:[%s1075_s24 + $0x18] sm:$0xff] %v252_v3  ;;  %v262_v8 = vld [vmem:[%s1070_s23 + $0x80] sm:$0xff]  ;;  %v264_v9 = vld [vmem:[%s1070_s23 + $0x90] sm:$0xff] }
  0x14   : > { %255 = vst [vmem:[%s1075_s24 + $0x20] sm:$0xff] %v254_v4  ;;  %v266_v10 = vld [vmem:[%s1070_s23 + $0xa0] sm:$0xff]  ;;  %v268_v11 = vld [vmem:[%s1070_s23 + $0xb0] sm:$0xff] }
  0x15   : > { %257 = vst [vmem:[%s1075_s24 + $0x28] sm:$0xff] %v256_v5  ;;  %v270_v12 = vld [vmem:[%s1070_s23 + $0xc0] sm:$0xff]  ;;  %v272_v13 = vld [vmem:[%s1070_s23 + $0xd0] sm:$0xff] }
  0x16   : > { %259 = vst [vmem:[%s1075_s24 + $0x30] sm:$0xff] %v258_v6  ;;  %v274_v14 = vld [vmem:[%s1070_s23 + $0xe0] sm:$0xff]  ;;  %v276_v15 = vld [vmem:[%s1070_s23 + $0xf0] sm:$0xff] }
  0x17   : > { %261 = vst [vmem:[%s1075_s24 + $0x38] sm:$0xff] %v260_v7  ;;  %v278_v16 = vld [vmem:[%s1070_s23 + $0x100] sm:$0xff]  ;;  %v280_v17 = vld [vmem:[%s1070_s23 + $0x110] sm:$0xff] }
  0x18   : > { %263 = vst [vmem:[%s1075_s24 + $0x40] sm:$0xff] %v262_v8  ;;  %v282_v18 = vld [vmem:[%s1070_s23 + $0x120] sm:$0xff]  ;;  %v284_v19 = vld [vmem:[%s1070_s23 + $0x130] sm:$0xff] }
  0x19   : > { %265 = vst [vmem:[%s1075_s24 + $0x48] sm:$0xff] %v264_v9  ;;  %v286_v20 = vld [vmem:[%s1070_s23 + $0x140] sm:$0xff]  ;;  %v288_v21 = vld [vmem:[%s1070_s23 + $0x150] sm:$0xff] }
  0x1a   : > { %267 = vst [vmem:[%s1075_s24 + $0x50] sm:$0xff] %v266_v10  ;;  %v290_v22 = vld [vmem:[%s1070_s23 + $0x160] sm:$0xff]  ;;  %v292_v23 = vld [vmem:[%s1070_s23 + $0x170] sm:$0xff] }
  0x1b   : > { %269 = vst [vmem:[%s1075_s24 + $0x58] sm:$0xff] %v268_v11  ;;  %v294_v24 = vld [vmem:[%s1070_s23 + $0x180] sm:$0xff]  ;;  %v296_v25 = vld [vmem:[%s1070_s23 + $0x190] sm:$0xff] }
  0x1c   : > { %271 = vst [vmem:[%s1075_s24 + $0x60] sm:$0xff] %v270_v12  ;;  %v298_v26 = vld [vmem:[%s1070_s23 + $0x1a0] sm:$0xff]  ;;  %v300_v27 = vld [vmem:[%s1070_s23 + $0x1b0] sm:$0xff] }
  0x1d   : > { %273 = vst [vmem:[%s1075_s24 + $0x68] sm:$0xff] %v272_v13  ;;  %v302_v28 = vld [vmem:[%s1070_s23 + $0x1c0] sm:$0xff]  ;;  %v304_v29 = vld [vmem:[%s1070_s23 + $0x1d0] sm:$0xff] }
  0x1e   : > { %275 = vst [vmem:[%s1075_s24 + $0x70] sm:$0xff] %v274_v14  ;;  %v306_v30 = vld [vmem:[%s1070_s23 + $0x1e0] sm:$0xff]  ;;  %v308_v31 = vld [vmem:[%s1070_s23 + $0x1f0] sm:$0xff] }
  0x1f   : > { %277 = vst [vmem:[%s1075_s24 + $0x78] sm:$0xff] %v276_v15 }
  0x20   : > { %279 = vst [vmem:[%s1075_s24 + $0x80] sm:$0xff] %v278_v16 }
  0x21   : > { %281 = vst [vmem:[%s1075_s24 + $0x88] sm:$0xff] %v280_v17 }
  0x22   : > { %283 = vst [vmem:[%s1075_s24 + $0x90] sm:$0xff] %v282_v18 }
  0x23   : > { %285 = vst [vmem:[%s1075_s24 + $0x98] sm:$0xff] %v284_v19 }
  0x24   : > { %287 = vst [vmem:[%s1075_s24 + $0xa0] sm:$0xff] %v286_v20 }
  0x25   : > { %289 = vst [vmem:[%s1075_s24 + $0xa8] sm:$0xff] %v288_v21 }
  0x26   : > { %291 = vst [vmem:[%s1075_s24 + $0xb0] sm:$0xff] %v290_v22 }
  0x27   : > { %293 = vst [vmem:[%s1075_s24 + $0xb8] sm:$0xff] %v292_v23 }
  0x28   : > { %295 = vst [vmem:[%s1075_s24 + $0xc0] sm:$0xff] %v294_v24 }
  0x29   : > { %297 = vst [vmem:[%s1075_s24 + $0xc8] sm:$0xff] %v296_v25 }
  0x2a   : > { %299 = vst [vmem:[%s1075_s24 + $0xd0] sm:$0xff] %v298_v26 }
  0x2b   : > { %301 = vst [vmem:[%s1075_s24 + $0xd8] sm:$0xff] %v300_v27 }
  0x2c   : > { %303 = vst [vmem:[%s1075_s24 + $0xe0] sm:$0xff] %v302_v28 }
  0x2d   : > { %305 = vst [vmem:[%s1075_s24 + $0xe8] sm:$0xff] %v304_v29 }
  0x2e   : > { %307 = vst [vmem:[%s1075_s24 + $0xf0] sm:$0xff] %v306_v30 }
  0x2f   : > { %309 = vst [vmem:[%s1075_s24 + $0xf8] sm:$0xff] %v308_v31 }
  0x30 PF: > { %p763_p6 = scmp.ge.s32.totalorder %s1009_s13, 1  ;;  %p314_p7 = scmp.lt.s32.totalorder %s1009_s13, 3 }
  0x32   : > { %p315_p8 = pnand %p763_p6, %p314_p7 }
  0x33   : > { %s321_s25 = sand.u32 (!%p315_p8), 1, %s993_s9   ;;  %s765_s30 = sshll.u32 (!%p315_p8), %s1001_s11, 1 }
  0x34   : > { %318 = sbr.rel (%p315_p8) target bundleno = 233 (0xe9), region = 62  ;;  %s764_s26 = sshll.u32 (!%p315_p8), %s321_s25, 8 }
  0x35   : > { %s1141_s27 = scalar_lea.vmem (!%p315_p8), [#allocation2], %s764_s26  ;;  %p370_p9 = scmp.lt.s32.totalorder (!%p315_p8), %s765_s30, 3 }
  0x39   : > { %v825_v32 = vld [vmem:[%s1141_s27 + $0x70] sm:$0xf]  ;;  %v913_v33 = vld [vmem:[%s1141_s27 + $0x74] sm:$0xf0]  ;;  %v912_v37 = vld [vmem:[%s1141_s27 + $0x74] sm:$0xf] }
  0x3a   : > { %v889_v34 = vld [vmem:[%s1141_s27 + $0xf0] sm:$0xf]  ;;  %v826_v35 = vor.u32 %v913_v33, %v825_v32  ;;  %v929_v36 = vld [vmem:[%s1141_s27 + $0xf4] sm:$0xf0]  ;;  %v827_v38 = vld [vmem:[%s1141_s27 + $0x78] sm:$0xf0] }
  0x3b   : > { %v890_v39 = vor.u32 %v929_v36, %v889_v34  ;;  %v830_v40 = vor.u32 %v912_v37, %v827_v38  ;;  %v928_v41 = vld [vmem:[%s1141_s27 + $0xf4] sm:$0xf]  ;;  %v891_v42 = vld [vmem:[%s1141_s27 + $0xf8] sm:$0xf0]  ;;  %v817_v43 = vld [vmem:[%s1141_s27 + $0x60] sm:$0xf] }
  0x3c   : > { %585 = vmatpush.bf16.msra.mxu0 %v826_v35  ;;  %v894_v44 = vor.u32 %v928_v41, %v891_v42  ;;  %v911_v45 = vld [vmem:[%s1141_s27 + $0x64] sm:$0xf0]  ;;  %v881_v46 = vld [vmem:[%s1141_s27 + $0xe0] sm:$0xf]  ;;  %v910_v50 = vld [vmem:[%s1141_s27 + $0x64] sm:$0xf] }
  0x3d   : > { %v927_v47 = vld [vmem:[%s1141_s27 + $0xe4] sm:$0xf0]  ;;  %598 = vmatpush.bf16.msra.mxu1 %v890_v39  ;;  %611 = vmatpush.bf16.msra.mxu2 %v830_v40  ;;  %v818_v48 = vor.u32 %v911_v45, %v817_v43  ;;  %v819_v51 = vld [vmem:[%s1141_s27 + $0x68] sm:$0xf0]  ;;  %v926_v52 = vld [vmem:[%s1141_s27 + $0xe4] sm:$0xf] }
  0x3e   : > { %v882_v49 = vor.u32 %v927_v47, %v881_v46  ;;  %624 = vmatpush.bf16.msra.mxu3 %v894_v44  ;;  %v822_v53 = vor.u32 %v910_v50, %v819_v51  ;;  %v883_v54 = vld [vmem:[%s1141_s27 + $0xe8] sm:$0xf0]  ;;  %v809_v55 = vld [vmem:[%s1141_s27 + $0x50] sm:$0xf]  ;;  %v909_v56 = vld [vmem:[%s1141_s27 + $0x54] sm:$0xf0] }
  0x3f   : > { %v886_v57 = vor.u32 %v926_v52, %v883_v54  ;;  %v873_v58 = vld [vmem:[%s1141_s27 + $0xd0] sm:$0xf]  ;;  %v925_v59 = vld [vmem:[%s1141_s27 + $0xd4] sm:$0xf0]  ;;  %v908_v60 = vld [vmem:[%s1141_s27 + $0x54] sm:$0xf]  ;;  %v810_v61 = vor.u32 %v909_v56, %v809_v55 }
  0x40   : > { %586 = vmatpush.bf16.msra.mxu0 %v818_v48  ;;  %v811_v62 = vld [vmem:[%s1141_s27 + $0x58] sm:$0xf0]  ;;  %v924_v63 = vld [vmem:[%s1141_s27 + $0xd4] sm:$0xf]  ;;  %v874_v1 = vor.u32 %v925_v59, %v873_v58  ;;  %v801_v3 = vld [vmem:[%s1141_s27 + $0x40] sm:$0xf] }
  0x41   : > { %v875_v0 = vld [vmem:[%s1141_s27 + $0xd8] sm:$0xf0]  ;;  %599 = vmatpush.bf16.msra.mxu1 %v882_v49  ;;  %612 = vmatpush.bf16.msra.mxu2 %v822_v53  ;;  %v814_v2 = vor.u32 %v908_v60, %v811_v62  ;;  %v907_v4 = vld [vmem:[%s1141_s27 + $0x44] sm:$0xf0]  ;;  %v865_v5 = vld [vmem:[%s1141_s27 + $0xc0] sm:$0xf] }
  0x42   : > { %625 = vmatpush.bf16.msra.mxu3 %v886_v57  ;;  %v878_v6 = vor.u32 %v924_v63, %v875_v0  ;;  %v923_v7 = vld [vmem:[%s1141_s27 + $0xc4] sm:$0xf0]  ;;  %v906_v8 = vld [vmem:[%s1141_s27 + $0x44] sm:$0xf]  ;;  %v803_v9 = vld [vmem:[%s1141_s27 + $0x48] sm:$0xf0]  ;;  %v802_v12 = vor.u32 %v907_v4, %v801_v3 }
  0x43   : > { %v922_v10 = vld [vmem:[%s1141_s27 + $0xc4] sm:$0xf]  ;;  %v867_v11 = vld [vmem:[%s1141_s27 + $0xc8] sm:$0xf0]  ;;  %v866_v13 = vor.u32 %v923_v7, %v865_v5  ;;  %v806_v14 = vor.u32 %v906_v8, %v803_v9  ;;  %v793_v15 = vld [vmem:[%s1141_s27 + $0x30] sm:$0xf] }
  0x44   : > { %587 = vmatpush.bf16.msra.mxu0 %v810_v61  ;;  %v905_v16 = vld [vmem:[%s1141_s27 + $0x34] sm:$0xf0]  ;;  %v857_v17 = vld [vmem:[%s1141_s27 + $0xb0] sm:$0xf]  ;;  %v870_v18 = vor.u32 %v922_v10, %v867_v11  ;;  %v904_v20 = vld [vmem:[%s1141_s27 + $0x34] sm:$0xf] }
  0x45   : > { %600 = vmatpush.bf16.msra.mxu1 %v874_v1  ;;  %613 = vmatpush.bf16.msra.mxu2 %v814_v2  ;;  %v921_v19 = vld [vmem:[%s1141_s27 + $0xb4] sm:$0xf0]  ;;  %v795_v21 = vld [vmem:[%s1141_s27 + $0x38] sm:$0xf0]  ;;  %v920_v22 = vld [vmem:[%s1141_s27 + $0xb4] sm:$0xf]  ;;  %v794_v24 = vor.u32 %v905_v16, %v793_v15 }
  0x46   : > { %626 = vmatpush.bf16.msra.mxu3 %v878_v6  ;;  %v859_v23 = vld [vmem:[%s1141_s27 + $0xb8] sm:$0xf0]  ;;  %v858_v25 = vor.u32 %v921_v19, %v857_v17  ;;  %v798_v26 = vor.u32 %v904_v20, %v795_v21  ;;  %v785_v27 = vld [vmem:[%s1141_s27 + $0x20] sm:$0xf]  ;;  %v903_v28 = vld [vmem:[%s1141_s27 + $0x24] sm:$0xf0] }
  0x47   : > { %v849_v29 = vld [vmem:[%s1141_s27 + $0xa0] sm:$0xf]  ;;  %v862_v30 = vor.u32 %v920_v22, %v859_v23  ;;  %v919_v31 = vld [vmem:[%s1141_s27 + $0xa4] sm:$0xf0]  ;;  %v902_v32 = vld [vmem:[%s1141_s27 + $0x24] sm:$0xf]  ;;  %v786_v36 = vor.u32 %v903_v28, %v785_v27 }
  0x48   : > { %588 = vmatpush.bf16.msra.mxu0 %v802_v12  ;;  %v787_v33 = vld [vmem:[%s1141_s27 + $0x28] sm:$0xf0]  ;;  %v918_v34 = vld [vmem:[%s1141_s27 + $0xa4] sm:$0xf]  ;;  %v850_v37 = vor.u32 %v919_v31, %v849_v29  ;;  %v777_v39 = vld [vmem:[%s1141_s27 + $0x10] sm:$0xf] }
  0x49   : > { %601 = vmatpush.bf16.msra.mxu1 %v866_v13  ;;  %614 = vmatpush.bf16.msra.mxu2 %v806_v14  ;;  %v851_v35 = vld [vmem:[%s1141_s27 + $0xa8] sm:$0xf0]  ;;  %v790_v38 = vor.u32 %v902_v32, %v787_v33  ;;  %v901_v40 = vld [vmem:[%s1141_s27 + $0x14] sm:$0xf0]  ;;  %v841_v41 = vld [vmem:[%s1141_s27 + $0x90] sm:$0xf] }
  0x4a   : > { %627 = vmatpush.bf16.msra.mxu3 %v870_v18  ;;  %v854_v42 = vor.u32 %v918_v34, %v851_v35  ;;  %v917_v43 = vld [vmem:[%s1141_s27 + $0x94] sm:$0xf0]  ;;  %v900_v44 = vld [vmem:[%s1141_s27 + $0x14] sm:$0xf]  ;;  %v779_v45 = vld [vmem:[%s1141_s27 + $0x18] sm:$0xf0]  ;;  %v778_v48 = vor.u32 %v901_v40, %v777_v39 }
  0x4b   : > { %v916_v46 = vld [vmem:[%s1141_s27 + $0x94] sm:$0xf]  ;;  %v843_v47 = vld [vmem:[%s1141_s27 + $0x98] sm:$0xf0]  ;;  %v385_v49 = vld [vmem:[%s1229_s0] sm:$0xff]  ;;  %v842_v50 = vor.u32 %v917_v43, %v841_v41  ;;  %v782_v51 = vor.u32 %v900_v44, %v779_v45  ;;  %s1239_s30 = smov (!%p370_p9, %s765_s30), 3 }
  0x4c   : > { %589 = vmatpush.bf16.msra.mxu0 %v794_v24  ;;  %v769_v52 = vld [vmem:[%s1141_s27] sm:$0xf]  ;;  %v899_v53 = vld [vmem:[%s1141_s27 + $0x4] sm:$0xf0]  ;;  %v846_v55 = vor.u32 %v916_v46, %v843_v47  ;;  %v898_v57 = vld [vmem:[%s1141_s27 + $0x4] sm:$0xf]  ;;  %v419_v61 = vunpack.c.l.b16 %v385_v49  ;;  %v420_v63 = vunpack.c.h.b16 %v385_v49 }
  0x4d   : > { %602 = vmatpush.bf16.msra.mxu1 %v858_v25  ;;  %615 = vmatpush.bf16.msra.mxu2 %v798_v26  ;;  %v833_v54 = vld [vmem:[%s1141_s27 + $0x80] sm:$0xf]  ;;  %v915_v56 = vld [vmem:[%s1141_s27 + $0x84] sm:$0xf0]  ;;  %v771_v58 = vld [vmem:[%s1141_s27 + $0x8] sm:$0xf0]  ;;  %v770_v62 = vor.u32 %v899_v53, %v769_v52 }
  0x4e   : > { %628 = vmatpush.bf16.msra.mxu3 %v862_v30  ;;  %v914_v59 = vld [vmem:[%s1141_s27 + $0x84] sm:$0xf]  ;;  %v835_v60 = vld [vmem:[%s1141_s27 + $0x88] sm:$0xf0]  ;;  %v834_v0 = vor.u32 %v915_v56, %v833_v54  ;;  %v774_v1 = vor.u32 %v898_v57, %v771_v58  ;;  %v421_v3 = vpack.c.b16 %v419_v61, %v419_v61  ;;  %v422_v4 = vpack.c.b16 %v420_v63, %v420_v63  ;;  %s766_s3 = sshll.u32 %s1239_s30, 3 }
  0x4f   : > { %v838_v2 = vor.u32 %v914_v59, %v835_v60  ;;  %s375_s6 = scalar_lea.vmem %s1231_s2, %s766_s3  ;;  %v1011_v5 = vmov 0.0  }
  0x50   : > { %590 = vmatpush.bf16.msra.mxu0 %v786_v36  ;;  %381 = vst [vmem:[%s375_s6] sm:$0xff] %v1011_v5 }
  0x51   : > { %603 = vmatpush.bf16.msra.mxu1 %v850_v37  ;;  %616 = vmatpush.bf16.msra.mxu2 %v790_v38  ;;  %382 = vst [vmem:[%s375_s6 + $0x8] sm:$0xff] %v1011_v5 }
  0x52   : > { %629 = vmatpush.bf16.msra.mxu3 %v854_v42 }
  0x54   : > { %591 = vmatpush.bf16.msra.mxu0 %v778_v48 }
  0x55   : > { %604 = vmatpush.bf16.msra.mxu1 %v842_v50  ;;  %617 = vmatpush.bf16.msra.mxu2 %v782_v51 }
  0x56   : > { %630 = vmatpush.bf16.msra.mxu3 %v846_v55 }
  0x57   : > { %v383_v7 = vld [vmem:[%s375_s6] sm:$0xff] }
  0x58   : > { %592 = vmatpush.bf16.msra.mxu0 %v770_v62 }
  0x59   : > { %605 = vmatpush.bf16.msra.mxu1 %v834_v0  ;;  %618 = vmatpush.bf16.msra.mxu2 %v774_v1 }
  0x5a   : > { %631 = vmatpush.bf16.msra.mxu3 %v838_v2 }
  0x5b   : > { %593 = vmatmul.bf16.vlgmr.msra.gmra.mxu0 %v421_v3 }
  0x5c   : > { %606 = vmatmul.bf16.vlgmr.msra.gmra.mxu1 %v422_v4  ;;  %619 = vmatmul.bf16.vlgmr.msra.gmra.mxu2 %v421_v3 }
  0x5d   : > { %632 = vmatmul.bf16.vlgmr.msra.gmra.mxu3 %v422_v4 }
  0xd8   : > { %v594_v6 = vpop.f32.mrf.mxu0 }
  0xd9   : > { %v607_v8 = vpop.f32.mrf.mxu1 }
  0xda   : > { %v608_v9 = vadd.f32 %v607_v8, %v594_v6 }
  0xdc   : > { %v637_v10 = vadd.f32 %v608_v9, %v383_v7 }
  0xde   : > { %639 = vst [vmem:[%s375_s6] sm:$0xff] %v637_v10 }
  0xdf   : > { %v620_v11 = vpop.f32.mrf.mxu2 }
  0xe0   : > { %v633_v12 = vpop.f32.mrf.mxu3  ;;  %v596_v13 = vpop.f32.mrf.mxu0 }
  0xe1   : > { %v634_v14 = vadd.f32 %v633_v12, %v620_v11  ;;  %v609_v15 = vpop.f32.mrf.mxu1 }
  0xe3   : > { %640 = vst [vmem:[%s375_s6 + $0x8] sm:$0xff] %v634_v14 }
  0xe7   : > { %v622_v16 = vpop.f32.mrf.mxu2 }
  0xe8   : > { %v635_v17 = vpop.f32.mrf.mxu3 }
  0xe9 PF: > { %s12_s13 = sadd.s32 1, %s1009_s13   ;;  %s1232_s9 = smov %s997_s10 }
  0xea   : > { %p9_p10 = scmp.ge.s32.totalorder %s12_s13, 4   ;;  %s1233_s10 = smov %s1062_s17 }
  0xeb   : > { %s1234_s11 = smov %s1005_s12  ;;  %s1235_s12 = smov %s1237_s14 }
  0xec   :  { %11 = sbr.rel (!%p9_p10) target bundleno = 3 (0x3), region = 108 }

// kernel: forward.55
= control target key start
LH: loop header
LB: loop body
LE: loop exit
PB: predicated region body
PF: predicated region fallthrough
CT: control target
= control target key end

     0   :  { %7 = vsyncpa [#allocation3], 0  ;;  %s1113_s0 = inlined_call_operand.vmem [shape: bf16[8,256], index: 0, kind: input, shape index: {}]   ;;  %s1114_s1 = inlined_call_operand.hbm [shape: bf16[256,512], index: 1, kind: input, shape index: {}]   ;;  %s1115_s2 = inlined_call_operand.vmem [shape: f32[8,512], index: 2, kind: output, shape index: {}]  }
   0x1   :  { %9 = vsyncpa [#allocation3 + $0x1], 0  ;;  %s957_s9 = smov 0   ;;  %s959_s10 = smov 0  }
   0x2   :  { %s961_s11 = smov 0   ;;  %s963_s12 = smov 0  }
   0x3   :  { %s965_s13 = smov 0   ;;  %s967_s14 = smov 0  }
   0x4 LB: > { %s622_s15 = sadd.s32 4294967295, %s936_s14   ;;  %s30_s16 = sadd.s32 1, %s932_s13  ;;  %s936_s14 = sphi %s967_s14, %s15_s14   ;;  %s932_s13 = sphi %s965_s13, %s1122_s13   ;;  %s928_s12 = sphi %s963_s12, %s1121_s12   ;;  %s924_s11 = sphi %s961_s11, %s1120_s11   ;;  %s920_s10 = sphi %s959_s10, %s1119_s10   ;;  %s916_s9 = sphi %s957_s9, %s1118_s9  }
   0x5   : > { %p32_p0 = scmp.ge.s32.totalorder %s30_s16, 2  ;;  %s71_s17 = sadd.s32 1, %s924_s11 }
   0x6   : > { %p78_p1 = scmp.ne.s32.totalorder %s924_s11, %s920_s10  ;;  %p79_p2 = scmp.eq.s32.totalorder %s936_s14, 0 }
   0x7   : > { %s1124_s16 = smov (%p32_p0, %s30_s16), 0  ;;  %p84_p4 = scmp.ne.s32.totalorder %s920_s10, %s916_s9 }
   0x8   : > { %p993_p3 = por %p79_p2, %p78_p1  ;;  %s67_s19 = ssub.s32 %s932_s13, %s1124_s16 }
   0x9   : > { %p85_p5 = scmp.eq.s32.totalorder %s622_s15, 0  ;;  %p69_p6 = scmp.eq.s32.totalorder %s67_s19, 0 }
   0xa   : > { %p803_p8 = scmp.lt.s32.totalorder %s936_s14, 2  ;;  %s149_s22 = sand.u32 1, %s924_s11  }
   0xb   : > { %p1000_p7 = por %p85_p5, %p84_p4  ;;  %s764_s23 = sshll.u32 %s932_s13, 3 }
   0xc   : > { %s1006_s21 = scalar_select %p69_p6, %s924_s11, %s71_s17  }
   0xd   : > { %s627_s24 = sshll.u32 %s149_s22, 8  ;;  %s161_s27 = scalar_lea.hbm %s1114_s1, %s764_s23 }
   0xe   : > { %s162_s28 = sshll.u32 %s161_s27, 4  ;;  %s153_s29 = scalar_lea.vmem [#allocation2], %s627_s24  ;;  %s163_s28 = int_to_ptr.hbm [resolvable:$true] %s162_s28 }
   0xf   : > { %s164_s30 = sshll.u32 %s153_s29, 4  ;;  %p800_p9 = pnand %p803_p8, %p993_p3  ;;  %s165_s30 = int_to_ptr.vmem [resolvable:$true] %s164_s30 }
  0x10   : > { %p630_p10 = scmp.ge.s32.totalorder %s936_s14, 1  ;;  %s150_s3 = scalar_lea.sflag [#allocation3], %s149_s22 }
  0x11   : > { %s938_s4 = smov 256   ;;  %s939_s5 = smov 128  }
  0x12   : > { %s940_s6 = smov 8   ;;  %p172_p11 = scmp.lt.s32.totalorder %s936_s14, 3 }
  0x13   : > { %802 = dma.hbm_to_vmem [thread:$0]  (!%p800_p9), %s163_s28, 4096, %s165_s30, %s150_s3, %s938_s4, %s939_s5, %s940_s6  }
  0x14   : > { %p173_p12 = pnand %p630_p10, %p172_p11 }
  0x15   : > { %s178_s7 = sand.u32 (!%p173_p12), 1, %s920_s10  }
  0x16   : > { %176 = sbr.rel (%p173_p12) target bundleno = 205 (0xcd), region = 28  ;;  %s631_s8 = sshll.u32 (!%p173_p12), %s178_s7, 8 }
  0x17   : > { %s179_s9 = scalar_lea.sflag (!%p173_p12), [#allocation3], %s178_s7  ;;  %s1018_s15 = scalar_lea.vmem (!%p173_p12), [#allocation2], %s631_s8 }
  0x1b   : > { %911 = dma.done.wait (%p1000_p7), %s179_s9, 4096  }
  0x1c   : > { %913 = vsyncadd (%p1000_p7), %s179_s9, 4294963200  ;;  %v692_v0 = vld [vmem:[%s1018_s15 + $0x70] sm:$0xf]  ;;  %v780_v1 = vld [vmem:[%s1018_s15 + $0x74] sm:$0xf0]  ;;  %s632_s19 = sshll.u32 %s928_s12, 1 }
  0x1d   : > { %v756_v2 = vld [vmem:[%s1018_s15 + $0xf0] sm:$0xf]  ;;  %v693_v3 = vor.u32 %v780_v1, %v692_v0  ;;  %v796_v4 = vld [vmem:[%s1018_s15 + $0xf4] sm:$0xf0]  ;;  %v779_v5 = vld [vmem:[%s1018_s15 + $0x74] sm:$0xf] }
  0x1e   : > { %v694_v6 = vld [vmem:[%s1018_s15 + $0x78] sm:$0xf0]  ;;  %v757_v7 = vor.u32 %v796_v4, %v756_v2  ;;  %v795_v9 = vld [vmem:[%s1018_s15 + $0xf4] sm:$0xf]  ;;  %v684_v11 = vld [vmem:[%s1018_s15 + $0x60] sm:$0xf] }
  0x1f   : > { %v697_v8 = vor.u32 %v779_v5, %v694_v6  ;;  %v758_v10 = vld [vmem:[%s1018_s15 + $0xf8] sm:$0xf0]  ;;  %447 = vmatpush.bf16.msra.mxu0 %v693_v3  ;;  %v778_v13 = vld [vmem:[%s1018_s15 + $0x64] sm:$0xf0]  ;;  %v748_v14 = vld [vmem:[%s1018_s15 + $0xe0] sm:$0xf] }
  0x20   : > { %v761_v12 = vor.u32 %v795_v9, %v758_v10  ;;  %v794_v15 = vld [vmem:[%s1018_s15 + $0xe4] sm:$0xf0]  ;;  %460 = vmatpush.bf16.msra.mxu1 %v757_v7  ;;  %v685_v16 = vor.u32 %v778_v13, %v684_v11  ;;  %v777_v18 = vld [vmem:[%s1018_s15 + $0x64] sm:$0xf]  ;;  %v686_v19 = vld [vmem:[%s1018_s15 + $0x68] sm:$0xf0] }
  0x21   : > { %473 = vmatpush.bf16.msra.mxu2 %v697_v8  ;;  %v749_v17 = vor.u32 %v794_v15, %v748_v14  ;;  %v793_v20 = vld [vmem:[%s1018_s15 + $0xe4] sm:$0xf]  ;;  %v689_v21 = vor.u32 %v777_v18, %v686_v19  ;;  %v750_v22 = vld [vmem:[%s1018_s15 + $0xe8] sm:$0xf0]  ;;  %v676_v23 = vld [vmem:[%s1018_s15 + $0x50] sm:$0xf] }
  0x22   : > { %486 = vmatpush.bf16.msra.mxu3 %v761_v12  ;;  %v776_v24 = vld [vmem:[%s1018_s15 + $0x54] sm:$0xf0]  ;;  %v753_v25 = vor.u32 %v793_v20, %v750_v22  ;;  %v740_v26 = vld [vmem:[%s1018_s15 + $0xd0] sm:$0xf]  ;;  %v775_v28 = vld [vmem:[%s1018_s15 + $0x54] sm:$0xf] }
  0x23   : > { %v792_v27 = vld [vmem:[%s1018_s15 + $0xd4] sm:$0xf0]  ;;  %448 = vmatpush.bf16.msra.mxu0 %v685_v16  ;;  %v677_v29 = vor.u32 %v776_v24, %v676_v23  ;;  %v678_v30 = vld [vmem:[%s1018_s15 + $0x58] sm:$0xf0]  ;;  %v791_v31 = vld [vmem:[%s1018_s15 + $0xd4] sm:$0xf] }
  0x24   : > { %v742_v32 = vld [vmem:[%s1018_s15 + $0xd8] sm:$0xf0]  ;;  %461 = vmatpush.bf16.msra.mxu1 %v749_v17  ;;  %v741_v33 = vor.u32 %v792_v27, %v740_v26  ;;  %v681_v34 = vor.u32 %v775_v28, %v678_v30  ;;  %v668_v35 = vld [vmem:[%s1018_s15 + $0x40] sm:$0xf]  ;;  %v774_v36 = vld [vmem:[%s1018_s15 + $0x44] sm:$0xf0] }
  0x25   : > { %474 = vmatpush.bf16.msra.mxu2 %v689_v21  ;;  %v732_v37 = vld [vmem:[%s1018_s15 + $0xc0] sm:$0xf]  ;;  %v745_v38 = vor.u32 %v791_v31, %v742_v32  ;;  %v790_v39 = vld [vmem:[%s1018_s15 + $0xc4] sm:$0xf0]  ;;  %v773_v40 = vld [vmem:[%s1018_s15 + $0x44] sm:$0xf]  ;;  %v669_v44 = vor.u32 %v774_v36, %v668_v35 }
  0x26   : > { %487 = vmatpush.bf16.msra.mxu3 %v753_v25  ;;  %v670_v41 = vld [vmem:[%s1018_s15 + $0x48] sm:$0xf0]  ;;  %v789_v42 = vld [vmem:[%s1018_s15 + $0xc4] sm:$0xf]  ;;  %v733_v45 = vor.u32 %v790_v39, %v732_v37  ;;  %v660_v47 = vld [vmem:[%s1018_s15 + $0x30] sm:$0xf] }
  0x27   : > { %v734_v43 = vld [vmem:[%s1018_s15 + $0xc8] sm:$0xf0]  ;;  %449 = vmatpush.bf16.msra.mxu0 %v677_v29  ;;  %v673_v46 = vor.u32 %v773_v40, %v670_v41  ;;  %v772_v48 = vld [vmem:[%s1018_s15 + $0x34] sm:$0xf0]  ;;  %v724_v49 = vld [vmem:[%s1018_s15 + $0xb0] sm:$0xf] }
  0x28   : > { %462 = vmatpush.bf16.msra.mxu1 %v741_v33  ;;  %v737_v50 = vor.u32 %v789_v42, %v734_v43  ;;  %v788_v51 = vld [vmem:[%s1018_s15 + $0xb4] sm:$0xf0]  ;;  %v771_v52 = vld [vmem:[%s1018_s15 + $0x34] sm:$0xf]  ;;  %v662_v53 = vld [vmem:[%s1018_s15 + $0x38] sm:$0xf0]  ;;  %v661_v56 = vor.u32 %v772_v48, %v660_v47 }
  0x29   : > { %475 = vmatpush.bf16.msra.mxu2 %v681_v34  ;;  %v787_v54 = vld [vmem:[%s1018_s15 + $0xb4] sm:$0xf]  ;;  %v726_v55 = vld [vmem:[%s1018_s15 + $0xb8] sm:$0xf0]  ;;  %v725_v57 = vor.u32 %v788_v51, %v724_v49  ;;  %v665_v58 = vor.u32 %v771_v52, %v662_v53  ;;  %v652_v59 = vld [vmem:[%s1018_s15 + $0x20] sm:$0xf] }
  0x2a   : > { %488 = vmatpush.bf16.msra.mxu3 %v745_v38  ;;  %v770_v60 = vld [vmem:[%s1018_s15 + $0x24] sm:$0xf0]  ;;  %v716_v61 = vld [vmem:[%s1018_s15 + $0xa0] sm:$0xf]  ;;  %v729_v62 = vor.u32 %v787_v54, %v726_v55  ;;  %v769_v0 = vld [vmem:[%s1018_s15 + $0x24] sm:$0xf] }
  0x2b   : > { %450 = vmatpush.bf16.msra.mxu0 %v669_v44  ;;  %v786_v63 = vld [vmem:[%s1018_s15 + $0xa4] sm:$0xf0]  ;;  %v654_v1 = vld [vmem:[%s1018_s15 + $0x28] sm:$0xf0]  ;;  %v785_v2 = vld [vmem:[%s1018_s15 + $0xa4] sm:$0xf]  ;;  %v653_v4 = vor.u32 %v770_v60, %v652_v59 }
  0x2c   : > { %463 = vmatpush.bf16.msra.mxu1 %v733_v45  ;;  %v718_v3 = vld [vmem:[%s1018_s15 + $0xa8] sm:$0xf0]  ;;  %v717_v5 = vor.u32 %v786_v63, %v716_v61  ;;  %v657_v6 = vor.u32 %v769_v0, %v654_v1  ;;  %v644_v7 = vld [vmem:[%s1018_s15 + $0x10] sm:$0xf]  ;;  %v768_v8 = vld [vmem:[%s1018_s15 + $0x14] sm:$0xf0] }
  0x2d   : > { %476 = vmatpush.bf16.msra.mxu2 %v673_v46  ;;  %v708_v9 = vld [vmem:[%s1018_s15 + $0x90] sm:$0xf]  ;;  %v721_v10 = vor.u32 %v785_v2, %v718_v3  ;;  %v784_v11 = vld [vmem:[%s1018_s15 + $0x94] sm:$0xf0]  ;;  %v767_v12 = vld [vmem:[%s1018_s15 + $0x14] sm:$0xf]  ;;  %v645_v16 = vor.u32 %v768_v8, %v644_v7 }
  0x2e   : > { %489 = vmatpush.bf16.msra.mxu3 %v737_v50  ;;  %v646_v13 = vld [vmem:[%s1018_s15 + $0x18] sm:$0xf0]  ;;  %v783_v14 = vld [vmem:[%s1018_s15 + $0x94] sm:$0xf]  ;;  %v247_v17 = vld [vmem:[%s1113_s0] sm:$0xff]  ;;  %v709_v18 = vor.u32 %v784_v11, %v708_v9  ;;  %p232_p13 = scmp.lt.s32.totalorder %s632_s19, 3 }
  0x2f   : > { %451 = vmatpush.bf16.msra.mxu0 %v661_v56  ;;  %v710_v15 = vld [vmem:[%s1018_s15 + $0x98] sm:$0xf0]  ;;  %v649_v19 = vor.u32 %v767_v12, %v646_v13  ;;  %v636_v20 = vld [vmem:[%s1018_s15] sm:$0xf]  ;;  %v766_v21 = vld [vmem:[%s1018_s15 + $0x4] sm:$0xf0]  ;;  %v281_v29 = vunpack.c.l.b16 %v247_v17  ;;  %v282_v31 = vunpack.c.h.b16 %v247_v17 }
  0x30   : > { %464 = vmatpush.bf16.msra.mxu1 %v725_v57  ;;  %v700_v22 = vld [vmem:[%s1018_s15 + $0x80] sm:$0xf]  ;;  %v713_v23 = vor.u32 %v783_v14, %v710_v15  ;;  %v782_v24 = vld [vmem:[%s1018_s15 + $0x84] sm:$0xf0]  ;;  %v765_v25 = vld [vmem:[%s1018_s15 + $0x4] sm:$0xf]  ;;  %v637_v30 = vor.u32 %v766_v21, %v636_v20 }
  0x31   : > { %477 = vmatpush.bf16.msra.mxu2 %v665_v58  ;;  %v638_v26 = vld [vmem:[%s1018_s15 + $0x8] sm:$0xf0]  ;;  %v781_v27 = vld [vmem:[%s1018_s15 + $0x84] sm:$0xf]  ;;  %v701_v32 = vor.u32 %v782_v24, %v700_v22  ;;  %v283_v35 = vpack.c.b16 %v281_v29, %v281_v29  ;;  %v284_v36 = vpack.c.b16 %v282_v31, %v282_v31  ;;  %s1126_s19 = smov (!%p232_p13, %s632_s19), 3  ;;  %v941_v37 = vmov 0.0  }
  0x32   : > { %490 = vmatpush.bf16.msra.mxu3 %v729_v62  ;;  %v702_v28 = vld [vmem:[%s1018_s15 + $0x88] sm:$0xf0]  ;;  %v641_v33 = vor.u32 %v765_v25, %v638_v26  ;;  %s633_s20 = sshll.u32 %s1126_s19, 3 }
  0x33   : > { %452 = vmatpush.bf16.msra.mxu0 %v653_v4  ;;  %v705_v34 = vor.u32 %v781_v27, %v702_v28  ;;  %s237_s24 = scalar_lea.vmem %s1115_s2, %s633_s20 }
  0x34   : > { %465 = vmatpush.bf16.msra.mxu1 %v717_v5  ;;  %243 = vst [vmem:[%s237_s24] sm:$0xff] %v941_v37 }
  0x35   : > { %478 = vmatpush.bf16.msra.mxu2 %v657_v6  ;;  %244 = vst [vmem:[%s237_s24 + $0x8] sm:$0xff] %v941_v37 }
  0x36   : > { %491 = vmatpush.bf16.msra.mxu3 %v721_v10 }
  0x37   : > { %453 = vmatpush.bf16.msra.mxu0 %v645_v16 }
  0x38   : > { %466 = vmatpush.bf16.msra.mxu1 %v709_v18 }
  0x39   : > { %479 = vmatpush.bf16.msra.mxu2 %v649_v19 }
  0x3a   : > { %492 = vmatpush.bf16.msra.mxu3 %v713_v23 }
  0x3b   : > { %454 = vmatpush.bf16.msra.mxu0 %v637_v30  ;;  %v245_v39 = vld [vmem:[%s237_s24] sm:$0xff] }
  0x3c   : > { %467 = vmatpush.bf16.msra.mxu1 %v701_v32 }
  0x3d   : > { %480 = vmatpush.bf16.msra.mxu2 %v641_v33 }
  0x3e   : > { %493 = vmatpush.bf16.msra.mxu3 %v705_v34  ;;  %455 = vmatmul.bf16.vlgmr.msra.gmra.mxu0 %v283_v35 }
  0x3f   : > { %468 = vmatmul.bf16.vlgmr.msra.gmra.mxu1 %v284_v36 }
  0x40   : > { %481 = vmatmul.bf16.vlgmr.msra.gmra.mxu2 %v283_v35 }
  0x41   : > { %494 = vmatmul.bf16.vlgmr.msra.gmra.mxu3 %v284_v36 }
  0xbb   : > { %v456_v38 = vpop.f32.mrf.mxu0 }
  0xbc   : > { %v469_v40 = vpop.f32.mrf.mxu1 }
  0xbd   : > { %v470_v41 = vadd.f32 %v469_v40, %v456_v38 }
  0xbf   : > { %v499_v42 = vadd.f32 %v470_v41, %v245_v39 }
  0xc1   : > { %501 = vst [vmem:[%s237_s24] sm:$0xff] %v499_v42 }
  0xc3   : > { %v482_v43 = vpop.f32.mrf.mxu2  ;;  %v458_v45 = vpop.f32.mrf.mxu0 }
  0xc4   : > { %v495_v44 = vpop.f32.mrf.mxu3  ;;  %v471_v47 = vpop.f32.mrf.mxu1 }
  0xc5   : > { %v496_v46 = vadd.f32 %v495_v44, %v482_v43 }
  0xc7   : > { %502 = vst [vmem:[%s237_s24 + $0x8] sm:$0xff] %v496_v46 }
  0xcb   : > { %v484_v48 = vpop.f32.mrf.mxu2 }
  0xcc   : > { %v497_v49 = vpop.f32.mrf.mxu3 }
  0xcd PF: > { %s15_s14 = sadd.s32 1, %s936_s14   ;;  %s1118_s9 = smov %s920_s10 }
  0xce   : > { %p12_p0 = scmp.ge.s32.totalorder %s15_s14, 4   ;;  %s1119_s10 = smov %s924_s11 }
  0xcf   : > { %s1120_s11 = smov %s1006_s21  ;;  %s1121_s12 = smov %s932_s13 }
  0xd0   : > { %s1122_s13 = smov %s1124_s16  ;;  %14 = sbr.rel (!%p12_p0) target bundleno = 4 (0x4), region = 75 }
  0xd5   :  { %533 = vsyncpa [#allocation3], 1 }
  0xd6   :  { %535 = vsyncpa [#allocation3 + $0x1], 1 }

// kernel: forward.57
= control target key start
LH: loop header
LB: loop body
LE: loop exit
PB: predicated region body
PF: predicated region fallthrough
CT: control target
= control target key end

     0   :  { %7 = vsyncpa [#allocation3], 0  ;;  %s1187_s0 = inlined_call_operand.vmem [shape: bf16[8,2304], index: 0, kind: input, shape index: {}]   ;;  %s1188_s1 = inlined_call_operand.hbm [shape: bf16[2304,512], index: 1, kind: input, shape index: {}]   ;;  %s1189_s2 = inlined_call_operand.vmem [shape: f32[8,512], index: 2, kind: output, shape index: {}]  }
   0x1   :  { %9 = vsyncpa [#allocation3 + $0x1], 0  ;;  %s993_s9 = smov 0   ;;  %s995_s10 = smov 0  }
   0x2   :  { %s997_s11 = smov 0   ;;  %s999_s12 = smov 0  }
   0x3   :  { %s1001_s13 = smov 0   ;;  %s1003_s14 = smov 0  }
   0x4   :  { %s1005_s15 = smov 0   ;;  %s1007_s16 = smov 0  }
   0x5 LB: > { %s622_s17 = sadd.s32 4294967295, %s972_s16   ;;  %s27_s18 = sadd.s32 1, %s964_s14  ;;  %s972_s16 = sphi %s1007_s16, %s15_s16   ;;  %s968_s15 = sphi %s1005_s15, %s1198_s15   ;;  %s964_s14 = sphi %s1003_s14, %s1197_s14   ;;  %s960_s13 = sphi %s1001_s13, %s1196_s13   ;;  %s956_s12 = sphi %s999_s12, %s1195_s12   ;;  %s952_s11 = sphi %s997_s11, %s1194_s11   ;;  %s948_s10 = sphi %s995_s10, %s1193_s10   ;;  %s944_s9 = sphi %s993_s9, %s1192_s9  }
   0x6   : > { %p28_p0 = scmp.ge.s32.totalorder %s27_s18, 9  ;;  %s30_s19 = sadd.s32 1, %s968_s15 }
   0x7   : > { %s71_s20 = sadd.s32 1, %s952_s11  ;;  %p78_p1 = scmp.ne.s32.totalorder %s952_s11, %s948_s10 }
   0x8   : > { %s1200_s18 = smov (%p28_p0, %s27_s18), 0  ;;  %s1202_s19 = smov (!%p28_p0, %s30_s19), %s968_s15 }
   0x9   : > { %s66_s21 = ssub.s32 %s964_s14, %s1200_s18  ;;  %p79_p2 = scmp.eq.s32.totalorder %s972_s16, 0 }
   0xa   : > { %p32_p3 = scmp.ge.s32.totalorder %s1202_s19, 2  ;;  %p84_p4 = scmp.ne.s32.totalorder %s948_s10, %s944_s9 }
   0xb   : > { %p1044_p5 = por %p79_p2, %p78_p1  ;;  %p85_p6 = scmp.eq.s32.totalorder %s622_s17, 0 }
   0xc   : > { %s1204_s19 = smov (%p32_p3, %s1202_s19), 0  ;;  %p807_p8 = scmp.lt.s32.totalorder %s972_s16, 18 }
   0xd   : > { %p1050_p7 = por %p85_p6, %p84_p4  ;;  %s67_s24 = ssub.s32 %s968_s15, %s1204_s19 }
   0xe   : > { %s68_s25 = sor.u32 %s67_s24, %s66_s21  ;;  %s149_s26 = sand.u32 1, %s952_s11  }
   0xf   : > { %p69_p9 = scmp.eq.s32.totalorder %s68_s25, 0  ;;  %s626_s27 = sshll.u32 %s149_s26, 8 }
  0x10   : > { %s628_s28 = sshll.u32 %s968_s15, 1  ;;  %s768_s30 = sshll.u32 %s964_s14, 7 }
  0x11   : > { %s1060_s29 = scalar_select %p69_p9, %s952_s11, %s71_s20  }
  0x12   : > { %s159_s3 = sadd.s32 %s768_s30, %s628_s28  ;;  %s153_s4 = scalar_lea.vmem [#allocation2], %s626_s27 }
  0x13   : > { %s164_s5 = sshll.u32 %s153_s4, 4  ;;  %s630_s6 = sshll.u32 %s159_s3, 2  ;;  %s165_s5 = int_to_ptr.vmem [resolvable:$true] %s164_s5 }
  0x14   : > { %s161_s9 = scalar_lea.hbm %s1188_s1, %s630_s6  ;;  %p804_p10 = pnand %p807_p8, %p1044_p5 }
  0x15   : > { %s162_s17 = sshll.u32 %s161_s9, 4  ;;  %s150_s21 = scalar_lea.sflag [#allocation3], %s149_s26  ;;  %s163_s17 = int_to_ptr.hbm [resolvable:$true] %s162_s17 }
  0x16   : > { %s974_s20 = smov 256   ;;  %s975_s24 = smov 128  }
  0x17   : > { %s976_s25 = smov 8   ;;  %p631_p11 = scmp.ge.s32.totalorder %s972_s16, 1 }
  0x18   : > { %806 = dma.hbm_to_vmem [thread:$0]  (!%p804_p10), %s163_s17, 4096, %s165_s5, %s150_s21, %s974_s20, %s975_s24, %s976_s25  }
  0x19   : > { %p172_p12 = scmp.lt.s32.totalorder %s972_s16, 19 }
  0x1b   : > { %p173_p13 = pnand %p631_p11, %p172_p12 }
  0x1c   : > { %s178_s27 = sand.u32 (!%p173_p13), 1, %s948_s10  }
  0x1d   : > { %176 = sbr.rel (%p173_p13) target bundleno = 225 (0xe1), region = 28  ;;  %s632_s28 = sshll.u32 (!%p173_p13), %s178_s27, 8 }
  0x1e   : > { %s179_s30 = scalar_lea.sflag (!%p173_p13), [#allocation3], %s178_s27  ;;  %s1073_s3 = scalar_lea.vmem (!%p173_p13), [#allocation2], %s632_s28 }
  0x22   : > { %939 = dma.done.wait (%p1050_p7), %s179_s30, 4096  }
  0x23   : > { %941 = vsyncadd (%p1050_p7), %s179_s30, 4294963200  ;;  %s633_s22 = sshll.u32 %s956_s12, 1  ;;  %s635_s26 = sshll.u32 %s960_s13, 1 }
  0x24   : > { %p220_p0 = scmp.lt.s32.totalorder %s633_s22, 17  ;;  %p232_p1 = scmp.lt.s32.totalorder %s635_s26, 3 }
  0x25   : > { %p637_p2 = scmp.ne.s32.totalorder %s956_s12, 0 }
  0x26   : > { %s1206_s22 = smov (!%p220_p0, %s633_s22), 17  ;;  %s1208_s26 = smov (!%p232_p1, %s635_s26), 3 }
  0x27   : > { %s634_s4 = sshll.u32 %s1206_s22, 2  ;;  %s636_s8 = sshll.u32 %s1208_s26, 3 }
  0x28   : > { %s1084_s7 = scalar_lea.vmem %s1187_s0, %s634_s4  ;;  %s1089_s23 = scalar_lea.vmem %s1189_s2, %s636_s8 }
  0x29   : > { %242 = sbr.rel (%p637_p2) target bundleno = 49 (0x31), region = 36 }
  0x2e   : > { %v977_v0 = vmov 0.0  }
  0x2f   : > { %243 = vst [vmem:[%s1089_s23] sm:$0xff] %v977_v0 }
  0x30   : > { %244 = vst [vmem:[%s1089_s23 + $0x8] sm:$0xff] %v977_v0 }
  0x31 PF: > { %v696_v1 = vld [vmem:[%s1073_s3 + $0x70] sm:$0xf]  ;;  %v784_v2 = vld [vmem:[%s1073_s3 + $0x74] sm:$0xf0]  ;;  %v783_v6 = vld [vmem:[%s1073_s3 + $0x74] sm:$0xf] }
  0x32   : > { %v760_v3 = vld [vmem:[%s1073_s3 + $0xf0] sm:$0xf]  ;;  %v697_v4 = vor.u32 %v784_v2, %v696_v1  ;;  %v800_v5 = vld [vmem:[%s1073_s3 + $0xf4] sm:$0xf0]  ;;  %v698_v7 = vld [vmem:[%s1073_s3 + $0x78] sm:$0xf0] }
  0x33   : > { %v761_v8 = vor.u32 %v800_v5, %v760_v3  ;;  %v701_v9 = vor.u32 %v783_v6, %v698_v7  ;;  %v799_v10 = vld [vmem:[%s1073_s3 + $0xf4] sm:$0xf]  ;;  %v762_v11 = vld [vmem:[%s1073_s3 + $0xf8] sm:$0xf0]  ;;  %v688_v12 = vld [vmem:[%s1073_s3 + $0x60] sm:$0xf] }
  0x34   : > { %447 = vmatpush.bf16.msra.mxu0 %v697_v4  ;;  %v765_v13 = vor.u32 %v799_v10, %v762_v11  ;;  %v782_v14 = vld [vmem:[%s1073_s3 + $0x64] sm:$0xf0]  ;;  %v752_v15 = vld [vmem:[%s1073_s3 + $0xe0] sm:$0xf]  ;;  %v781_v19 = vld [vmem:[%s1073_s3 + $0x64] sm:$0xf] }
  0x35   : > { %v798_v16 = vld [vmem:[%s1073_s3 + $0xe4] sm:$0xf0]  ;;  %460 = vmatpush.bf16.msra.mxu1 %v761_v8  ;;  %473 = vmatpush.bf16.msra.mxu2 %v701_v9  ;;  %v689_v17 = vor.u32 %v782_v14, %v688_v12  ;;  %v690_v20 = vld [vmem:[%s1073_s3 + $0x68] sm:$0xf0]  ;;  %v797_v21 = vld [vmem:[%s1073_s3 + $0xe4] sm:$0xf] }
  0x36   : > { %v753_v18 = vor.u32 %v798_v16, %v752_v15  ;;  %486 = vmatpush.bf16.msra.mxu3 %v765_v13  ;;  %v693_v22 = vor.u32 %v781_v19, %v690_v20  ;;  %v754_v23 = vld [vmem:[%s1073_s3 + $0xe8] sm:$0xf0]  ;;  %v680_v24 = vld [vmem:[%s1073_s3 + $0x50] sm:$0xf]  ;;  %v780_v25 = vld [vmem:[%s1073_s3 + $0x54] sm:$0xf0] }
  0x37   : > { %v757_v26 = vor.u32 %v797_v21, %v754_v23  ;;  %v744_v27 = vld [vmem:[%s1073_s3 + $0xd0] sm:$0xf]  ;;  %v796_v28 = vld [vmem:[%s1073_s3 + $0xd4] sm:$0xf0]  ;;  %v779_v29 = vld [vmem:[%s1073_s3 + $0x54] sm:$0xf]  ;;  %v681_v30 = vor.u32 %v780_v25, %v680_v24 }
  0x38   : > { %448 = vmatpush.bf16.msra.mxu0 %v689_v17  ;;  %v682_v31 = vld [vmem:[%s1073_s3 + $0x58] sm:$0xf0]  ;;  %v795_v32 = vld [vmem:[%s1073_s3 + $0xd4] sm:$0xf]  ;;  %v745_v34 = vor.u32 %v796_v28, %v744_v27  ;;  %v672_v36 = vld [vmem:[%s1073_s3 + $0x40] sm:$0xf] }
  0x39   : > { %v746_v33 = vld [vmem:[%s1073_s3 + $0xd8] sm:$0xf0]  ;;  %461 = vmatpush.bf16.msra.mxu1 %v753_v18  ;;  %474 = vmatpush.bf16.msra.mxu2 %v693_v22  ;;  %v685_v35 = vor.u32 %v779_v29, %v682_v31  ;;  %v778_v37 = vld [vmem:[%s1073_s3 + $0x44] sm:$0xf0]  ;;  %v736_v38 = vld [vmem:[%s1073_s3 + $0xc0] sm:$0xf] }
  0x3a   : > { %487 = vmatpush.bf16.msra.mxu3 %v757_v26  ;;  %v749_v39 = vor.u32 %v795_v32, %v746_v33  ;;  %v794_v40 = vld [vmem:[%s1073_s3 + $0xc4] sm:$0xf0]  ;;  %v777_v41 = vld [vmem:[%s1073_s3 + $0x44] sm:$0xf]  ;;  %v674_v42 = vld [vmem:[%s1073_s3 + $0x48] sm:$0xf0]  ;;  %v673_v45 = vor.u32 %v778_v37, %v672_v36 }
  0x3b   : > { %v793_v43 = vld [vmem:[%s1073_s3 + $0xc4] sm:$0xf]  ;;  %v738_v44 = vld [vmem:[%s1073_s3 + $0xc8] sm:$0xf0]  ;;  %v737_v46 = vor.u32 %v794_v40, %v736_v38  ;;  %v677_v47 = vor.u32 %v777_v41, %v674_v42  ;;  %v664_v48 = vld [vmem:[%s1073_s3 + $0x30] sm:$0xf] }
  0x3c   : > { %449 = vmatpush.bf16.msra.mxu0 %v681_v30  ;;  %v776_v49 = vld [vmem:[%s1073_s3 + $0x34] sm:$0xf0]  ;;  %v728_v50 = vld [vmem:[%s1073_s3 + $0xb0] sm:$0xf]  ;;  %v741_v51 = vor.u32 %v793_v43, %v738_v44  ;;  %v775_v53 = vld [vmem:[%s1073_s3 + $0x34] sm:$0xf] }
  0x3d   : > { %462 = vmatpush.bf16.msra.mxu1 %v745_v34  ;;  %475 = vmatpush.bf16.msra.mxu2 %v685_v35  ;;  %v792_v52 = vld [vmem:[%s1073_s3 + $0xb4] sm:$0xf0]  ;;  %v666_v54 = vld [vmem:[%s1073_s3 + $0x38] sm:$0xf0]  ;;  %v791_v55 = vld [vmem:[%s1073_s3 + $0xb4] sm:$0xf]  ;;  %v665_v57 = vor.u32 %v776_v49, %v664_v48 }
  0x3e   : > { %488 = vmatpush.bf16.msra.mxu3 %v749_v39  ;;  %v730_v56 = vld [vmem:[%s1073_s3 + $0xb8] sm:$0xf0]  ;;  %v729_v58 = vor.u32 %v792_v52, %v728_v50  ;;  %v669_v59 = vor.u32 %v775_v53, %v666_v54  ;;  %v656_v60 = vld [vmem:[%s1073_s3 + $0x20] sm:$0xf]  ;;  %v774_v61 = vld [vmem:[%s1073_s3 + $0x24] sm:$0xf0] }
  0x3f   : > { %v720_v62 = vld [vmem:[%s1073_s3 + $0xa0] sm:$0xf]  ;;  %v733_v63 = vor.u32 %v791_v55, %v730_v56  ;;  %v790_v0 = vld [vmem:[%s1073_s3 + $0xa4] sm:$0xf0]  ;;  %v773_v1 = vld [vmem:[%s1073_s3 + $0x24] sm:$0xf]  ;;  %v657_v5 = vor.u32 %v774_v61, %v656_v60 }
  0x40   : > { %450 = vmatpush.bf16.msra.mxu0 %v673_v45  ;;  %v658_v2 = vld [vmem:[%s1073_s3 + $0x28] sm:$0xf0]  ;;  %v789_v3 = vld [vmem:[%s1073_s3 + $0xa4] sm:$0xf]  ;;  %v721_v6 = vor.u32 %v790_v0, %v720_v62  ;;  %v648_v8 = vld [vmem:[%s1073_s3 + $0x10] sm:$0xf] }
  0x41   : > { %463 = vmatpush.bf16.msra.mxu1 %v737_v46  ;;  %476 = vmatpush.bf16.msra.mxu2 %v677_v47  ;;  %v722_v4 = vld [vmem:[%s1073_s3 + $0xa8] sm:$0xf0]  ;;  %v661_v7 = vor.u32 %v773_v1, %v658_v2  ;;  %v772_v9 = vld [vmem:[%s1073_s3 + $0x14] sm:$0xf0]  ;;  %v712_v10 = vld [vmem:[%s1073_s3 + $0x90] sm:$0xf] }
  0x42   : > { %489 = vmatpush.bf16.msra.mxu3 %v741_v51  ;;  %v725_v11 = vor.u32 %v789_v3, %v722_v4  ;;  %v788_v12 = vld [vmem:[%s1073_s3 + $0x94] sm:$0xf0]  ;;  %v771_v13 = vld [vmem:[%s1073_s3 + $0x14] sm:$0xf]  ;;  %v650_v14 = vld [vmem:[%s1073_s3 + $0x18] sm:$0xf0]  ;;  %v649_v17 = vor.u32 %v772_v9, %v648_v8 }
  0x43   : > { %v787_v15 = vld [vmem:[%s1073_s3 + $0x94] sm:$0xf]  ;;  %v714_v16 = vld [vmem:[%s1073_s3 + $0x98] sm:$0xf0]  ;;  %v247_v18 = vld [vmem:[%s1084_s7] sm:$0xff]  ;;  %v713_v19 = vor.u32 %v788_v12, %v712_v10  ;;  %v653_v20 = vor.u32 %v771_v13, %v650_v14 }
  0x44   : > { %451 = vmatpush.bf16.msra.mxu0 %v665_v57  ;;  %v640_v21 = vld [vmem:[%s1073_s3] sm:$0xf]  ;;  %v770_v22 = vld [vmem:[%s1073_s3 + $0x4] sm:$0xf0]  ;;  %v717_v24 = vor.u32 %v787_v15, %v714_v16  ;;  %v769_v26 = vld [vmem:[%s1073_s3 + $0x4] sm:$0xf]  ;;  %v281_v30 = vunpack.c.l.b16 %v247_v18  ;;  %v282_v32 = vunpack.c.h.b16 %v247_v18 }
  0x45   : > { %464 = vmatpush.bf16.msra.mxu1 %v729_v58  ;;  %477 = vmatpush.bf16.msra.mxu2 %v669_v59  ;;  %v704_v23 = vld [vmem:[%s1073_s3 + $0x80] sm:$0xf]  ;;  %v786_v25 = vld [vmem:[%s1073_s3 + $0x84] sm:$0xf0]  ;;  %v642_v27 = vld [vmem:[%s1073_s3 + $0x8] sm:$0xf0]  ;;  %v641_v31 = vor.u32 %v770_v22, %v640_v21 }
  0x46   : > { %490 = vmatpush.bf16.msra.mxu3 %v733_v63  ;;  %v785_v28 = vld [vmem:[%s1073_s3 + $0x84] sm:$0xf]  ;;  %v706_v29 = vld [vmem:[%s1073_s3 + $0x88] sm:$0xf0]  ;;  %v705_v33 = vor.u32 %v786_v25, %v704_v23  ;;  %v645_v34 = vor.u32 %v769_v26, %v642_v27  ;;  %v283_v36 = vpack.c.b16 %v281_v30, %v281_v30  ;;  %v284_v37 = vpack.c.b16 %v282_v32, %v282_v32 }
  0x47   : > { %v709_v35 = vor.u32 %v785_v28, %v706_v29  ;;  %v245_v39 = vld [vmem:[%s1089_s23] sm:$0xff]  ;;  %v246_v42 = vld [vmem:[%s1089_s23 + $0x8] sm:$0xff] }
  0x48   : > { %452 = vmatpush.bf16.msra.mxu0 %v657_v5 }
  0x49   : > { %465 = vmatpush.bf16.msra.mxu1 %v721_v6  ;;  %478 = vmatpush.bf16.msra.mxu2 %v661_v7 }
  0x4a   : > { %491 = vmatpush.bf16.msra.mxu3 %v725_v11 }
  0x4c   : > { %453 = vmatpush.bf16.msra.mxu0 %v649_v17 }
  0x4d   : > { %466 = vmatpush.bf16.msra.mxu1 %v713_v19  ;;  %479 = vmatpush.bf16.msra.mxu2 %v653_v20 }
  0x4e   : > { %492 = vmatpush.bf16.msra.mxu3 %v717_v24 }
  0x50   : > { %454 = vmatpush.bf16.msra.mxu0 %v641_v31 }
  0x51   : > { %467 = vmatpush.bf16.msra.mxu1 %v705_v33  ;;  %480 = vmatpush.bf16.msra.mxu2 %v645_v34 }
  0x52   : > { %493 = vmatpush.bf16.msra.mxu3 %v709_v35 }
  0x53   : > { %455 = vmatmul.bf16.vlgmr.msra.gmra.mxu0 %v283_v36 }
  0x54   : > { %468 = vmatmul.bf16.vlgmr.msra.gmra.mxu1 %v284_v37  ;;  %481 = vmatmul.bf16.vlgmr.msra.gmra.mxu2 %v283_v36 }
  0x55   : > { %494 = vmatmul.bf16.vlgmr.msra.gmra.mxu3 %v284_v37 }
  0xd0   : > { %v456_v38 = vpop.f32.mrf.mxu0 }
  0xd1   : > { %v469_v40 = vpop.f32.mrf.mxu1 }
  0xd2   : > { %v470_v41 = vadd.f32 %v469_v40, %v456_v38 }
  0xd4   : > { %v499_v43 = vadd.f32 %v470_v41, %v245_v39 }
  0xd6   : > { %501 = vst [vmem:[%s1089_s23] sm:$0xff] %v499_v43 }
  0xd7   : > { %v482_v44 = vpop.f32.mrf.mxu2 }
  0xd8   : > { %v495_v45 = vpop.f32.mrf.mxu3  ;;  %v458_v46 = vpop.f32.mrf.mxu0 }
  0xd9   : > { %v496_v47 = vadd.f32 %v495_v45, %v482_v44  ;;  %v471_v48 = vpop.f32.mrf.mxu1 }
  0xdb   : > { %v500_v49 = vadd.f32 %v496_v47, %v246_v42 }
  0xdd   : > { %502 = vst [vmem:[%s1089_s23 + $0x8] sm:$0xff] %v500_v49 }
  0xdf   : > { %v484_v50 = vpop.f32.mrf.mxu2 }
  0xe0   : > { %v497_v51 = vpop.f32.mrf.mxu3 }
  0xe1 PF: > { %s15_s16 = sadd.s32 1, %s972_s16   ;;  %s1192_s9 = smov %s948_s10 }
  0xe2   : > { %p12_p3 = scmp.ge.s32.totalorder %s15_s16, 20   ;;  %s1193_s10 = smov %s952_s11 }
  0xe3   : > { %s1194_s11 = smov %s1060_s29  ;;  %s1195_s12 = smov %s964_s14 }
  0xe4   : > { %s1196_s13 = smov %s968_s15  ;;  %s1197_s14 = smov %s1200_s18 }
  0xe5   : > { %s1198_s15 = smov %s1204_s19  ;;  %14 = sbr.rel (!%p12_p3) target bundleno = 5 (0x5), region = 75 }
  0xea   :  { %533 = vsyncpa [#allocation3], 1 }
  0xeb   :  { %535 = vsyncpa [#allocation3 + $0x1], 1 }

// kernel: forward.53
= control target key start
LH: loop header
LB: loop body
LE: loop exit
PB: predicated region body
PF: predicated region fallthrough
CT: control target
= control target key end

     0   :  { %s92_s0 = inlined_call_operand.vmem [shape: f32[8,512], index: 0, kind: input, shape index: {}]   ;;  %s93_s1 = inlined_call_operand.vmem [shape: f32[8,512], index: 1, kind: input, shape index: {}]   ;;  %s94_s2 = inlined_call_operand.vmem [shape: bf16[8,512], index: 2, kind: output, shape index: {}]  }
   0x1   :  { %v11_v0 = vld [vmem:[%s93_s1] sm:$0xff]  ;;  %v12_v1 = vld [vmem:[%s93_s1 + $0x8] sm:$0xff]  ;;  %v13_v8 = vld [vmem:[%s93_s1 + $0x10] sm:$0xff] }
   0x2   :  { %v15_v2 = vld [vmem:[%s92_s0] sm:$0xff]  ;;  %v16_v3 = vld [vmem:[%s92_s0 + $0x8] sm:$0xff]  ;;  %v19_v4 = vperm.slane %v11_v0, 0  ;;  %v20_v5 = vperm.slane %v12_v1, 0  ;;  %v27_v6 = vperm.slane %v11_v0, 1  ;;  %v28_v7 = vperm.slane %v12_v1, 1 }
   0x3   :  { %v14_v9 = vld [vmem:[%s93_s1 + $0x18] sm:$0xff]  ;;  %v17_v10 = vld [vmem:[%s92_s0 + $0x10] sm:$0xff]  ;;  %v21_v12 = vperm.slane %v13_v8, 0  ;;  %v29_v13 = vperm.slane %v13_v8, 1 }
   0x4   :  { %v18_v11 = vld [vmem:[%s92_s0 + $0x18] sm:$0xff]  ;;  %v23_v14 = vmul.f32 %v19_v4, %v15_v2  ;;  %v24_v15 = vmul.f32 %v20_v5, %v16_v3  ;;  %v22_v16 = vperm.slane %v14_v9, 0  ;;  %v30_v17 = vperm.slane %v14_v9, 1 }
   0x5   :  { %v25_v18 = vmul.f32 %v21_v12, %v17_v10 }
   0x6   :  { %v31_v19 = vadd.f32 %v27_v6, %v23_v14  ;;  %v32_v20 = vadd.f32 %v28_v7, %v24_v15  ;;  %v26_v21 = vmul.f32 %v22_v16, %v18_v11 }
   0x7   :  { %v33_v22 = vadd.f32 %v29_v13, %v25_v18 }
   0x8   :  { %v35_v23 = vmax.f32 %v31_v19, 0.0  ;;  %v36_v24 = vmax.f32 %v32_v20, 0.0  ;;  %v34_v25 = vadd.f32 %v30_v17, %v26_v21 }
   0x9   :  { %v37_v26 = vmax.f32 %v33_v22, 0.0 }
   0xa   :  { %v39_v27 = vpack.c.bf16 %v36_v24, %v35_v23  ;;  %v38_v28 = vmax.f32 %v34_v25, 0.0 }
   0xc   :  { %41 = vst [vmem:[%s94_s2] sm:$0xff] %v39_v27  ;;  %v40_v29 = vpack.c.bf16 %v38_v28, %v37_v26 }
   0xe   :  { %42 = vst [vmem:[%s94_s2 + $0x8] sm:$0xff] %v40_v29 }

// kernel: forward.54
= control target key start
LH: loop header
LB: loop body
LE: loop exit
PB: predicated region body
PF: predicated region fallthrough
CT: control target
= control target key end

     0   :  { %7 = vsyncpa [#allocation3], 0  ;;  %s1680_s0 = inlined_call_operand.vmem [shape: bf16[8,4608], index: 0, kind: input, shape index: {}]   ;;  %s1681_s1 = inlined_call_operand.hbm [shape: bf16[4608,512], index: 1, kind: input, shape index: {}]   ;;  %s1682_s2 = inlined_call_operand.vmem [shape: f32[8,512], index: 2, kind: output, shape index: {}]  }
   0x1   :  { %9 = vsyncpa [#allocation3 + $0x1], 0  ;;  %s1405_s9 = smov 0   ;;  %s1407_s10 = smov 0  }
   0x2   :  { %s1409_s11 = smov 0   ;;  %s1411_s12 = smov 0  }
   0x3   :  { %s1413_s13 = smov 0   ;;  %s1415_s14 = smov 0  }
   0x4   :  { %s1417_s15 = smov 0   ;;  %s1419_s16 = smov 0  }
   0x5 LB: > { %s874_s17 = sadd.s32 4294967295, %s1384_s16   ;;  %s27_s18 = sadd.s32 1, %s1376_s14  ;;  %s1384_s16 = sphi %s1419_s16, %s15_s16   ;;  %s1380_s15 = sphi %s1417_s15, %s1691_s15   ;;  %s1376_s14 = sphi %s1415_s14, %s1690_s14   ;;  %s1372_s13 = sphi %s1413_s13, %s1689_s13   ;;  %s1368_s12 = sphi %s1411_s12, %s1688_s12   ;;  %s1364_s11 = sphi %s1409_s11, %s1687_s11   ;;  %s1360_s10 = sphi %s1407_s10, %s1686_s10   ;;  %s1356_s9 = sphi %s1405_s9, %s1685_s9  }
   0x6   : > { %p28_p0 = scmp.ge.s32.totalorder %s27_s18, 9  ;;  %s30_s19 = sadd.s32 1, %s1380_s15 }
   0x7   : > { %s71_s20 = sadd.s32 1, %s1364_s11  ;;  %p78_p1 = scmp.ne.s32.totalorder %s1364_s11, %s1360_s10 }
   0x8   : > { %s1693_s18 = smov (%p28_p0, %s27_s18), 0  ;;  %s1695_s19 = smov (!%p28_p0, %s30_s19), %s1380_s15 }
   0x9   : > { %s66_s21 = ssub.s32 %s1376_s14, %s1693_s18  ;;  %p79_p2 = scmp.eq.s32.totalorder %s1384_s16, 0 }
   0xa   : > { %p32_p3 = scmp.ge.s32.totalorder %s1695_s19, 2  ;;  %p84_p4 = scmp.ne.s32.totalorder %s1360_s10, %s1356_s9 }
   0xb   : > { %p1456_p5 = por %p79_p2, %p78_p1  ;;  %p85_p6 = scmp.eq.s32.totalorder %s874_s17, 0 }
   0xc   : > { %s1697_s19 = smov (%p32_p3, %s1695_s19), 0  ;;  %p1219_p8 = scmp.lt.s32.totalorder %s1384_s16, 18 }
   0xd   : > { %p1462_p7 = por %p85_p6, %p84_p4  ;;  %s67_s24 = ssub.s32 %s1380_s15, %s1697_s19 }
   0xe   : > { %s68_s25 = sor.u32 %s67_s24, %s66_s21  ;;  %s149_s26 = sand.u32 1, %s1364_s11  }
   0xf   : > { %p69_p9 = scmp.eq.s32.totalorder %s68_s25, 0  ;;  %s878_s27 = sshll.u32 %s149_s26, 9 }
  0x10   : > { %s880_s28 = sshll.u32 %s1380_s15, 1  ;;  %s1148_s30 = sshll.u32 %s1376_s14, 8 }
  0x11   : > { %s1472_s29 = scalar_select %p69_p9, %s1364_s11, %s71_s20  }
  0x12   : > { %s159_s3 = sadd.s32 %s1148_s30, %s880_s28  ;;  %s153_s4 = scalar_lea.vmem [#allocation2], %s878_s27 }
  0x13   : > { %s164_s5 = sshll.u32 %s153_s4, 4  ;;  %s882_s6 = sshll.u32 %s159_s3, 2  ;;  %s165_s5 = int_to_ptr.vmem [resolvable:$true] %s164_s5 }
  0x14   : > { %s161_s9 = scalar_lea.hbm %s1681_s1, %s882_s6  ;;  %p1216_p10 = pnand %p1219_p8, %p1456_p5 }
  0x15   : > { %s162_s17 = sshll.u32 %s161_s9, 4  ;;  %s150_s21 = scalar_lea.sflag [#allocation3], %s149_s26  ;;  %s163_s17 = int_to_ptr.hbm [resolvable:$true] %s162_s17 }
  0x16   : > { %s1386_s20 = smov 256   ;;  %s1387_s24 = smov 128  }
  0x17   : > { %s1388_s25 = smov 8   ;;  %p883_p11 = scmp.ge.s32.totalorder %s1384_s16, 1 }
  0x18   : > { %1218 = dma.hbm_to_vmem [thread:$0]  (!%p1216_p10), %s163_s17, 8192, %s165_s5, %s150_s21, %s1386_s20, %s1387_s24, %s1388_s25  }
  0x19   : > { %p172_p12 = scmp.lt.s32.totalorder %s1384_s16, 19 }
  0x1b   : > { %p173_p13 = pnand %p883_p11, %p172_p12 }
  0x1c   : > { %s178_s27 = sand.u32 (!%p173_p13), 1, %s1360_s10  }
  0x1d   : > { %176 = sbr.rel (%p173_p13) target bundleno = 258 (0x102), region = 28  ;;  %s884_s28 = sshll.u32 (!%p173_p13), %s178_s27, 9 }
  0x1e   : > { %s179_s30 = scalar_lea.sflag (!%p173_p13), [#allocation3], %s178_s27  ;;  %s1485_s3 = scalar_lea.vmem (!%p173_p13), [#allocation2], %s884_s28 }
  0x22   : > { %1351 = dma.done.wait (%p1462_p7), %s179_s30, 8192  }
  0x23   : > { %1353 = vsyncadd (%p1462_p7), %s179_s30, 4294959104  ;;  %s885_s22 = sshll.u32 %s1368_s12, 2  ;;  %s887_s26 = sshll.u32 %s1372_s13, 1 }
  0x24   : > { %p220_p0 = scmp.lt.s32.totalorder %s885_s22, 35  ;;  %p232_p1 = scmp.lt.s32.totalorder %s887_s26, 3 }
  0x25   : > { %p889_p2 = scmp.ne.s32.totalorder %s1368_s12, 0 }
  0x26   : > { %s1699_s22 = smov (!%p220_p0, %s885_s22), 35  ;;  %s1701_s26 = smov (!%p232_p1, %s887_s26), 3 }
  0x27   : > { %s886_s4 = sshll.u32 %s1699_s22, 2  ;;  %s888_s8 = sshll.u32 %s1701_s26, 3 }
  0x28   : > { %s1496_s7 = scalar_lea.vmem %s1680_s0, %s886_s4  ;;  %s1501_s23 = scalar_lea.vmem %s1682_s2, %s888_s8 }
  0x29   : > { %242 = sbr.rel (%p889_p2) target bundleno = 49 (0x31), region = 36 }
  0x2e   : > { %v1389_v0 = vmov 0.0  }
  0x2f   : > { %243 = vst [vmem:[%s1501_s23] sm:$0xff] %v1389_v0 }
  0x30   : > { %244 = vst [vmem:[%s1501_s23 + $0x8] sm:$0xff] %v1389_v0 }
  0x31 PF: > { %v948_v1 = vld [vmem:[%s1485_s3 + $0x70] sm:$0xf]  ;;  %v1164_v2 = vld [vmem:[%s1485_s3 + $0x74] sm:$0xf0]  ;;  %v940_v12 = vld [vmem:[%s1485_s3 + $0x60] sm:$0xf] }
  0x32   : > { %v1012_v3 = vld [vmem:[%s1485_s3 + $0xf0] sm:$0xf]  ;;  %v949_v4 = vor.u32 %v1164_v2, %v948_v1  ;;  %v1180_v5 = vld [vmem:[%s1485_s3 + $0xf4] sm:$0xf0]  ;;  %v1162_v14 = vld [vmem:[%s1485_s3 + $0x64] sm:$0xf0] }
  0x33   : > { %v1076_v6 = vld [vmem:[%s1485_s3 + $0x170] sm:$0xf]  ;;  %v1196_v7 = vld [vmem:[%s1485_s3 + $0x174] sm:$0xf0]  ;;  %v1013_v8 = vor.u32 %v1180_v5, %v1012_v3  ;;  %v1004_v15 = vld [vmem:[%s1485_s3 + $0xe0] sm:$0xf]  ;;  %v941_v17 = vor.u32 %v1162_v14, %v940_v12 }
  0x34   : > { %v1077_v9 = vor.u32 %v1196_v7, %v1076_v6  ;;  %v1140_v10 = vld [vmem:[%s1485_s3 + $0x1f0] sm:$0xf]  ;;  %v1212_v11 = vld [vmem:[%s1485_s3 + $0x1f4] sm:$0xf0]  ;;  %647 = vmatpush.bf16.msra.mxu0 %v949_v4  ;;  %v1178_v16 = vld [vmem:[%s1485_s3 + $0xe4] sm:$0xf0] }
  0x35   : > { %v1141_v13 = vor.u32 %v1212_v11, %v1140_v10  ;;  %660 = vmatpush.bf16.msra.mxu1 %v1013_v8  ;;  %v1005_v18 = vor.u32 %v1178_v16, %v1004_v15  ;;  %v1068_v19 = vld [vmem:[%s1485_s3 + $0x160] sm:$0xf]  ;;  %v1194_v20 = vld [vmem:[%s1485_s3 + $0x164] sm:$0xf0]  ;;  %v932_v24 = vld [vmem:[%s1485_s3 + $0x50] sm:$0xf] }
  0x36   : > { %673 = vmatpush.bf16.msra.mxu2 %v1077_v9  ;;  %v1132_v21 = vld [vmem:[%s1485_s3 + $0x1e0] sm:$0xf]  ;;  %v1069_v22 = vor.u32 %v1194_v20, %v1068_v19  ;;  %v1210_v23 = vld [vmem:[%s1485_s3 + $0x1e4] sm:$0xf0]  ;;  %v1160_v25 = vld [vmem:[%s1485_s3 + $0x54] sm:$0xf0] }
  0x37   : > { %686 = vmatpush.bf16.msra.mxu3 %v1141_v13  ;;  %v1133_v26 = vor.u32 %v1210_v23, %v1132_v21  ;;  %v996_v27 = vld [vmem:[%s1485_s3 + $0xd0] sm:$0xf]  ;;  %v1176_v28 = vld [vmem:[%s1485_s3 + $0xd4] sm:$0xf0]  ;;  %v933_v30 = vor.u32 %v1160_v25, %v932_v24  ;;  %v924_v36 = vld [vmem:[%s1485_s3 + $0x40] sm:$0xf] }
  0x38   : > { %v1060_v29 = vld [vmem:[%s1485_s3 + $0x150] sm:$0xf]  ;;  %648 = vmatpush.bf16.msra.mxu0 %v941_v17  ;;  %v1192_v31 = vld [vmem:[%s1485_s3 + $0x154] sm:$0xf0]  ;;  %v997_v34 = vor.u32 %v1176_v28, %v996_v27  ;;  %v1158_v37 = vld [vmem:[%s1485_s3 + $0x44] sm:$0xf0] }
  0x39   : > { %v1124_v32 = vld [vmem:[%s1485_s3 + $0x1d0] sm:$0xf]  ;;  %v1208_v33 = vld [vmem:[%s1485_s3 + $0x1d4] sm:$0xf0]  ;;  %661 = vmatpush.bf16.msra.mxu1 %v1005_v18  ;;  %v1061_v35 = vor.u32 %v1192_v31, %v1060_v29  ;;  %v988_v38 = vld [vmem:[%s1485_s3 + $0xc0] sm:$0xf]  ;;  %v925_v45 = vor.u32 %v1158_v37, %v924_v36 }
  0x3a   : > { %674 = vmatpush.bf16.msra.mxu2 %v1069_v22  ;;  %v1125_v39 = vor.u32 %v1208_v33, %v1124_v32  ;;  %v1174_v40 = vld [vmem:[%s1485_s3 + $0xc4] sm:$0xf0]  ;;  %v1052_v41 = vld [vmem:[%s1485_s3 + $0x140] sm:$0xf]  ;;  %v916_v48 = vld [vmem:[%s1485_s3 + $0x30] sm:$0xf] }
  0x3b   : > { %687 = vmatpush.bf16.msra.mxu3 %v1133_v26  ;;  %v1190_v42 = vld [vmem:[%s1485_s3 + $0x144] sm:$0xf0]  ;;  %v1116_v43 = vld [vmem:[%s1485_s3 + $0x1c0] sm:$0xf]  ;;  %v989_v46 = vor.u32 %v1174_v40, %v988_v38  ;;  %v1156_v49 = vld [vmem:[%s1485_s3 + $0x34] sm:$0xf0] }
  0x3c   : > { %v1206_v44 = vld [vmem:[%s1485_s3 + $0x1c4] sm:$0xf0]  ;;  %649 = vmatpush.bf16.msra.mxu0 %v933_v30  ;;  %v1053_v47 = vor.u32 %v1190_v42, %v1052_v41  ;;  %v980_v50 = vld [vmem:[%s1485_s3 + $0xb0] sm:$0xf]  ;;  %v1172_v52 = vld [vmem:[%s1485_s3 + $0xb4] sm:$0xf0]  ;;  %v917_v57 = vor.u32 %v1156_v49, %v916_v48 }
  0x3d   : > { %662 = vmatpush.bf16.msra.mxu1 %v997_v34  ;;  %v1117_v51 = vor.u32 %v1206_v44, %v1116_v43  ;;  %v1044_v53 = vld [vmem:[%s1485_s3 + $0x130] sm:$0xf]  ;;  %v1188_v54 = vld [vmem:[%s1485_s3 + $0x134] sm:$0xf0]  ;;  %v981_v58 = vor.u32 %v1172_v52, %v980_v50  ;;  %v908_v60 = vld [vmem:[%s1485_s3 + $0x20] sm:$0xf] }
  0x3e   : > { %675 = vmatpush.bf16.msra.mxu2 %v1061_v35  ;;  %v1108_v55 = vld [vmem:[%s1485_s3 + $0x1b0] sm:$0xf]  ;;  %v1204_v56 = vld [vmem:[%s1485_s3 + $0x1b4] sm:$0xf0]  ;;  %v1045_v59 = vor.u32 %v1188_v54, %v1044_v53  ;;  %v1154_v61 = vld [vmem:[%s1485_s3 + $0x24] sm:$0xf0] }
  0x3f   : > { %688 = vmatpush.bf16.msra.mxu3 %v1125_v39  ;;  %v972_v62 = vld [vmem:[%s1485_s3 + $0xa0] sm:$0xf]  ;;  %v1109_v63 = vor.u32 %v1204_v56, %v1108_v55  ;;  %v1170_v0 = vld [vmem:[%s1485_s3 + $0xa4] sm:$0xf0]  ;;  %v909_v5 = vor.u32 %v1154_v61, %v908_v60  ;;  %v900_v8 = vld [vmem:[%s1485_s3 + $0x10] sm:$0xf] }
  0x40   : > { %650 = vmatpush.bf16.msra.mxu0 %v925_v45  ;;  %v1036_v1 = vld [vmem:[%s1485_s3 + $0x120] sm:$0xf]  ;;  %v1186_v2 = vld [vmem:[%s1485_s3 + $0x124] sm:$0xf0]  ;;  %v973_v6 = vor.u32 %v1170_v0, %v972_v62  ;;  %v1152_v9 = vld [vmem:[%s1485_s3 + $0x14] sm:$0xf0] }
  0x41   : > { %663 = vmatpush.bf16.msra.mxu1 %v989_v46  ;;  %v1100_v3 = vld [vmem:[%s1485_s3 + $0x1a0] sm:$0xf]  ;;  %v1202_v4 = vld [vmem:[%s1485_s3 + $0x1a4] sm:$0xf0]  ;;  %v1037_v7 = vor.u32 %v1186_v2, %v1036_v1  ;;  %v964_v10 = vld [vmem:[%s1485_s3 + $0x90] sm:$0xf]  ;;  %v901_v17 = vor.u32 %v1152_v9, %v900_v8 }
  0x42   : > { %676 = vmatpush.bf16.msra.mxu2 %v1053_v47  ;;  %v1101_v11 = vor.u32 %v1202_v4, %v1100_v3  ;;  %v1168_v12 = vld [vmem:[%s1485_s3 + $0x94] sm:$0xf0]  ;;  %v1028_v13 = vld [vmem:[%s1485_s3 + $0x110] sm:$0xf]  ;;  %v892_v18 = vld [vmem:[%s1485_s3] sm:$0xf] }
  0x43   : > { %689 = vmatpush.bf16.msra.mxu3 %v1117_v51  ;;  %v1184_v14 = vld [vmem:[%s1485_s3 + $0x114] sm:$0xf0]  ;;  %v1092_v15 = vld [vmem:[%s1485_s3 + $0x190] sm:$0xf]  ;;  %v1150_v19 = vld [vmem:[%s1485_s3 + $0x4] sm:$0xf0]  ;;  %v965_v21 = vor.u32 %v1168_v12, %v964_v10 }
  0x44   : > { %651 = vmatpush.bf16.msra.mxu0 %v917_v57  ;;  %v1200_v16 = vld [vmem:[%s1485_s3 + $0x194] sm:$0xf0]  ;;  %v956_v20 = vld [vmem:[%s1485_s3 + $0x80] sm:$0xf]  ;;  %v1029_v22 = vor.u32 %v1184_v14, %v1028_v13  ;;  %v1166_v23 = vld [vmem:[%s1485_s3 + $0x84] sm:$0xf0]  ;;  %v893_v33 = vor.u32 %v1150_v19, %v892_v18 }
  0x45   : > { %664 = vmatpush.bf16.msra.mxu1 %v981_v58  ;;  %v1020_v24 = vld [vmem:[%s1485_s3 + $0x100] sm:$0xf]  ;;  %v1182_v25 = vld [vmem:[%s1485_s3 + $0x104] sm:$0xf0]  ;;  %v1093_v26 = vor.u32 %v1200_v16, %v1092_v15  ;;  %v1163_v29 = vld [vmem:[%s1485_s3 + $0x74] sm:$0xf]  ;;  %v957_v38 = vor.u32 %v1166_v23, %v956_v20 }
  0x46   : > { %677 = vmatpush.bf16.msra.mxu2 %v1045_v59  ;;  %v1084_v27 = vld [vmem:[%s1485_s3 + $0x180] sm:$0xf]  ;;  %v1198_v28 = vld [vmem:[%s1485_s3 + $0x184] sm:$0xf0]  ;;  %v950_v30 = vld [vmem:[%s1485_s3 + $0x78] sm:$0xf0]  ;;  %v1021_v39 = vor.u32 %v1182_v25, %v1020_v24 }
  0x47   : > { %690 = vmatpush.bf16.msra.mxu3 %v1109_v63  ;;  %v1179_v31 = vld [vmem:[%s1485_s3 + $0xf4] sm:$0xf]  ;;  %v248_v32 = vld [vmem:[%s1496_s7 + $0x8] sm:$0xff]  ;;  %v1014_v34 = vld [vmem:[%s1485_s3 + $0xf8] sm:$0xf0]  ;;  %v1085_v43 = vor.u32 %v1198_v28, %v1084_v27  ;;  %v953_v44 = vor.u32 %v1163_v29, %v950_v30 }
  0x48   : > { %652 = vmatpush.bf16.msra.mxu0 %v909_v5  ;;  %v1195_v35 = vld [vmem:[%s1485_s3 + $0x174] sm:$0xf]  ;;  %v1078_v36 = vld [vmem:[%s1485_s3 + $0x178] sm:$0xf0]  ;;  %v317_v37 = vunpack.c.l.b16 %v248_v32  ;;  %v318_v42 = vunpack.c.h.b16 %v248_v32  ;;  %v247_v45 = vld [vmem:[%s1496_s7] sm:$0xff]  ;;  %v1017_v46 = vor.u32 %v1179_v31, %v1014_v34 }
  0x49   : > { %665 = vmatpush.bf16.msra.mxu1 %v973_v6  ;;  %v1211_v40 = vld [vmem:[%s1485_s3 + $0x1f4] sm:$0xf]  ;;  %v1142_v41 = vld [vmem:[%s1485_s3 + $0x1f8] sm:$0xf0]  ;;  %v1081_v47 = vor.u32 %v1195_v35, %v1078_v36  ;;  %v1161_v48 = vld [vmem:[%s1485_s3 + $0x64] sm:$0xf]  ;;  %v315_v51 = vunpack.c.l.b16 %v247_v45  ;;  %v316_v52 = vunpack.c.h.b16 %v247_v45 }
  0x4a   : > { %678 = vmatpush.bf16.msra.mxu2 %v1037_v7  ;;  %v942_v49 = vld [vmem:[%s1485_s3 + $0x68] sm:$0xf0]  ;;  %v1177_v50 = vld [vmem:[%s1485_s3 + $0xe4] sm:$0xf]  ;;  %v1145_v53 = vor.u32 %v1211_v40, %v1142_v41  ;;  %v1586_v57 = vpack.c.b16 %v317_v37, %v317_v37  ;;  %v1590_v60 = vpack.c.b16 %v318_v42, %v318_v42  ;;  %v1159_v2 = vld [vmem:[%s1485_s3 + $0x54] sm:$0xf] }
  0x4b   : > { %691 = vmatpush.bf16.msra.mxu3 %v1101_v11  ;;  %v1006_v54 = vld [vmem:[%s1485_s3 + $0xe8] sm:$0xf0]  ;;  %v1193_v55 = vld [vmem:[%s1485_s3 + $0x164] sm:$0xf]  ;;  %v1592_v61 = vpack.c.b16 %v315_v51, %v315_v51  ;;  %v945_v62 = vor.u32 %v1161_v48, %v942_v49  ;;  %v1594_v63 = vpack.c.b16 %v316_v52, %v316_v52  ;;  %v934_v3 = vld [vmem:[%s1485_s3 + $0x58] sm:$0xf0] }
  0x4c   : > { %653 = vmatpush.bf16.msra.mxu0 %v901_v17  ;;  %v1070_v56 = vld [vmem:[%s1485_s3 + $0x168] sm:$0xf0]  ;;  %v1209_v58 = vld [vmem:[%s1485_s3 + $0x1e4] sm:$0xf]  ;;  %v1009_v0 = vor.u32 %v1177_v50, %v1006_v54  ;;  %v1175_v4 = vld [vmem:[%s1485_s3 + $0xd4] sm:$0xf]  ;;  %v937_v11 = vor.u32 %v1159_v2, %v934_v3 }
  0x4d   : > { %666 = vmatpush.bf16.msra.mxu1 %v965_v21  ;;  %v1134_v59 = vld [vmem:[%s1485_s3 + $0x1e8] sm:$0xf0]  ;;  %v1073_v1 = vor.u32 %v1193_v55, %v1070_v56  ;;  %v998_v6 = vld [vmem:[%s1485_s3 + $0xd8] sm:$0xf0]  ;;  %v1191_v7 = vld [vmem:[%s1485_s3 + $0x154] sm:$0xf] }
  0x4e   : > { %679 = vmatpush.bf16.msra.mxu2 %v1029_v22  ;;  %v1137_v5 = vor.u32 %v1209_v58, %v1134_v59  ;;  %v1062_v8 = vld [vmem:[%s1485_s3 + $0x158] sm:$0xf0]  ;;  %v1207_v9 = vld [vmem:[%s1485_s3 + $0x1d4] sm:$0xf]  ;;  %v1001_v12 = vor.u32 %v1175_v4, %v998_v6  ;;  %v1157_v14 = vld [vmem:[%s1485_s3 + $0x44] sm:$0xf] }
  0x4f   : > { %692 = vmatpush.bf16.msra.mxu3 %v1093_v26  ;;  %v1126_v10 = vld [vmem:[%s1485_s3 + $0x1d8] sm:$0xf0]  ;;  %v1065_v13 = vor.u32 %v1191_v7, %v1062_v8  ;;  %v926_v15 = vld [vmem:[%s1485_s3 + $0x48] sm:$0xf0]  ;;  %v1173_v16 = vld [vmem:[%s1485_s3 + $0xc4] sm:$0xf] }
  0x50   : > { %654 = vmatpush.bf16.msra.mxu0 %v893_v33  ;;  %v1129_v17 = vor.u32 %v1207_v9, %v1126_v10  ;;  %v990_v18 = vld [vmem:[%s1485_s3 + $0xc8] sm:$0xf0]  ;;  %v1189_v19 = vld [vmem:[%s1485_s3 + $0x144] sm:$0xf]  ;;  %v929_v23 = vor.u32 %v1157_v14, %v926_v15  ;;  %v1155_v26 = vld [vmem:[%s1485_s3 + $0x34] sm:$0xf] }
  0x51   : > { %667 = vmatpush.bf16.msra.mxu1 %v957_v38  ;;  %v1054_v20 = vld [vmem:[%s1485_s3 + $0x148] sm:$0xf0]  ;;  %v1205_v21 = vld [vmem:[%s1485_s3 + $0x1c4] sm:$0xf]  ;;  %v993_v24 = vor.u32 %v1173_v16, %v990_v18  ;;  %v918_v27 = vld [vmem:[%s1485_s3 + $0x38] sm:$0xf0] }
  0x52   : > { %680 = vmatpush.bf16.msra.mxu2 %v1021_v39  ;;  %v1118_v22 = vld [vmem:[%s1485_s3 + $0x1c8] sm:$0xf0]  ;;  %v1057_v25 = vor.u32 %v1189_v19, %v1054_v20  ;;  %v1171_v28 = vld [vmem:[%s1485_s3 + $0xb4] sm:$0xf]  ;;  %v982_v30 = vld [vmem:[%s1485_s3 + $0xb8] sm:$0xf0]  ;;  %v921_v35 = vor.u32 %v1155_v26, %v918_v27 }
  0x53   : > { %693 = vmatpush.bf16.msra.mxu3 %v1085_v43  ;;  %655 = vmatmul.bf16.vlgmr.msra.gmra.mxu0 %v1592_v61  ;;  %v1121_v29 = vor.u32 %v1205_v21, %v1118_v22  ;;  %v1187_v31 = vld [vmem:[%s1485_s3 + $0x134] sm:$0xf]  ;;  %v1046_v32 = vld [vmem:[%s1485_s3 + $0x138] sm:$0xf0]  ;;  %v985_v36 = vor.u32 %v1171_v28, %v982_v30  ;;  %v1153_v38 = vld [vmem:[%s1485_s3 + $0x24] sm:$0xf] }
  0x54   : > { %699 = vmatpush.bf16.msrb.mxu0 %v953_v44  ;;  %668 = vmatmul.bf16.vlgmr.msra.gmra.mxu1 %v1594_v63  ;;  %v1203_v33 = vld [vmem:[%s1485_s3 + $0x1b4] sm:$0xf]  ;;  %v1110_v34 = vld [vmem:[%s1485_s3 + $0x1b8] sm:$0xf0]  ;;  %v1049_v37 = vor.u32 %v1187_v31, %v1046_v32  ;;  %v910_v39 = vld [vmem:[%s1485_s3 + $0x28] sm:$0xf0] }
  0x55   : > { %712 = vmatpush.bf16.msrb.mxu1 %v1017_v46  ;;  %681 = vmatmul.bf16.vlgmr.msra.gmra.mxu2 %v1586_v57  ;;  %v1169_v40 = vld [vmem:[%s1485_s3 + $0xa4] sm:$0xf]  ;;  %v1113_v41 = vor.u32 %v1203_v33, %v1110_v34  ;;  %v974_v42 = vld [vmem:[%s1485_s3 + $0xa8] sm:$0xf0]  ;;  %v1151_v50 = vld [vmem:[%s1485_s3 + $0x14] sm:$0xf] }
  0x56   : > { %725 = vmatpush.bf16.msrb.mxu2 %v1081_v47  ;;  %694 = vmatmul.bf16.vlgmr.msra.gmra.mxu3 %v1590_v60  ;;  %v1185_v43 = vld [vmem:[%s1485_s3 + $0x124] sm:$0xf]  ;;  %v1038_v44 = vld [vmem:[%s1485_s3 + $0x128] sm:$0xf0]  ;;  %v913_v47 = vor.u32 %v1153_v38, %v910_v39  ;;  %v977_v48 = vor.u32 %v1169_v40, %v974_v42  ;;  %v902_v51 = vld [vmem:[%s1485_s3 + $0x18] sm:$0xf0] }
  0x57   : > { %738 = vmatpush.bf16.msrb.mxu3 %v1145_v53  ;;  %v1201_v45 = vld [vmem:[%s1485_s3 + $0x1a4] sm:$0xf]  ;;  %v1102_v46 = vld [vmem:[%s1485_s3 + $0x1a8] sm:$0xf0]  ;;  %v1041_v49 = vor.u32 %v1185_v43, %v1038_v44  ;;  %v1167_v52 = vld [vmem:[%s1485_s3 + $0x94] sm:$0xf] }
  0x58   : > { %700 = vmatpush.bf16.msrb.mxu0 %v945_v62  ;;  %v1105_v53 = vor.u32 %v1201_v45, %v1102_v46  ;;  %v966_v54 = vld [vmem:[%s1485_s3 + $0x98] sm:$0xf0]  ;;  %v1183_v55 = vld [vmem:[%s1485_s3 + $0x114] sm:$0xf]  ;;  %v905_v62 = vor.u32 %v1151_v50, %v902_v51  ;;  %v1149_v2 = vld [vmem:[%s1485_s3 + $0x4] sm:$0xf] }
  0x59   : > { %713 = vmatpush.bf16.msrb.mxu1 %v1009_v0  ;;  %v1030_v56 = vld [vmem:[%s1485_s3 + $0x118] sm:$0xf0]  ;;  %v1199_v58 = vld [vmem:[%s1485_s3 + $0x194] sm:$0xf]  ;;  %v969_v0 = vor.u32 %v1167_v52, %v966_v54  ;;  %v894_v3 = vld [vmem:[%s1485_s3 + $0x8] sm:$0xf0] }
  0x5a   : > { %726 = vmatpush.bf16.msrb.mxu2 %v1073_v1  ;;  %v1094_v59 = vld [vmem:[%s1485_s3 + $0x198] sm:$0xf0]  ;;  %v1033_v1 = vor.u32 %v1183_v55, %v1030_v56  ;;  %v1165_v4 = vld [vmem:[%s1485_s3 + $0x84] sm:$0xf]  ;;  %v958_v6 = vld [vmem:[%s1485_s3 + $0x88] sm:$0xf0] }
  0x5b   : > { %739 = vmatpush.bf16.msrb.mxu3 %v1137_v5  ;;  %v1097_v5 = vor.u32 %v1199_v58, %v1094_v59  ;;  %v1181_v7 = vld [vmem:[%s1485_s3 + $0x104] sm:$0xf]  ;;  %v1022_v8 = vld [vmem:[%s1485_s3 + $0x108] sm:$0xf0] }
  0x5c   : > { %701 = vmatpush.bf16.msrb.mxu0 %v937_v11  ;;  %v1197_v9 = vld [vmem:[%s1485_s3 + $0x184] sm:$0xf]  ;;  %v1086_v10 = vld [vmem:[%s1485_s3 + $0x188] sm:$0xf0]  ;;  %v897_v11 = vor.u32 %v1149_v2, %v894_v3 }
  0x5d   : > { %714 = vmatpush.bf16.msrb.mxu1 %v1001_v12  ;;  %v961_v12 = vor.u32 %v1165_v4, %v958_v6  ;;  %v1089_v14 = vor.u32 %v1197_v9, %v1086_v10  ;;  %v245_v21 = vld [vmem:[%s1501_s23] sm:$0xff] }
  0x5e   : > { %727 = vmatpush.bf16.msrb.mxu2 %v1065_v13  ;;  %v1025_v13 = vor.u32 %v1181_v7, %v1022_v8 }
  0x5f   : > { %740 = vmatpush.bf16.msrb.mxu3 %v1129_v17 }
  0x60   : > { %702 = vmatpush.bf16.msrb.mxu0 %v929_v23 }
  0x61   : > { %715 = vmatpush.bf16.msrb.mxu1 %v993_v24 }
  0x62   : > { %728 = vmatpush.bf16.msrb.mxu2 %v1057_v25  ;;  %v246_v25 = vld [vmem:[%s1501_s23 + $0x8] sm:$0xff] }
  0x63   : > { %741 = vmatpush.bf16.msrb.mxu3 %v1121_v29 }
  0x64   : > { %703 = vmatpush.bf16.msrb.mxu0 %v921_v35 }
  0x65   : > { %716 = vmatpush.bf16.msrb.mxu1 %v985_v36 }
  0x66   : > { %729 = vmatpush.bf16.msrb.mxu2 %v1049_v37 }
  0x67   : > { %742 = vmatpush.bf16.msrb.mxu3 %v1113_v41 }
  0x68   : > { %704 = vmatpush.bf16.msrb.mxu0 %v913_v47 }
  0x69   : > { %717 = vmatpush.bf16.msrb.mxu1 %v977_v48 }
  0x6a   : > { %730 = vmatpush.bf16.msrb.mxu2 %v1041_v49 }
  0x6b   : > { %743 = vmatpush.bf16.msrb.mxu3 %v1105_v53 }
  0x6c   : > { %705 = vmatpush.bf16.msrb.mxu0 %v905_v62 }
  0x6d   : > { %718 = vmatpush.bf16.msrb.mxu1 %v969_v0 }
  0x6e   : > { %731 = vmatpush.bf16.msrb.mxu2 %v1033_v1 }
  0x6f   : > { %744 = vmatpush.bf16.msrb.mxu3 %v1097_v5 }
  0x70   : > { %706 = vmatpush.bf16.msrb.mxu0 %v897_v11 }
  0x71   : > { %719 = vmatpush.bf16.msrb.mxu1 %v961_v12 }
  0x72   : > { %732 = vmatpush.bf16.msrb.mxu2 %v1025_v13 }
  0x73   : > { %745 = vmatpush.bf16.msrb.mxu3 %v1089_v14  ;;  %707 = vmatmul.bf16.vlgmr.msrb.gmra.mxu0 %v1592_v61 }
  0x74   : > { %720 = vmatmul.bf16.vlgmr.msrb.gmra.mxu1 %v1594_v63 }
  0x75   : > { %733 = vmatmul.bf16.vlgmr.msrb.gmra.mxu2 %v1586_v57 }
  0x76   : > { %746 = vmatmul.bf16.vlgmr.msrb.gmra.mxu3 %v1590_v60 }
  0xd0   : > { %v656_v15 = vpop.f32.mrf.mxu0 }
  0xd1   : > { %v669_v16 = vpop.f32.mrf.mxu1 }
  0xd2   : > { %v670_v17 = vadd.f32 %v669_v16, %v656_v15 }
  0xd8   : > { %v682_v18 = vpop.f32.mrf.mxu2  ;;  %v658_v23 = vpop.f32.mrf.mxu0 }
  0xd9   : > { %v683_v19 = vadd.f32 %v682_v18, %v670_v17  ;;  %v695_v20 = vpop.f32.mrf.mxu3  ;;  %v671_v24 = vpop.f32.mrf.mxu1 }
  0xdb   : > { %v696_v22 = vadd.f32 %v695_v20, %v683_v19 }
  0xdd   : > { %v751_v61 = vadd.f32 %v696_v22, %v245_v21 }
  0xdf   : > { %753 = vst [vmem:[%s1501_s23] sm:$0xff] %v751_v61 }
  0xe0   : > { %v684_v26 = vpop.f32.mrf.mxu2 }
  0xe1   : > { %v697_v63 = vpop.f32.mrf.mxu3 }
  0xf0   : > { %v708_v27 = vpop.f32.mrf.mxu0 }
  0xf1   : > { %v721_v57 = vpop.f32.mrf.mxu1 }
  0xf2   : > { %v722_v28 = vadd.f32 %v721_v57, %v708_v27 }
  0xf8   : > { %v734_v60 = vpop.f32.mrf.mxu2  ;;  %v710_v31 = vpop.f32.mrf.mxu0 }
  0xf9   : > { %v735_v29 = vadd.f32 %v734_v60, %v722_v28  ;;  %v747_v30 = vpop.f32.mrf.mxu3  ;;  %v723_v32 = vpop.f32.mrf.mxu1 }
  0xfb   : > { %v748_v33 = vadd.f32 %v747_v30, %v735_v29 }
  0xfd   : > { %v752_v34 = vadd.f32 %v748_v33, %v246_v25 }
  0xff   : > { %754 = vst [vmem:[%s1501_s23 + $0x8] sm:$0xff] %v752_v34 }
 0x100   : > { %v736_v35 = vpop.f32.mrf.mxu2 }
 0x101   : > { %v749_v36 = vpop.f32.mrf.mxu3 }
 0x102 PF: > { %s15_s16 = sadd.s32 1, %s1384_s16   ;;  %s1685_s9 = smov %s1360_s10 }
 0x103   : > { %p12_p3 = scmp.ge.s32.totalorder %s15_s16, 20   ;;  %s1686_s10 = smov %s1364_s11 }
 0x104   : > { %s1687_s11 = smov %s1472_s29  ;;  %s1688_s12 = smov %s1376_s14 }
 0x105   : > { %s1689_s13 = smov %s1380_s15  ;;  %s1690_s14 = smov %s1693_s18 }
 0x106   : > { %s1691_s15 = smov %s1697_s19  ;;  %14 = sbr.rel (!%p12_p3) target bundleno = 5 (0x5), region = 75 }
 0x10b   :  { %785 = vsyncpa [#allocation3], 1 }
 0x10c   :  { %787 = vsyncpa [#allocation3 + $0x1], 1 }

// kernel: forward.56
= control target key start
LH: loop header
LB: loop body
LE: loop exit
PB: predicated region body
PF: predicated region fallthrough
CT: control target
= control target key end

     0   :  { %s160_s0 = inlined_call_operand.vmem [shape: f32[8,512], index: 0, kind: input, shape index: {}]   ;;  %s161_s1 = inlined_call_operand.vmem [shape: f32[8,512], index: 1, kind: input, shape index: {}]   ;;  %s162_s2 = inlined_call_operand.vmem [shape: f32[8,512], index: 2, kind: input, shape index: {}]   ;;  %s163_s3 = inlined_call_operand.vmem [shape: f32[8,512], index: 3, kind: input, shape index: {}]   ;;  %s164_s4 = inlined_call_operand.vmem [shape: bf16[8,512], index: 4, kind: output, shape index: {}]  }
   0x1   :  { %v17_v0 = vld [vmem:[%s162_s2] sm:$0xff]  ;;  %v18_v1 = vld [vmem:[%s162_s2 + $0x8] sm:$0xff]  ;;  %v19_v18 = vld [vmem:[%s162_s2 + $0x10] sm:$0xff] }
   0x2   :  { %v21_v2 = vld [vmem:[%s163_s3] sm:$0xff]  ;;  %v22_v3 = vld [vmem:[%s163_s3 + $0x8] sm:$0xff]  ;;  %v33_v6 = vperm.slane %v17_v0, 0  ;;  %v34_v7 = vperm.slane %v18_v1, 0  ;;  %v41_v8 = vperm.slane %v17_v0, 1  ;;  %v42_v11 = vperm.slane %v18_v1, 1 }
   0x3   :  { %v25_v4 = vld [vmem:[%s160_s0] sm:$0xff]  ;;  %v26_v5 = vld [vmem:[%s160_s0 + $0x8] sm:$0xff]  ;;  %v49_v12 = vperm.slane %v21_v2, 0  ;;  %v50_v13 = vperm.slane %v22_v3, 0  ;;  %v61_v16 = vperm.slane %v21_v2, 1  ;;  %v62_v17 = vperm.slane %v22_v3, 1 }
   0x4   :  { %v29_v9 = vld [vmem:[%s161_s1] sm:$0xff]  ;;  %v30_v10 = vld [vmem:[%s161_s1 + $0x8] sm:$0xff]  ;;  %v37_v14 = vmul.f32 %v33_v6, %v25_v4  ;;  %v38_v15 = vmul.f32 %v34_v7, %v26_v5  ;;  %v20_v19 = vld [vmem:[%s162_s2 + $0x18] sm:$0xff]  ;;  %v35_v26 = vperm.slane %v19_v18, 0  ;;  %v43_v32 = vperm.slane %v19_v18, 1 }
   0x5   :  { %v23_v20 = vld [vmem:[%s163_s3 + $0x10] sm:$0xff]  ;;  %v53_v21 = vmul.f32 %v49_v12, %v29_v9  ;;  %v54_v22 = vmul.f32 %v50_v13, %v30_v10  ;;  %v24_v23 = vld [vmem:[%s163_s3 + $0x18] sm:$0xff]  ;;  %v36_v27 = vperm.slane %v20_v19, 0  ;;  %v44_v33 = vperm.slane %v20_v19, 1 }
   0x6   :  { %v27_v24 = vld [vmem:[%s160_s0 + $0x10] sm:$0xff]  ;;  %v28_v25 = vld [vmem:[%s160_s0 + $0x18] sm:$0xff]  ;;  %v45_v28 = vadd.f32 %v41_v8, %v37_v14  ;;  %v46_v29 = vadd.f32 %v42_v11, %v38_v15  ;;  %v51_v36 = vperm.slane %v23_v20, 0  ;;  %v52_v37 = vperm.slane %v24_v23, 0 }
   0x7   :  { %v31_v30 = vld [vmem:[%s161_s1 + $0x10] sm:$0xff]  ;;  %v32_v31 = vld [vmem:[%s161_s1 + $0x18] sm:$0xff]  ;;  %v39_v34 = vmul.f32 %v35_v26, %v27_v24  ;;  %v40_v35 = vmul.f32 %v36_v27, %v28_v25  ;;  %v63_v40 = vperm.slane %v23_v20, 1  ;;  %v64_v41 = vperm.slane %v24_v23, 1 }
   0x8   :  { %v57_v38 = vadd.f32 %v53_v21, %v45_v28  ;;  %v58_v39 = vadd.f32 %v54_v22, %v46_v29  ;;  %v55_v44 = vmul.f32 %v51_v36, %v31_v30  ;;  %v56_v45 = vmul.f32 %v52_v37, %v32_v31 }
   0x9   :  { %v47_v42 = vadd.f32 %v43_v32, %v39_v34  ;;  %v48_v43 = vadd.f32 %v44_v33, %v40_v35 }
   0xa   :  { %v65_v46 = vadd.f32 %v61_v16, %v57_v38  ;;  %v66_v47 = vadd.f32 %v62_v17, %v58_v39 }
   0xb   :  { %v59_v48 = vadd.f32 %v55_v44, %v47_v42  ;;  %v60_v49 = vadd.f32 %v56_v45, %v48_v43 }
   0xc   :  { %v69_v50 = vmax.f32 %v65_v46, 0.0  ;;  %v70_v51 = vmax.f32 %v66_v47, 0.0 }
   0xd   :  { %v67_v52 = vadd.f32 %v63_v40, %v59_v48  ;;  %v68_v53 = vadd.f32 %v64_v41, %v60_v49 }
   0xe   :  { %v73_v54 = vpack.c.bf16 %v70_v51, %v69_v50 }
   0xf   :  { %v71_v55 = vmax.f32 %v67_v52, 0.0  ;;  %v72_v56 = vmax.f32 %v68_v53, 0.0 }
  0x10   :  { %75 = vst [vmem:[%s164_s4] sm:$0xff] %v73_v54 }
  0x11   :  { %v74_v57 = vpack.c.bf16 %v72_v56, %v71_v55 }
  0x13   :  { %76 = vst [vmem:[%s164_s4 + $0x8] sm:$0xff] %v74_v57 }

</bundles_post_ra>
